<compile_context>
chip_gen: v5e
topology: v5e:2x2
jax: 0.10.0
libtpu: 0.0.40
codegen_flags: <defaults>
</compile_context>

<pallas_src>
import jax
import jax.numpy as jnp
from jax.experimental import pallas as pl
from jax.experimental.pallas import tpu as pltpu


# ------------------------------- fused kernel --------------------------------
def _net_kernel(x_ref,
                sel1_ref, sel2_ref,
                w1t_ref, b1_ref, s1_ref, t1_ref,
                w2t_ref, b2_ref, s2_ref, t2_ref,
                w3t_ref, b3_ref, s3_ref, t3_ref,
                w4t_ref, b4_ref, s4_ref, t4_ref,
                wct_ref, bc_ref,
                u1_ref, bf1_ref, wf2_ref, bf2_ref, wf3_ref, bf3_ref,
                o_ref,
                xpad1, xp2, xp3, xp4):
    f32 = jnp.float32
    bf16 = jnp.bfloat16

    # ---- zero only the padding halos (interiors are fully overwritten) ----
    xpad1[0:1, :] = jnp.zeros((1, 252), f32)
    xpad1[8:9, :] = jnp.zeros((1, 252), f32)
    xpad1[:, 0:1] = jnp.zeros((9, 1), f32)
    xpad1[:, 251:252] = jnp.zeros((9, 1), f32)

    zc32 = jnp.zeros((32, 1), bf16)
    zc64 = jnp.zeros((64, 1), bf16)
    xp2[0, :, :] = jnp.zeros((32, 126), bf16)
    xp2[3, :, :] = jnp.zeros((32, 126), bf16)
    xp3[0, :, :] = jnp.zeros((64, 126), bf16)
    xp3[3, :, :] = jnp.zeros((64, 126), bf16)
    for r in (1, 2):
        xp2[r, :, 0:1] = zc32
        xp2[r, :, 125:126] = zc32
        xp3[r, :, 0:1] = zc64
        xp3[r, :, 125:126] = zc64
    xp4[:, 0:1] = zc64
    xp4[:, 63:64] = zc64

    # interior of the (zero-padded) conv1 input
    xpad1[1:8, 1:251] = x_ref[0, 0]

    # per-channel vectors (C, 1) f32 -> broadcast along lanes (W)
    b1 = b1_ref[...]; s1 = s1_ref[...]; t1 = t1_ref[...]
    b2 = b2_ref[...]; s2 = s2_ref[...]; t2 = t2_ref[...]
    b3 = b3_ref[...]; s3 = s3_ref[...]; t3 = t3_ref[...]
    b4 = b4_ref[...]; s4 = s4_ref[...]; t4 = t4_ref[...]
    bc = bc_ref[...]
    bf1 = bf1_ref[...]; bf2 = bf2_ref[...]; bf3 = bf3_ref[...]

    sel1 = sel1_ref[...]          # (247, 124) bf16, even-column selector
    sel2 = sel2_ref[...]          # (123, 62)  bf16

    # ---- conv1 (1->32, 5x5, pad 1) + maxpool 2x2 + ReLU + BN1 ----
    w1t = w1t_ref[...]            # (32, 25) bf16, taps ordered kw*5+kh
    ys = []
    for ho in range(4):           # conv1 row 4 is dropped by the pool
        p = jnp.concatenate(
            [xpad1[ho:ho + 5, kw:kw + 248] for kw in range(5)], axis=0)  # (25, 248) f32
        ys.append(jnp.dot(w1t, p.astype(bf16), preferred_element_type=f32))  # (32, 248)
    for hp in range(2):
        mh = jnp.maximum(ys[2 * hp], ys[2 * hp + 1])                     # pool over H
        m = jnp.maximum(mh[:, 0:247], mh[:, 1:248])                      # pairwise max over W
        pooled = jnp.dot(m.astype(bf16), sel1, preferred_element_type=f32)  # (32, 124)
        z = jnp.maximum(pooled + b1, 0.0) * s1 + t1                      # ReLU then BN1
        xp2[1 + hp, :, 1:125] = z.astype(bf16)

    # ---- conv2 (32->64, 3x3, pad 1) + ReLU + BN2 : per-kh accumulation ----
    for ho in range(2):
        acc = b2 + jnp.dot(
            w2t_ref[0],
            jnp.concatenate([xp2[ho, :, kw:kw + 124] for kw in range(3)], axis=0),
            preferred_element_type=f32)                                  # (64, 124)
        for kh in (1, 2):
            p = jnp.concatenate(
                [xp2[ho + kh, :, kw:kw + 124] for kw in range(3)], axis=0)  # (96, 124)
            acc = acc + jnp.dot(w2t_ref[kh], p, preferred_element_type=f32)
        z = jnp.maximum(acc, 0.0) * s2 + t2
        xp3[1 + ho, :, 1:125] = z.astype(bf16)

    # ---- conv3 (64->64, 3x3, pad 1) + maxpool 2x2 + ReLU + BN3 ----
    ys3 = []
    for ho in range(2):
        acc = b3 + jnp.dot(
            w3t_ref[0],
            jnp.concatenate([xp3[ho, :, kw:kw + 124] for kw in range(3)], axis=0),
            preferred_element_type=f32)                                  # (64, 124)
        for kh in (1, 2):
            p = jnp.concatenate(
                [xp3[ho + kh, :, kw:kw + 124] for kw in range(3)], axis=0)  # (192, 124)
            acc = acc + jnp.dot(w3t_ref[kh], p, preferred_element_type=f32)
        ys3.append(acc)
    mh3 = jnp.maximum(ys3[0], ys3[1])                                    # pool over H
    m3 = jnp.maximum(mh3[:, 0:123], mh3[:, 1:124])
    pooled3 = jnp.dot(m3.astype(bf16), sel2, preferred_element_type=f32)  # (64, 62)
    z3 = jnp.maximum(pooled3, 0.0) * s3 + t3
    xp4[:, 1:63] = z3.astype(bf16)

    # ---- conv4 (64->128, 3x3 pad 1; H=1 so only kh=1 taps) + ReLU + BN4,
    #      classifier 1x1 conv, flatten folded into fc1, fc1/fc2/fc3 ----
    p4 = jnp.concatenate([xp4[:, kw:kw + 62] for kw in range(3)], axis=0)   # (192, 62)
    y4 = jnp.dot(w4t_ref[...], p4, preferred_element_type=f32)              # (128, 62)
    a4 = jnp.maximum(y4 + b4, 0.0) * s4 + t4
    y5 = jnp.dot(wct_ref[...], a4.astype(bf16), preferred_element_type=f32) + bc  # (10, 62)
    y5b = y5.astype(bf16)

    # fc1 over torch-order flattened 620 features (index c*62+w), no transpose:
    # u1[c] has shape (62, 512) with u1[c][w, j] = fc1_w[j, c*62+w].
    acc1 = bf1                                                               # (1, 512)
    for c in range(10):
        acc1 = acc1 + jnp.dot(y5b[c:c + 1, :], u1_ref[c], preferred_element_type=f32)
    h1 = jnp.maximum(acc1, 0.0)

    h2 = jnp.maximum(
        jnp.dot(h1.astype(bf16), wf2_ref[...], preferred_element_type=f32) + bf2, 0.0)
    out = jnp.dot(h2.astype(bf16), wf3_ref[...], preferred_element_type=f32) + bf3  # (1, 3)
    o_ref[0, :, :] = out


# ------------------------------- wrapper --------------------------------------
def _const_spec(arr):
    zeros = (0,) * arr.ndim
    return pl.BlockSpec(arr.shape, lambda n: zeros)


def net_forward(prep, x_nchw):
    # x_nchw: (N, 1, 7, 250) float32 -> logits (N, 3) float32
    N = x_nchw.shape[0]

    keys = ["sel1", "sel2",
            "w1t", "b1", "s1", "t1",
            "w2t", "b2", "s2", "t2",
            "w3t", "b3", "s3", "t3",
            "w4t", "b4", "s4", "t4",
            "wct", "bc",
            "u1", "bf1", "wf2", "bf2", "wf3", "bf3"]
    weights = [prep[k] for k in keys]

    in_specs = [pl.BlockSpec((1, 1, 7, 250), lambda n: (n, 0, 0, 0))]
    in_specs += [_const_spec(w) for w in weights]

    out = pl.pallas_call(
        _net_kernel,
        out_shape=jax.ShapeDtypeStruct((N, 1, 3), jnp.float32),
        grid_spec=pltpu.PrefetchScalarGridSpec(
            num_scalar_prefetch=0,
            grid=(N,),
            in_specs=in_specs,
            out_specs=pl.BlockSpec((1, 1, 3), lambda n: (n, 0, 0)),
            scratch_shapes=[
                pltpu.VMEM((9, 252), jnp.float32),        # padded conv1 input
                pltpu.VMEM((4, 32, 126), jnp.bfloat16),   # padded conv2 input (H,C,W)
                pltpu.VMEM((4, 64, 126), jnp.bfloat16),   # padded conv3 input
                pltpu.VMEM((64, 64), jnp.bfloat16),       # padded conv4 input (C,W)
            ]),
        compiler_params=pltpu.CompilerParams(
            dimension_semantics=("parallel",)),
    )(x_nchw, *weights)
    return out.reshape(N, 3)


# ------------------------------ parameters ------------------------------------
def init_params(key):
    """Torch-layout parameters: conv (Cout,Cin,KH,KW), linear (out,in)."""
    ks = jax.random.split(key, 20)

    def nrm(k, shape, scale):
        return (scale * jax.random.normal(k, shape)).astype(jnp.float32)

    def bn(k, c):
        k1, k2 = jax.random.split(k)
        gamma = (1.0 + 0.1 * jax.random.normal(k1, (c,))).astype(jnp.float32)
        beta = (0.1 * jax.random.normal(k2, (c,))).astype(jnp.float32)
        mean = jnp.zeros((c,), jnp.float32)   # eval-mode running stats
        var = jnp.ones((c,), jnp.float32)
        return (gamma, beta, mean, var)

    p = {}
    p["conv1_w"] = nrm(ks[0], (32, 1, 5, 5), 0.10);   p["conv1_b"] = nrm(ks[1], (32,), 0.1)
    p["conv2_w"] = nrm(ks[2], (64, 32, 3, 3), 0.05);  p["conv2_b"] = nrm(ks[3], (64,), 0.1)
    p["conv3_w"] = nrm(ks[4], (64, 64, 3, 3), 0.05);  p["conv3_b"] = nrm(ks[5], (64,), 0.1)
    p["conv4_w"] = nrm(ks[6], (128, 64, 3, 3), 0.05); p["conv4_b"] = nrm(ks[7], (128,), 0.1)
    p["bn1"] = bn(ks[8], 32)
    p["bn2"] = bn(ks[9], 64)
    p["bn3"] = bn(ks[10], 64)
    p["bn4"] = bn(ks[11], 128)
    p["cls_w"] = nrm(ks[12], (10, 128, 1, 1), 0.05);  p["cls_b"] = nrm(ks[13], (10,), 0.1)
    p["fc1_w"] = nrm(ks[14], (512, 620), 0.02);       p["fc1_b"] = nrm(ks[15], (512,), 0.1)
    p["fc2_w"] = nrm(ks[16], (512, 512), 0.02);       p["fc2_b"] = nrm(ks[17], (512,), 0.1)
    p["fc3_w"] = nrm(ks[18], (3, 512), 0.02);         p["fc3_b"] = nrm(ks[19], (3,), 0.1)
    return p


def prepare_params(p, eps=1e-5):
    """One-time re-layout of torch-style weights into kernel-ready (bf16) form."""
    bf16 = jnp.bfloat16
    f32 = jnp.float32

    def bn_scale_shift(bn, c):
        gamma, beta, mean, var = bn
        scale = gamma / jnp.sqrt(var + eps)
        shift = beta - mean * scale
        return scale.reshape(c, 1).astype(f32), shift.reshape(c, 1).astype(f32)

    s1, t1 = bn_scale_shift(p["bn1"], 32)
    s2, t2 = bn_scale_shift(p["bn2"], 64)
    s3, t3 = bn_scale_shift(p["bn3"], 64)
    s4, t4 = bn_scale_shift(p["bn4"], 128)

    # conv1 taps ordered kw*5+kh (matches the 5-slab im2col in the kernel)
    w1t = p["conv1_w"].transpose(0, 1, 3, 2).reshape(32, 25).astype(bf16)
    # conv2/conv3: per-kh slabs (kh, Cout, kw*Cin) for the in-kernel accumulation
    w2t = p["conv2_w"].transpose(2, 0, 3, 1).reshape(3, 64, 96).astype(bf16)
    w3t = p["conv3_w"].transpose(2, 0, 3, 1).reshape(3, 64, 192).astype(bf16)
    # conv4 input has H=1 (pad 1): kh=0/2 taps multiply zeros -> keep only kh=1
    w4t = p["conv4_w"][:, :, 1, :].transpose(0, 2, 1).reshape(128, 192).astype(bf16)
    wct = p["cls_w"].reshape(10, 128).astype(bf16)

    # fc1: fold the torch NCHW flatten (index = c*62 + w) into the weight layout:
    # u1[c, w, j] = fc1_w[j, c*62 + w]
    u1 = p["fc1_w"].T.reshape(10, 62, 512).astype(bf16)

    # even-column selectors for the W-halving of MaxPool2d(2,2), precomputed on host
    sel1 = (jnp.arange(247)[:, None] == 2 * jnp.arange(124)[None, :]).astype(bf16)
    sel2 = (jnp.arange(123)[:, None] == 2 * jnp.arange(62)[None, :]).astype(bf16)

    return {
        "sel1": sel1, "sel2": sel2,
        "w1t": w1t, "b1": p["conv1_b"].reshape(32, 1), "s1": s1, "t1": t1,
        "w2t": w2t, "b2": p["conv2_b"].reshape(64, 1), "s2": s2, "t2": t2,
        "w3t": w3t, "b3": p["conv3_b"].reshape(64, 1), "s3": s3, "t3": t3,
        "w4t": w4t, "b4": p["conv4_b"].reshape(128, 1), "s4": s4, "t4": t4,
        "wct": wct, "bc": p["cls_b"].reshape(10, 1),
        "u1": u1, "bf1": p["fc1_b"].reshape(1, 512),
        "wf2": p["fc2_w"].T.astype(bf16), "bf2": p["fc2_b"].reshape(1, 512),
        "wf3": p["fc3_w"].T.astype(bf16), "bf3": p["fc3_b"].reshape(1, 3),
    }


if __name__ == "__main__":
    key = jax.random.PRNGKey(0)
    pkey, xkey = jax.random.split(key)
    params = init_params(pkey)
    prep = prepare_params(params)
    x = jax.random.normal(xkey, (2, 1, 7, 250), dtype=jnp.float32)

    fwd = jax.jit(net_forward)
    out = jax.block_until_ready(fwd(prep, x))

    assert out.shape == (2, 3), out.shape
    assert out.dtype == jnp.float32
    assert bool(jnp.all(jnp.isfinite(out)))
    print("KERNEL_OK")
</pallas_src>

<mosaic_0001>
module attributes {stable_mosaic.version = 11 : i64} {
  func.func @_net_kernel(%arg0: i32, %arg1: memref<1x1x7x250xf32, #tpu.memory_space<vmem>>, %arg2: memref<247x124xbf16, #tpu.memory_space<vmem>>, %arg3: memref<123x62xbf16, #tpu.memory_space<vmem>>, %arg4: memref<32x25xbf16, #tpu.memory_space<vmem>>, %arg5: memref<32x1xf32, #tpu.memory_space<vmem>>, %arg6: memref<32x1xf32, #tpu.memory_space<vmem>>, %arg7: memref<32x1xf32, #tpu.memory_space<vmem>>, %arg8: memref<3x64x96xbf16, #tpu.memory_space<vmem>>, %arg9: memref<64x1xf32, #tpu.memory_space<vmem>>, %arg10: memref<64x1xf32, #tpu.memory_space<vmem>>, %arg11: memref<64x1xf32, #tpu.memory_space<vmem>>, %arg12: memref<3x64x192xbf16, #tpu.memory_space<vmem>>, %arg13: memref<64x1xf32, #tpu.memory_space<vmem>>, %arg14: memref<64x1xf32, #tpu.memory_space<vmem>>, %arg15: memref<64x1xf32, #tpu.memory_space<vmem>>, %arg16: memref<128x192xbf16, #tpu.memory_space<vmem>>, %arg17: memref<128x1xf32, #tpu.memory_space<vmem>>, %arg18: memref<128x1xf32, #tpu.memory_space<vmem>>, %arg19: memref<128x1xf32, #tpu.memory_space<vmem>>, %arg20: memref<10x128xbf16, #tpu.memory_space<vmem>>, %arg21: memref<10x1xf32, #tpu.memory_space<vmem>>, %arg22: memref<10x62x512xbf16, #tpu.memory_space<vmem>>, %arg23: memref<1x512xf32, #tpu.memory_space<vmem>>, %arg24: memref<512x512xbf16, #tpu.memory_space<vmem>>, %arg25: memref<1x512xf32, #tpu.memory_space<vmem>>, %arg26: memref<512x3xbf16, #tpu.memory_space<vmem>>, %arg27: memref<1x3xf32, #tpu.memory_space<vmem>>, %arg28: memref<1x1x3xf32, #tpu.memory_space<vmem>>, %arg29: memref<9x252xf32, #tpu.memory_space<vmem>>, %arg30: memref<4x32x126xbf16, #tpu.memory_space<vmem>>, %arg31: memref<4x64x126xbf16, #tpu.memory_space<vmem>>, %arg32: memref<64x64xbf16, #tpu.memory_space<vmem>>) attributes {dimension_semantics = [#tpu.dimension_semantics<parallel>], iteration_bounds = array<i64: 2>, scalar_prefetch = 0 : i64, scratch_operands = 4 : i64, tpu.core_type = #tpu.core_type<tc>, window_params = [{transform_indices = @transform_0, window_bounds = array<i64: 1, 1, 7, 250>}, {pipeline_mode = #tpu.pipeline_mode<synchronous>, transform_indices = @transform_1, window_bounds = array<i64: 247, 124>}, {pipeline_mode = #tpu.pipeline_mode<synchronous>, transform_indices = @transform_2, window_bounds = array<i64: 123, 62>}, {pipeline_mode = #tpu.pipeline_mode<synchronous>, transform_indices = @transform_3, window_bounds = array<i64: 32, 25>}, {pipeline_mode = #tpu.pipeline_mode<synchronous>, transform_indices = @transform_4, window_bounds = array<i64: 32, 1>}, {pipeline_mode = #tpu.pipeline_mode<synchronous>, transform_indices = @transform_5, window_bounds = array<i64: 32, 1>}, {pipeline_mode = #tpu.pipeline_mode<synchronous>, transform_indices = @transform_6, window_bounds = array<i64: 32, 1>}, {pipeline_mode = #tpu.pipeline_mode<synchronous>, transform_indices = @transform_7, window_bounds = array<i64: 3, 64, 96>}, {pipeline_mode = #tpu.pipeline_mode<synchronous>, transform_indices = @transform_8, window_bounds = array<i64: 64, 1>}, {pipeline_mode = #tpu.pipeline_mode<synchronous>, transform_indices = @transform_9, window_bounds = array<i64: 64, 1>}, {pipeline_mode = #tpu.pipeline_mode<synchronous>, transform_indices = @transform_10, window_bounds = array<i64: 64, 1>}, {pipeline_mode = #tpu.pipeline_mode<synchronous>, transform_indices = @transform_11, window_bounds = array<i64: 3, 64, 192>}, {pipeline_mode = #tpu.pipeline_mode<synchronous>, transform_indices = @transform_12, window_bounds = array<i64: 64, 1>}, {pipeline_mode = #tpu.pipeline_mode<synchronous>, transform_indices = @transform_13, window_bounds = array<i64: 64, 1>}, {pipeline_mode = #tpu.pipeline_mode<synchronous>, transform_indices = @transform_14, window_bounds = array<i64: 64, 1>}, {pipeline_mode = #tpu.pipeline_mode<synchronous>, transform_indices = @transform_15, window_bounds = array<i64: 128, 192>}, {pipeline_mode = #tpu.pipeline_mode<synchronous>, transform_indices = @transform_16, window_bounds = array<i64: 128, 1>}, {pipeline_mode = #tpu.pipeline_mode<synchronous>, transform_indices = @transform_17, window_bounds = array<i64: 128, 1>}, {pipeline_mode = #tpu.pipeline_mode<synchronous>, transform_indices = @transform_18, window_bounds = array<i64: 128, 1>}, {pipeline_mode = #tpu.pipeline_mode<synchronous>, transform_indices = @transform_19, window_bounds = array<i64: 10, 128>}, {pipeline_mode = #tpu.pipeline_mode<synchronous>, transform_indices = @transform_20, window_bounds = array<i64: 10, 1>}, {pipeline_mode = #tpu.pipeline_mode<synchronous>, transform_indices = @transform_21, window_bounds = array<i64: 10, 62, 512>}, {pipeline_mode = #tpu.pipeline_mode<synchronous>, transform_indices = @transform_22, window_bounds = array<i64: 1, 512>}, {pipeline_mode = #tpu.pipeline_mode<synchronous>, transform_indices = @transform_23, window_bounds = array<i64: 512, 512>}, {pipeline_mode = #tpu.pipeline_mode<synchronous>, transform_indices = @transform_24, window_bounds = array<i64: 1, 512>}, {pipeline_mode = #tpu.pipeline_mode<synchronous>, transform_indices = @transform_25, window_bounds = array<i64: 512, 3>}, {pipeline_mode = #tpu.pipeline_mode<synchronous>, transform_indices = @transform_26, window_bounds = array<i64: 1, 3>}, {transform_indices = @transform_27, window_bounds = array<i64: 1, 1, 3>}]} {
    %cst = arith.constant 0.000000e+00 : f32
    %0 = vector.broadcast %cst : f32 to vector<1x252xf32>
    %c0 = arith.constant 0 : index
    %c0_0 = arith.constant 0 : index
    %1 = vector.load %arg29[%c0, %c0_0] : memref<9x252xf32, #tpu.memory_space<vmem>>, vector<1x252xf32>
    tpu.vector_store %arg29[%c0, %c0_0], %0 {strides = array<i32>} : memref<9x252xf32, #tpu.memory_space<vmem>>, vector<1x252xf32>,
    %cst_1 = arith.constant 0.000000e+00 : f32
    %2 = vector.broadcast %cst_1 : f32 to vector<1x252xf32>
    %c8 = arith.constant 8 : index
    %c0_2 = arith.constant 0 : index
    %3 = vector.load %arg29[%c8, %c0_2] : memref<9x252xf32, #tpu.memory_space<vmem>>, vector<1x252xf32>
    tpu.vector_store %arg29[%c8, %c0_2], %2 {strides = array<i32>} : memref<9x252xf32, #tpu.memory_space<vmem>>, vector<1x252xf32>,
    %cst_3 = arith.constant 0.000000e+00 : f32
    %4 = vector.broadcast %cst_3 : f32 to vector<9x1xf32>
    %c0_4 = arith.constant 0 : index
    %c0_5 = arith.constant 0 : index
    %5 = vector.load %arg29[%c0_4, %c0_5] : memref<9x252xf32, #tpu.memory_space<vmem>>, vector<9x1xf32>
    tpu.vector_store %arg29[%c0_4, %c0_5], %4 {strides = array<i32>} : memref<9x252xf32, #tpu.memory_space<vmem>>, vector<9x1xf32>,
    %cst_6 = arith.constant 0.000000e+00 : f32
    %6 = vector.broadcast %cst_6 : f32 to vector<9x1xf32>
    %c0_7 = arith.constant 0 : index
    %c251 = arith.constant 251 : index
    %7 = vector.load %arg29[%c0_7, %c251] : memref<9x252xf32, #tpu.memory_space<vmem>>, vector<9x1xf32>
    tpu.vector_store %arg29[%c0_7, %c251], %6 {strides = array<i32>} : memref<9x252xf32, #tpu.memory_space<vmem>>, vector<9x1xf32>,
    %cst_8 = arith.constant 0.000000e+00 : bf16
    %8 = vector.broadcast %cst_8 : bf16 to vector<32x1xbf16>
    %cst_9 = arith.constant 0.000000e+00 : bf16
    %9 = vector.broadcast %cst_9 : bf16 to vector<64x1xbf16>
    %cst_10 = arith.constant 0.000000e+00 : bf16
    %10 = vector.broadcast %cst_10 : bf16 to vector<32x126xbf16>
    %c0_11 = arith.constant 0 : index
    %c0_12 = arith.constant 0 : index
    %c0_13 = arith.constant 0 : index
    %11 = vector.load %arg30[%c0_11, %c0_12, %c0_13] : memref<4x32x126xbf16, #tpu.memory_space<vmem>>, vector<1x32x126xbf16>
    %12 = vector.shape_cast %11 : vector<1x32x126xbf16> to vector<32x126xbf16>
    %13 = vector.shape_cast %10 : vector<32x126xbf16> to vector<1x32x126xbf16>
    tpu.vector_store %arg30[%c0_11, %c0_12, %c0_13], %13 {strides = array<i32>} : memref<4x32x126xbf16, #tpu.memory_space<vmem>>, vector<1x32x126xbf16>,
    %cst_14 = arith.constant 0.000000e+00 : bf16
    %14 = vector.broadcast %cst_14 : bf16 to vector<32x126xbf16>
    %c3 = arith.constant 3 : index
    %c0_15 = arith.constant 0 : index
    %c0_16 = arith.constant 0 : index
    %15 = vector.load %arg30[%c3, %c0_15, %c0_16] : memref<4x32x126xbf16, #tpu.memory_space<vmem>>, vector<1x32x126xbf16>
    %16 = vector.shape_cast %15 : vector<1x32x126xbf16> to vector<32x126xbf16>
    %17 = vector.shape_cast %14 : vector<32x126xbf16> to vector<1x32x126xbf16>
    tpu.vector_store %arg30[%c3, %c0_15, %c0_16], %17 {strides = array<i32>} : memref<4x32x126xbf16, #tpu.memory_space<vmem>>, vector<1x32x126xbf16>,
    %cst_17 = arith.constant 0.000000e+00 : bf16
    %18 = vector.broadcast %cst_17 : bf16 to vector<64x126xbf16>
    %c0_18 = arith.constant 0 : index
    %c0_19 = arith.constant 0 : index
    %c0_20 = arith.constant 0 : index
    %19 = vector.load %arg31[%c0_18, %c0_19, %c0_20] : memref<4x64x126xbf16, #tpu.memory_space<vmem>>, vector<1x64x126xbf16>
    %20 = vector.shape_cast %19 : vector<1x64x126xbf16> to vector<64x126xbf16>
    %21 = vector.shape_cast %18 : vector<64x126xbf16> to vector<1x64x126xbf16>
    tpu.vector_store %arg31[%c0_18, %c0_19, %c0_20], %21 {strides = array<i32>} : memref<4x64x126xbf16, #tpu.memory_space<vmem>>, vector<1x64x126xbf16>,
    %cst_21 = arith.constant 0.000000e+00 : bf16
    %22 = vector.broadcast %cst_21 : bf16 to vector<64x126xbf16>
    %c3_22 = arith.constant 3 : index
    %c0_23 = arith.constant 0 : index
    %c0_24 = arith.constant 0 : index
    %23 = vector.load %arg31[%c3_22, %c0_23, %c0_24] : memref<4x64x126xbf16, #tpu.memory_space<vmem>>, vector<1x64x126xbf16>
    %24 = vector.shape_cast %23 : vector<1x64x126xbf16> to vector<64x126xbf16>
    %25 = vector.shape_cast %22 : vector<64x126xbf16> to vector<1x64x126xbf16>
    tpu.vector_store %arg31[%c3_22, %c0_23, %c0_24], %25 {strides = array<i32>} : memref<4x64x126xbf16, #tpu.memory_space<vmem>>, vector<1x64x126xbf16>,
    %c1 = arith.constant 1 : index
    %c0_25 = arith.constant 0 : index
    %c0_26 = arith.constant 0 : index
    %26 = vector.load %arg30[%c1, %c0_25, %c0_26] : memref<4x32x126xbf16, #tpu.memory_space<vmem>>, vector<1x32x1xbf16>
    %27 = vector.shape_cast %26 : vector<1x32x1xbf16> to vector<32x1xbf16>
    %28 = vector.shape_cast %8 : vector<32x1xbf16> to vector<1x32x1xbf16>
    tpu.vector_store %arg30[%c1, %c0_25, %c0_26], %28 {strides = array<i32>} : memref<4x32x126xbf16, #tpu.memory_space<vmem>>, vector<1x32x1xbf16>,
    %c1_27 = arith.constant 1 : index
    %c0_28 = arith.constant 0 : index
    %c125 = arith.constant 125 : index
    %29 = vector.load %arg30[%c1_27, %c0_28, %c125] : memref<4x32x126xbf16, #tpu.memory_space<vmem>>, vector<1x32x1xbf16>
    %30 = vector.shape_cast %29 : vector<1x32x1xbf16> to vector<32x1xbf16>
    %31 = vector.shape_cast %8 : vector<32x1xbf16> to vector<1x32x1xbf16>
    tpu.vector_store %arg30[%c1_27, %c0_28, %c125], %31 {strides = array<i32>} : memref<4x32x126xbf16, #tpu.memory_space<vmem>>, vector<1x32x1xbf16>,
    %c1_29 = arith.constant 1 : index
    %c0_30 = arith.constant 0 : index
    %c0_31 = arith.constant 0 : index
    %32 = vector.load %arg31[%c1_29, %c0_30, %c0_31] : memref<4x64x126xbf16, #tpu.memory_space<vmem>>, vector<1x64x1xbf16>
    %33 = vector.shape_cast %32 : vector<1x64x1xbf16> to vector<64x1xbf16>
    %34 = vector.shape_cast %9 : vector<64x1xbf16> to vector<1x64x1xbf16>
    tpu.vector_store %arg31[%c1_29, %c0_30, %c0_31], %34 {strides = array<i32>} : memref<4x64x126xbf16, #tpu.memory_space<vmem>>, vector<1x64x1xbf16>,
    %c1_32 = arith.constant 1 : index
    %c0_33 = arith.constant 0 : index
    %c125_34 = arith.constant 125 : index
    %35 = vector.load %arg31[%c1_32, %c0_33, %c125_34] : memref<4x64x126xbf16, #tpu.memory_space<vmem>>, vector<1x64x1xbf16>
    %36 = vector.shape_cast %35 : vector<1x64x1xbf16> to vector<64x1xbf16>
    %37 = vector.shape_cast %9 : vector<64x1xbf16> to vector<1x64x1xbf16>
    tpu.vector_store %arg31[%c1_32, %c0_33, %c125_34], %37 {strides = array<i32>} : memref<4x64x126xbf16, #tpu.memory_space<vmem>>, vector<1x64x1xbf16>,
    %c2 = arith.constant 2 : index
    %c0_35 = arith.constant 0 : index
    %c0_36 = arith.constant 0 : index
    %38 = vector.load %arg30[%c2, %c0_35, %c0_36] : memref<4x32x126xbf16, #tpu.memory_space<vmem>>, vector<1x32x1xbf16>
    %39 = vector.shape_cast %38 : vector<1x32x1xbf16> to vector<32x1xbf16>
    %40 = vector.shape_cast %8 : vector<32x1xbf16> to vector<1x32x1xbf16>
    tpu.vector_store %arg30[%c2, %c0_35, %c0_36], %40 {strides = array<i32>} : memref<4x32x126xbf16, #tpu.memory_space<vmem>>, vector<1x32x1xbf16>,
    %c2_37 = arith.constant 2 : index
    %c0_38 = arith.constant 0 : index
    %c125_39 = arith.constant 125 : index
    %41 = vector.load %arg30[%c2_37, %c0_38, %c125_39] : memref<4x32x126xbf16, #tpu.memory_space<vmem>>, vector<1x32x1xbf16>
    %42 = vector.shape_cast %41 : vector<1x32x1xbf16> to vector<32x1xbf16>
    %43 = vector.shape_cast %8 : vector<32x1xbf16> to vector<1x32x1xbf16>
    tpu.vector_store %arg30[%c2_37, %c0_38, %c125_39], %43 {strides = array<i32>} : memref<4x32x126xbf16, #tpu.memory_space<vmem>>, vector<1x32x1xbf16>,
    %c2_40 = arith.constant 2 : index
    %c0_41 = arith.constant 0 : index
    %c0_42 = arith.constant 0 : index
    %44 = vector.load %arg31[%c2_40, %c0_41, %c0_42] : memref<4x64x126xbf16, #tpu.memory_space<vmem>>, vector<1x64x1xbf16>
    %45 = vector.shape_cast %44 : vector<1x64x1xbf16> to vector<64x1xbf16>
    %46 = vector.shape_cast %9 : vector<64x1xbf16> to vector<1x64x1xbf16>
    tpu.vector_store %arg31[%c2_40, %c0_41, %c0_42], %46 {strides = array<i32>} : memref<4x64x126xbf16, #tpu.memory_space<vmem>>, vector<1x64x1xbf16>,
    %c2_43 = arith.constant 2 : index
    %c0_44 = arith.constant 0 : index
    %c125_45 = arith.constant 125 : index
    %47 = vector.load %arg31[%c2_43, %c0_44, %c125_45] : memref<4x64x126xbf16, #tpu.memory_space<vmem>>, vector<1x64x1xbf16>
    %48 = vector.shape_cast %47 : vector<1x64x1xbf16> to vector<64x1xbf16>
    %49 = vector.shape_cast %9 : vector<64x1xbf16> to vector<1x64x1xbf16>
    tpu.vector_store %arg31[%c2_43, %c0_44, %c125_45], %49 {strides = array<i32>} : memref<4x64x126xbf16, #tpu.memory_space<vmem>>, vector<1x64x1xbf16>,
    %c0_46 = arith.constant 0 : index
    %c0_47 = arith.constant 0 : index
    %50 = vector.load %arg32[%c0_46, %c0_47] : memref<64x64xbf16, #tpu.memory_space<vmem>>, vector<64x1xbf16>
    tpu.vector_store %arg32[%c0_46, %c0_47], %9 {strides = array<i32>} : memref<64x64xbf16, #tpu.memory_space<vmem>>, vector<64x1xbf16>,
    %c0_48 = arith.constant 0 : index
    %c63 = arith.constant 63 : index
    %51 = vector.load %arg32[%c0_48, %c63] : memref<64x64xbf16, #tpu.memory_space<vmem>>, vector<64x1xbf16>
    tpu.vector_store %arg32[%c0_48, %c63], %9 {strides = array<i32>} : memref<64x64xbf16, #tpu.memory_space<vmem>>, vector<64x1xbf16>,
    %c0_49 = arith.constant 0 : index
    %c0_50 = arith.constant 0 : index
    %c0_51 = arith.constant 0 : index
    %c0_52 = arith.constant 0 : index
    %52 = vector.load %arg1[%c0_49, %c0_50, %c0_51, %c0_52] : memref<1x1x7x250xf32, #tpu.memory_space<vmem>>, vector<1x1x7x250xf32>
    %53 = vector.shape_cast %52 : vector<1x1x7x250xf32> to vector<7x250xf32>
    %c1_53 = arith.constant 1 : index
    %c1_54 = arith.constant 1 : index
    %54 = vector.load %arg29[%c1_53, %c1_54] : memref<9x252xf32, #tpu.memory_space<vmem>>, vector<7x250xf32>
    tpu.vector_store %arg29[%c1_53, %c1_54], %53 {strides = array<i32>} : memref<9x252xf32, #tpu.memory_space<vmem>>, vector<7x250xf32>,
    %c0_55 = arith.constant 0 : index
    %c0_56 = arith.constant 0 : index
    %55 = vector.load %arg5[%c0_55, %c0_56] : memref<32x1xf32, #tpu.memory_space<vmem>>, vector<32x1xf32>
    %c0_57 = arith.constant 0 : index
    %c0_58 = arith.constant 0 : index
    %56 = vector.load %arg6[%c0_57, %c0_58] : memref<32x1xf32, #tpu.memory_space<vmem>>, vector<32x1xf32>
    %c0_59 = arith.constant 0 : index
    %c0_60 = arith.constant 0 : index
    %57 = vector.load %arg7[%c0_59, %c0_60] : memref<32x1xf32, #tpu.memory_space<vmem>>, vector<32x1xf32>
    %c0_61 = arith.constant 0 : index
    %c0_62 = arith.constant 0 : index
    %58 = vector.load %arg9[%c0_61, %c0_62] : memref<64x1xf32, #tpu.memory_space<vmem>>, vector<64x1xf32>
    %c0_63 = arith.constant 0 : index
    %c0_64 = arith.constant 0 : index
    %59 = vector.load %arg10[%c0_63, %c0_64] : memref<64x1xf32, #tpu.memory_space<vmem>>, vector<64x1xf32>
    %c0_65 = arith.constant 0 : index
    %c0_66 = arith.constant 0 : index
    %60 = vector.load %arg11[%c0_65, %c0_66] : memref<64x1xf32, #tpu.memory_space<vmem>>, vector<64x1xf32>
    %c0_67 = arith.constant 0 : index
    %c0_68 = arith.constant 0 : index
    %61 = vector.load %arg13[%c0_67, %c0_68] : memref<64x1xf32, #tpu.memory_space<vmem>>, vector<64x1xf32>
    %c0_69 = arith.constant 0 : index
    %c0_70 = arith.constant 0 : index
    %62 = vector.load %arg14[%c0_69, %c0_70] : memref<64x1xf32, #tpu.memory_space<vmem>>, vector<64x1xf32>
    %c0_71 = arith.constant 0 : index
    %c0_72 = arith.constant 0 : index
    %63 = vector.load %arg15[%c0_71, %c0_72] : memref<64x1xf32, #tpu.memory_space<vmem>>, vector<64x1xf32>
    %c0_73 = arith.constant 0 : index
    %c0_74 = arith.constant 0 : index
    %64 = vector.load %arg17[%c0_73, %c0_74] : memref<128x1xf32, #tpu.memory_space<vmem>>, vector<128x1xf32>
    %c0_75 = arith.constant 0 : index
    %c0_76 = arith.constant 0 : index
    %65 = vector.load %arg18[%c0_75, %c0_76] : memref<128x1xf32, #tpu.memory_space<vmem>>, vector<128x1xf32>
    %c0_77 = arith.constant 0 : index
    %c0_78 = arith.constant 0 : index
    %66 = vector.load %arg19[%c0_77, %c0_78] : memref<128x1xf32, #tpu.memory_space<vmem>>, vector<128x1xf32>
    %c0_79 = arith.constant 0 : index
    %c0_80 = arith.constant 0 : index
    %67 = vector.load %arg21[%c0_79, %c0_80] : memref<10x1xf32, #tpu.memory_space<vmem>>, vector<10x1xf32>
    %c0_81 = arith.constant 0 : index
    %c0_82 = arith.constant 0 : index
    %68 = vector.load %arg23[%c0_81, %c0_82] : memref<1x512xf32, #tpu.memory_space<vmem>>, vector<1x512xf32>
    %c0_83 = arith.constant 0 : index
    %c0_84 = arith.constant 0 : index
    %69 = vector.load %arg25[%c0_83, %c0_84] : memref<1x512xf32, #tpu.memory_space<vmem>>, vector<1x512xf32>
    %c0_85 = arith.constant 0 : index
    %c0_86 = arith.constant 0 : index
    %70 = vector.load %arg27[%c0_85, %c0_86] : memref<1x3xf32, #tpu.memory_space<vmem>>, vector<1x3xf32>
    %c0_87 = arith.constant 0 : index
    %c0_88 = arith.constant 0 : index
    %71 = vector.load %arg2[%c0_87, %c0_88] : memref<247x124xbf16, #tpu.memory_space<vmem>>, vector<247x124xbf16>
    %c0_89 = arith.constant 0 : index
    %c0_90 = arith.constant 0 : index
    %72 = vector.load %arg3[%c0_89, %c0_90] : memref<123x62xbf16, #tpu.memory_space<vmem>>, vector<123x62xbf16>
    %c0_91 = arith.constant 0 : index
    %c0_92 = arith.constant 0 : index
    %73 = vector.load %arg4[%c0_91, %c0_92] : memref<32x25xbf16, #tpu.memory_space<vmem>>, vector<32x25xbf16>
    %c0_93 = arith.constant 0 : index
    %c0_94 = arith.constant 0 : index
    %74 = vector.load %arg29[%c0_93, %c0_94] : memref<9x252xf32, #tpu.memory_space<vmem>>, vector<5x248xf32>
    %c0_95 = arith.constant 0 : index
    %c1_96 = arith.constant 1 : index
    %75 = vector.load %arg29[%c0_95, %c1_96] : memref<9x252xf32, #tpu.memory_space<vmem>>, vector<5x248xf32>
    %c0_97 = arith.constant 0 : index
    %c2_98 = arith.constant 2 : index
    %76 = vector.load %arg29[%c0_97, %c2_98] : memref<9x252xf32, #tpu.memory_space<vmem>>, vector<5x248xf32>
    %c0_99 = arith.constant 0 : index
    %c3_100 = arith.constant 3 : index
    %77 = vector.load %arg29[%c0_99, %c3_100] : memref<9x252xf32, #tpu.memory_space<vmem>>, vector<5x248xf32>
    %c0_101 = arith.constant 0 : index
    %c4 = arith.constant 4 : index
    %78 = vector.load %arg29[%c0_101, %c4] : memref<9x252xf32, #tpu.memory_space<vmem>>, vector<5x248xf32>
    %79 = tpu.concatenate %74, %75, %76, %77, %78 in 0 : vector<5x248xf32>, vector<5x248xf32>, vector<5x248xf32>, vector<5x248xf32>, vector<5x248xf32> -> vector<25x248xf32>
    %80 = arith.truncf %79 : vector<25x248xf32> to vector<25x248xbf16>
    %cst_102 = arith.constant dense<0.000000e+00> : vector<32x248xf32>
    %81 = tpu.matmul %73, %80, %cst_102 {dimension_numbers = #tpu.dot_dimension_numbers<[1], [0], [0], [1], [0, 0, 1, 1], [], []>} : vector<32x25xbf16>, vector<25x248xbf16>, vector<32x248xf32> -> vector<32x248xf32>
    %c1_103 = arith.constant 1 : index
    %c0_104 = arith.constant 0 : index
    %82 = vector.load %arg29[%c1_103, %c0_104] : memref<9x252xf32, #tpu.memory_space<vmem>>, vector<5x248xf32>
    %c1_105 = arith.constant 1 : index
    %c1_106 = arith.constant 1 : index
    %83 = vector.load %arg29[%c1_105, %c1_106] : memref<9x252xf32, #tpu.memory_space<vmem>>, vector<5x248xf32>
    %c1_107 = arith.constant 1 : index
    %c2_108 = arith.constant 2 : index
    %84 = vector.load %arg29[%c1_107, %c2_108] : memref<9x252xf32, #tpu.memory_space<vmem>>, vector<5x248xf32>
    %c1_109 = arith.constant 1 : index
    %c3_110 = arith.constant 3 : index
    %85 = vector.load %arg29[%c1_109, %c3_110] : memref<9x252xf32, #tpu.memory_space<vmem>>, vector<5x248xf32>
    %c1_111 = arith.constant 1 : index
    %c4_112 = arith.constant 4 : index
    %86 = vector.load %arg29[%c1_111, %c4_112] : memref<9x252xf32, #tpu.memory_space<vmem>>, vector<5x248xf32>
    %87 = tpu.concatenate %82, %83, %84, %85, %86 in 0 : vector<5x248xf32>, vector<5x248xf32>, vector<5x248xf32>, vector<5x248xf32>, vector<5x248xf32> -> vector<25x248xf32>
    %88 = arith.truncf %87 : vector<25x248xf32> to vector<25x248xbf16>
    %cst_113 = arith.constant dense<0.000000e+00> : vector<32x248xf32>
    %89 = tpu.matmul %73, %88, %cst_113 {dimension_numbers = #tpu.dot_dimension_numbers<[1], [0], [0], [1], [0, 0, 1, 1], [], []>} : vector<32x25xbf16>, vector<25x248xbf16>, vector<32x248xf32> -> vector<32x248xf32>
    %c2_114 = arith.constant 2 : index
    %c0_115 = arith.constant 0 : index
    %90 = vector.load %arg29[%c2_114, %c0_115] : memref<9x252xf32, #tpu.memory_space<vmem>>, vector<5x248xf32>
    %c2_116 = arith.constant 2 : index
    %c1_117 = arith.constant 1 : index
    %91 = vector.load %arg29[%c2_116, %c1_117] : memref<9x252xf32, #tpu.memory_space<vmem>>, vector<5x248xf32>
    %c2_118 = arith.constant 2 : index
    %c2_119 = arith.constant 2 : index
    %92 = vector.load %arg29[%c2_118, %c2_119] : memref<9x252xf32, #tpu.memory_space<vmem>>, vector<5x248xf32>
    %c2_120 = arith.constant 2 : index
    %c3_121 = arith.constant 3 : index
    %93 = vector.load %arg29[%c2_120, %c3_121] : memref<9x252xf32, #tpu.memory_space<vmem>>, vector<5x248xf32>
    %c2_122 = arith.constant 2 : index
    %c4_123 = arith.constant 4 : index
    %94 = vector.load %arg29[%c2_122, %c4_123] : memref<9x252xf32, #tpu.memory_space<vmem>>, vector<5x248xf32>
    %95 = tpu.concatenate %90, %91, %92, %93, %94 in 0 : vector<5x248xf32>, vector<5x248xf32>, vector<5x248xf32>, vector<5x248xf32>, vector<5x248xf32> -> vector<25x248xf32>
    %96 = arith.truncf %95 : vector<25x248xf32> to vector<25x248xbf16>
    %cst_124 = arith.constant dense<0.000000e+00> : vector<32x248xf32>
    %97 = tpu.matmul %73, %96, %cst_124 {dimension_numbers = #tpu.dot_dimension_numbers<[1], [0], [0], [1], [0, 0, 1, 1], [], []>} : vector<32x25xbf16>, vector<25x248xbf16>, vector<32x248xf32> -> vector<32x248xf32>
    %c3_125 = arith.constant 3 : index
    %c0_126 = arith.constant 0 : index
    %98 = vector.load %arg29[%c3_125, %c0_126] : memref<9x252xf32, #tpu.memory_space<vmem>>, vector<5x248xf32>
    %c3_127 = arith.constant 3 : index
    %c1_128 = arith.constant 1 : index
    %99 = vector.load %arg29[%c3_127, %c1_128] : memref<9x252xf32, #tpu.memory_space<vmem>>, vector<5x248xf32>
    %c3_129 = arith.constant 3 : index
    %c2_130 = arith.constant 2 : index
    %100 = vector.load %arg29[%c3_129, %c2_130] : memref<9x252xf32, #tpu.memory_space<vmem>>, vector<5x248xf32>
    %c3_131 = arith.constant 3 : index
    %c3_132 = arith.constant 3 : index
    %101 = vector.load %arg29[%c3_131, %c3_132] : memref<9x252xf32, #tpu.memory_space<vmem>>, vector<5x248xf32>
    %c3_133 = arith.constant 3 : index
    %c4_134 = arith.constant 4 : index
    %102 = vector.load %arg29[%c3_133, %c4_134] : memref<9x252xf32, #tpu.memory_space<vmem>>, vector<5x248xf32>
    %103 = tpu.concatenate %98, %99, %100, %101, %102 in 0 : vector<5x248xf32>, vector<5x248xf32>, vector<5x248xf32>, vector<5x248xf32>, vector<5x248xf32> -> vector<25x248xf32>
    %104 = arith.truncf %103 : vector<25x248xf32> to vector<25x248xbf16>
    %cst_135 = arith.constant dense<0.000000e+00> : vector<32x248xf32>
    %105 = tpu.matmul %73, %104, %cst_135 {dimension_numbers = #tpu.dot_dimension_numbers<[1], [0], [0], [1], [0, 0, 1, 1], [], []>} : vector<32x25xbf16>, vector<25x248xbf16>, vector<32x248xf32> -> vector<32x248xf32>
    %106 = arith.maximumf %81, %89 : vector<32x248xf32>
    %107 = vector.extract_strided_slice %106 {offsets = [0, 0], sizes = [32, 247], strides = [1, 1]} : vector<32x248xf32> to vector<32x247xf32>
    %108 = vector.extract_strided_slice %106 {offsets = [0, 1], sizes = [32, 247], strides = [1, 1]} : vector<32x248xf32> to vector<32x247xf32>
    %109 = arith.maximumf %107, %108 : vector<32x247xf32>
    %110 = arith.truncf %109 : vector<32x247xf32> to vector<32x247xbf16>
    %cst_136 = arith.constant dense<0.000000e+00> : vector<32x124xf32>
    %111 = tpu.matmul %110, %71, %cst_136 {dimension_numbers = #tpu.dot_dimension_numbers<[1], [0], [0], [1], [0, 0, 1, 1], [], []>} : vector<32x247xbf16>, vector<247x124xbf16>, vector<32x124xf32> -> vector<32x124xf32>
    %112 = vector.broadcast %55 : vector<32x1xf32> to vector<32x124xf32>
    %113 = arith.addf %111, %112 : vector<32x124xf32>
    %cst_137 = arith.constant 0.000000e+00 : f32
    %114 = vector.broadcast %cst_137 : f32 to vector<32x124xf32>
    %115 = arith.maximumf %113, %114 : vector<32x124xf32>
    %116 = vector.broadcast %56 : vector<32x1xf32> to vector<32x124xf32>
    %117 = arith.mulf %115, %116 : vector<32x124xf32>
    %118 = vector.broadcast %57 : vector<32x1xf32> to vector<32x124xf32>
    %119 = arith.addf %117, %118 : vector<32x124xf32>
    %120 = arith.truncf %119 : vector<32x124xf32> to vector<32x124xbf16>
    %c1_138 = arith.constant 1 : index
    %c0_139 = arith.constant 0 : index
    %c1_140 = arith.constant 1 : index
    %121 = vector.load %arg30[%c1_138, %c0_139, %c1_140] : memref<4x32x126xbf16, #tpu.memory_space<vmem>>, vector<1x32x124xbf16>
    %122 = vector.shape_cast %121 : vector<1x32x124xbf16> to vector<32x124xbf16>
    %123 = vector.shape_cast %120 : vector<32x124xbf16> to vector<1x32x124xbf16>
    tpu.vector_store %arg30[%c1_138, %c0_139, %c1_140], %123 {strides = array<i32>} : memref<4x32x126xbf16, #tpu.memory_space<vmem>>, vector<1x32x124xbf16>,
    %124 = arith.maximumf %97, %105 : vector<32x248xf32>
    %125 = vector.extract_strided_slice %124 {offsets = [0, 0], sizes = [32, 247], strides = [1, 1]} : vector<32x248xf32> to vector<32x247xf32>
    %126 = vector.extract_strided_slice %124 {offsets = [0, 1], sizes = [32, 247], strides = [1, 1]} : vector<32x248xf32> to vector<32x247xf32>
    %127 = arith.maximumf %125, %126 : vector<32x247xf32>
    %128 = arith.truncf %127 : vector<32x247xf32> to vector<32x247xbf16>
    %cst_141 = arith.constant dense<0.000000e+00> : vector<32x124xf32>
    %129 = tpu.matmul %128, %71, %cst_141 {dimension_numbers = #tpu.dot_dimension_numbers<[1], [0], [0], [1], [0, 0, 1, 1], [], []>} : vector<32x247xbf16>, vector<247x124xbf16>, vector<32x124xf32> -> vector<32x124xf32>
    %130 = vector.broadcast %55 : vector<32x1xf32> to vector<32x124xf32>
    %131 = arith.addf %129, %130 : vector<32x124xf32>
    %cst_142 = arith.constant 0.000000e+00 : f32
    %132 = vector.broadcast %cst_142 : f32 to vector<32x124xf32>
    %133 = arith.maximumf %131, %132 : vector<32x124xf32>
    %134 = vector.broadcast %56 : vector<32x1xf32> to vector<32x124xf32>
    %135 = arith.mulf %133, %134 : vector<32x124xf32>
    %136 = vector.broadcast %57 : vector<32x1xf32> to vector<32x124xf32>
    %137 = arith.addf %135, %136 : vector<32x124xf32>
    %138 = arith.truncf %137 : vector<32x124xf32> to vector<32x124xbf16>
    %c2_143 = arith.constant 2 : index
    %c0_144 = arith.constant 0 : index
    %c1_145 = arith.constant 1 : index
    %139 = vector.load %arg30[%c2_143, %c0_144, %c1_145] : memref<4x32x126xbf16, #tpu.memory_space<vmem>>, vector<1x32x124xbf16>
    %140 = vector.shape_cast %139 : vector<1x32x124xbf16> to vector<32x124xbf16>
    %141 = vector.shape_cast %138 : vector<32x124xbf16> to vector<1x32x124xbf16>
    tpu.vector_store %arg30[%c2_143, %c0_144, %c1_145], %141 {strides = array<i32>} : memref<4x32x126xbf16, #tpu.memory_space<vmem>>, vector<1x32x124xbf16>,
    %c0_146 = arith.constant 0 : index
    %c0_147 = arith.constant 0 : index
    %c0_148 = arith.constant 0 : index
    %142 = vector.load %arg8[%c0_146, %c0_147, %c0_148] : memref<3x64x96xbf16, #tpu.memory_space<vmem>>, vector<1x64x96xbf16>
    %143 = vector.shape_cast %142 : vector<1x64x96xbf16> to vector<64x96xbf16>
    %c0_149 = arith.constant 0 : index
    %c0_150 = arith.constant 0 : index
    %c0_151 = arith.constant 0 : index
    %144 = vector.load %arg30[%c0_149, %c0_150, %c0_151] : memref<4x32x126xbf16, #tpu.memory_space<vmem>>, vector<1x32x124xbf16>
    %145 = vector.shape_cast %144 : vector<1x32x124xbf16> to vector<32x124xbf16>
    %c0_152 = arith.constant 0 : index
    %c0_153 = arith.constant 0 : index
    %c1_154 = arith.constant 1 : index
    %146 = vector.load %arg30[%c0_152, %c0_153, %c1_154] : memref<4x32x126xbf16, #tpu.memory_space<vmem>>, vector<1x32x124xbf16>
    %147 = vector.shape_cast %146 : vector<1x32x124xbf16> to vector<32x124xbf16>
    %c0_155 = arith.constant 0 : index
    %c0_156 = arith.constant 0 : index
    %c2_157 = arith.constant 2 : index
    %148 = vector.load %arg30[%c0_155, %c0_156, %c2_157] : memref<4x32x126xbf16, #tpu.memory_space<vmem>>, vector<1x32x124xbf16>
    %149 = vector.shape_cast %148 : vector<1x32x124xbf16> to vector<32x124xbf16>
    %150 = tpu.concatenate %145, %147, %149 in 0 : vector<32x124xbf16>, vector<32x124xbf16>, vector<32x124xbf16> -> vector<96x124xbf16>
    %cst_158 = arith.constant dense<0.000000e+00> : vector<64x124xf32>
    %151 = tpu.matmul %143, %150, %cst_158 {dimension_numbers = #tpu.dot_dimension_numbers<[1], [0], [0], [1], [0, 0, 1, 1], [], []>} : vector<64x96xbf16>, vector<96x124xbf16>, vector<64x124xf32> -> vector<64x124xf32>
    %152 = vector.broadcast %58 : vector<64x1xf32> to vector<64x124xf32>
    %153 = arith.addf %152, %151 : vector<64x124xf32>
    %c1_159 = arith.constant 1 : index
    %c0_160 = arith.constant 0 : index
    %c0_161 = arith.constant 0 : index
    %154 = vector.load %arg30[%c1_159, %c0_160, %c0_161] : memref<4x32x126xbf16, #tpu.memory_space<vmem>>, vector<1x32x124xbf16>
    %155 = vector.shape_cast %154 : vector<1x32x124xbf16> to vector<32x124xbf16>
    %c1_162 = arith.constant 1 : index
    %c0_163 = arith.constant 0 : index
    %c1_164 = arith.constant 1 : index
    %156 = vector.load %arg30[%c1_162, %c0_163, %c1_164] : memref<4x32x126xbf16, #tpu.memory_space<vmem>>, vector<1x32x124xbf16>
    %157 = vector.shape_cast %156 : vector<1x32x124xbf16> to vector<32x124xbf16>
    %c1_165 = arith.constant 1 : index
    %c0_166 = arith.constant 0 : index
    %c2_167 = arith.constant 2 : index
    %158 = vector.load %arg30[%c1_165, %c0_166, %c2_167] : memref<4x32x126xbf16, #tpu.memory_space<vmem>>, vector<1x32x124xbf16>
    %159 = vector.shape_cast %158 : vector<1x32x124xbf16> to vector<32x124xbf16>
    %160 = tpu.concatenate %155, %157, %159 in 0 : vector<32x124xbf16>, vector<32x124xbf16>, vector<32x124xbf16> -> vector<96x124xbf16>
    %c1_168 = arith.constant 1 : index
    %c0_169 = arith.constant 0 : index
    %c0_170 = arith.constant 0 : index
    %161 = vector.load %arg8[%c1_168, %c0_169, %c0_170] : memref<3x64x96xbf16, #tpu.memory_space<vmem>>, vector<1x64x96xbf16>
    %162 = vector.shape_cast %161 : vector<1x64x96xbf16> to vector<64x96xbf16>
    %cst_171 = arith.constant dense<0.000000e+00> : vector<64x124xf32>
    %163 = tpu.matmul %162, %160, %cst_171 {dimension_numbers = #tpu.dot_dimension_numbers<[1], [0], [0], [1], [0, 0, 1, 1], [], []>} : vector<64x96xbf16>, vector<96x124xbf16>, vector<64x124xf32> -> vector<64x124xf32>
    %164 = arith.addf %153, %163 : vector<64x124xf32>
    %c2_172 = arith.constant 2 : index
    %c0_173 = arith.constant 0 : index
    %c0_174 = arith.constant 0 : index
    %165 = vector.load %arg30[%c2_172, %c0_173, %c0_174] : memref<4x32x126xbf16, #tpu.memory_space<vmem>>, vector<1x32x124xbf16>
    %166 = vector.shape_cast %165 : vector<1x32x124xbf16> to vector<32x124xbf16>
    %c2_175 = arith.constant 2 : index
    %c0_176 = arith.constant 0 : index
    %c1_177 = arith.constant 1 : index
    %167 = vector.load %arg30[%c2_175, %c0_176, %c1_177] : memref<4x32x126xbf16, #tpu.memory_space<vmem>>, vector<1x32x124xbf16>
    %168 = vector.shape_cast %167 : vector<1x32x124xbf16> to vector<32x124xbf16>
    %c2_178 = arith.constant 2 : index
    %c0_179 = arith.constant 0 : index
    %c2_180 = arith.constant 2 : index
    %169 = vector.load %arg30[%c2_178, %c0_179, %c2_180] : memref<4x32x126xbf16, #tpu.memory_space<vmem>>, vector<1x32x124xbf16>
    %170 = vector.shape_cast %169 : vector<1x32x124xbf16> to vector<32x124xbf16>
    %171 = tpu.concatenate %166, %168, %170 in 0 : vector<32x124xbf16>, vector<32x124xbf16>, vector<32x124xbf16> -> vector<96x124xbf16>
    %c2_181 = arith.constant 2 : index
    %c0_182 = arith.constant 0 : index
    %c0_183 = arith.constant 0 : index
    %172 = vector.load %arg8[%c2_181, %c0_182, %c0_183] : memref<3x64x96xbf16, #tpu.memory_space<vmem>>, vector<1x64x96xbf16>
    %173 = vector.shape_cast %172 : vector<1x64x96xbf16> to vector<64x96xbf16>
    %cst_184 = arith.constant dense<0.000000e+00> : vector<64x124xf32>
    %174 = tpu.matmul %173, %171, %cst_184 {dimension_numbers = #tpu.dot_dimension_numbers<[1], [0], [0], [1], [0, 0, 1, 1], [], []>} : vector<64x96xbf16>, vector<96x124xbf16>, vector<64x124xf32> -> vector<64x124xf32>
    %175 = arith.addf %164, %174 : vector<64x124xf32>
    %cst_185 = arith.constant 0.000000e+00 : f32
    %176 = vector.broadcast %cst_185 : f32 to vector<64x124xf32>
    %177 = arith.maximumf %175, %176 : vector<64x124xf32>
    %178 = vector.broadcast %59 : vector<64x1xf32> to vector<64x124xf32>
    %179 = arith.mulf %177, %178 : vector<64x124xf32>
    %180 = vector.broadcast %60 : vector<64x1xf32> to vector<64x124xf32>
    %181 = arith.addf %179, %180 : vector<64x124xf32>
    %182 = arith.truncf %181 : vector<64x124xf32> to vector<64x124xbf16>
    %c1_186 = arith.constant 1 : index
    %c0_187 = arith.constant 0 : index
    %c1_188 = arith.constant 1 : index
    %183 = vector.load %arg31[%c1_186, %c0_187, %c1_188] : memref<4x64x126xbf16, #tpu.memory_space<vmem>>, vector<1x64x124xbf16>
    %184 = vector.shape_cast %183 : vector<1x64x124xbf16> to vector<64x124xbf16>
    %185 = vector.shape_cast %182 : vector<64x124xbf16> to vector<1x64x124xbf16>
    tpu.vector_store %arg31[%c1_186, %c0_187, %c1_188], %185 {strides = array<i32>} : memref<4x64x126xbf16, #tpu.memory_space<vmem>>, vector<1x64x124xbf16>,
    %c0_189 = arith.constant 0 : index
    %c0_190 = arith.constant 0 : index
    %c0_191 = arith.constant 0 : index
    %186 = vector.load %arg8[%c0_189, %c0_190, %c0_191] : memref<3x64x96xbf16, #tpu.memory_space<vmem>>, vector<1x64x96xbf16>
    %187 = vector.shape_cast %186 : vector<1x64x96xbf16> to vector<64x96xbf16>
    %c1_192 = arith.constant 1 : index
    %c0_193 = arith.constant 0 : index
    %c0_194 = arith.constant 0 : index
    %188 = vector.load %arg30[%c1_192, %c0_193, %c0_194] : memref<4x32x126xbf16, #tpu.memory_space<vmem>>, vector<1x32x124xbf16>
    %189 = vector.shape_cast %188 : vector<1x32x124xbf16> to vector<32x124xbf16>
    %c1_195 = arith.constant 1 : index
    %c0_196 = arith.constant 0 : index
    %c1_197 = arith.constant 1 : index
    %190 = vector.load %arg30[%c1_195, %c0_196, %c1_197] : memref<4x32x126xbf16, #tpu.memory_space<vmem>>, vector<1x32x124xbf16>
    %191 = vector.shape_cast %190 : vector<1x32x124xbf16> to vector<32x124xbf16>
    %c1_198 = arith.constant 1 : index
    %c0_199 = arith.constant 0 : index
    %c2_200 = arith.constant 2 : index
    %192 = vector.load %arg30[%c1_198, %c0_199, %c2_200] : memref<4x32x126xbf16, #tpu.memory_space<vmem>>, vector<1x32x124xbf16>
    %193 = vector.shape_cast %192 : vector<1x32x124xbf16> to vector<32x124xbf16>
    %194 = tpu.concatenate %189, %191, %193 in 0 : vector<32x124xbf16>, vector<32x124xbf16>, vector<32x124xbf16> -> vector<96x124xbf16>
    %cst_201 = arith.constant dense<0.000000e+00> : vector<64x124xf32>
    %195 = tpu.matmul %187, %194, %cst_201 {dimension_numbers = #tpu.dot_dimension_numbers<[1], [0], [0], [1], [0, 0, 1, 1], [], []>} : vector<64x96xbf16>, vector<96x124xbf16>, vector<64x124xf32> -> vector<64x124xf32>
    %196 = vector.broadcast %58 : vector<64x1xf32> to vector<64x124xf32>
    %197 = arith.addf %196, %195 : vector<64x124xf32>
    %c2_202 = arith.constant 2 : index
    %c0_203 = arith.constant 0 : index
    %c0_204 = arith.constant 0 : index
    %198 = vector.load %arg30[%c2_202, %c0_203, %c0_204] : memref<4x32x126xbf16, #tpu.memory_space<vmem>>, vector<1x32x124xbf16>
    %199 = vector.shape_cast %198 : vector<1x32x124xbf16> to vector<32x124xbf16>
    %c2_205 = arith.constant 2 : index
    %c0_206 = arith.constant 0 : index
    %c1_207 = arith.constant 1 : index
    %200 = vector.load %arg30[%c2_205, %c0_206, %c1_207] : memref<4x32x126xbf16, #tpu.memory_space<vmem>>, vector<1x32x124xbf16>
    %201 = vector.shape_cast %200 : vector<1x32x124xbf16> to vector<32x124xbf16>
    %c2_208 = arith.constant 2 : index
    %c0_209 = arith.constant 0 : index
    %c2_210 = arith.constant 2 : index
    %202 = vector.load %arg30[%c2_208, %c0_209, %c2_210] : memref<4x32x126xbf16, #tpu.memory_space<vmem>>, vector<1x32x124xbf16>
    %203 = vector.shape_cast %202 : vector<1x32x124xbf16> to vector<32x124xbf16>
    %204 = tpu.concatenate %199, %201, %203 in 0 : vector<32x124xbf16>, vector<32x124xbf16>, vector<32x124xbf16> -> vector<96x124xbf16>
    %c1_211 = arith.constant 1 : index
    %c0_212 = arith.constant 0 : index
    %c0_213 = arith.constant 0 : index
    %205 = vector.load %arg8[%c1_211, %c0_212, %c0_213] : memref<3x64x96xbf16, #tpu.memory_space<vmem>>, vector<1x64x96xbf16>
    %206 = vector.shape_cast %205 : vector<1x64x96xbf16> to vector<64x96xbf16>
    %cst_214 = arith.constant dense<0.000000e+00> : vector<64x124xf32>
    %207 = tpu.matmul %206, %204, %cst_214 {dimension_numbers = #tpu.dot_dimension_numbers<[1], [0], [0], [1], [0, 0, 1, 1], [], []>} : vector<64x96xbf16>, vector<96x124xbf16>, vector<64x124xf32> -> vector<64x124xf32>
    %208 = arith.addf %197, %207 : vector<64x124xf32>
    %c3_215 = arith.constant 3 : index
    %c0_216 = arith.constant 0 : index
    %c0_217 = arith.constant 0 : index
    %209 = vector.load %arg30[%c3_215, %c0_216, %c0_217] : memref<4x32x126xbf16, #tpu.memory_space<vmem>>, vector<1x32x124xbf16>
    %210 = vector.shape_cast %209 : vector<1x32x124xbf16> to vector<32x124xbf16>
    %c3_218 = arith.constant 3 : index
    %c0_219 = arith.constant 0 : index
    %c1_220 = arith.constant 1 : index
    %211 = vector.load %arg30[%c3_218, %c0_219, %c1_220] : memref<4x32x126xbf16, #tpu.memory_space<vmem>>, vector<1x32x124xbf16>
    %212 = vector.shape_cast %211 : vector<1x32x124xbf16> to vector<32x124xbf16>
    %c3_221 = arith.constant 3 : index
    %c0_222 = arith.constant 0 : index
    %c2_223 = arith.constant 2 : index
    %213 = vector.load %arg30[%c3_221, %c0_222, %c2_223] : memref<4x32x126xbf16, #tpu.memory_space<vmem>>, vector<1x32x124xbf16>
    %214 = vector.shape_cast %213 : vector<1x32x124xbf16> to vector<32x124xbf16>
    %215 = tpu.concatenate %210, %212, %214 in 0 : vector<32x124xbf16>, vector<32x124xbf16>, vector<32x124xbf16> -> vector<96x124xbf16>
    %c2_224 = arith.constant 2 : index
    %c0_225 = arith.constant 0 : index
    %c0_226 = arith.constant 0 : index
    %216 = vector.load %arg8[%c2_224, %c0_225, %c0_226] : memref<3x64x96xbf16, #tpu.memory_space<vmem>>, vector<1x64x96xbf16>
    %217 = vector.shape_cast %216 : vector<1x64x96xbf16> to vector<64x96xbf16>
    %cst_227 = arith.constant dense<0.000000e+00> : vector<64x124xf32>
    %218 = tpu.matmul %217, %215, %cst_227 {dimension_numbers = #tpu.dot_dimension_numbers<[1], [0], [0], [1], [0, 0, 1, 1], [], []>} : vector<64x96xbf16>, vector<96x124xbf16>, vector<64x124xf32> -> vector<64x124xf32>
    %219 = arith.addf %208, %218 : vector<64x124xf32>
    %cst_228 = arith.constant 0.000000e+00 : f32
    %220 = vector.broadcast %cst_228 : f32 to vector<64x124xf32>
    %221 = arith.maximumf %219, %220 : vector<64x124xf32>
    %222 = vector.broadcast %59 : vector<64x1xf32> to vector<64x124xf32>
    %223 = arith.mulf %221, %222 : vector<64x124xf32>
    %224 = vector.broadcast %60 : vector<64x1xf32> to vector<64x124xf32>
    %225 = arith.addf %223, %224 : vector<64x124xf32>
    %226 = arith.truncf %225 : vector<64x124xf32> to vector<64x124xbf16>
    %c2_229 = arith.constant 2 : index
    %c0_230 = arith.constant 0 : index
    %c1_231 = arith.constant 1 : index
    %227 = vector.load %arg31[%c2_229, %c0_230, %c1_231] : memref<4x64x126xbf16, #tpu.memory_space<vmem>>, vector<1x64x124xbf16>
    %228 = vector.shape_cast %227 : vector<1x64x124xbf16> to vector<64x124xbf16>
    %229 = vector.shape_cast %226 : vector<64x124xbf16> to vector<1x64x124xbf16>
    tpu.vector_store %arg31[%c2_229, %c0_230, %c1_231], %229 {strides = array<i32>} : memref<4x64x126xbf16, #tpu.memory_space<vmem>>, vector<1x64x124xbf16>,
    %c0_232 = arith.constant 0 : index
    %c0_233 = arith.constant 0 : index
    %c0_234 = arith.constant 0 : index
    %230 = vector.load %arg12[%c0_232, %c0_233, %c0_234] : memref<3x64x192xbf16, #tpu.memory_space<vmem>>, vector<1x64x192xbf16>
    %231 = vector.shape_cast %230 : vector<1x64x192xbf16> to vector<64x192xbf16>
    %c0_235 = arith.constant 0 : index
    %c0_236 = arith.constant 0 : index
    %c0_237 = arith.constant 0 : index
    %232 = vector.load %arg31[%c0_235, %c0_236, %c0_237] : memref<4x64x126xbf16, #tpu.memory_space<vmem>>, vector<1x64x124xbf16>
    %233 = vector.shape_cast %232 : vector<1x64x124xbf16> to vector<64x124xbf16>
    %c0_238 = arith.constant 0 : index
    %c0_239 = arith.constant 0 : index
    %c1_240 = arith.constant 1 : index
    %234 = vector.load %arg31[%c0_238, %c0_239, %c1_240] : memref<4x64x126xbf16, #tpu.memory_space<vmem>>, vector<1x64x124xbf16>
    %235 = vector.shape_cast %234 : vector<1x64x124xbf16> to vector<64x124xbf16>
    %c0_241 = arith.constant 0 : index
    %c0_242 = arith.constant 0 : index
    %c2_243 = arith.constant 2 : index
    %236 = vector.load %arg31[%c0_241, %c0_242, %c2_243] : memref<4x64x126xbf16, #tpu.memory_space<vmem>>, vector<1x64x124xbf16>
    %237 = vector.shape_cast %236 : vector<1x64x124xbf16> to vector<64x124xbf16>
    %238 = tpu.concatenate %233, %235, %237 in 0 : vector<64x124xbf16>, vector<64x124xbf16>, vector<64x124xbf16> -> vector<192x124xbf16>
    %cst_244 = arith.constant dense<0.000000e+00> : vector<64x124xf32>
    %239 = tpu.matmul %231, %238, %cst_244 {dimension_numbers = #tpu.dot_dimension_numbers<[1], [0], [0], [1], [0, 0, 1, 1], [], []>} : vector<64x192xbf16>, vector<192x124xbf16>, vector<64x124xf32> -> vector<64x124xf32>
    %240 = vector.broadcast %61 : vector<64x1xf32> to vector<64x124xf32>
    %241 = arith.addf %240, %239 : vector<64x124xf32>
    %c1_245 = arith.constant 1 : index
    %c0_246 = arith.constant 0 : index
    %c0_247 = arith.constant 0 : index
    %242 = vector.load %arg31[%c1_245, %c0_246, %c0_247] : memref<4x64x126xbf16, #tpu.memory_space<vmem>>, vector<1x64x124xbf16>
    %243 = vector.shape_cast %242 : vector<1x64x124xbf16> to vector<64x124xbf16>
    %c1_248 = arith.constant 1 : index
    %c0_249 = arith.constant 0 : index
    %c1_250 = arith.constant 1 : index
    %244 = vector.load %arg31[%c1_248, %c0_249, %c1_250] : memref<4x64x126xbf16, #tpu.memory_space<vmem>>, vector<1x64x124xbf16>
    %245 = vector.shape_cast %244 : vector<1x64x124xbf16> to vector<64x124xbf16>
    %c1_251 = arith.constant 1 : index
    %c0_252 = arith.constant 0 : index
    %c2_253 = arith.constant 2 : index
    %246 = vector.load %arg31[%c1_251, %c0_252, %c2_253] : memref<4x64x126xbf16, #tpu.memory_space<vmem>>, vector<1x64x124xbf16>
    %247 = vector.shape_cast %246 : vector<1x64x124xbf16> to vector<64x124xbf16>
    %248 = tpu.concatenate %243, %245, %247 in 0 : vector<64x124xbf16>, vector<64x124xbf16>, vector<64x124xbf16> -> vector<192x124xbf16>
    %c1_254 = arith.constant 1 : index
    %c0_255 = arith.constant 0 : index
    %c0_256 = arith.constant 0 : index
    %249 = vector.load %arg12[%c1_254, %c0_255, %c0_256] : memref<3x64x192xbf16, #tpu.memory_space<vmem>>, vector<1x64x192xbf16>
    %250 = vector.shape_cast %249 : vector<1x64x192xbf16> to vector<64x192xbf16>
    %cst_257 = arith.constant dense<0.000000e+00> : vector<64x124xf32>
    %251 = tpu.matmul %250, %248, %cst_257 {dimension_numbers = #tpu.dot_dimension_numbers<[1], [0], [0], [1], [0, 0, 1, 1], [], []>} : vector<64x192xbf16>, vector<192x124xbf16>, vector<64x124xf32> -> vector<64x124xf32>
    %252 = arith.addf %241, %251 : vector<64x124xf32>
    %c2_258 = arith.constant 2 : index
    %c0_259 = arith.constant 0 : index
    %c0_260 = arith.constant 0 : index
    %253 = vector.load %arg31[%c2_258, %c0_259, %c0_260] : memref<4x64x126xbf16, #tpu.memory_space<vmem>>, vector<1x64x124xbf16>
    %254 = vector.shape_cast %253 : vector<1x64x124xbf16> to vector<64x124xbf16>
    %c2_261 = arith.constant 2 : index
    %c0_262 = arith.constant 0 : index
    %c1_263 = arith.constant 1 : index
    %255 = vector.load %arg31[%c2_261, %c0_262, %c1_263] : memref<4x64x126xbf16, #tpu.memory_space<vmem>>, vector<1x64x124xbf16>
    %256 = vector.shape_cast %255 : vector<1x64x124xbf16> to vector<64x124xbf16>
    %c2_264 = arith.constant 2 : index
    %c0_265 = arith.constant 0 : index
    %c2_266 = arith.constant 2 : index
    %257 = vector.load %arg31[%c2_264, %c0_265, %c2_266] : memref<4x64x126xbf16, #tpu.memory_space<vmem>>, vector<1x64x124xbf16>
    %258 = vector.shape_cast %257 : vector<1x64x124xbf16> to vector<64x124xbf16>
    %259 = tpu.concatenate %254, %256, %258 in 0 : vector<64x124xbf16>, vector<64x124xbf16>, vector<64x124xbf16> -> vector<192x124xbf16>
    %c2_267 = arith.constant 2 : index
    %c0_268 = arith.constant 0 : index
    %c0_269 = arith.constant 0 : index
    %260 = vector.load %arg12[%c2_267, %c0_268, %c0_269] : memref<3x64x192xbf16, #tpu.memory_space<vmem>>, vector<1x64x192xbf16>
    %261 = vector.shape_cast %260 : vector<1x64x192xbf16> to vector<64x192xbf16>
    %cst_270 = arith.constant dense<0.000000e+00> : vector<64x124xf32>
    %262 = tpu.matmul %261, %259, %cst_270 {dimension_numbers = #tpu.dot_dimension_numbers<[1], [0], [0], [1], [0, 0, 1, 1], [], []>} : vector<64x192xbf16>, vector<192x124xbf16>, vector<64x124xf32> -> vector<64x124xf32>
    %263 = arith.addf %252, %262 : vector<64x124xf32>
    %c0_271 = arith.constant 0 : index
    %c0_272 = arith.constant 0 : index
    %c0_273 = arith.constant 0 : index
    %264 = vector.load %arg12[%c0_271, %c0_272, %c0_273] : memref<3x64x192xbf16, #tpu.memory_space<vmem>>, vector<1x64x192xbf16>
    %265 = vector.shape_cast %264 : vector<1x64x192xbf16> to vector<64x192xbf16>
    %c1_274 = arith.constant 1 : index
    %c0_275 = arith.constant 0 : index
    %c0_276 = arith.constant 0 : index
    %266 = vector.load %arg31[%c1_274, %c0_275, %c0_276] : memref<4x64x126xbf16, #tpu.memory_space<vmem>>, vector<1x64x124xbf16>
    %267 = vector.shape_cast %266 : vector<1x64x124xbf16> to vector<64x124xbf16>
    %c1_277 = arith.constant 1 : index
    %c0_278 = arith.constant 0 : index
    %c1_279 = arith.constant 1 : index
    %268 = vector.load %arg31[%c1_277, %c0_278, %c1_279] : memref<4x64x126xbf16, #tpu.memory_space<vmem>>, vector<1x64x124xbf16>
    %269 = vector.shape_cast %268 : vector<1x64x124xbf16> to vector<64x124xbf16>
    %c1_280 = arith.constant 1 : index
    %c0_281 = arith.constant 0 : index
    %c2_282 = arith.constant 2 : index
    %270 = vector.load %arg31[%c1_280, %c0_281, %c2_282] : memref<4x64x126xbf16, #tpu.memory_space<vmem>>, vector<1x64x124xbf16>
    %271 = vector.shape_cast %270 : vector<1x64x124xbf16> to vector<64x124xbf16>
    %272 = tpu.concatenate %267, %269, %271 in 0 : vector<64x124xbf16>, vector<64x124xbf16>, vector<64x124xbf16> -> vector<192x124xbf16>
    %cst_283 = arith.constant dense<0.000000e+00> : vector<64x124xf32>
    %273 = tpu.matmul %265, %272, %cst_283 {dimension_numbers = #tpu.dot_dimension_numbers<[1], [0], [0], [1], [0, 0, 1, 1], [], []>} : vector<64x192xbf16>, vector<192x124xbf16>, vector<64x124xf32> -> vector<64x124xf32>
    %274 = vector.broadcast %61 : vector<64x1xf32> to vector<64x124xf32>
    %275 = arith.addf %274, %273 : vector<64x124xf32>
    %c2_284 = arith.constant 2 : index
    %c0_285 = arith.constant 0 : index
    %c0_286 = arith.constant 0 : index
    %276 = vector.load %arg31[%c2_284, %c0_285, %c0_286] : memref<4x64x126xbf16, #tpu.memory_space<vmem>>, vector<1x64x124xbf16>
    %277 = vector.shape_cast %276 : vector<1x64x124xbf16> to vector<64x124xbf16>
    %c2_287 = arith.constant 2 : index
    %c0_288 = arith.constant 0 : index
    %c1_289 = arith.constant 1 : index
    %278 = vector.load %arg31[%c2_287, %c0_288, %c1_289] : memref<4x64x126xbf16, #tpu.memory_space<vmem>>, vector<1x64x124xbf16>
    %279 = vector.shape_cast %278 : vector<1x64x124xbf16> to vector<64x124xbf16>
    %c2_290 = arith.constant 2 : index
    %c0_291 = arith.constant 0 : index
    %c2_292 = arith.constant 2 : index
    %280 = vector.load %arg31[%c2_290, %c0_291, %c2_292] : memref<4x64x126xbf16, #tpu.memory_space<vmem>>, vector<1x64x124xbf16>
    %281 = vector.shape_cast %280 : vector<1x64x124xbf16> to vector<64x124xbf16>
    %282 = tpu.concatenate %277, %279, %281 in 0 : vector<64x124xbf16>, vector<64x124xbf16>, vector<64x124xbf16> -> vector<192x124xbf16>
    %c1_293 = arith.constant 1 : index
    %c0_294 = arith.constant 0 : index
    %c0_295 = arith.constant 0 : index
    %283 = vector.load %arg12[%c1_293, %c0_294, %c0_295] : memref<3x64x192xbf16, #tpu.memory_space<vmem>>, vector<1x64x192xbf16>
    %284 = vector.shape_cast %283 : vector<1x64x192xbf16> to vector<64x192xbf16>
    %cst_296 = arith.constant dense<0.000000e+00> : vector<64x124xf32>
    %285 = tpu.matmul %284, %282, %cst_296 {dimension_numbers = #tpu.dot_dimension_numbers<[1], [0], [0], [1], [0, 0, 1, 1], [], []>} : vector<64x192xbf16>, vector<192x124xbf16>, vector<64x124xf32> -> vector<64x124xf32>
    %286 = arith.addf %275, %285 : vector<64x124xf32>
    %c3_297 = arith.constant 3 : index
    %c0_298 = arith.constant 0 : index
    %c0_299 = arith.constant 0 : index
    %287 = vector.load %arg31[%c3_297, %c0_298, %c0_299] : memref<4x64x126xbf16, #tpu.memory_space<vmem>>, vector<1x64x124xbf16>
    %288 = vector.shape_cast %287 : vector<1x64x124xbf16> to vector<64x124xbf16>
    %c3_300 = arith.constant 3 : index
    %c0_301 = arith.constant 0 : index
    %c1_302 = arith.constant 1 : index
    %289 = vector.load %arg31[%c3_300, %c0_301, %c1_302] : memref<4x64x126xbf16, #tpu.memory_space<vmem>>, vector<1x64x124xbf16>
    %290 = vector.shape_cast %289 : vector<1x64x124xbf16> to vector<64x124xbf16>
    %c3_303 = arith.constant 3 : index
    %c0_304 = arith.constant 0 : index
    %c2_305 = arith.constant 2 : index
    %291 = vector.load %arg31[%c3_303, %c0_304, %c2_305] : memref<4x64x126xbf16, #tpu.memory_space<vmem>>, vector<1x64x124xbf16>
    %292 = vector.shape_cast %291 : vector<1x64x124xbf16> to vector<64x124xbf16>
    %293 = tpu.concatenate %288, %290, %292 in 0 : vector<64x124xbf16>, vector<64x124xbf16>, vector<64x124xbf16> -> vector<192x124xbf16>
    %c2_306 = arith.constant 2 : index
    %c0_307 = arith.constant 0 : index
    %c0_308 = arith.constant 0 : index
    %294 = vector.load %arg12[%c2_306, %c0_307, %c0_308] : memref<3x64x192xbf16, #tpu.memory_space<vmem>>, vector<1x64x192xbf16>
    %295 = vector.shape_cast %294 : vector<1x64x192xbf16> to vector<64x192xbf16>
    %cst_309 = arith.constant dense<0.000000e+00> : vector<64x124xf32>
    %296 = tpu.matmul %295, %293, %cst_309 {dimension_numbers = #tpu.dot_dimension_numbers<[1], [0], [0], [1], [0, 0, 1, 1], [], []>} : vector<64x192xbf16>, vector<192x124xbf16>, vector<64x124xf32> -> vector<64x124xf32>
    %297 = arith.addf %286, %296 : vector<64x124xf32>
    %298 = arith.maximumf %263, %297 : vector<64x124xf32>
    %299 = vector.extract_strided_slice %298 {offsets = [0, 0], sizes = [64, 123], strides = [1, 1]} : vector<64x124xf32> to vector<64x123xf32>
    %300 = vector.extract_strided_slice %298 {offsets = [0, 1], sizes = [64, 123], strides = [1, 1]} : vector<64x124xf32> to vector<64x123xf32>
    %301 = arith.maximumf %299, %300 : vector<64x123xf32>
    %302 = arith.truncf %301 : vector<64x123xf32> to vector<64x123xbf16>
    %cst_310 = arith.constant dense<0.000000e+00> : vector<64x62xf32>
    %303 = tpu.matmul %302, %72, %cst_310 {dimension_numbers = #tpu.dot_dimension_numbers<[1], [0], [0], [1], [0, 0, 1, 1], [], []>} : vector<64x123xbf16>, vector<123x62xbf16>, vector<64x62xf32> -> vector<64x62xf32>
    %cst_311 = arith.constant 0.000000e+00 : f32
    %304 = vector.broadcast %cst_311 : f32 to vector<64x62xf32>
    %305 = arith.maximumf %303, %304 : vector<64x62xf32>
    %306 = vector.broadcast %62 : vector<64x1xf32> to vector<64x62xf32>
    %307 = arith.mulf %305, %306 : vector<64x62xf32>
    %308 = vector.broadcast %63 : vector<64x1xf32> to vector<64x62xf32>
    %309 = arith.addf %307, %308 : vector<64x62xf32>
    %310 = arith.truncf %309 : vector<64x62xf32> to vector<64x62xbf16>
    %c0_312 = arith.constant 0 : index
    %c1_313 = arith.constant 1 : index
    %311 = vector.load %arg32[%c0_312, %c1_313] : memref<64x64xbf16, #tpu.memory_space<vmem>>, vector<64x62xbf16>
    tpu.vector_store %arg32[%c0_312, %c1_313], %310 {strides = array<i32>} : memref<64x64xbf16, #tpu.memory_space<vmem>>, vector<64x62xbf16>,
    %c0_314 = arith.constant 0 : index
    %c0_315 = arith.constant 0 : index
    %312 = vector.load %arg32[%c0_314, %c0_315] : memref<64x64xbf16, #tpu.memory_space<vmem>>, vector<64x62xbf16>
    %c0_316 = arith.constant 0 : index
    %c1_317 = arith.constant 1 : index
    %313 = vector.load %arg32[%c0_316, %c1_317] : memref<64x64xbf16, #tpu.memory_space<vmem>>, vector<64x62xbf16>
    %c0_318 = arith.constant 0 : index
    %c2_319 = arith.constant 2 : index
    %314 = vector.load %arg32[%c0_318, %c2_319] : memref<64x64xbf16, #tpu.memory_space<vmem>>, vector<64x62xbf16>
    %315 = tpu.concatenate %312, %313, %314 in 0 : vector<64x62xbf16>, vector<64x62xbf16>, vector<64x62xbf16> -> vector<192x62xbf16>
    %c0_320 = arith.constant 0 : index
    %c0_321 = arith.constant 0 : index
    %316 = vector.load %arg16[%c0_320, %c0_321] : memref<128x192xbf16, #tpu.memory_space<vmem>>, vector<128x192xbf16>
    %cst_322 = arith.constant dense<0.000000e+00> : vector<128x62xf32>
    %317 = tpu.matmul %316, %315, %cst_322 {dimension_numbers = #tpu.dot_dimension_numbers<[1], [0], [0], [1], [0, 0, 1, 1], [], []>} : vector<128x192xbf16>, vector<192x62xbf16>, vector<128x62xf32> -> vector<128x62xf32>
    %318 = vector.broadcast %64 : vector<128x1xf32> to vector<128x62xf32>
    %319 = arith.addf %317, %318 : vector<128x62xf32>
    %cst_323 = arith.constant 0.000000e+00 : f32
    %320 = vector.broadcast %cst_323 : f32 to vector<128x62xf32>
    %321 = arith.maximumf %319, %320 : vector<128x62xf32>
    %322 = vector.broadcast %65 : vector<128x1xf32> to vector<128x62xf32>
    %323 = arith.mulf %321, %322 : vector<128x62xf32>
    %324 = vector.broadcast %66 : vector<128x1xf32> to vector<128x62xf32>
    %325 = arith.addf %323, %324 : vector<128x62xf32>
    %c0_324 = arith.constant 0 : index
    %c0_325 = arith.constant 0 : index
    %326 = vector.load %arg20[%c0_324, %c0_325] : memref<10x128xbf16, #tpu.memory_space<vmem>>, vector<10x128xbf16>
    %327 = arith.truncf %325 : vector<128x62xf32> to vector<128x62xbf16>
    %cst_326 = arith.constant dense<0.000000e+00> : vector<10x62xf32>
    %328 = tpu.matmul %326, %327, %cst_326 {dimension_numbers = #tpu.dot_dimension_numbers<[1], [0], [0], [1], [0, 0, 1, 1], [], []>} : vector<10x128xbf16>, vector<128x62xbf16>, vector<10x62xf32> -> vector<10x62xf32>
    %329 = vector.broadcast %67 : vector<10x1xf32> to vector<10x62xf32>
    %330 = arith.addf %328, %329 : vector<10x62xf32>
    %331 = arith.truncf %330 : vector<10x62xf32> to vector<10x62xbf16>
    %332 = vector.extract_strided_slice %331 {offsets = [0, 0], sizes = [1, 62], strides = [1, 1]} : vector<10x62xbf16> to vector<1x62xbf16>
    %c0_327 = arith.constant 0 : index
    %c0_328 = arith.constant 0 : index
    %c0_329 = arith.constant 0 : index
    %333 = vector.load %arg22[%c0_327, %c0_328, %c0_329] : memref<10x62x512xbf16, #tpu.memory_space<vmem>>, vector<1x62x512xbf16>
    %334 = vector.shape_cast %333 : vector<1x62x512xbf16> to vector<62x512xbf16>
    %cst_330 = arith.constant dense<0.000000e+00> : vector<1x512xf32>
    %335 = tpu.matmul %332, %334, %cst_330 {dimension_numbers = #tpu.dot_dimension_numbers<[1], [0], [0], [1], [0, 0, 1, 1], [], []>} : vector<1x62xbf16>, vector<62x512xbf16>, vector<1x512xf32> -> vector<1x512xf32>
    %336 = arith.addf %68, %335 : vector<1x512xf32>
    %337 = vector.extract_strided_slice %331 {offsets = [1, 0], sizes = [1, 62], strides = [1, 1]} : vector<10x62xbf16> to vector<1x62xbf16>
    %c1_331 = arith.constant 1 : index
    %c0_332 = arith.constant 0 : index
    %c0_333 = arith.constant 0 : index
    %338 = vector.load %arg22[%c1_331, %c0_332, %c0_333] : memref<10x62x512xbf16, #tpu.memory_space<vmem>>, vector<1x62x512xbf16>
    %339 = vector.shape_cast %338 : vector<1x62x512xbf16> to vector<62x512xbf16>
    %cst_334 = arith.constant dense<0.000000e+00> : vector<1x512xf32>
    %340 = tpu.matmul %337, %339, %cst_334 {dimension_numbers = #tpu.dot_dimension_numbers<[1], [0], [0], [1], [0, 0, 1, 1], [], []>} : vector<1x62xbf16>, vector<62x512xbf16>, vector<1x512xf32> -> vector<1x512xf32>
    %341 = arith.addf %336, %340 : vector<1x512xf32>
    %342 = vector.extract_strided_slice %331 {offsets = [2, 0], sizes = [1, 62], strides = [1, 1]} : vector<10x62xbf16> to vector<1x62xbf16>
    %c2_335 = arith.constant 2 : index
    %c0_336 = arith.constant 0 : index
    %c0_337 = arith.constant 0 : index
    %343 = vector.load %arg22[%c2_335, %c0_336, %c0_337] : memref<10x62x512xbf16, #tpu.memory_space<vmem>>, vector<1x62x512xbf16>
    %344 = vector.shape_cast %343 : vector<1x62x512xbf16> to vector<62x512xbf16>
    %cst_338 = arith.constant dense<0.000000e+00> : vector<1x512xf32>
    %345 = tpu.matmul %342, %344, %cst_338 {dimension_numbers = #tpu.dot_dimension_numbers<[1], [0], [0], [1], [0, 0, 1, 1], [], []>} : vector<1x62xbf16>, vector<62x512xbf16>, vector<1x512xf32> -> vector<1x512xf32>
    %346 = arith.addf %341, %345 : vector<1x512xf32>
    %347 = vector.extract_strided_slice %331 {offsets = [3, 0], sizes = [1, 62], strides = [1, 1]} : vector<10x62xbf16> to vector<1x62xbf16>
    %c3_339 = arith.constant 3 : index
    %c0_340 = arith.constant 0 : index
    %c0_341 = arith.constant 0 : index
    %348 = vector.load %arg22[%c3_339, %c0_340, %c0_341] : memref<10x62x512xbf16, #tpu.memory_space<vmem>>, vector<1x62x512xbf16>
    %349 = vector.shape_cast %348 : vector<1x62x512xbf16> to vector<62x512xbf16>
    %cst_342 = arith.constant dense<0.000000e+00> : vector<1x512xf32>
    %350 = tpu.matmul %347, %349, %cst_342 {dimension_numbers = #tpu.dot_dimension_numbers<[1], [0], [0], [1], [0, 0, 1, 1], [], []>} : vector<1x62xbf16>, vector<62x512xbf16>, vector<1x512xf32> -> vector<1x512xf32>
    %351 = arith.addf %346, %350 : vector<1x512xf32>
    %352 = vector.extract_strided_slice %331 {offsets = [4, 0], sizes = [1, 62], strides = [1, 1]} : vector<10x62xbf16> to vector<1x62xbf16>
    %c4_343 = arith.constant 4 : index
    %c0_344 = arith.constant 0 : index
    %c0_345 = arith.constant 0 : index
    %353 = vector.load %arg22[%c4_343, %c0_344, %c0_345] : memref<10x62x512xbf16, #tpu.memory_space<vmem>>, vector<1x62x512xbf16>
    %354 = vector.shape_cast %353 : vector<1x62x512xbf16> to vector<62x512xbf16>
    %cst_346 = arith.constant dense<0.000000e+00> : vector<1x512xf32>
    %355 = tpu.matmul %352, %354, %cst_346 {dimension_numbers = #tpu.dot_dimension_numbers<[1], [0], [0], [1], [0, 0, 1, 1], [], []>} : vector<1x62xbf16>, vector<62x512xbf16>, vector<1x512xf32> -> vector<1x512xf32>
    %356 = arith.addf %351, %355 : vector<1x512xf32>
    %357 = vector.extract_strided_slice %331 {offsets = [5, 0], sizes = [1, 62], strides = [1, 1]} : vector<10x62xbf16> to vector<1x62xbf16>
    %c5 = arith.constant 5 : index
    %c0_347 = arith.constant 0 : index
    %c0_348 = arith.constant 0 : index
    %358 = vector.load %arg22[%c5, %c0_347, %c0_348] : memref<10x62x512xbf16, #tpu.memory_space<vmem>>, vector<1x62x512xbf16>
    %359 = vector.shape_cast %358 : vector<1x62x512xbf16> to vector<62x512xbf16>
    %cst_349 = arith.constant dense<0.000000e+00> : vector<1x512xf32>
    %360 = tpu.matmul %357, %359, %cst_349 {dimension_numbers = #tpu.dot_dimension_numbers<[1], [0], [0], [1], [0, 0, 1, 1], [], []>} : vector<1x62xbf16>, vector<62x512xbf16>, vector<1x512xf32> -> vector<1x512xf32>
    %361 = arith.addf %356, %360 : vector<1x512xf32>
    %362 = vector.extract_strided_slice %331 {offsets = [6, 0], sizes = [1, 62], strides = [1, 1]} : vector<10x62xbf16> to vector<1x62xbf16>
    %c6 = arith.constant 6 : index
    %c0_350 = arith.constant 0 : index
    %c0_351 = arith.constant 0 : index
    %363 = vector.load %arg22[%c6, %c0_350, %c0_351] : memref<10x62x512xbf16, #tpu.memory_space<vmem>>, vector<1x62x512xbf16>
    %364 = vector.shape_cast %363 : vector<1x62x512xbf16> to vector<62x512xbf16>
    %cst_352 = arith.constant dense<0.000000e+00> : vector<1x512xf32>
    %365 = tpu.matmul %362, %364, %cst_352 {dimension_numbers = #tpu.dot_dimension_numbers<[1], [0], [0], [1], [0, 0, 1, 1], [], []>} : vector<1x62xbf16>, vector<62x512xbf16>, vector<1x512xf32> -> vector<1x512xf32>
    %366 = arith.addf %361, %365 : vector<1x512xf32>
    %367 = vector.extract_strided_slice %331 {offsets = [7, 0], sizes = [1, 62], strides = [1, 1]} : vector<10x62xbf16> to vector<1x62xbf16>
    %c7 = arith.constant 7 : index
    %c0_353 = arith.constant 0 : index
    %c0_354 = arith.constant 0 : index
    %368 = vector.load %arg22[%c7, %c0_353, %c0_354] : memref<10x62x512xbf16, #tpu.memory_space<vmem>>, vector<1x62x512xbf16>
    %369 = vector.shape_cast %368 : vector<1x62x512xbf16> to vector<62x512xbf16>
    %cst_355 = arith.constant dense<0.000000e+00> : vector<1x512xf32>
    %370 = tpu.matmul %367, %369, %cst_355 {dimension_numbers = #tpu.dot_dimension_numbers<[1], [0], [0], [1], [0, 0, 1, 1], [], []>} : vector<1x62xbf16>, vector<62x512xbf16>, vector<1x512xf32> -> vector<1x512xf32>
    %371 = arith.addf %366, %370 : vector<1x512xf32>
    %372 = vector.extract_strided_slice %331 {offsets = [8, 0], sizes = [1, 62], strides = [1, 1]} : vector<10x62xbf16> to vector<1x62xbf16>
    %c8_356 = arith.constant 8 : index
    %c0_357 = arith.constant 0 : index
    %c0_358 = arith.constant 0 : index
    %373 = vector.load %arg22[%c8_356, %c0_357, %c0_358] : memref<10x62x512xbf16, #tpu.memory_space<vmem>>, vector<1x62x512xbf16>
    %374 = vector.shape_cast %373 : vector<1x62x512xbf16> to vector<62x512xbf16>
    %cst_359 = arith.constant dense<0.000000e+00> : vector<1x512xf32>
    %375 = tpu.matmul %372, %374, %cst_359 {dimension_numbers = #tpu.dot_dimension_numbers<[1], [0], [0], [1], [0, 0, 1, 1], [], []>} : vector<1x62xbf16>, vector<62x512xbf16>, vector<1x512xf32> -> vector<1x512xf32>
    %376 = arith.addf %371, %375 : vector<1x512xf32>
    %377 = vector.extract_strided_slice %331 {offsets = [9, 0], sizes = [1, 62], strides = [1, 1]} : vector<10x62xbf16> to vector<1x62xbf16>
    %c9 = arith.constant 9 : index
    %c0_360 = arith.constant 0 : index
    %c0_361 = arith.constant 0 : index
    %378 = vector.load %arg22[%c9, %c0_360, %c0_361] : memref<10x62x512xbf16, #tpu.memory_space<vmem>>, vector<1x62x512xbf16>
    %379 = vector.shape_cast %378 : vector<1x62x512xbf16> to vector<62x512xbf16>
    %cst_362 = arith.constant dense<0.000000e+00> : vector<1x512xf32>
    %380 = tpu.matmul %377, %379, %cst_362 {dimension_numbers = #tpu.dot_dimension_numbers<[1], [0], [0], [1], [0, 0, 1, 1], [], []>} : vector<1x62xbf16>, vector<62x512xbf16>, vector<1x512xf32> -> vector<1x512xf32>
    %381 = arith.addf %376, %380 : vector<1x512xf32>
    %cst_363 = arith.constant 0.000000e+00 : f32
    %382 = vector.broadcast %cst_363 : f32 to vector<1x512xf32>
    %383 = arith.maximumf %381, %382 : vector<1x512xf32>
    %384 = arith.truncf %383 : vector<1x512xf32> to vector<1x512xbf16>
    %c0_364 = arith.constant 0 : index
    %c0_365 = arith.constant 0 : index
    %385 = vector.load %arg24[%c0_364, %c0_365] : memref<512x512xbf16, #tpu.memory_space<vmem>>, vector<512x512xbf16>
    %cst_366 = arith.constant dense<0.000000e+00> : vector<1x512xf32>
    %386 = tpu.matmul %384, %385, %cst_366 {dimension_numbers = #tpu.dot_dimension_numbers<[1], [0], [0], [1], [0, 0, 1, 1], [], []>} : vector<1x512xbf16>, vector<512x512xbf16>, vector<1x512xf32> -> vector<1x512xf32>
    %387 = arith.addf %386, %69 : vector<1x512xf32>
    %cst_367 = arith.constant 0.000000e+00 : f32
    %388 = vector.broadcast %cst_367 : f32 to vector<1x512xf32>
    %389 = arith.maximumf %387, %388 : vector<1x512xf32>
    %390 = arith.truncf %389 : vector<1x512xf32> to vector<1x512xbf16>
    %c0_368 = arith.constant 0 : index
    %c0_369 = arith.constant 0 : index
    %391 = vector.load %arg26[%c0_368, %c0_369] : memref<512x3xbf16, #tpu.memory_space<vmem>>, vector<512x3xbf16>
    %cst_370 = arith.constant dense<0.000000e+00> : vector<1x3xf32>
    %392 = tpu.matmul %390, %391, %cst_370 {dimension_numbers = #tpu.dot_dimension_numbers<[1], [0], [0], [1], [0, 0, 1, 1], [], []>} : vector<1x512xbf16>, vector<512x3xbf16>, vector<1x3xf32> -> vector<1x3xf32>
    %393 = arith.addf %392, %70 : vector<1x3xf32>
    %c0_371 = arith.constant 0 : index
    %c0_372 = arith.constant 0 : index
    %c0_373 = arith.constant 0 : index
    %394 = vector.load %arg28[%c0_371, %c0_372, %c0_373] : memref<1x1x3xf32, #tpu.memory_space<vmem>>, vector<1x1x3xf32>
    %395 = vector.shape_cast %394 : vector<1x1x3xf32> to vector<1x3xf32>
    %396 = vector.shape_cast %393 : vector<1x3xf32> to vector<1x1x3xf32>
    tpu.vector_store %arg28[%c0_371, %c0_372, %c0_373], %396 {strides = array<i32>} : memref<1x1x3xf32, #tpu.memory_space<vmem>>, vector<1x1x3xf32>,
    return
  }
  func.func @transform_0(%arg0: i32) -> (i32, i32, i32, i32) {
    %c0_i32 = arith.constant 0 : i32
    %c0_i32_0 = arith.constant 0 : i32
    %c0_i32_1 = arith.constant 0 : i32
    %c0_i32_2 = arith.constant 0 : i32
    return %arg0, %c0_i32, %c0_i32_0, %c0_i32_1 : i32, i32, i32, i32
  }
  func.func @transform_1(%arg0: i32) -> (i32, i32) {
    %c0_i32 = arith.constant 0 : i32
    %c0_i32_0 = arith.constant 0 : i32
    %c0_i32_1 = arith.constant 0 : i32
    return %c0_i32, %c0_i32_0 : i32, i32
  }
  func.func @transform_2(%arg0: i32) -> (i32, i32) {
    %c0_i32 = arith.constant 0 : i32
    %c0_i32_0 = arith.constant 0 : i32
    %c0_i32_1 = arith.constant 0 : i32
    return %c0_i32, %c0_i32_0 : i32, i32
  }
  func.func @transform_3(%arg0: i32) -> (i32, i32) {
    %c0_i32 = arith.constant 0 : i32
    %c0_i32_0 = arith.constant 0 : i32
    %c0_i32_1 = arith.constant 0 : i32
    return %c0_i32, %c0_i32_0 : i32, i32
  }
  func.func @transform_4(%arg0: i32) -> (i32, i32) {
    %c0_i32 = arith.constant 0 : i32
    %c0_i32_0 = arith.constant 0 : i32
    %c0_i32_1 = arith.constant 0 : i32
    return %c0_i32, %c0_i32_0 : i32, i32
  }
  func.func @transform_5(%arg0: i32) -> (i32, i32) {
    %c0_i32 = arith.constant 0 : i32
    %c0_i32_0 = arith.constant 0 : i32
    %c0_i32_1 = arith.constant 0 : i32
    return %c0_i32, %c0_i32_0 : i32, i32
  }
  func.func @transform_6(%arg0: i32) -> (i32, i32) {
    %c0_i32 = arith.constant 0 : i32
    %c0_i32_0 = arith.constant 0 : i32
    %c0_i32_1 = arith.constant 0 : i32
    return %c0_i32, %c0_i32_0 : i32, i32
  }
  func.func @transform_7(%arg0: i32) -> (i32, i32, i32) {
    %c0_i32 = arith.constant 0 : i32
    %c0_i32_0 = arith.constant 0 : i32
    %c0_i32_1 = arith.constant 0 : i32
    %c0_i32_2 = arith.constant 0 : i32
    return %c0_i32, %c0_i32_0, %c0_i32_1 : i32, i32, i32
  }
  func.func @transform_8(%arg0: i32) -> (i32, i32) {
    %c0_i32 = arith.constant 0 : i32
    %c0_i32_0 = arith.constant 0 : i32
    %c0_i32_1 = arith.constant 0 : i32
    return %c0_i32, %c0_i32_0 : i32, i32
  }
  func.func @transform_9(%arg0: i32) -> (i32, i32) {
    %c0_i32 = arith.constant 0 : i32
    %c0_i32_0 = arith.constant 0 : i32
    %c0_i32_1 = arith.constant 0 : i32
    return %c0_i32, %c0_i32_0 : i32, i32
  }
  func.func @transform_10(%arg0: i32) -> (i32, i32) {
    %c0_i32 = arith.constant 0 : i32
    %c0_i32_0 = arith.constant 0 : i32
    %c0_i32_1 = arith.constant 0 : i32
    return %c0_i32, %c0_i32_0 : i32, i32
  }
  func.func @transform_11(%arg0: i32) -> (i32, i32, i32) {
    %c0_i32 = arith.constant 0 : i32
    %c0_i32_0 = arith.constant 0 : i32
    %c0_i32_1 = arith.constant 0 : i32
    %c0_i32_2 = arith.constant 0 : i32
    return %c0_i32, %c0_i32_0, %c0_i32_1 : i32, i32, i32
  }
  func.func @transform_12(%arg0: i32) -> (i32, i32) {
    %c0_i32 = arith.constant 0 : i32
    %c0_i32_0 = arith.constant 0 : i32
    %c0_i32_1 = arith.constant 0 : i32
    return %c0_i32, %c0_i32_0 : i32, i32
  }
  func.func @transform_13(%arg0: i32) -> (i32, i32) {
    %c0_i32 = arith.constant 0 : i32
    %c0_i32_0 = arith.constant 0 : i32
    %c0_i32_1 = arith.constant 0 : i32
    return %c0_i32, %c0_i32_0 : i32, i32
  }
  func.func @transform_14(%arg0: i32) -> (i32, i32) {
    %c0_i32 = arith.constant 0 : i32
    %c0_i32_0 = arith.constant 0 : i32
    %c0_i32_1 = arith.constant 0 : i32
    return %c0_i32, %c0_i32_0 : i32, i32
  }
  func.func @transform_15(%arg0: i32) -> (i32, i32) {
    %c0_i32 = arith.constant 0 : i32
    %c0_i32_0 = arith.constant 0 : i32
    %c0_i32_1 = arith.constant 0 : i32
    return %c0_i32, %c0_i32_0 : i32, i32
  }
  func.func @transform_16(%arg0: i32) -> (i32, i32) {
    %c0_i32 = arith.constant 0 : i32
    %c0_i32_0 = arith.constant 0 : i32
    %c0_i32_1 = arith.constant 0 : i32
    return %c0_i32, %c0_i32_0 : i32, i32
  }
  func.func @transform_17(%arg0: i32) -> (i32, i32) {
    %c0_i32 = arith.constant 0 : i32
    %c0_i32_0 = arith.constant 0 : i32
    %c0_i32_1 = arith.constant 0 : i32
    return %c0_i32, %c0_i32_0 : i32, i32
  }
  func.func @transform_18(%arg0: i32) -> (i32, i32) {
    %c0_i32 = arith.constant 0 : i32
    %c0_i32_0 = arith.constant 0 : i32
    %c0_i32_1 = arith.constant 0 : i32
    return %c0_i32, %c0_i32_0 : i32, i32
  }
  func.func @transform_19(%arg0: i32) -> (i32, i32) {
    %c0_i32 = arith.constant 0 : i32
    %c0_i32_0 = arith.constant 0 : i32
    %c0_i32_1 = arith.constant 0 : i32
    return %c0_i32, %c0_i32_0 : i32, i32
  }
  func.func @transform_20(%arg0: i32) -> (i32, i32) {
    %c0_i32 = arith.constant 0 : i32
    %c0_i32_0 = arith.constant 0 : i32
    %c0_i32_1 = arith.constant 0 : i32
    return %c0_i32, %c0_i32_0 : i32, i32
  }
  func.func @transform_21(%arg0: i32) -> (i32, i32, i32) {
    %c0_i32 = arith.constant 0 : i32
    %c0_i32_0 = arith.constant 0 : i32
    %c0_i32_1 = arith.constant 0 : i32
    %c0_i32_2 = arith.constant 0 : i32
    return %c0_i32, %c0_i32_0, %c0_i32_1 : i32, i32, i32
  }
  func.func @transform_22(%arg0: i32) -> (i32, i32) {
    %c0_i32 = arith.constant 0 : i32
    %c0_i32_0 = arith.constant 0 : i32
    %c0_i32_1 = arith.constant 0 : i32
    return %c0_i32, %c0_i32_0 : i32, i32
  }
  func.func @transform_23(%arg0: i32) -> (i32, i32) {
    %c0_i32 = arith.constant 0 : i32
    %c0_i32_0 = arith.constant 0 : i32
    %c0_i32_1 = arith.constant 0 : i32
    return %c0_i32, %c0_i32_0 : i32, i32
  }
  func.func @transform_24(%arg0: i32) -> (i32, i32) {
    %c0_i32 = arith.constant 0 : i32
    %c0_i32_0 = arith.constant 0 : i32
    %c0_i32_1 = arith.constant 0 : i32
    return %c0_i32, %c0_i32_0 : i32, i32
  }
  func.func @transform_25(%arg0: i32) -> (i32, i32) {
    %c0_i32 = arith.constant 0 : i32
    %c0_i32_0 = arith.constant 0 : i32
    %c0_i32_1 = arith.constant 0 : i32
    return %c0_i32, %c0_i32_0 : i32, i32
  }
  func.func @transform_26(%arg0: i32) -> (i32, i32) {
    %c0_i32 = arith.constant 0 : i32
    %c0_i32_0 = arith.constant 0 : i32
    %c0_i32_1 = arith.constant 0 : i32
    return %c0_i32, %c0_i32_0 : i32, i32
  }
  func.func @transform_27(%arg0: i32) -> (i32, i32, i32) {
    %c0_i32 = arith.constant 0 : i32
    %c0_i32_0 = arith.constant 0 : i32
    %c0_i32_1 = arith.constant 0 : i32
    return %arg0, %c0_i32, %c0_i32_0 : i32, i32, i32
  }
}

</mosaic_0001>

<bundles_post_ra>
// kernel: net_forward.1
= control target key start
LH: loop header
LB: loop body
LE: loop exit
PB: predicated region body
PF: predicated region fallthrough
CT: control target
= control target key end

     0   :  { %s13215_s0 = inlined_call_operand.vmem [shape: f32[2,1,7,250], index: 0, kind: input, shape index: {}]   ;;  %s13216_s1 = inlined_call_operand.vmem [shape: bf16[247,124], index: 1, kind: input, shape index: {}]   ;;  %s13217_s2 = inlined_call_operand.vmem [shape: bf16[123,62], index: 2, kind: input, shape index: {}]   ;;  %s13218_s3 = inlined_call_operand.vmem [shape: bf16[32,25], index: 3, kind: input, shape index: {}]   ;;  %s13219_s4 = inlined_call_operand.vmem [shape: f32[32,1], index: 4, kind: input, shape index: {}]   ;;  %s13220_s5 = inlined_call_operand.vmem [shape: f32[32,1], index: 5, kind: input, shape index: {}]   ;;  %s13221_s6 = inlined_call_operand.vmem [shape: f32[32,1], index: 6, kind: input, shape index: {}]   ;;  %s13222_s7 = inlined_call_operand.vmem [shape: bf16[3,64,96], index: 7, kind: input, shape index: {}]   ;;  %s13223_s8 = inlined_call_operand.vmem [shape: f32[64,1], index: 8, kind: input, shape index: {}]   ;;  %s13224_s9 = inlined_call_operand.vmem [shape: f32[64,1], index: 9, kind: input, shape index: {}]   ;;  %s13225_s10 = inlined_call_operand.vmem [shape: f32[64,1], index: 10, kind: input, shape index: {}]   ;;  %s13226_s11 = inlined_call_operand.vmem [shape: bf16[3,64,192], index: 11, kind: input, shape index: {}]   ;;  %s13227_s12 = inlined_call_operand.vmem [shape: f32[64,1], index: 12, kind: input, shape index: {}]   ;;  %s13228_s13 = inlined_call_operand.vmem [shape: f32[64,1], index: 13, kind: input, shape index: {}]   ;;  %s13229_s14 = inlined_call_operand.vmem [shape: f32[64,1], index: 14, kind: input, shape index: {}]   ;;  %s13230_s15 = inlined_call_operand.vmem [shape: bf16[128,192], index: 15, kind: input, shape index: {}]   ;;  %s13231_s16 = inlined_call_operand.vmem [shape: f32[128,1], index: 16, kind: input, shape index: {}]   ;;  %s13232_s17 = inlined_call_operand.vmem [shape: f32[128,1], index: 17, kind: input, shape index: {}]   ;;  %s13233_s18 = inlined_call_operand.vmem [shape: f32[128,1], index: 18, kind: input, shape index: {}]   ;;  %s13234_s19 = inlined_call_operand.vmem [shape: bf16[10,128], index: 19, kind: input, shape index: {}]   ;;  %s13235_s20 = inlined_call_operand.vmem [shape: f32[10,1], index: 20, kind: input, shape index: {}]   ;;  %s13236_s21 = inlined_call_operand.hbm [shape: bf16[10,62,512], index: 21, kind: input, shape index: {}]   ;;  %s13237_s22 = inlined_call_operand.vmem [shape: f32[1,512], index: 22, kind: input, shape index: {}]   ;;  %s13238_s23 = inlined_call_operand.hbm [shape: bf16[512,512], index: 23, kind: input, shape index: {}]   ;;  %s13239_s24 = inlined_call_operand.vmem [shape: f32[1,512], index: 24, kind: input, shape index: {}]   ;;  %s13240_s25 = inlined_call_operand.vmem [shape: bf16[512,3], index: 25, kind: input, shape index: {}]   ;;  %s13241_s26 = inlined_call_operand.vmem [shape: f32[1,3], index: 26, kind: input, shape index: {}]   ;;  %s13242_s27 = inlined_call_operand.hbm [shape: f32[2,1,3], index: 27, kind: output, shape index: {}]  }
   0x1   :  { %13280 = sst [smem:[#allocation22_spill]] %s13215_s0 }
   0x2   :  { %13281 = sst [smem:[#allocation23_spill]] %s13216_s1 }
   0x3   :  { %13282 = sst [smem:[#allocation24_spill]] %s13217_s2 }
   0x4   :  { %13283 = sst [smem:[#allocation25_spill]] %s13218_s3 }
   0x5   :  { %13284 = sst [smem:[#allocation26_spill]] %s13219_s4 }
   0x6   :  { %13285 = sst [smem:[#allocation27_spill]] %s13220_s5 }
   0x7   :  { %13286 = sst [smem:[#allocation28_spill]] %s13221_s6 }
   0x8   :  { %13287 = sst [smem:[#allocation29_spill]] %s13222_s7 }
   0x9   :  { %13288 = sst [smem:[#allocation30_spill]] %s13223_s8 }
   0xa   :  { %13289 = sst [smem:[#allocation31_spill]] %s13224_s9 }
   0xb   :  { %13290 = sst [smem:[#allocation32_spill]] %s13225_s10 }
   0xc   :  { %13291 = sst [smem:[#allocation33_spill]] %s13226_s11 }
   0xd   :  { %13292 = sst [smem:[#allocation34_spill]] %s13227_s12 }
   0xe   :  { %13293 = sst [smem:[#allocation35_spill]] %s13236_s21 }
   0xf   :  { %13294 = sst [smem:[#allocation36_spill]] %s13238_s23 }
  0x10   :  { %13295 = sst [smem:[#allocation37_spill]] %s13241_s26 }
  0x11   :  { %13296 = sst [smem:[#allocation38_spill]] %s13242_s27 }
  0x12   :  { %32 = vsyncpa [#allocation7], 0 }
  0x13   :  { %33 = vsyncpa [#allocation10], 0 }
  0x14   :  { %34 = vsyncpa [#allocation8], 0 }
  0x15   :  { %36 = vsyncpa [#allocation8 + $0x1], 0  ;;  %s10660_s7 = smov 0   ;;  %s10662_s4 = smov 0  }
  0x16   :  { %s10664_s8 = smov 0   ;;  %s10666_s30 = smov 0  }
  0x17 LB: > { %13297 = sst [smem:[#allocation15_spill]] %s10494_s7  ;;  %s10681_s9 = sadd.s32 4294967295, %s10506_s30   ;;  %s10506_s30 = sphi %s10666_s30, %s13335_s30   ;;  %s10502_s8 = sphi %s10664_s8, %s13337_s8   ;;  %s10498_s4 = sphi %s10662_s4, %s13339_s4   ;;  %s10494_s7 = sphi %s10660_s7, %s13338_s7  }
  0x18   : > { %13298 = sst [smem:[#allocation16_spill]] %s10502_s8  ;;  %s7772_s5 = sadd.s32 4294967294, %s10506_s30  }
  0x19   : > { %13299 = sst [smem:[#allocation17_spill]] %s10506_s30  ;;  %s10685_s28 = sadd.s32 1, %s10506_s30  }
  0x1a   : > { %13300 = sst [smem:[#allocation18_spill]] %s10685_s28  ;;  %s621_s0 = sadd.s32 1, %s10502_s8 }
  0x1b   : > { %s618_s10 = ssub.s32 %s10506_s30, %s10685_s28  ;;  %p631_p0 = scmp.ne.s32.totalorder %s10502_s8, %s10498_s4 }
  0x1c   : > { %p619_p1 = scmp.eq.s32.totalorder %s618_s10, 0  ;;  %p632_p2 = scmp.eq.s32.totalorder %s10681_s9, 1 }
  0x1d   : > { %p637_p3 = scmp.ne.s32.totalorder %s10498_s4, %s10494_s7  ;;  %p638_p4 = scmp.eq.s32.totalorder %s7772_s5, 1 }
  0x1e   : > { %s10696_s29 = scalar_select %p619_p1, %s10502_s8, %s621_s0  }
  0x1f   : > { %p10698_p5 = por %p632_p2, %p631_p0  ;;  %p10702_p6 = por %p638_p4, %p637_p3 }
  0x20   : > { %13301 = sst [smem:[#allocation19_spill]] %s10696_s29  ;;  %p7773_p7 = scmp.ge.s32.totalorder %s10506_s30, 1 }
  0x21   : > { %s13302_s1 = scalar_select %p10698_p5, 1, 0 }
  0x22   : > { %s13304_s6 = scalar_select %p10702_p6, 1, 0 }
  0x23   : > { %13303 = sst [smem:[#allocation20_spill]] %s13302_s1  ;;  %p645_p8 = scmp.lt.s32.totalorder %s10506_s30, 3 }
  0x24   : > { %13305 = sst [smem:[#allocation21_spill]] %s13304_s6  ;;  %p10184_p9 = scmp.eq.s32.totalorder %s10681_s9, 0 }
  0x25   : > { %p10709_p10 = pnand %p7773_p7, %p645_p8  ;;  %s13307_s21 = sld [smem:[#allocation35_spill]] }
  0x26   : > { %s10508_s0 = smov [#allocation6]   ;;  %s13308_s23 = sld [smem:[#allocation36_spill]] }
  0x27   : > { %p10173_p11 = pneg %p10709_p10  ;;  %s718_s10 = sshll.u32 %s10508_s0, 4  ;;  %s719_s10 = int_to_ptr.vmem [resolvable:$true] %s718_s10 }
  0x28   : > { %s10509_s6 = smov 256   ;;  %s10510_s7 = smov 16  }
  0x29   : > { %p10174_p12 = pnand %p10184_p9, %p10173_p11  ;;  %s10511_s30 = smov [#allocation9]  }
  0x2a   : > { %s735_s2 = sshll.u32 %s10511_s30, 4  ;;  %768 = sbr.rel (%p10709_p10) target bundleno = 3576 (0xdf8), region = 128  ;;  %s736_s2 = int_to_ptr.vmem [resolvable:$true] %s735_s2 }
  0x2b   : > { %s716_s5 = sshll.u32 %s13307_s21, 4  ;;  %s717_s5 = int_to_ptr.hbm [resolvable:$true] %s716_s5 }
  0x2c   : > { %s733_s28 = sshll.u32 %s13308_s23, 4  ;;  %s734_s28 = int_to_ptr.hbm [resolvable:$true] %s733_s28 }
  0x2d   : > { %10176 = dma.hbm_to_vmem [thread:$0]  (!%p10174_p12), %s717_s5, 20480, %s719_s10, [#allocation7], %s10509_s6, %s10509_s6, %s10510_s7  }
  0x2e   : > { %10179 = dma.hbm_to_vmem [thread:$0]  (!%p10174_p12), %s734_s28, 16384, %s736_s2, [#allocation10], %s10509_s6, %s10509_s6, %s10510_s7  }
  0x2f   : > { %10481 = dma.done.wait (%p10184_p9), [#allocation7], 20480  }
  0x30   : > { %10483 = vsyncadd (%p10184_p9), [#allocation7], 4294946816 }
  0x31   : > { %10485 = dma.done.wait (%p10184_p9), [#allocation10], 16384  }
  0x32   : > { %10487 = vsyncadd (%p10184_p9), [#allocation10], 4294950912  ;;  %p845_p13 = scmp.lt.s32.totalorder %s10681_s9, 1  ;;  %v851_v0 = vlaneseq  ;;  %vm860_vm1 = vcmask 7168   ;;  %v10512_v1 = vmov 0.0   ;;  %s13309_s29 = sld [smem:[#allocation22_spill]] }
  0x33   : > { %s13264_s11 = smov 1   ;;  %vm864_vm2 = vcmask 1015768   ;;  %vm979_vm3 = vcmask 1047561   ;;  %vm981_vm4 = vcmask 1006593   ;;  %s10514_s3 = smov 125   ;;  %vm1200_vm5 = vcmask 1043456  }
  0x34   : > { %s846_s7 = scalar_select %p845_p13, %s10681_s9, 1  ;;  %vm853_vm0 = vcmp.lt.s32.totalorder %v851_v0, 252  ;;  %vm1191_vm6 = vcmask 1044480   ;;  %vm1177_vm7 = vcmask 1022976   ;;  %vm1167_vm8 = vcmask 1031168  }
  0x35   : > { %855 = vst.msk [vmem:[#allocation2] ss:$8 sm:$0x3] %vm853_vm0, %v10512_v1  ;;  %s13260_s5 = smov 127   ;;  %s10516_s0 = smov 124   ;;  %vm1187_vm9 = vcmask 1014784  }
  0x36   : > { %s9720_s8 = sshll.u32 %s846_s7, 4  ;;  %861 = vst.msk [vmem:[#allocation2] sm:$0xff] %vm860_vm1, %v10512_v1  ;;  %s13262_s10 = smov 126   ;;  %vm1194_vm10 = vcmask 1041408   ;;  %vm1157_vm11 = vcmask 1039360   ;;  %vm1197_vm12 = vcmask 1046528  }
  0x37   : > { %865 = vst.msk [vmem:[#allocation2 + $0x8] sm:$0xff] %vm864_vm2, %v10512_v1  ;;  %vm1217_vm13 = vcmask 203776   ;;  %vm1744_vm14 = vcmask 1042432   ;;  %vm1737_vm15 = vcmask 973824   ;;  %vm868_vm0 = vcmask 1027072   ;;  %s13317_s30 = smov 126  }
  0x38   : > { %s849_s6 = scalar_lea.vmem %s13309_s29, %s9720_s8  ;;  %s13310_s8 = sld [smem:[#allocation25_spill]]  ;;  %vm901_vm2 = vcmask 1028072  }
  0x39   : > { %v966_v2 = vld [vmem:[%s849_s6] sm:$0x7f]  ;;  %v967_v4 = vld [vmem:[%s849_s6 + $0x8] sm:$0x7f]  ;;  %s13318_s29 = smov 127   ;;  %s13320_s21 = sld [smem:[#allocation30_spill]] }
  0x3a   : > { %v970_v3 = vrot.slane %v966_v2, 7  ;;  %v971_v5 = vrot.slane %v967_v4, 7  ;;  %v13277_v4 = vmov 65535   ;;  %s13322_s1 = sld [smem:[#allocation31_spill]] }
  0x3b   : > { %s13324_s12 = sld [smem:[#allocation34_spill]] }
  0x3c   : > { %972 = vrot.lane.b32.xlu0 %v970_v3, %s13264_s11  ;;  %s13325_s27 = sld [smem:[#allocation24_spill]] }
  0x3d   : > { %s13328_s26 = sld [smem:[#allocation37_spill]] }
  0x3e   : > { %s13311_s28 = smov %s13310_s8  ;;  %s13329_s7 = sld [smem:[#allocation38_spill]] }
  0x44   : > { %974 = vrot.lane.b32.xlu0 %v971_v5, %s13264_s11  ;;  %v1224_v5 = vsel %vm1200_vm5, 4294967295, %v13277_v4  ;;  %s13314_s11 = sld [smem:[#allocation27_spill]]  ;;  %s13330_s23 = smov %s13329_s7 }
  0x45   : > { %s7691_s6 = scalar_lea.hbm %s13329_s7, %s10681_s9 }
  0xae   : > { %v973_v6 = vpop.permute.xlu0 %972 }
  0xaf   : > { %980 = vst.msk [vmem:[#allocation2] sm:$0xfe] %vm979_vm3, %v973_v6  ;;  %vm1860_vm3 = vcmask 1018888  }
  0xb6   : > { %v975_v7 = vpop.permute.xlu0 %974  ;;  %v10742_v9 = vld [vmem:[#allocation2] sm:$0x3e] }
  0xb7   : > { %v976_v8 = vsel %vm860_vm1, %v973_v6, %v975_v7  ;;  %v10744_v10 = vld [vmem:[#allocation2] sm:$0x1f]  ;;  %v1296_v12 = vrot.slane %v10742_v9, 2  ;;  %v1278_v13 = vrot.slane %v10742_v9, 4  ;;  %v1305_v25 = vrot.slane %v10742_v9, 5 }
  0xb8   : > { %982 = vst.msk [vmem:[#allocation2 + $0x8] sm:$0xfe] %vm981_vm4, %v976_v8  ;;  %v1171_v17 = vrot.slane %v10744_v10, 1  ;;  %v1287_v26 = vrot.slane %v10742_v9, 7  ;;  %v1161_v27 = vrot.slane %v10744_v10, 6  ;;  %v1181_v36 = vrot.slane %v10744_v10, 4 }
  0xb9   : > { %v10771_v33 = vld [vmem:[#allocation2] sm:$0xf8]  ;;  %v1151_v37 = vrot.slane %v10744_v10, 3  ;;  %vm896_vm1 = vcmask 3072   ;;  %vm2057_vm4 = vcmask 785408  }
  0xba   : > { %v1476_v38 = vrot.slane %v10771_v33, 6  ;;  %v10784_v44 = vld [vmem:[#allocation2] sm:$0x7c]  ;;  %v1494_v47 = vrot.slane %v10771_v33, 4  ;;  %v1503_v48 = vrot.slane %v10771_v33, 7  ;;  %v1485_v55 = vrot.slane %v10771_v33, 1 }
  0xbb   : > { %v1403_v49 = vrot.slane %v10784_v44, 6  ;;  %v1394_v56 = vrot.slane %v10784_v44, 3  ;;  %v1378_v60 = vrot.slane %v10784_v44, 5 }
  0xbf   : > { %v10746_v11 = vld [vmem:[#allocation2 + $0x8] sm:$0x3e] }
  0xc0   : > { %v10750_v14 = vld [vmem:[#allocation2 + $0x8] sm:$0x1f]  ;;  %v1297_v15 = vrot.slane %v10746_v11, 2  ;;  %v1279_v16 = vrot.slane %v10746_v11, 4  ;;  %v1306_v22 = vrot.slane %v10746_v11, 5  ;;  %v1288_v23 = vrot.slane %v10746_v11, 7 }
  0xc1   : > { %v1172_v18 = vrot.slane %v10750_v14, 1  ;;  %v1162_v24 = vrot.slane %v10750_v14, 6  ;;  %v10767_v31 = vld [vmem:[#allocation2 + $0x8] sm:$0xf8]  ;;  %v1182_v32 = vrot.slane %v10750_v14, 4  ;;  %v1152_v34 = vrot.slane %v10750_v14, 3 }
  0xc2   : > { %v10233_v19 = vpack.i.bf16 %v1297_v15, %v1296_v12  ;;  %v10243_v20 = vpack.i.bf16 %v1279_v16, %v1278_v13  ;;  %v10238_v28 = vpack.i.bf16 %v1306_v22, %v1305_v25  ;;  %v10248_v29 = vpack.i.bf16 %v1288_v23, %v1287_v26  ;;  %v10780_v42 = vld [vmem:[#allocation2 + $0x8] sm:$0x7c] }
  0xc3   : > { %v10253_v21 = vpack.i.bf16 %v1172_v18, %v1171_v17  ;;  %v10268_v30 = vpack.i.bf16 %v1162_v24, %v1161_v27  ;;  %v1477_v35 = vrot.slane %v10767_v31, 6  ;;  %v10258_v39 = vpack.i.bf16 %v1182_v32, %v1181_v36 }
  0xc4   : > { %10234 = vrot.lane.b32.xlu1 %v10233_v19, %s10514_s3  ;;  %10244 = vrot.lane.b32.xlu2 %v10243_v20, %s13260_s5  ;;  %v10263_v40 = vpack.i.bf16 %v1152_v34, %v1151_v37  ;;  %v1495_v43 = vrot.slane %v10767_v31, 4  ;;  %v1504_v45 = vrot.slane %v10767_v31, 7  ;;  %v1404_v46 = vrot.slane %v10780_v42, 6 }
  0xc5   : > { %10254 = vrot.lane.b32.xlu0 %v10253_v21, %s10514_s3  ;;  %v10283_v41 = vpack.i.bf16 %v1477_v35, %v1476_v38  ;;  %v1486_v53 = vrot.slane %v10767_v31, 1  ;;  %v1395_v54 = vrot.slane %v10780_v42, 3  ;;  %v1379_v59 = vrot.slane %v10780_v42, 5 }
  0xc6   : > { %v10273_v50 = vpack.i.bf16 %v1495_v43, %v1494_v47  ;;  %v10278_v51 = vpack.i.bf16 %v1504_v45, %v1503_v48  ;;  %v10298_v52 = vpack.i.bf16 %v1404_v46, %v1403_v49  ;;  %v10308_v62 = vpack.i.bf16 %v10780_v42, %v10784_v44 }
  0xc7   : > { %v10288_v57 = vpack.i.bf16 %v1486_v53, %v1485_v55  ;;  %v10293_v58 = vpack.i.bf16 %v1395_v54, %v1394_v56  ;;  %v10303_v61 = vpack.i.bf16 %v1379_v59, %v1378_v60  ;;  %v10813_v21 = vsel %vm1191_vm6, %v1224_v5, 0 }
  0xc8   : > { %v1274_v46 = vrot.slane %v10742_v9, 1  ;;  %v10839_v9 = vld [vmem:[%s13310_s8] sm:$0xff]  ;;  %s13316_s8 = smov 1  }
  0xcc   : > { %10239 = vrot.lane.b32.xlu1 %v10238_v28, %s10516_s0  ;;  %10249 = vrot.lane.b32.xlu2 %v10248_v29, %s13262_s10  ;;  %v1275_v29 = vrot.slane %v10746_v11, 1 }
  0xcd   : > { %10269 = vrot.lane.b32.xlu0 %v10268_v30, %s13262_s10 }
  0xd4   : > { %10259 = vrot.lane.b32.xlu1 %v10258_v39, %s10516_s0  ;;  %10264 = vrot.lane.b32.xlu2 %v10263_v40, %s13260_s5 }
  0xd5   : > { %10284 = vrot.lane.b32.xlu0 %v10283_v41, %s13260_s5 }
  0xdc   : > { %10274 = vrot.lane.b32.xlu1 %v10273_v50, %s10514_s3  ;;  %10279 = vrot.lane.b32.xlu2 %v10278_v51, %s10516_s0 }
  0xdd   : > { %10299 = vrot.lane.b32.xlu0 %v10298_v52, %s10516_s0  ;;  %s13312_s0 = sld [smem:[#allocation23_spill]] }
  0xe4   : > { %10289 = vrot.lane.b32.xlu1 %v10288_v57, %s13262_s10  ;;  %10294 = vrot.lane.b32.xlu2 %v10293_v58, %s10514_s3  ;;  %s13315_s3 = sld [smem:[#allocation28_spill]] }
  0xec   : > { %10304 = vrot.lane.b32.xlu1 %v10303_v61, %s13260_s5  ;;  %10309 = vrot.lane.b32.xlu2 %v10308_v62, %s13262_s10  ;;  %s13313_s10 = sld [smem:[#allocation26_spill]] }
 0x11e   : > { %v10245_v63 = vpop.permute.xlu2 %10244 }
 0x11f   : > { %v10247_v15 = vunpack.i.h.bf16 %v10245_v63  ;;  %v10246_v16 = vunpack.i.l.bf16 %v10245_v63 }
 0x121   : > { %v1284_v32 = vsel %vm1157_vm11, %v10246_v16, %v10247_v15  ;;  %v1315_v51 = vsel %vm1191_vm6, %v1275_v29, %v10247_v15 }
 0x122   : > { %v1314_v53 = vsel %vm1191_vm6, %v1274_v46, %v1284_v32 }
 0x126   : > { %v10250_v0 = vpop.permute.xlu2 %10249 }
 0x127   : > { %v10252_v6 = vunpack.i.h.bf16 %v10250_v0  ;;  %v10251_v7 = vunpack.i.l.bf16 %v10250_v0 }
 0x129   : > { %v1293_v25 = vsel %vm1167_vm8, %v10251_v7, %v10252_v6  ;;  %v1317_v30 = vsel %vm1194_vm10, %v10247_v15, %v10252_v6 }
 0x12a   : > { %v1316_v37 = vsel %vm1194_vm10, %v1284_v32, %v1293_v25 }
 0x12e   : > { %v10806_v1 = vpop.permute.xlu2 %10264 }
 0x12f   : > { %v10267_v43 = vunpack.i.h.bf16 %v10806_v1  ;;  %v10266_v11 = vunpack.i.l.bf16 %v10806_v1 }
 0x131   : > { %v1158_v63 = vsel %vm1157_vm11, %v10266_v11, %v10267_v43 }
 0x136   : > { %v10235_v2 = vpop.permute.xlu1 %10234  ;;  %v10810_v20 = vpop.permute.xlu2 %10279 }
 0x137   : > { %v10255_v3 = vpop.permute.xlu0 %10254  ;;  %v10237_v8 = vunpack.i.h.bf16 %v10235_v2  ;;  %v10236_v12 = vunpack.i.l.bf16 %v10235_v2  ;;  %v10282_v2 = vunpack.i.h.bf16 %v10810_v20 }
 0x138   : > { %v10257_v38 = vunpack.i.h.bf16 %v10255_v3  ;;  %v10256_v39 = vunpack.i.l.bf16 %v10255_v3  ;;  %v10281_v3 = vunpack.i.l.bf16 %v10810_v20  ;;  %v1192_v20 = vsel %vm1191_vm6, %v10744_v10, %v1158_v63 }
 0x139   : > { %v1302_v23 = vsel %vm1177_vm7, %v10236_v12, %v10237_v8  ;;  %v1319_v41 = vsel %vm1197_vm12, %v1317_v30, %v10237_v8 }
 0x13a   : > { %v1318_v47 = vsel %vm1197_vm12, %v1316_v37, %v1302_v23  ;;  %v1323_v52 = vpack.c.bf16 %v1319_v41, %v1315_v51  ;;  %v1178_v57 = vsel %vm1177_vm7, %v10256_v39, %v10257_v38  ;;  %v1509_v25 = vsel %vm1187_vm9, %v10281_v3, %v10282_v2 }
 0x13b   : > { %v1322_v55 = vpack.c.bf16 %v1318_v47, %v1314_v53 }
 0x13e   : > { %v10240_v13 = vpop.permute.xlu1 %10239  ;;  %v10295_v59 = vpop.permute.xlu2 %10294 }
 0x13f   : > { %v10242_v17 = vunpack.i.h.bf16 %v10240_v13  ;;  %v10241_v18 = vunpack.i.l.bf16 %v10240_v13  ;;  %v10270_v19 = vpop.permute.xlu0 %10269  ;;  %v10851_v6 = vunpack.i.h.bf16 %v10295_v59  ;;  %v10296_v7 = vunpack.i.l.bf16 %v10295_v59 }
 0x140   : > { %v10272_v34 = vunpack.i.h.bf16 %v10270_v19  ;;  %v10271_v35 = vunpack.i.l.bf16 %v10270_v19  ;;  %v1193_v19 = vsel %vm1191_vm6, %v10750_v14, %v10267_v43 }
 0x141   : > { %v1321_v22 = vsel %vm1200_vm5, %v10237_v8, %v10242_v17  ;;  %v1311_v24 = vsel %vm1187_vm9, %v10241_v18, %v10242_v17 }
 0x142   : > { %v1325_v26 = vpack.c.bf16 %v10242_v17, %v1321_v22  ;;  %v1320_v27 = vsel %vm1200_vm5, %v1302_v23, %v1311_v24  ;;  %v1168_v54 = vsel %vm1167_vm8, %v10271_v35, %v10272_v34  ;;  %v1196_v62 = vsel %vm1194_vm10, %v10267_v43, %v10272_v34 }
 0x143   : > { %v1324_v28 = vpack.c.bf16 %v1311_v24, %v1320_v27  ;;  %v1195_v1 = vsel %vm1194_vm10, %v1158_v63, %v1168_v54  ;;  %v1199_v12 = vsel %vm1197_vm12, %v1196_v62, %v10257_v38 }
 0x144   : > { %v1330_v36 = vand.u32 %v1325_v26, %v10813_v21  ;;  %v1198_v15 = vsel %vm1197_vm12, %v1195_v1, %v1178_v57  ;;  %v1204_v24 = vpack.c.bf16 %v1199_v12, %v1193_v19  ;;  %v1374_v1 = vrot.slane %v10784_v44, 2 }
 0x145   : > { %v1327_v40 = vand.u32 %v1324_v28, %v10813_v21  ;;  %v1203_v26 = vpack.c.bf16 %v1198_v15, %v1192_v20  ;;  %v1400_v28 = vsel %vm1177_vm7, %v10296_v7, %v10851_v6 }
 0x146   : > { %1357 = vmatpush.bf16.msra.mxu3 %v1330_v36  ;;  %v10260_v45 = vpop.permute.xlu1 %10259 }
 0x147   : > { %v10262_v48 = vunpack.i.h.bf16 %v10260_v45  ;;  %v10261_v49 = vunpack.i.l.bf16 %v10260_v45  ;;  %v10831_v50 = vpop.permute.xlu0 %10284  ;;  %1338 = vmatpush.bf16.msra.mxu2 %v1327_v40 }
 0x148   : > { %v10287_v37 = vunpack.i.h.bf16 %v10831_v50 }
 0x149   : > { %v1202_v56 = vsel %vm1200_vm5, %v10257_v38, %v10262_v48  ;;  %v1188_v58 = vsel %vm1187_vm9, %v10261_v49, %v10262_v48  ;;  %v10286_v38 = vunpack.i.l.bf16 %v10831_v50  ;;  %v9745_v50 = vld [vmem:[%s13311_s28 + $0x8] sm:$0xff]  ;;  %s13321_s28 = sld [smem:[#allocation32_spill]] }
 0x14a   : > { %1358 = vmatpush.bf16.msra.mxu3 %v1323_v52  ;;  %v1206_v60 = vpack.c.bf16 %v10262_v48, %v1202_v56  ;;  %v1201_v61 = vsel %vm1200_vm5, %v1178_v57, %v1188_v58  ;;  %v1473_v48 = vrot.slane %v10767_v31, 3  ;;  %v1472_v52 = vrot.slane %v10771_v33, 3 }
 0x14b   : > { %1339 = vmatpush.bf16.msra.mxu2 %v1322_v55  ;;  %v1205_v0 = vpack.c.bf16 %v1188_v58, %v1201_v61  ;;  %v1482_v49 = vsel %vm1157_vm11, %v10286_v38, %v10287_v37 }
 0x14c   : > { %v1230_v5 = vand.u32 %v10813_v21, %v1206_v60  ;;  %v1513_v54 = vsel %vm1191_vm6, %v1473_v48, %v10287_v37  ;;  %v1512_v57 = vsel %vm1191_vm6, %v1472_v52, %v1482_v49 }
 0x14d   : > { %7796 = vmatmul.msk.bf16.vlgmr.msra.gmra.mxu3 %vm1217_vm13, %v10839_v9  ;;  %v1227_v8 = vand.u32 %v10813_v21, %v1205_v0  ;;  %v1375_v0 = vrot.slane %v10780_v42, 2 }
 0x14e   : > { %7794 = vmatmul.msk.bf16.vlgmr.msra.gmra.mxu2 %vm1217_vm13, %v10839_v9  ;;  %v10275_v13 = vpop.permute.xlu1 %10274  ;;  %1257 = vmatpush.bf16.msra.mxu1 %v1230_v5 }
 0x14f   : > { %v10277_v16 = vunpack.i.h.bf16 %v10275_v13  ;;  %v10276_v17 = vunpack.i.l.bf16 %v10275_v13  ;;  %v10300_v18 = vpop.permute.xlu0 %10299  ;;  %1238 = vmatpush.bf16.msra.mxu0 %v1227_v8 }
 0x150   : > { %v10302_v22 = vunpack.i.h.bf16 %v10300_v18  ;;  %v10301_v23 = vunpack.i.l.bf16 %v10300_v18 }
 0x151   : > { %v1519_v27 = vsel %vm1200_vm5, %v10277_v16, %v10282_v2  ;;  %v1500_v29 = vsel %vm1177_vm7, %v10276_v17, %v10277_v16  ;;  %vm3841_vm7 = vcmask 1045504  }
 0x152   : > { %1258 = vmatpush.bf16.msra.mxu1 %v1204_v24  ;;  %v1419_v14 = vsel %vm1200_vm5, %v10851_v6, %v10302_v22  ;;  %v1523_v30 = vpack.c.bf16 %v10282_v2, %v1519_v27  ;;  %v1409_v10 = vsel %vm1187_vm9, %v10301_v23, %v10302_v22  ;;  %v1518_v32 = vsel %vm1200_vm5, %v1500_v29, %v1509_v25 }
 0x153   : > { %1239 = vmatpush.bf16.msra.mxu0 %v1203_v26  ;;  %v1423_v34 = vpack.c.bf16 %v10302_v22, %v1419_v14  ;;  %v1418_v35 = vsel %vm1200_vm5, %v1400_v28, %v1409_v10  ;;  %v1522_v36 = vpack.c.bf16 %v1509_v25, %v1518_v32  ;;  %vm4020_vm9 = vcmask 510984  }
 0x154   : > { %v1528_v39 = vand.u32 %v1523_v30, %v10813_v21  ;;  %v1422_v40 = vpack.c.bf16 %v1409_v10, %v1418_v35 }
 0x155   : > { %7792 = vmatmul.msk.bf16.vlgmr.msra.gmra.mxu1 %vm1217_vm13, %v10839_v9  ;;  %v1428_v41 = vand.u32 %v1423_v34, %v10813_v21  ;;  %v1525_v43 = vand.u32 %v1522_v36, %v10813_v21 }
 0x156   : > { %v10290_v11 = vpop.permute.xlu1 %10289  ;;  %7790 = vmatmul.msk.bf16.vlgmr.msra.gmra.mxu0 %vm1217_vm13, %v10839_v9  ;;  %1555 = vmatpush.bf16.msrb.mxu3 %v1528_v39  ;;  %v1425_v45 = vand.u32 %v1422_v40, %v10813_v21  ;;  %v10310_v21 = vpop.permute.xlu2 %10309 }
 0x157   : > { %v10292_v46 = vunpack.i.h.bf16 %v10290_v11  ;;  %v10291_v47 = vunpack.i.l.bf16 %v10290_v11  ;;  %1455 = vmatpush.bf16.msrb.mxu1 %v1428_v41  ;;  %1536 = vmatpush.bf16.msrb.mxu2 %v1525_v43  ;;  %v10312_v60 = vunpack.i.h.bf16 %v10310_v21  ;;  %v10311_v61 = vunpack.i.l.bf16 %v10310_v21 }
 0x158   : > { %1436 = vmatpush.bf16.msrb.mxu0 %v1425_v45 }
 0x159   : > { %v1515_v51 = vsel %vm1194_vm10, %v10287_v37, %v10292_v46  ;;  %v1491_v53 = vsel %vm1167_vm8, %v10291_v47, %v10292_v46  ;;  %v1391_v7 = vsel %vm1167_vm8, %v10311_v61, %v10312_v60  ;;  %vm957_vm8 = vcmask 519672  }
 0x15a   : > { %v1517_v55 = vsel %vm1197_vm12, %v1515_v51, %v10277_v16  ;;  %v1514_v56 = vsel %vm1194_vm10, %v1482_v49, %v1491_v53 }
 0x15b   : > { %v1521_v31 = vpack.c.bf16 %v1517_v55, %v1513_v54  ;;  %v1516_v58 = vsel %vm1197_vm12, %v1514_v56, %v1500_v29 }
 0x15c   : > { %v1520_v59 = vpack.c.bf16 %v1516_v58, %v1512_v57 }
 0x15d   : > { %7797 = vmatmul.msk.bf16.gmra.mxu3 %vm1217_vm13, %v9745_v50 }
 0x15e   : > { %1556 = vmatpush.bf16.msrb.mxu3 %v1521_v31  ;;  %7795 = vmatmul.msk.bf16.gmra.mxu2 %vm1217_vm13, %v9745_v50  ;;  %v10305_v33 = vpop.permute.xlu1 %10304 }
 0x15f   : > { %v10307_v62 = vunpack.i.h.bf16 %v10305_v33  ;;  %v10306_v63 = vunpack.i.l.bf16 %v10305_v33  ;;  %1537 = vmatpush.bf16.msrb.mxu2 %v1520_v59 }
 0x161   : > { %v1413_v2 = vsel %vm1191_vm6, %v1375_v0, %v10307_v62  ;;  %v1415_v3 = vsel %vm1194_vm10, %v10307_v62, %v10312_v60  ;;  %v1384_v5 = vsel %vm1157_vm11, %v10306_v63, %v10307_v62 }
 0x162   : > { %v1417_v8 = vsel %vm1197_vm12, %v1415_v3, %v10851_v6  ;;  %v1412_v12 = vsel %vm1191_vm6, %v1374_v1, %v1384_v5  ;;  %v1414_v13 = vsel %vm1194_vm10, %v1384_v5, %v1391_v7  ;;  %v1126_v7 = vld [vmem:[%s13312_s0 + $0x78] sm:$0xf] }
 0x163   : > { %v1421_v15 = vpack.c.bf16 %v1417_v8, %v1413_v2  ;;  %v1416_v42 = vsel %vm1197_vm12, %v1414_v13, %v1400_v28  ;;  %v9728_v8 = vld [vmem:[%s13312_s0 + $0x38] sm:$0xff]  ;;  %v1745_v13 = vsel %vm1744_vm14, 4294967295, %v13277_v4  ;;  %vm4794_vm14 = vcmask 1042434  }
 0x164   : > { %v1420_v16 = vpack.c.bf16 %v1416_v42, %v1412_v12  ;;  %v1705_v12 = vunpack.c.l.b16 %v1126_v7  ;;  %1927 = vmatpush.bf16.msra.mxu2 %v9728_v8  ;;  %v9727_v42 = vld [vmem:[%s13312_s0 + $0x30] sm:$0xff] }
 0x165   : > { %7793 = vmatmul.msk.bf16.gmra.mxu1 %vm1217_vm13, %v9745_v50 }
 0x166   : > { %1456 = vmatpush.bf16.msrb.mxu1 %v1421_v15  ;;  %7791 = vmatmul.msk.bf16.gmra.mxu0 %vm1217_vm13, %v9745_v50  ;;  %v1746_v15 = vsel %vm1200_vm5, %v1745_v13, 0  ;;  %vm2998_vm5 = vcmask 523264  }
 0x167   : > { %1437 = vmatpush.bf16.msrb.mxu0 %v1420_v16  ;;  %v1721_v16 = vpack.c.b16 %v1705_v12, %v1705_v12 }
 0x168   : > { %1928 = vmatpush.bf16.msra.mxu2 %v9727_v42 }
 0x16b   : > { %1750 = vmatpush.bf16.msra.mxu0 %v9728_v8 }
 0x16d   : > { %7804 = vmatmul.msk.bf16.vlgmr.msrb.gmra.mxu3 %vm1217_vm13, %v10839_v9 }
 0x16e   : > { %7802 = vmatmul.msk.bf16.vlgmr.msrb.gmra.mxu2 %vm1217_vm13, %v10839_v9 }
 0x16f   : > { %1751 = vmatpush.bf16.msra.mxu0 %v9727_v42 }
 0x175   : > { %7800 = vmatmul.msk.bf16.vlgmr.msrb.gmra.mxu1 %vm1217_vm13, %v10839_v9 }
 0x176   : > { %7798 = vmatmul.msk.bf16.vlgmr.msrb.gmra.mxu0 %vm1217_vm13, %v10839_v9 }
 0x17d   : > { %7805 = vmatmul.msk.bf16.gmra.mxu3 %vm1217_vm13, %v9745_v50 }
 0x17e   : > { %7803 = vmatmul.msk.bf16.gmra.mxu2 %vm1217_vm13, %v9745_v50 }
 0x185   : > { %7801 = vmatmul.msk.bf16.gmra.mxu1 %vm1217_vm13, %v9745_v50 }
 0x186   : > { %7799 = vmatmul.msk.bf16.gmra.mxu0 %vm1217_vm13, %v9745_v50  ;;  %vm4792_vm13 = vcmask 1040384  }
 0x1d0   : > { %v1360_v44 = vpop.f32.mrf.mxu3 }
 0x1d1   : > { %v1341_v6 = vpop.f32.mrf.mxu2 }
 0x1d2   : > { %v1260_v17 = vpop.f32.mrf.mxu1 }
 0x1d3   : > { %v10924_v18 = vmax.f32 %v1260_v17, %v1360_v44  ;;  %v1241_v19 = vpop.f32.mrf.mxu0  ;;  %v1748_v44 = vand.u32 %v1746_v15, %v1721_v16  ;;  %v9735_v17 = vld [vmem:[%s13312_s0 + $0x70] sm:$0xff] }
 0x1d4   : > { %v10926_v20 = vmax.f32 %v1241_v19, %v1341_v6  ;;  %v9726_v6 = vld [vmem:[%s13312_s0 + $0x28] sm:$0xff]  ;;  %v9725_v19 = vld [vmem:[%s13312_s0 + $0x20] sm:$0xff] }
 0x1d5   : > { %1769 = vmatpush.bf16.msra.mxu1 %v1748_v44  ;;  %1946 = vmatpush.bf16.msra.mxu3 %v1748_v44 }
 0x1d6   : > { %v10323_v22 = vpack.i.bf16 %v10924_v18, %v10926_v20  ;;  %1752 = vmatpush.bf16.msra.mxu0 %v9726_v6  ;;  %1929 = vmatpush.bf16.msra.mxu2 %v9726_v6 }
 0x1d8   : > { %v1362_v9 = vpop.f32.mrf.mxu3  ;;  %10324 = vrot.lane.b32.xlu2 %v10323_v22, %s13260_s5  ;;  %v9734_v22 = vld [vmem:[%s13312_s0 + $0x68] sm:$0xff] }
 0x1d9   : > { %v1343_v23 = vpop.f32.mrf.mxu2  ;;  %1770 = vmatpush.bf16.msra.mxu1 %v9735_v17  ;;  %1947 = vmatpush.bf16.msra.mxu3 %v9735_v17 }
 0x1da   : > { %v1262_v24 = vpop.f32.mrf.mxu1  ;;  %1753 = vmatpush.bf16.msra.mxu0 %v9725_v19  ;;  %1930 = vmatpush.bf16.msra.mxu2 %v9725_v19 }
 0x1db   : > { %v1243_v25 = vpop.f32.mrf.mxu0  ;;  %v10938_v11 = vmax.f32 %v1262_v24, %v1362_v9  ;;  %v9733_v9 = vld [vmem:[%s13312_s0 + $0x60] sm:$0xff]  ;;  %v9724_v24 = vld [vmem:[%s13312_s0 + $0x18] sm:$0xff] }
 0x1dc   : > { %v10940_v45 = vmax.f32 %v1243_v25, %v1343_v23  ;;  %v9732_v23 = vld [vmem:[%s13312_s0 + $0x58] sm:$0xff]  ;;  %v9731_v25 = vld [vmem:[%s13312_s0 + $0x50] sm:$0xff] }
 0x1dd   : > { %1771 = vmatpush.bf16.msra.mxu1 %v9734_v22  ;;  %1948 = vmatpush.bf16.msra.mxu3 %v9734_v22 }
 0x1de   : > { %v10328_v50 = vpack.i.bf16 %v10938_v11, %v10940_v45  ;;  %1754 = vmatpush.bf16.msra.mxu0 %v9724_v24  ;;  %1931 = vmatpush.bf16.msra.mxu2 %v9724_v24 }
 0x1e0   : > { %v1365_v26 = vpop.f32.mrf.mxu3 }
 0x1e1   : > { %v1346_v27 = vpop.f32.mrf.mxu2  ;;  %1772 = vmatpush.bf16.msra.mxu1 %v9733_v9  ;;  %1949 = vmatpush.bf16.msra.mxu3 %v9733_v9 }
 0x1e2   : > { %v1265_v28 = vpop.f32.mrf.mxu1 }
 0x1e3   : > { %v1246_v29 = vpop.f32.mrf.mxu0  ;;  %v10952_v21 = vmax.f32 %v1265_v28, %v1365_v26  ;;  %v13275_v26 = vmov 0   ;;  %v9723_v28 = vld [vmem:[%s13312_s0 + $0x10] sm:$0xff] }
 0x1e4   : > { %v10954_v54 = vmax.f32 %v1246_v29, %v1346_v27  ;;  %10355 = vset.pattern.permute.xlu1 %v13275_v26  ;;  %v983_v27 = vld [vmem:[%s13313_s10] sm:$0xff]  ;;  %10353 = vset.pattern.permute.xlu2 %v13275_v26  ;;  %v9730_v29 = vld [vmem:[%s13312_s0 + $0x48] sm:$0xff]  ;;  %869 = vst.msk [vmem:[#allocation3] sm:$0xf] %vm868_vm0, %v13275_v26 }
 0x1e5   : > { %1773 = vmatpush.bf16.msra.mxu1 %v9732_v23  ;;  %1950 = vmatpush.bf16.msra.mxu3 %v9732_v23  ;;  %870 = vst.msk [vmem:[#allocation3 + $0x4] sm:$0xf] %vm868_vm0, %v13275_v26 }
 0x1e6   : > { %v10343_v58 = vpack.i.bf16 %v10952_v21, %v10954_v54  ;;  %10354 = vset.pattern.permute.xlu0 %v13275_v26  ;;  %1755 = vmatpush.bf16.msra.mxu0 %v9723_v28  ;;  %871 = vst.msk [vmem:[#allocation3 + $0x8] sm:$0xf] %vm868_vm0, %v13275_v26 }
 0x1e7   : > { %1932 = vmatpush.bf16.msra.mxu2 %v9723_v28  ;;  %872 = vst.msk [vmem:[#allocation3 + $0xc] sm:$0xf] %vm868_vm0, %v13275_v26 }
 0x1e8   : > { %v1367_v14 = vpop.f32.mrf.mxu3  ;;  %874 = vst.msk [vmem:[#allocation3 + $0x30] sm:$0xf] %vm868_vm0, %v13275_v26 }
 0x1e9   : > { %v1348_v30 = vpop.f32.mrf.mxu2  ;;  %1774 = vmatpush.bf16.msra.mxu1 %v9731_v25  ;;  %1951 = vmatpush.bf16.msra.mxu3 %v9731_v25  ;;  %875 = vst.msk [vmem:[#allocation3 + $0x34] sm:$0xf] %vm868_vm0, %v13275_v26 }
 0x1ea   : > { %v1267_v10 = vpop.f32.mrf.mxu1  ;;  %876 = vst.msk [vmem:[#allocation3 + $0x38] sm:$0xf] %vm868_vm0, %v13275_v26 }
 0x1eb   : > { %v1248_v32 = vpop.f32.mrf.mxu0  ;;  %v10966_v60 = vmax.f32 %v1267_v10, %v1367_v14  ;;  %v9722_v14 = vld [vmem:[%s13312_s0 + $0x8] sm:$0xff]  ;;  %v989_v10 = vld [vmem:[%s13314_s11 + $0x10] sm:$0xff]  ;;  %877 = vst.msk [vmem:[#allocation3 + $0x3c] sm:$0xf] %vm868_vm0, %v13275_v26 }
 0x1ec   : > { %v10968_v61 = vmax.f32 %v1248_v32, %v1348_v30  ;;  %v9729_v30 = vld [vmem:[%s13312_s0 + $0x40] sm:$0xff]  ;;  %1756 = vmatpush.bf16.msra.mxu0 %v9722_v14  ;;  %1933 = vmatpush.bf16.msra.mxu2 %v9722_v14  ;;  %878 = vst.msk [vmem:[#allocation4] sm:$0xf] %vm868_vm0, %v13275_v26 }
 0x1ed   : > { %1775 = vmatpush.bf16.msra.mxu1 %v9730_v29  ;;  %1952 = vmatpush.bf16.msra.mxu3 %v9730_v29  ;;  %v9721_v32 = vld [vmem:[%s13312_s0] sm:$0xff]  ;;  %879 = vst.msk [vmem:[#allocation4 + $0x4] sm:$0xf] %vm868_vm0, %v13275_v26  ;;  %s13319_s0 = sld [smem:[#allocation29_spill]] }
 0x1ee   : > { %v10348_v3 = vpack.i.bf16 %v10966_v60, %v10968_v61  ;;  %880 = vst.msk [vmem:[#allocation4 + $0x8] sm:$0xf] %vm868_vm0, %v13275_v26 }
 0x1ef   : > { %881 = vst.msk [vmem:[#allocation4 + $0xc] sm:$0xf] %vm868_vm0, %v13275_v26 }
 0x1f0   : > { %v1558_v34 = vpop.f32.mrf.mxu3  ;;  %1757 = vmatpush.bf16.msra.mxu0 %v9721_v32  ;;  %1934 = vmatpush.bf16.msra.mxu2 %v9721_v32  ;;  %882 = vst.msk [vmem:[#allocation4 + $0x10] sm:$0xf] %vm868_vm0, %v13275_v26 }
 0x1f1   : > { %v1539_v35 = vpop.f32.mrf.mxu2  ;;  %1776 = vmatpush.bf16.msra.mxu1 %v9729_v30  ;;  %1953 = vmatpush.bf16.msra.mxu3 %v9729_v30  ;;  %883 = vst.msk [vmem:[#allocation4 + $0x14] sm:$0xf] %vm868_vm0, %v13275_v26 }
 0x1f2   : > { %v1458_v36 = vpop.f32.mrf.mxu1  ;;  %884 = vst.msk [vmem:[#allocation4 + $0x18] sm:$0xf] %vm868_vm0, %v13275_v26 }
 0x1f3   : > { %v10931_v37 = vmax.f32 %v1458_v36, %v1558_v34  ;;  %v1439_v38 = vpop.f32.mrf.mxu0  ;;  %v985_v34 = vld [vmem:[%s13313_s10 + $0x10] sm:$0xff]  ;;  %v986_v36 = vld [vmem:[%s13313_s10 + $0x18] sm:$0xff]  ;;  %885 = vst.msk [vmem:[#allocation4 + $0x1c] sm:$0xf] %vm868_vm0, %v13275_v26 }
 0x1f4   : > { %v10933_v39 = vmax.f32 %v1439_v38, %v1539_v35  ;;  %v994_v35 = vld [vmem:[%s13315_s3 + $0x18] sm:$0xff]  ;;  %v984_v38 = vld [vmem:[%s13313_s10 + $0x8] sm:$0xff]  ;;  %887 = vst.msk [vmem:[#allocation4 + $0x60] sm:$0xf] %vm868_vm0, %v13275_v26 }
 0x1f5   : > { %888 = vst.msk [vmem:[#allocation4 + $0x64] sm:$0xf] %vm868_vm0, %v13275_v26 }
 0x1f6   : > { %v10313_v40 = vpack.i.bf16 %v10931_v37, %v10933_v39  ;;  %889 = vst.msk [vmem:[#allocation4 + $0x68] sm:$0xf] %vm868_vm0, %v13275_v26 }
 0x1f7   : > { %890 = vst.msk [vmem:[#allocation4 + $0x6c] sm:$0xf] %vm868_vm0, %v13275_v26 }
 0x1f8   : > { %v1560_v41 = vpop.f32.mrf.mxu3  ;;  %10314 = vrot.lane.b32.xlu0 %v10313_v40, %s13260_s5  ;;  %v991_v40 = vld [vmem:[%s13315_s3] sm:$0xff]  ;;  %891 = vst.msk [vmem:[#allocation4 + $0x70] sm:$0xf] %vm868_vm0, %v13275_v26 }
 0x1f9   : > { %v1541_v43 = vpop.f32.mrf.mxu2  ;;  %892 = vst.msk [vmem:[#allocation4 + $0x74] sm:$0xf] %vm868_vm0, %v13275_v26 }
 0x1fa   : > { %v1460_v46 = vpop.f32.mrf.mxu1  ;;  %893 = vst.msk [vmem:[#allocation4 + $0x78] sm:$0xf] %vm868_vm0, %v13275_v26 }
 0x1fb   : > { %v10942_v47 = vmax.f32 %v1460_v46, %v1560_v41  ;;  %v1441_v48 = vpop.f32.mrf.mxu0  ;;  %v993_v46 = vld [vmem:[%s13315_s3 + $0x10] sm:$0xff]  ;;  %894 = vst.msk [vmem:[#allocation4 + $0x7c] sm:$0xf] %vm868_vm0, %v13275_v26 }
 0x1fc   : > { %v10944_v49 = vmax.f32 %v1441_v48, %v1541_v43  ;;  %v990_v48 = vld [vmem:[%s13314_s11 + $0x18] sm:$0xff]  ;;  %926 = vst.msk [vmem:[#allocation3 + $0x28] sm:$0xf] %vm896_vm1, %v13275_v26 }
 0x1fd   : > { %930 = vst.msk [vmem:[#allocation3 + $0x28] sm:$0xf] %vm901_vm2, %v13275_v26 }
 0x1fe   : > { %v10318_v51 = vpack.i.bf16 %v10942_v47, %v10944_v49  ;;  %897 = vst.msk [vmem:[#allocation3 + $0x10] sm:$0xf] %vm896_vm1, %v13275_v26 }
 0x1ff   : > { %898 = vst.msk [vmem:[#allocation3 + $0x14] sm:$0xf] %vm896_vm1, %v13275_v26 }
 0x200   : > { %v1563_v52 = vpop.f32.mrf.mxu3  ;;  %10329 = vrot.lane.b32.xlu0 %v10328_v50, %s13260_s5  ;;  %10319 = vrot.lane.b32.xlu1 %v10318_v51, %s13260_s5  ;;  %899 = vst.msk [vmem:[#allocation3 + $0x18] sm:$0xf] %vm896_vm1, %v13275_v26 }
 0x201   : > { %v1544_v53 = vpop.f32.mrf.mxu2  ;;  %900 = vst.msk [vmem:[#allocation3 + $0x1c] sm:$0xf] %vm896_vm1, %v13275_v26 }
 0x202   : > { %v1463_v55 = vpop.f32.mrf.mxu1  ;;  %907 = vst.msk [vmem:[#allocation4 + $0x20] sm:$0xf] %vm896_vm1, %v13275_v26 }
 0x203   : > { %v10956_v56 = vmax.f32 %v1463_v55, %v1563_v52  ;;  %v1444_v31 = vpop.f32.mrf.mxu0  ;;  %908 = vst.msk [vmem:[#allocation4 + $0x24] sm:$0xf] %vm896_vm1, %v13275_v26 }
 0x204   : > { %v10958_v57 = vmax.f32 %v1444_v31, %v1544_v53  ;;  %909 = vst.msk [vmem:[#allocation4 + $0x28] sm:$0xf] %vm896_vm1, %v13275_v26 }
 0x205   : > { %910 = vst.msk [vmem:[#allocation4 + $0x2c] sm:$0xf] %vm896_vm1, %v13275_v26 }
 0x206   : > { %v10333_v59 = vpack.i.bf16 %v10956_v56, %v10958_v57  ;;  %911 = vst.msk [vmem:[#allocation4 + $0x30] sm:$0xf] %vm896_vm1, %v13275_v26 }
 0x207   : > { %912 = vst.msk [vmem:[#allocation4 + $0x34] sm:$0xf] %vm896_vm1, %v13275_v26 }
 0x208   : > { %10344 = vrot.lane.b32.xlu0 %v10343_v58, %s13260_s5  ;;  %10334 = vrot.lane.b32.xlu1 %v10333_v59, %s13260_s5  ;;  %v1565_v33 = vpop.f32.mrf.mxu3  ;;  %913 = vst.msk [vmem:[#allocation4 + $0x38] sm:$0xf] %vm896_vm1, %v13275_v26 }
 0x209   : > { %v1546_v63 = vpop.f32.mrf.mxu2  ;;  %914 = vst.msk [vmem:[#allocation4 + $0x3c] sm:$0xf] %vm896_vm1, %v13275_v26 }
 0x20a   : > { %v1465_v62 = vpop.f32.mrf.mxu1  ;;  %924 = vst.msk [vmem:[#allocation3 + $0x20] sm:$0xf] %vm896_vm1, %v13275_v26 }
 0x20b   : > { %v10970_v0 = vmax.f32 %v1465_v62, %v1565_v33  ;;  %v1446_v1 = vpop.f32.mrf.mxu0  ;;  %925 = vst.msk [vmem:[#allocation3 + $0x24] sm:$0xf] %vm896_vm1, %v13275_v26 }
 0x20c   : > { %v10972_v2 = vmax.f32 %v1446_v1, %v1546_v63  ;;  %927 = vst.msk [vmem:[#allocation3 + $0x2c] sm:$0xf] %vm896_vm1, %v13275_v26 }
 0x20d   : > { %933 = vst.msk [vmem:[#allocation4 + $0x40] sm:$0xf] %vm896_vm1, %v13275_v26 }
 0x20e   : > { %v10338_v5 = vpack.i.bf16 %v10970_v0, %v10972_v2  ;;  %934 = vst.msk [vmem:[#allocation4 + $0x44] sm:$0xf] %vm896_vm1, %v13275_v26 }
 0x20f   : > { %935 = vst.msk [vmem:[#allocation4 + $0x48] sm:$0xf] %vm896_vm1, %v13275_v26 }
 0x210   : > { %10349 = vrot.lane.b32.xlu1 %v10348_v3, %s13260_s5  ;;  %10339 = vrot.lane.b32.xlu2 %v10338_v5, %s13260_s5  ;;  %v988_v3 = vld [vmem:[%s13314_s11 + $0x8] sm:$0xff]  ;;  %v987_v5 = vld [vmem:[%s13314_s11] sm:$0xff]  ;;  %936 = vst.msk [vmem:[#allocation4 + $0x4c] sm:$0xf] %vm896_vm1, %v13275_v26  ;;  %s13323_s11 = sld [smem:[#allocation33_spill]] }
 0x211   : > { %1641 = vperm.xlu0 %10354, %v986_v36   ;;  %937 = vst.msk [vmem:[#allocation4 + $0x50] sm:$0xf] %vm896_vm1, %v13275_v26 }
 0x212   : > { %938 = vst.msk [vmem:[#allocation4 + $0x54] sm:$0xf] %vm896_vm1, %v13275_v26 }
 0x213   : > { %939 = vst.msk [vmem:[#allocation4 + $0x58] sm:$0xf] %vm896_vm1, %v13275_v26 }
 0x214   : > { %940 = vst.msk [vmem:[#allocation4 + $0x5c] sm:$0xf] %vm896_vm1, %v13275_v26 }
 0x215   : > { %949 = vst.msk [vmem:[#allocation5] sm:$0xf] %vm896_vm1, %v13275_v26 }
 0x216   : > { %950 = vst.msk [vmem:[#allocation5 + $0x4] sm:$0xf] %vm896_vm1, %v13275_v26 }
 0x217   : > { %951 = vst.msk [vmem:[#allocation5 + $0x8] sm:$0xf] %vm896_vm1, %v13275_v26 }
 0x218   : > { %1626 = vperm.xlu1 %10355, %v983_v27   ;;  %1636 = vperm.xlu2 %10353, %v985_v34   ;;  %952 = vst.msk [vmem:[#allocation5 + $0xc] sm:$0xf] %vm896_vm1, %v13275_v26 }
 0x219   : > { %1828 = vperm.xlu0 %10354, %v993_v46   ;;  %953 = vst.msk [vmem:[#allocation5 + $0x10] sm:$0xf] %vm896_vm1, %v13275_v26 }
 0x21a   : > { %954 = vst.msk [vmem:[#allocation5 + $0x14] sm:$0xf] %vm896_vm1, %v13275_v26 }
 0x21b   : > { %955 = vst.msk [vmem:[#allocation5 + $0x18] sm:$0xf] %vm896_vm1, %v13275_v26 }
 0x21c   : > { %956 = vst.msk [vmem:[#allocation5 + $0x1c] sm:$0xf] %vm896_vm1, %v13275_v26 }
 0x21d   : > { %902 = vst.msk [vmem:[#allocation3 + $0x10] sm:$0xf] %vm901_vm2, %v13275_v26 }
 0x21e   : > { %903 = vst.msk [vmem:[#allocation3 + $0x14] sm:$0xf] %vm901_vm2, %v13275_v26 }
 0x21f   : > { %904 = vst.msk [vmem:[#allocation3 + $0x18] sm:$0xf] %vm901_vm2, %v13275_v26 }
 0x220   : > { %1804 = vperm.xlu1 %10355, %v989_v10   ;;  %1631 = vperm.xlu2 %10353, %v984_v38   ;;  %905 = vst.msk [vmem:[#allocation3 + $0x1c] sm:$0xf] %vm901_vm2, %v13275_v26 }
 0x221   : > { %1799 = vperm.xlu0 %10354, %v988_v3   ;;  %915 = vst.msk [vmem:[#allocation4 + $0x20] sm:$0xf] %vm901_vm2, %v13275_v26 }
 0x222   : > { %916 = vst.msk [vmem:[#allocation4 + $0x24] sm:$0xf] %vm901_vm2, %v13275_v26 }
 0x223   : > { %917 = vst.msk [vmem:[#allocation4 + $0x28] sm:$0xf] %vm901_vm2, %v13275_v26 }
 0x224   : > { %918 = vst.msk [vmem:[#allocation4 + $0x2c] sm:$0xf] %vm901_vm2, %v13275_v26 }
 0x225   : > { %919 = vst.msk [vmem:[#allocation4 + $0x30] sm:$0xf] %vm901_vm2, %v13275_v26 }
 0x226   : > { %920 = vst.msk [vmem:[#allocation4 + $0x34] sm:$0xf] %vm901_vm2, %v13275_v26 }
 0x227   : > { %921 = vst.msk [vmem:[#allocation4 + $0x38] sm:$0xf] %vm901_vm2, %v13275_v26 }
 0x228   : > { %1833 = vperm.xlu1 %10355, %v994_v35   ;;  %1809 = vperm.xlu2 %10353, %v990_v48   ;;  %922 = vst.msk [vmem:[#allocation4 + $0x3c] sm:$0xf] %vm901_vm2, %v13275_v26 }
 0x229   : > { %928 = vst.msk [vmem:[#allocation3 + $0x20] sm:$0xf] %vm901_vm2, %v13275_v26 }
 0x22a   : > { %929 = vst.msk [vmem:[#allocation3 + $0x24] sm:$0xf] %vm901_vm2, %v13275_v26 }
 0x22b   : > { %931 = vst.msk [vmem:[#allocation3 + $0x2c] sm:$0xf] %vm901_vm2, %v13275_v26 }
 0x22c   : > { %941 = vst.msk [vmem:[#allocation4 + $0x40] sm:$0xf] %vm901_vm2, %v13275_v26 }
 0x22d   : > { %942 = vst.msk [vmem:[#allocation4 + $0x44] sm:$0xf] %vm901_vm2, %v13275_v26 }
 0x22e   : > { %943 = vst.msk [vmem:[#allocation4 + $0x48] sm:$0xf] %vm901_vm2, %v13275_v26 }
 0x22f   : > { %944 = vst.msk [vmem:[#allocation4 + $0x4c] sm:$0xf] %vm901_vm2, %v13275_v26 }
 0x230   : > { %1818 = vperm.xlu1 %10355, %v991_v40   ;;  %1794 = vperm.xlu2 %10353, %v987_v5   ;;  %945 = vst.msk [vmem:[#allocation4 + $0x50] sm:$0xf] %vm901_vm2, %v13275_v26 }
 0x231   : > { %946 = vst.msk [vmem:[#allocation4 + $0x54] sm:$0xf] %vm901_vm2, %v13275_v26 }
 0x232   : > { %v10325_v41 = vpop.permute.xlu2 %10324  ;;  %947 = vst.msk [vmem:[#allocation4 + $0x58] sm:$0xf] %vm901_vm2, %v13275_v26 }
 0x233   : > { %v10327_v50 = vunpack.i.h.bf16 %v10325_v41  ;;  %v10326_v51 = vunpack.i.l.bf16 %v10325_v41  ;;  %948 = vst.msk [vmem:[#allocation4 + $0x5c] sm:$0xf] %vm901_vm2, %v13275_v26 }
 0x235   : > { %v1600_v55 = vsel %vm1157_vm11, %v10326_v51, %v10327_v50  ;;  %v1613_v7 = vmax.f32 %v10924_v18, %v10327_v50 }
 0x236   : > { %v1612_v8 = vmax.f32 %v10926_v20, %v1600_v55 }
 0x26a   : > { %v10315_v43 = vpop.permute.xlu0 %10314 }
 0x26b   : > { %v10317_v52 = vunpack.i.h.bf16 %v10315_v43  ;;  %v10316_v53 = vunpack.i.l.bf16 %v10315_v43 }
 0x26d   : > { %v1897_v31 = vsel %vm1157_vm11, %v10316_v53, %v10317_v52  ;;  %v1910_v12 = vmax.f32 %v10931_v37, %v10317_v52 }
 0x26e   : > { %v1909_v44 = vmax.f32 %v10933_v39, %v1897_v31  ;;  %v992_v39 = vld [vmem:[%s13315_s3 + $0x8] sm:$0xff]  ;;  %s843_s3 = sand.u32 1, %s10498_s4  }
 0x26f   : > { %1823 = vperm.xlu2 %10353, %v992_v39   ;;  %s7683_s10 = scalar_lea.sflag [#allocation8], %s843_s3 }
 0x272   : > { %v10330_v58 = vpop.permute.xlu0 %10329  ;;  %v10320_v59 = vpop.permute.xlu1 %10319 }
 0x273   : > { %v10332_v33 = vunpack.i.h.bf16 %v10330_v58  ;;  %v10331_v62 = vunpack.i.l.bf16 %v10330_v58  ;;  %v10322_v63 = vunpack.i.h.bf16 %v10320_v59  ;;  %v10321_v1 = vunpack.i.l.bf16 %v10320_v59 }
 0x275   : > { %v1615_v13 = vmax.f32 %v10938_v11, %v10332_v33  ;;  %v1601_v15 = vsel %vm1157_vm11, %v10331_v62, %v10332_v33  ;;  %v1912_v42 = vmax.f32 %v10942_v47, %v10322_v63  ;;  %v1898_v16 = vsel %vm1157_vm11, %v10321_v1, %v10322_v63  ;;  %v10340_v47 = vpop.permute.xlu2 %10339 }
 0x276   : > { %v1614_v6 = vmax.f32 %v10940_v45, %v1601_v15  ;;  %v1911_v17 = vmax.f32 %v10944_v49, %v1898_v16  ;;  %v10342_v9 = vunpack.i.h.bf16 %v10340_v47  ;;  %v10341_v23 = vunpack.i.l.bf16 %v10340_v47 }
 0x277   : > { %v1621_v18 = vpack.c.bf16 %v1615_v13, %v1613_v7  ;;  %v1918_v20 = vpack.c.bf16 %v1912_v42, %v1910_v12 }
 0x278   : > { %v1620_v37 = vpack.c.bf16 %v1614_v6, %v1612_v8  ;;  %v1917_v19 = vpack.c.bf16 %v1911_v17, %v1909_v44  ;;  %v1900_v29 = vsel %vm1157_vm11, %v10341_v23, %v10342_v9  ;;  %v1916_v35 = vmax.f32 %v10970_v0, %v10342_v9 }
 0x279   : > { %7866 = vmatmul.msk.bf16.vlgmr.msra.gmra.mxu1 %vm1737_vm15, %v1621_v18  ;;  %7868 = vmatmul.msk.bf16.vlgmr.msra.gmra.mxu3 %vm1737_vm15, %v1918_v20 }
 0x27a   : > { %1758 = vmatmul.bf16.vlgmr.msra.gmra.mxu0 %v1620_v37  ;;  %1935 = vmatmul.bf16.vlgmr.msra.gmra.mxu2 %v1917_v19  ;;  %v10335_v11 = vpop.permute.xlu1 %10334  ;;  %v10345_v45 = vpop.permute.xlu0 %10344 }
 0x27b   : > { %v10337_v49 = vunpack.i.h.bf16 %v10335_v11  ;;  %v10336_v22 = vunpack.i.l.bf16 %v10335_v11  ;;  %v10347_v24 = vunpack.i.h.bf16 %v10345_v45  ;;  %v10346_v25 = vunpack.i.l.bf16 %v10345_v45 }
 0x27d   : > { %v1899_v27 = vsel %vm1157_vm11, %v10336_v22, %v10337_v49  ;;  %v1914_v14 = vmax.f32 %v10956_v56, %v10337_v49  ;;  %v1602_v32 = vsel %vm1157_vm11, %v10346_v25, %v10347_v24  ;;  %v1617_v36 = vmax.f32 %v10952_v21, %v10347_v24  ;;  %v1637_v21 = vpop.permute.xlu2 %1636 }
 0x27e   : > { %v1913_v34 = vmax.f32 %v10958_v57, %v1899_v27  ;;  %v1616_v41 = vmax.f32 %v10954_v54, %v1602_v32  ;;  %v1915_v56 = vmax.f32 %v10972_v2, %v1900_v29 }
 0x27f   : > { %v1920_v48 = vpack.c.bf16 %v1916_v35, %v1914_v14 }
 0x280   : > { %v1919_v51 = vpack.c.bf16 %v1915_v56, %v1913_v34 }
 0x282   : > { %v10350_v28 = vpop.permute.xlu1 %10349 }
 0x283   : > { %v10352_v30 = vunpack.i.h.bf16 %v10350_v28  ;;  %v10351_v10 = vunpack.i.l.bf16 %v10350_v28  ;;  %v1642_v7 = vpop.permute.xlu0 %1641 }
 0x285   : > { %v1619_v38 = vmax.f32 %v10966_v60, %v10352_v30  ;;  %v1603_v40 = vsel %vm1157_vm11, %v10351_v10, %v10352_v30  ;;  %v1632_v60 = vpop.permute.xlu2 %1631  ;;  %vm4717_vm11 = vcmask 506880  }
 0x286   : > { %v1618_v43 = vmax.f32 %v10968_v61, %v1603_v40 }
 0x287   : > { %v1623_v46 = vpack.c.bf16 %v1619_v38, %v1617_v36 }
 0x288   : > { %v1622_v50 = vpack.c.bf16 %v1618_v43, %v1616_v41 }
 0x289   : > { %7867 = vmatmul.msk.bf16.gmra.mxu1 %vm1737_vm15, %v1623_v46  ;;  %7869 = vmatmul.msk.bf16.gmra.mxu3 %vm1737_vm15, %v1920_v48 }
 0x28a   : > { %1763 = vmatmul.bf16.gmra.mxu0 %v1622_v50  ;;  %1940 = vmatmul.bf16.gmra.mxu2 %v1919_v51  ;;  %v1627_v57 = vpop.permute.xlu1 %1626 }
 0x28b   : > { %v1829_v6 = vpop.permute.xlu0 %1828 }
 0x28d   : > { %v11097_v52 = vpop.permute.xlu2 %1809 }
 0x292   : > { %v1805_v0 = vpop.permute.xlu1 %1804 }
 0x293   : > { %v1800_v32 = vpop.permute.xlu0 %1799 }
 0x295   : > { %v11101_v59 = vpop.permute.xlu2 %1794 }
 0x29a   : > { %v11099_v54 = vpop.permute.xlu1 %1833 }
 0x2a2   : > { %v11104_v1 = vpop.permute.xlu1 %1818 }
 0x2f6   : > { %v1778_v61 = vpop.f32.mrf.mxu1 }
 0x2f7   : > { %v1759_v2 = vpop.f32.mrf.mxu0 }
 0x2f8   : > { %v1760_v53 = vadd.f32 %v1759_v2, %v1627_v57 }
 0x2fa   : > { %v1779_v55 = vadd.f32 %v1778_v61, %v1760_v53 }
 0x2fc   : > { %v1788_v31 = vmax.f32 %v1779_v55, 0.0  ;;  %v1955_v58 = vpop.f32.mrf.mxu3 }
 0x2fd   : > { %v1936_v33 = vpop.f32.mrf.mxu2 }
 0x2fe   : > { %v1812_v62 = vmul.f32 %v11101_v59, %v1788_v31  ;;  %v1780_v63 = vpop.f32.mrf.mxu1  ;;  %v1937_v29 = vadd.f32 %v1936_v33, %v1627_v57 }
 0x2ff   : > { %v1761_v3 = vpop.f32.mrf.mxu0 }
 0x300   : > { %v1836_v5 = vadd.f32 %v11104_v1, %v1812_v62  ;;  %v1762_v17 = vadd.f32 %v1761_v3, %v1632_v60  ;;  %v1956_v41 = vadd.f32 %v1955_v58, %v1937_v29  ;;  %v11178_v62 = vld [vmem:[#allocation3] sm:$0xff]  ;;  %v1017_v29 = vld [vmem:[%s13321_s28 + $0x30] sm:$0xff] }
 0x302   : > { %v1840_v8 = vpack.c.bf16 %v1836_v5, %v1836_v5  ;;  %v1781_v45 = vadd.f32 %v1780_v63, %v1762_v17  ;;  %v11180_v63 = vld [vmem:[#allocation3 + $0x8] sm:$0xff] }
 0x304   : > { %v1957_v12 = vpop.f32.mrf.mxu3  ;;  %1848 = vrot.lane.b32.xlu1 %v1840_v8, %s13316_s8  ;;  %v1789_v14 = vmax.f32 %v1781_v45, 0.0 }
 0x305   : > { %v1938_v13 = vpop.f32.mrf.mxu2 }
 0x306   : > { %v1783_v15 = vpop.f32.mrf.mxu1  ;;  %v1939_v19 = vadd.f32 %v1938_v13, %v1632_v60  ;;  %v1813_v56 = vmul.f32 %v1800_v32, %v1789_v14  ;;  %v1824_v60 = vpop.permute.xlu2 %1823  ;;  %v1001_v14 = vld [vmem:[%s13320_s21 + $0x30] sm:$0xff] }
 0x307   : > { %v1764_v42 = vpop.f32.mrf.mxu0 }
 0x308   : > { %v1765_v16 = vadd.f32 %v1764_v42, %v1637_v21  ;;  %v1958_v24 = vadd.f32 %v1957_v12, %v1939_v19  ;;  %v1837_v2 = vadd.f32 %v1824_v60, %v1813_v56  ;;  %v1005_v56 = vld [vmem:[%s13322_s1 + $0x10] sm:$0xff] }
 0x30a   : > { %v1784_v44 = vadd.f32 %v1783_v15, %v1765_v16  ;;  %v1966_v35 = vmax.f32 %v1958_v24, 0.0  ;;  %v1841_v58 = vpack.c.bf16 %v1837_v2, %v1837_v2  ;;  %v1002_v24 = vld [vmem:[%s13320_s21 + $0x38] sm:$0xff] }
 0x30c   : > { %v1790_v18 = vmax.f32 %v1784_v44, 0.0  ;;  %v1960_v20 = vpop.f32.mrf.mxu3  ;;  %v1970_v51 = vmul.f32 %v1966_v35, %v1800_v32  ;;  %v1000_v32 = vld [vmem:[%s13320_s21 + $0x28] sm:$0xff]  ;;  %v9749_v35 = vld [vmem:[%s13319_s0 + $0x18] sm:$0xff] }
 0x30d   : > { %v1941_v37 = vpop.f32.mrf.mxu2 }
 0x30e   : > { %v1814_v11 = vmul.f32 %v1805_v0, %v1790_v18  ;;  %v1942_v47 = vadd.f32 %v1941_v37, %v1637_v21  ;;  %v1785_v23 = vpop.f32.mrf.mxu1  ;;  %v1974_v55 = vadd.f32 %v1970_v51, %v1824_v60  ;;  %v1016_v60 = vld [vmem:[%s13321_s28 + $0x28] sm:$0xff] }
 0x30f   : > { %v1766_v39 = vpop.f32.mrf.mxu0 }
 0x310   : > { %v1961_v49 = vadd.f32 %v1960_v20, %v1942_v47  ;;  %v1767_v22 = vadd.f32 %v1766_v39, %v1642_v7  ;;  %v1838_v9 = vadd.f32 %v1829_v6, %v1814_v11  ;;  %v11332_v47 = vld [vmem:[#allocation3 + $0x38] sm:$0xff]  ;;  %v9746_v39 = vld [vmem:[%s13319_s0] sm:$0xff] }
 0x312   : > { %v1967_v25 = vmax.f32 %v1961_v49, 0.0  ;;  %v1786_v27 = vadd.f32 %v1785_v23, %v1767_v22  ;;  %v1842_v28 = vpack.c.bf16 %v1838_v9, %v1838_v9  ;;  %v11347_v49 = vld [vmem:[#allocation3 + $0x30] sm:$0xff]  ;;  %v9747_v9 = vld [vmem:[%s13319_s0 + $0x8] sm:$0xff]  ;;  %v999_v23 = vld [vmem:[%s13320_s21 + $0x20] sm:$0xff] }
 0x314   : > { %v1971_v30 = vmul.f32 %v1967_v25, %v1805_v0  ;;  %v1791_v10 = vmax.f32 %v1786_v27, 0.0  ;;  %1852 = vrot.lane.b32.xlu0 %v1842_v28, %s13316_s8  ;;  %v1962_v43 = vpop.f32.mrf.mxu3  ;;  %v1965_v0 = vmax.f32 %v1956_v41, 0.0  ;;  %v998_v25 = vld [vmem:[%s13320_s21 + $0x18] sm:$0xff]  ;;  %v997_v27 = vld [vmem:[%s13320_s21 + $0x10] sm:$0xff] }
 0x315   : > { %v1943_v34 = vpop.f32.mrf.mxu2  ;;  %v9748_v28 = vld [vmem:[%s13319_s0 + $0x10] sm:$0xff]  ;;  %v1006_v41 = vld [vmem:[%s13322_s1 + $0x18] sm:$0xff] }
 0x316   : > { %v1815_v36 = vmul.f32 %v11097_v52, %v1791_v10  ;;  %v1944_v38 = vadd.f32 %v1943_v34, %v1642_v7  ;;  %v1975_v40 = vadd.f32 %v1971_v30, %v1829_v6  ;;  %v1010_v30 = vld [vmem:[%s13322_s1 + $0x38] sm:$0xff]  ;;  %v996_v10 = vld [vmem:[%s13320_s21 + $0x8] sm:$0xff]  ;;  %v995_v34 = vld [vmem:[%s13320_s21] sm:$0xff] }
 0x318   : > { %v1963_v46 = vadd.f32 %v1962_v43, %v1944_v38  ;;  %v1979_v48 = vpack.c.bf16 %v1975_v40, %v1975_v40  ;;  %v1839_v50 = vadd.f32 %v11099_v54, %v1815_v36  ;;  %v1015_v36 = vld [vmem:[%s13321_s28 + $0x20] sm:$0xff]  ;;  %v1009_v38 = vld [vmem:[%s13322_s1 + $0x30] sm:$0xff]  ;;  %v1008_v40 = vld [vmem:[%s13322_s1 + $0x28] sm:$0xff] }
 0x319   : > { %v1018_v43 = vld [vmem:[%s13321_s28 + $0x38] sm:$0xff] }
 0x31a   : > { %v1968_v21 = vmax.f32 %v1963_v46, 0.0  ;;  %1989 = vrot.lane.b32.xlu2 %v1979_v48, %s13316_s8  ;;  %v1843_v57 = vpack.c.bf16 %v1839_v50, %v1839_v50  ;;  %v1003_v46 = vld [vmem:[%s13322_s1] sm:$0xff]  ;;  %v1014_v50 = vld [vmem:[%s13321_s28 + $0x18] sm:$0xff] }
 0x31b   : > { %v1007_v48 = vld [vmem:[%s13322_s1 + $0x20] sm:$0xff] }
 0x31c   : > { %v1972_v61 = vmul.f32 %v1968_v21, %v11097_v52  ;;  %1854 = vrot.lane.b32.xlu1 %v1843_v57, %s13316_s8  ;;  %v1969_v52 = vmul.f32 %v1965_v0, %v11101_v59  ;;  %v1012_v57 = vld [vmem:[%s13321_s28 + $0x8] sm:$0xff]  ;;  %v1011_v0 = vld [vmem:[%s13321_s28] sm:$0xff] }
 0x31e   : > { %v1976_v53 = vadd.f32 %v1972_v61, %v11099_v54  ;;  %v1978_v54 = vpack.c.bf16 %v1974_v55, %v1974_v55  ;;  %v1973_v59 = vadd.f32 %v1969_v52, %v11104_v1 }
 0x320   : > { %v1980_v31 = vpack.c.bf16 %v1976_v53, %v1976_v53  ;;  %v1977_v33 = vpack.c.bf16 %v1973_v59, %v1973_v59  ;;  %v1013_v53 = vld [vmem:[%s13321_s28 + $0x10] sm:$0xff] }
 0x322   : > { %1991 = vrot.lane.b32.xlu0 %v1980_v31, %s13316_s8  ;;  %1850 = vrot.lane.b32.xlu2 %v1841_v58, %s13316_s8  ;;  %v1004_v31 = vld [vmem:[%s13322_s1 + $0x8] sm:$0xff]  ;;  %s7695_s1 = sshll.u32 %s7691_s6, 4  ;;  %s7696_s1 = int_to_ptr.hbm [resolvable:$true] %s7695_s1 }
 0x323   : > { %s10450_s5 = sshra.s32 %s7696_s1, 4  ;;  %s10451_s5 = int_to_ptr.hbm [resolvable:$true] %s10450_s5 }
 0x324   : > { %1987 = vrot.lane.b32.xlu1 %v1978_v54, %s13316_s8  ;;  %p10457_p3 = scmp.lt.s32.totalorder %s10451_s5, %s13330_s23 }
 0x32a   : > { %1985 = vrot.lane.b32.xlu0 %v1977_v33, %s13316_s8  ;;  %2033 = vrot.lane.b32.xlu2 %v11180_v63, %s13317_s30 }
 0x32c   : > { %2031 = vrot.lane.b32.xlu1 %v11178_v62, %s13317_s30 }
 0x334   : > { %2027 = vrot.lane.b32.xlu1 %v11180_v63, %s13318_s29 }
 0x33c   : > { %2025 = vrot.lane.b32.xlu1 %v11178_v62, %s13318_s29 }
 0x374   : > { %v1990_v1 = vpop.permute.xlu2 %1989 }
 0x375   : > { %1999 = vst.msk [vmem:[#allocation3 + $0x28] sm:$0xf] %vm1860_vm3, %v1990_v1 }
 0x376   : > { %v1849_v3 = vpop.permute.xlu1 %1848 }
 0x377   : > { %1861 = vst.msk [vmem:[#allocation3 + $0x10] sm:$0xf] %vm1860_vm3, %v1849_v3  ;;  %v9754_v3 = vld [vmem:[%s13319_s0 + $0x20] sm:$0xff] }
 0x37c   : > { %v1851_v5 = vpop.permute.xlu2 %1850 }
 0x37d   : > { %1862 = vst.msk [vmem:[#allocation3 + $0x14] sm:$0xf] %vm1860_vm3, %v1851_v5 }
 0x384   : > { %v11296_v7 = vld [vmem:[#allocation3 + $0x10] sm:$0xff]  ;;  %v2034_v8 = vpop.permute.xlu2 %2033 }
 0x385   : > { %2072 = vmatpush.bf16.msrb.mxu0 %v2034_v8  ;;  %2169 = vrot.lane.b32.xlu0 %v11296_v7, %s13317_s30  ;;  %v11327_v11 = vld [vmem:[#allocation3 + $0x10] sm:$0xff] }
 0x386   : > { %v1853_v12 = vpop.permute.xlu0 %1852 }
 0x387   : > { %1863 = vst.msk [vmem:[#allocation3 + $0x18] sm:$0xf] %vm1860_vm3, %v1853_v12 }
 0x38e   : > { %v1855_v13 = vpop.permute.xlu1 %1854 }
 0x38f   : > { %1864 = vst.msk [vmem:[#allocation3 + $0x1c] sm:$0xf] %vm1860_vm3, %v1855_v13 }
 0x394   : > { %v1992_v15 = vpop.permute.xlu0 %1991 }
 0x395   : > { %2000 = vst.msk [vmem:[#allocation3 + $0x2c] sm:$0xf] %vm1860_vm3, %v1992_v15  ;;  %v9761_v15 = vld [vmem:[%s13319_s0 + $0x48] sm:$0xff] }
 0x396   : > { %v1988_v42 = vpop.permute.xlu1 %1987  ;;  %v11303_v16 = vld [vmem:[#allocation3 + $0x18] sm:$0xff] }
 0x397   : > { %1998 = vst.msk [vmem:[#allocation3 + $0x24] sm:$0xf] %vm1860_vm3, %v1988_v42  ;;  %2171 = vrot.lane.b32.xlu0 %v11303_v16, %s13317_s30  ;;  %v11319_v20 = vld [vmem:[#allocation3 + $0x18] sm:$0xff]  ;;  %v9755_v42 = vld [vmem:[%s13319_s0 + $0x28] sm:$0xff] }
 0x39c   : > { %v1986_v44 = vpop.permute.xlu0 %1985  ;;  %v11321_v37 = vld [vmem:[#allocation3 + $0x28] sm:$0xff] }
 0x39d   : > { %1997 = vst.msk [vmem:[#allocation3 + $0x20] sm:$0xf] %vm1860_vm3, %v1986_v44  ;;  %v11345_v45 = vld [vmem:[#allocation3 + $0x28] sm:$0xff] }
 0x39e   : > { %v2032_v6 = vpop.permute.xlu1 %2031 }
 0x39f   : > { %2073 = vmatpush.bf16.msrb.mxu0 %v2032_v6  ;;  %2165 = vrot.lane.b32.xlu0 %v11303_v16, %s13318_s29 }
 0x3a4   : > { %v11311_v17 = vld [vmem:[#allocation3 + $0x20] sm:$0xff] }
 0x3a5   : > { %2269 = vrot.lane.b32.xlu1 %v11311_v17, %s13318_s29  ;;  %2275 = vrot.lane.b32.xlu2 %v11311_v17, %s13317_s30  ;;  %v11359_v22 = vld [vmem:[#allocation3 + $0x20] sm:$0xff] }
 0x3a6   : > { %v2028_v18 = vpop.permute.xlu1 %2027 }
 0x3a7   : > { %2074 = vmatpush.bf16.msrb.mxu0 %v2028_v18  ;;  %2163 = vrot.lane.b32.xlu0 %v11296_v7, %s13318_s29  ;;  %v9762_v18 = vld [vmem:[%s13319_s0 + $0x50] sm:$0xff] }
 0x3ad   : > { %2537 = vrot.lane.b32.xlu1 %v11319_v20, %s13318_s29  ;;  %2277 = vrot.lane.b32.xlu2 %v11321_v37, %s13317_s30 }
 0x3ae   : > { %v2026_v19 = vpop.permute.xlu1 %2025 }
 0x3af   : > { %2075 = vmatpush.bf16.msrb.mxu0 %v2026_v19  ;;  %2541 = vrot.lane.b32.xlu0 %v11327_v11, %s13317_s30  ;;  %v9772_v19 = vld [vmem:[%s13319_s0 + $0x20] sm:$0xff] }
 0x3b3   : > { %2076 = vmatpush.bf16.msrb.mxu0 %v11180_v63  ;;  %v9760_v63 = vld [vmem:[%s13319_s0 + $0x40] sm:$0xff] }
 0x3b5   : > { %2535 = vrot.lane.b32.xlu1 %v11327_v11, %s13318_s29  ;;  %2271 = vrot.lane.b32.xlu2 %v11321_v37, %s13318_s29 }
 0x3b7   : > { %2077 = vmatpush.bf16.msrb.mxu0 %v11178_v62  ;;  %2745 = vrot.lane.b32.xlu0 %v11332_v47, %s13317_s30 }
 0x3ba   : > { %7894 = vmatmul.msk.bf16.vlgmr.msrb.gmra.mxu0 %vm2057_vm4, %v9746_v39  ;;  %v9766_v39 = vld [vmem:[%s13319_s0 + $0x10] sm:$0xff] }
 0x3bd   : > { %2634 = vrot.lane.b32.xlu1 %v11345_v45, %s13318_s29  ;;  %2543 = vrot.lane.b32.xlu2 %v11319_v20, %s13317_s30 }
 0x3bf   : > { %2743 = vrot.lane.b32.xlu0 %v11347_v49, %s13317_s30 }
 0x3c5   : > { %2737 = vrot.lane.b32.xlu1 %v11347_v49, %s13318_s29  ;;  %2640 = vrot.lane.b32.xlu2 %v11345_v45, %s13317_s30 }
 0x3c7   : > { %2632 = vrot.lane.b32.xlu0 %v11359_v22, %s13318_s29 }
 0x3ca   : > { %7895 = vmatmul.msk.bf16.gmra.mxu0 %vm2057_vm4, %v9747_v9  ;;  %v9774_v9 = vld [vmem:[%s13319_s0 + $0x30] sm:$0xff] }
 0x3cd   : > { %2121 = vperm.xlu1 %10355, %v999_v23   ;;  %2638 = vrot.lane.b32.xlu2 %v11359_v22, %s13317_s30  ;;  %v9779_v23 = vld [vmem:[%s13319_s0 + $0x48] sm:$0xff] }
 0x3cf   : > { %2136 = vperm.xlu0 %10354, %v1002_v24   ;;  %v9775_v24 = vld [vmem:[%s13319_s0 + $0x38] sm:$0xff] }
 0x3d5   : > { %2116 = vperm.xlu1 %10355, %v998_v25   ;;  %2739 = vrot.lane.b32.xlu2 %v11332_v47, %s13318_s29 }
 0x3d7   : > { %2111 = vperm.xlu0 %10354, %v997_v27  }
 0x3da   : > { %7896 = vmatmul.msk.bf16.gmra.mxu0 %vm2057_vm4, %v9748_v28 }
 0x3dd   : > { %2447 = vperm.xlu1 %10355, %v1017_v29   ;;  %2131 = vperm.xlu2 %10353, %v1001_v14   ;;  %v9780_v29 = vld [vmem:[%s13319_s0 + $0x50] sm:$0xff] }
 0x3df   : > { %2404 = vperm.xlu0 %10354, %v1010_v30  }
 0x3e5   : > { %2106 = vperm.xlu1 %10355, %v996_v10   ;;  %2126 = vperm.xlu2 %10353, %v1000_v32   ;;  %v9781_v10 = vld [vmem:[%s13319_s0 + $0x58] sm:$0xff] }
 0x3e7   : > { %2101 = vperm.xlu0 %10354, %v995_v34  }
 0x3ea   : > { %7897 = vmatmul.msk.bf16.gmra.mxu0 %vm2057_vm4, %v9749_v35 }
 0x3ed   : > { %2437 = vperm.xlu1 %10355, %v1015_v36   ;;  %2399 = vperm.xlu2 %10353, %v1009_v38  }
 0x3ef   : > { %2394 = vperm.xlu0 %10354, %v1008_v40  }
 0x3f5   : > { %2384 = vperm.xlu1 %10355, %v1006_v41   ;;  %2452 = vperm.xlu2 %10353, %v1018_v43  }
 0x3f7   : > { %2379 = vperm.xlu0 %10354, %v1005_v56   ;;  %v2170_v21 = vpop.permute.xlu0 %2169 }
 0x3fd   : > { %2369 = vperm.xlu1 %10355, %v1003_v46   ;;  %2389 = vperm.xlu2 %10353, %v1007_v48  }
 0x3ff   : > { %2432 = vperm.xlu0 %10354, %v1014_v50   ;;  %v2276_v51 = vpop.permute.xlu2 %2275 }
 0x405   : > { %2422 = vperm.xlu1 %10355, %v1012_v57   ;;  %2442 = vperm.xlu2 %10353, %v1016_v60  }
 0x407   : > { %2417 = vperm.xlu0 %10354, %v1011_v0   ;;  %v2278_v61 = vpop.permute.xlu2 %2277 }
 0x408   : > { %2324 = vmatpush.bf16.msrb.mxu2 %v2278_v61 }
 0x409   : > { %v2172_v2 = vpop.permute.xlu0 %2171 }
 0x40a   : > { %2218 = vmatpush.bf16.msrb.mxu1 %v2172_v2 }
 0x40c   : > { %2325 = vmatpush.bf16.msrb.mxu2 %v2276_v51 }
 0x40d   : > { %2427 = vperm.xlu2 %10353, %v1013_v53  }
 0x40e   : > { %2219 = vmatpush.bf16.msrb.mxu1 %v2170_v21 }
 0x40f   : > { %v2272_v55 = vpop.permute.xlu2 %2271 }
 0x410   : > { %2326 = vmatpush.bf16.msrb.mxu2 %v2272_v55 }
 0x411   : > { %v2166_v52 = vpop.permute.xlu0 %2165 }
 0x412   : > { %2220 = vmatpush.bf16.msrb.mxu1 %v2166_v52 }
 0x415   : > { %2374 = vperm.xlu2 %10353, %v1004_v31  }
 0x417   : > { %v2544_v58 = vpop.permute.xlu2 %2543  ;;  %v2270_v54 = vpop.permute.xlu1 %2269 }
 0x418   : > { %2327 = vmatpush.bf16.msrb.mxu2 %v2270_v54  ;;  %2581 = vmatpush.bf16.msrb.mxu3 %v2544_v58 }
 0x419   : > { %v2164_v59 = vpop.permute.xlu0 %2163 }
 0x41a   : > { %2221 = vmatpush.bf16.msrb.mxu1 %v2164_v59 }
 0x41c   : > { %2328 = vmatpush.bf16.msrb.mxu2 %v11321_v37  ;;  %v9765_v37 = vld [vmem:[%s13319_s0 + $0x8] sm:$0xff] }
 0x41e   : > { %2222 = vmatpush.bf16.msrb.mxu1 %v11303_v16  ;;  %v9764_v16 = vld [vmem:[%s13319_s0] sm:$0xff] }
 0x41f   : > { %v2641_v33 = vpop.permute.xlu2 %2640  ;;  %v2538_v62 = vpop.permute.xlu1 %2537 }
 0x420   : > { %2329 = vmatpush.bf16.msrb.mxu2 %v11311_v17  ;;  %2686 = vmatpush.bf16.msra.mxu0 %v2641_v33 }
 0x421   : > { %v2542_v1 = vpop.permute.xlu0 %2541 }
 0x422   : > { %2223 = vmatpush.bf16.msrb.mxu1 %v11296_v7  ;;  %2582 = vmatpush.bf16.msrb.mxu3 %v2542_v1 }
 0x423   : > { %7966 = vmatmul.msk.bf16.vlgmr.msrb.gmra.mxu2 %vm2057_vm4, %v9760_v63 }
 0x425   : > { %7930 = vmatmul.msk.bf16.vlgmr.msrb.gmra.mxu1 %vm2057_vm4, %v9754_v3 }
 0x426   : > { %2583 = vmatpush.bf16.msrb.mxu3 %v2538_v62 }
 0x427   : > { %v2639_v5 = vpop.permute.xlu2 %2638  ;;  %v2536_v8 = vpop.permute.xlu1 %2535 }
 0x428   : > { %2687 = vmatpush.bf16.msra.mxu0 %v2639_v5 }
 0x429   : > { %v2746_v12 = vpop.permute.xlu0 %2745 }
 0x42a   : > { %2584 = vmatpush.bf16.msrb.mxu3 %v2536_v8  ;;  %2791 = vmatpush.bf16.msra.mxu1 %v2746_v12 }
 0x42e   : > { %2585 = vmatpush.bf16.msrb.mxu3 %v11319_v20  ;;  %v9756_v20 = vld [vmem:[%s13319_s0 + $0x30] sm:$0xff] }
 0x42f   : > { %v2635_v13 = vpop.permute.xlu1 %2634  ;;  %v2740_v44 = vpop.permute.xlu2 %2739 }
 0x430   : > { %2688 = vmatpush.bf16.msra.mxu0 %v2635_v13 }
 0x431   : > { %v2744_v7 = vpop.permute.xlu0 %2743 }
 0x432   : > { %2586 = vmatpush.bf16.msrb.mxu3 %v11327_v11  ;;  %2792 = vmatpush.bf16.msra.mxu1 %v2744_v7  ;;  %v9763_v11 = vld [vmem:[%s13319_s0 + $0x58] sm:$0xff] }
 0x433   : > { %7967 = vmatmul.msk.bf16.gmra.mxu2 %vm2057_vm4, %v9761_v15 }
 0x435   : > { %7931 = vmatmul.msk.bf16.gmra.mxu1 %vm2057_vm4, %v9755_v42  ;;  %7994 = vmatmul.msk.bf16.vlgmr.msrb.gmra.mxu3 %vm2057_vm4, %v9764_v16 }
 0x436   : > { %2793 = vmatpush.bf16.msra.mxu1 %v2740_v44 }
 0x437   : > { %v2738_v6 = vpop.permute.xlu1 %2737  ;;  %v2079_v25 = vpop.f32.mrf.mxu0 }
 0x438   : > { %v11553_v41 = vpop.permute.xlu2 %2131 }
 0x439   : > { %v2633_v17 = vpop.permute.xlu0 %2632 }
 0x43a   : > { %2689 = vmatpush.bf16.msra.mxu0 %v2633_v17  ;;  %2794 = vmatpush.bf16.msra.mxu1 %v2738_v6 }
 0x43e   : > { %2690 = vmatpush.bf16.msra.mxu0 %v11345_v45  ;;  %2795 = vmatpush.bf16.msra.mxu1 %v11332_v47  ;;  %v9757_v47 = vld [vmem:[%s13319_s0 + $0x38] sm:$0xff]  ;;  %v9773_v45 = vld [vmem:[%s13319_s0 + $0x28] sm:$0xff] }
 0x43f   : > { %v11533_v27 = vpop.f32.mrf.mxu0  ;;  %v11551_v35 = vpop.permute.xlu1 %2121 }
 0x440   : > { %v11561_v57 = vpop.permute.xlu2 %2126 }
 0x441   : > { %v11535_v28 = vpop.permute.xlu0 %2136 }
 0x442   : > { %2691 = vmatpush.bf16.msra.mxu0 %v11359_v22  ;;  %2796 = vmatpush.bf16.msra.mxu1 %v11347_v49  ;;  %v9767_v49 = vld [vmem:[%s13319_s0 + $0x18] sm:$0xff]  ;;  %v9778_v22 = vld [vmem:[%s13319_s0 + $0x40] sm:$0xff]  ;;  %s10456_s0 = scalar_lea.hbm %s13330_s23, 2 }
 0x443   : > { %7968 = vmatmul.msk.bf16.gmra.mxu2 %vm2057_vm4, %v9762_v18 }
 0x445   : > { %7932 = vmatmul.msk.bf16.gmra.mxu1 %vm2057_vm4, %v9756_v20  ;;  %7995 = vmatmul.msk.bf16.gmra.mxu3 %vm2057_vm4, %v9765_v37 }
 0x446   : > { %8030 = vmatmul.msk.bf16.vlgmr.msra.gmra.mxu0 %vm2057_vm4, %v9772_v19 }
 0x447   : > { %v11541_v14 = vpop.f32.mrf.mxu0  ;;  %v11555_v46 = vpop.permute.xlu1 %2116 }
 0x448   : > { %v11567_v53 = vpop.permute.xlu2 %2399 }
 0x449   : > { %v11543_v30 = vpop.permute.xlu0 %2111 }
 0x44f   : > { %v2086_v32 = vpop.f32.mrf.mxu0  ;;  %v11565_v0 = vpop.permute.xlu1 %2447 }
 0x450   : > { %v11573_v62 = vpop.permute.xlu2 %2452  ;;  %v2142_v3 = vadd.f32 %v11555_v46, %v2086_v32 }
 0x451   : > { %v11548_v34 = vpop.permute.xlu0 %2404 }
 0x453   : > { %7969 = vmatmul.msk.bf16.gmra.mxu2 %vm2057_vm4, %v9763_v11 }
 0x455   : > { %7933 = vmatmul.msk.bf16.gmra.mxu1 %vm2057_vm4, %v9757_v47  ;;  %7996 = vmatmul.msk.bf16.gmra.mxu3 %vm2057_vm4, %v9766_v39 }
 0x456   : > { %8031 = vmatmul.msk.bf16.gmra.mxu0 %vm2057_vm4, %v9773_v45 }
 0x457   : > { %v2089_v36 = vpop.f32.mrf.mxu0  ;;  %v11569_v52 = vpop.permute.xlu1 %2106 }
 0x458   : > { %v2143_v5 = vadd.f32 %v11551_v35, %v2089_v36  ;;  %v11581_v18 = vpop.permute.xlu2 %2389 }
 0x459   : > { %v2102_v38 = vpop.permute.xlu0 %2101 }
 0x45a   : > { %v2139_v40 = vadd.f32 %v2102_v38, %v2079_v25 }
 0x45f   : > { %v2091_v50 = vpop.f32.mrf.mxu0  ;;  %v11577_v12 = vpop.permute.xlu1 %2437 }
 0x461   : > { %v11571_v54 = vpop.permute.xlu0 %2394 }
 0x465   : > { %7997 = vmatmul.msk.bf16.gmra.mxu3 %vm2057_vm4, %v9767_v49  ;;  %8066 = vmatmul.msk.bf16.vlgmr.msra.gmra.mxu1 %vm2057_vm4, %v9778_v22 }
 0x466   : > { %8032 = vmatmul.msk.bf16.gmra.mxu0 %vm2057_vm4, %v9774_v9 }
 0x467   : > { %v2094_v61 = vpop.f32.mrf.mxu0  ;;  %v11585_v47 = vpop.permute.xlu1 %2384 }
 0x469   : > { %v11579_v6 = vpop.permute.xlu0 %2379 }
 0x46f   : > { %v2096_v58 = vpop.f32.mrf.mxu0 }
 0x471   : > { %v11589_v22 = vpop.permute.xlu0 %2432 }
 0x475   : > { %8067 = vmatmul.msk.bf16.gmra.mxu1 %vm2057_vm4, %v9779_v23  ;;  %v2144_v23 = vadd.f32 %v11561_v57, %v2091_v50 }
 0x476   : > { %8033 = vmatmul.msk.bf16.gmra.mxu0 %vm2057_vm4, %v9775_v24  ;;  %v2145_v24 = vadd.f32 %v11553_v41, %v2094_v61  ;;  %v2146_v61 = vadd.f32 %v11535_v28, %v2096_v58  ;;  %v2140_v58 = vadd.f32 %v11569_v52, %v11533_v27 }
 0x485   : > { %8068 = vmatmul.msk.bf16.gmra.mxu1 %vm2057_vm4, %v9780_v29 }
 0x495   : > { %8069 = vmatmul.msk.bf16.gmra.mxu1 %vm2057_vm4, %v9781_v10 }
 0x4a2   : > { %v2225_v43 = vpop.f32.mrf.mxu1 }
 0x4a3   : > { %v2245_v56 = vadd.f32 %v2225_v43, %v2139_v40 }
 0x4a6   : > { %v2331_v48 = vpop.f32.mrf.mxu2 }
 0x4a7   : > { %v11557_v51 = vadd.f32 %v2331_v48, %v2245_v56  ;;  %v11596_v56 = vpop.permute.xlu2 %2442 }
 0x4aa   : > { %v11559_v21 = vpop.f32.mrf.mxu1 }
 0x4ae   : > { %v11563_v60 = vpop.f32.mrf.mxu2 }
 0x4b2   : > { %v2230_v2 = vpop.f32.mrf.mxu1 }
 0x4b6   : > { %v2336_v55 = vpop.f32.mrf.mxu2 }
 0x4b8   : > { %v2588_v33 = vpop.f32.mrf.mxu3 }
 0x4b9   : > { %v2608_v63 = vadd.f32 %v2588_v33, %v2102_v38 }
 0x4ba   : > { %v2232_v31 = vpop.f32.mrf.mxu1 }
 0x4bb   : > { %v2248_v15 = vadd.f32 %v2232_v31, %v2142_v3 }
 0x4be   : > { %v2338_v59 = vpop.f32.mrf.mxu2 }
 0x4bf   : > { %v2354_v16 = vadd.f32 %v2338_v59, %v2248_v15  ;;  %v2141_v59 = vadd.f32 %v11543_v30, %v11541_v14  ;;  %v2359_v14 = vmax.f32 %v11557_v51, 0.0 }
 0x4c0   : > { %v11594_v43 = vpop.f32.mrf.mxu3 }
 0x4c1   : > { %v2362_v37 = vmax.f32 %v2354_v16, 0.0 }
 0x4c2   : > { %v2235_v1 = vpop.f32.mrf.mxu1 }
 0x4c3   : > { %v2693_v8 = vpop.f32.mrf.mxu0  ;;  %v2249_v7 = vadd.f32 %v2235_v1, %v2143_v5  ;;  %v2410_v45 = vmul.f32 %v11585_v47, %v2362_v37  ;;  %v2247_v1 = vadd.f32 %v2230_v2, %v2141_v59  ;;  %v11643_v59 = vld [vmem:[#allocation4 + $0x10] sm:$0xff] }
 0x4c4   : > { %v2713_v13 = vadd.f32 %v2693_v8, %v2608_v63 }
 0x4c5   : > { %v2458_v25 = vadd.f32 %v11589_v22, %v2410_v45  ;;  %v2353_v15 = vadd.f32 %v2336_v55, %v2247_v1  ;;  %v11617_v45 = vpop.permute.xlu1 %2369 }
 0x4c6   : > { %v2341_v42 = vpop.f32.mrf.mxu2  ;;  %v2407_v51 = vmul.f32 %v11617_v45, %v2359_v14 }
 0x4c7   : > { %v2355_v44 = vadd.f32 %v2341_v42, %v2249_v7  ;;  %v2466_v40 = vpack.c.bf16 %v2458_v25, %v2458_v25  ;;  %v2361_v2 = vmax.f32 %v2353_v15, 0.0  ;;  %v11624_v25 = vld [vmem:[#allocation4 + $0x18] sm:$0xff] }
 0x4c9   : > { %v2363_v17 = vmax.f32 %v2355_v44, 0.0 }
 0x4ca   : > { %v2237_v20 = vpop.f32.mrf.mxu1 }
 0x4cb   : > { %v2411_v19 = vmul.f32 %v11581_v18, %v2363_v17  ;;  %v2250_v29 = vadd.f32 %v2237_v20, %v2144_v23  ;;  %v11599_v31 = vpop.f32.mrf.mxu0  ;;  %v2593_v17 = vpop.f32.mrf.mxu3  ;;  %v2409_v23 = vmul.f32 %v11579_v6, %v2361_v2 }
 0x4cd   : > { %v2459_v11 = vadd.f32 %v11577_v12, %v2411_v19 }
 0x4ce   : > { %v2343_v39 = vpop.f32.mrf.mxu2 }
 0x4cf   : > { %v2467_v49 = vpack.c.bf16 %v2459_v11, %v2459_v11  ;;  %v2356_v36 = vadd.f32 %v2343_v39, %v2250_v29  ;;  %v11615_v11 = vpop.permute.xlu2 %2427  ;;  %v11628_v29 = vpop.permute.xlu0 %2417 }
 0x4d1   : > { %2487 = vrot.lane.b32.xlu1 %v2467_v49, %s13316_s8  ;;  %v2364_v33 = vmax.f32 %v2356_v36, 0.0  ;;  %v2246_v49 = vadd.f32 %v11559_v21, %v2140_v58 }
 0x4d2   : > { %v2240_v9 = vpop.f32.mrf.mxu1 }
 0x4d3   : > { %v2251_v10 = vadd.f32 %v2240_v9, %v2145_v24  ;;  %v2412_v7 = vmul.f32 %v11571_v54, %v2364_v33  ;;  %v2698_v39 = vpop.f32.mrf.mxu0  ;;  %v2352_v9 = vadd.f32 %v11563_v60, %v2246_v49  ;;  %v2457_v60 = vadd.f32 %v11615_v11, %v2409_v23  ;;  %v11636_v36 = vpop.f32.mrf.mxu3 }
 0x4d4   : > { %v11647_v33 = vpop.permute.xlu1 %2422 }
 0x4d5   : > { %v2460_v55 = vadd.f32 %v11596_v56, %v2412_v7  ;;  %v2360_v21 = vmax.f32 %v2352_v9, 0.0  ;;  %v2610_v7 = vadd.f32 %v2593_v17, %v11543_v30 }
 0x4d6   : > { %v2346_v32 = vpop.f32.mrf.mxu2 }
 0x4d7   : > { %v2357_v38 = vadd.f32 %v2346_v32, %v2251_v10  ;;  %v2455_v32 = vadd.f32 %v11628_v29, %v2407_v51 }
 0x4d9   : > { %v2365_v48 = vmax.f32 %v2357_v38, 0.0  ;;  %2485 = vrot.lane.b32.xlu1 %v2466_v40, %s13316_s8  ;;  %v11638_v38 = vpop.permute.xlu2 %2374 }
 0x4da   : > { %v2242_v50 = vpop.f32.mrf.mxu1 }
 0x4db   : > { %v2413_v63 = vmul.f32 %v11567_v53, %v2365_v48  ;;  %v2252_v3 = vadd.f32 %v2242_v50, %v2146_v61  ;;  %v11640_v40 = vpop.f32.mrf.mxu0  ;;  %v2408_v48 = vmul.f32 %v11638_v38, %v2360_v21  ;;  %v2465_v50 = vpack.c.bf16 %v2457_v60, %v2457_v60 }
 0x4dc   : > { %v2463_v61 = vpack.c.bf16 %v2455_v32, %v2455_v32 }
 0x4dd   : > { %v2461_v5 = vadd.f32 %v11565_v0, %v2413_v63  ;;  %v2456_v1 = vadd.f32 %v11647_v33, %v2408_v48 }
 0x4de   : > { %v2348_v8 = vpop.f32.mrf.mxu2 }
 0x4df   : > { %v2358_v42 = vadd.f32 %v2348_v8, %v2252_v3  ;;  %v2469_v16 = vpack.c.bf16 %v2461_v5, %v2461_v5  ;;  %v2598_v3 = vpop.f32.mrf.mxu3  ;;  %v2464_v5 = vpack.c.bf16 %v2456_v1, %v2456_v1 }
 0x4e0   : > { %v2612_v58 = vadd.f32 %v2598_v3, %v11551_v35 }
 0x4e1   : > { %v2366_v44 = vmax.f32 %v2358_v42, 0.0  ;;  %2491 = vrot.lane.b32.xlu2 %v2469_v16, %s13316_s8  ;;  %2944 = vrot.lane.b32.xlu1 %v11624_v25, %s13318_s29  ;;  %v2715_v42 = vadd.f32 %v2698_v39, %v2610_v7  ;;  %v11658_v16 = vld [vmem:[#allocation4 + $0x8] sm:$0xff] }
 0x4e2   : > { %v2798_v20 = vpop.f32.mrf.mxu1 }
 0x4e3   : > { %v2414_v37 = vmul.f32 %v11548_v34, %v2366_v44  ;;  %v11612_v19 = vadd.f32 %v2798_v20, %v2713_v13  ;;  %v2468_v13 = vpack.c.bf16 %v2460_v55, %v2460_v55  ;;  %v2703_v8 = vpop.f32.mrf.mxu0  ;;  %v11660_v44 = vld [vmem:[#allocation4] sm:$0xff] }
 0x4e4   : > { %v2717_v2 = vadd.f32 %v2703_v8, %v2612_v58 }
 0x4e5   : > { %v2462_v27 = vadd.f32 %v11573_v62, %v2414_v37 }
 0x4e7   : > { %v2470_v24 = vpack.c.bf16 %v2462_v27, %v2462_v27  ;;  %v2600_v20 = vpop.f32.mrf.mxu3 }
 0x4e8   : > { %v2613_v39 = vadd.f32 %v2600_v20, %v11561_v57 }
 0x4e9   : > { %2493 = vrot.lane.b32.xlu0 %v2470_v24, %s13316_s8  ;;  %2489 = vrot.lane.b32.xlu2 %v2468_v13, %s13316_s8 }
 0x4ea   : > { %v11630_v10 = vpop.f32.mrf.mxu1  ;;  %2954 = vrot.lane.b32.xlu1 %v11643_v59, %s13317_s30 }
 0x4eb   : > { %v2705_v37 = vpop.f32.mrf.mxu0 }
 0x4ec   : > { %v2718_v51 = vadd.f32 %v2705_v37, %v2613_v39 }
 0x4ef   : > { %v2603_v23 = vpop.f32.mrf.mxu3 }
 0x4f0   : > { %v2614_v57 = vadd.f32 %v2603_v23, %v11553_v41 }
 0x4f1   : > { %2483 = vrot.lane.b32.xlu0 %v2465_v50, %s13316_s8  ;;  %2479 = vrot.lane.b32.xlu2 %v2463_v61, %s13316_s8 }
 0x4f2   : > { %v2803_v63 = vpop.f32.mrf.mxu1 }
 0x4f3   : > { %v2820_v14 = vadd.f32 %v2803_v63, %v2715_v42  ;;  %v2708_v32 = vpop.f32.mrf.mxu0 }
 0x4f4   : > { %v2719_v50 = vadd.f32 %v2708_v32, %v2614_v57 }
 0x4f5   : > { %v2828_v49 = vmax.f32 %v2820_v14, 0.0 }
 0x4f7   : > { %v2836_v27 = vmul.f32 %v2828_v49, %v11579_v6  ;;  %v2605_v1 = vpop.f32.mrf.mxu3 }
 0x4f9   : > { %2481 = vrot.lane.b32.xlu0 %v2464_v5, %s13316_s8  ;;  %2942 = vrot.lane.b32.xlu2 %v11643_v59, %s13318_s29  ;;  %v2844_v60 = vadd.f32 %v2836_v27, %v11615_v11  ;;  %v2615_v11 = vadd.f32 %v2605_v1, %v11535_v28 }
 0x4fa   : > { %v11655_v15 = vpop.f32.mrf.mxu1 }
 0x4fb   : > { %v2710_v5 = vpop.f32.mrf.mxu0 }
 0x4fc   : > { %v2720_v42 = vadd.f32 %v2710_v5, %v2615_v11  ;;  %v9785_v5 = vld [vmem:[%s13323_s11 + $0x14] sm:$0xf0] }
 0x501   : > { %2940 = vrot.lane.b32.xlu0 %v11658_v16, %s13318_s29  ;;  %2938 = vrot.lane.b32.xlu2 %v11660_v44, %s13318_s29 }
 0x502   : > { %v2808_v55 = vpop.f32.mrf.mxu1 }
 0x503   : > { %v2822_v30 = vadd.f32 %v2808_v55, %v2717_v2 }
 0x505   : > { %v2830_v17 = vmax.f32 %v2822_v30, 0.0 }
 0x507   : > { %v2838_v35 = vmul.f32 %v2830_v17, %v11581_v18  ;;  %v2852_v18 = vpack.c.bf16 %v2844_v60, %v2844_v60 }
 0x509   : > { %2956 = vrot.lane.b32.xlu0 %v11624_v25, %s13317_s30  ;;  %v2846_v9 = vadd.f32 %v2838_v35, %v11577_v12 }
 0x50a   : > { %v2810_v24 = vpop.f32.mrf.mxu1 }
 0x50b   : > { %v2823_v13 = vadd.f32 %v2810_v24, %v2718_v51  ;;  %v2854_v21 = vpack.c.bf16 %v2846_v9, %v2846_v9  ;;  %v2611_v9 = vadd.f32 %v11636_v36, %v11555_v46  ;;  %v2609_v46 = vadd.f32 %v11594_v43, %v11569_v52 }
 0x50c   : > { %v2826_v43 = vmax.f32 %v11612_v19, 0.0 }
 0x50d   : > { %v2831_v48 = vmax.f32 %v2823_v13, 0.0  ;;  %2874 = vrot.lane.b32.xlu2 %v2854_v21, %s13316_s8  ;;  %v2716_v23 = vadd.f32 %v11640_v40, %v2611_v9  ;;  %v2714_v60 = vadd.f32 %v11599_v31, %v2609_v46  ;;  %v8106_v9 = vld [vmem:[%s13323_s11 + $0x28] sm:$0xf0] }
 0x50f   : > { %v2839_v6 = vmul.f32 %v2831_v48, %v11571_v54  ;;  %v2821_v21 = vadd.f32 %v11655_v15, %v2716_v23  ;;  %v2819_v40 = vadd.f32 %v11630_v10, %v2714_v60  ;;  %v8112_v23 = vld [vmem:[%s13323_s11 + $0x30] sm:$0xf] }
 0x511   : > { %2870 = vrot.lane.b32.xlu0 %v2852_v18, %s13316_s8  ;;  %v2847_v63 = vadd.f32 %v2839_v6, %v11596_v56  ;;  %v2829_v36 = vmax.f32 %v2821_v21, 0.0  ;;  %v2827_v52 = vmax.f32 %v2819_v40, 0.0  ;;  %v8148_v40 = vld [vmem:[%s13323_s11 + $0x40] sm:$0xf] }
 0x512   : > { %v2813_v61 = vpop.f32.mrf.mxu1 }
 0x513   : > { %v2824_v12 = vadd.f32 %v2813_v61, %v2719_v50  ;;  %v2855_v7 = vpack.c.bf16 %v2847_v63, %v2847_v63  ;;  %v2837_v15 = vmul.f32 %v2829_v36, %v11585_v47  ;;  %v2835_v10 = vmul.f32 %v2827_v52, %v11638_v38  ;;  %v9783_v61 = vld [vmem:[%s13323_s11 + $0x4] sm:$0xf0]  ;;  %v9798_v52 = vld [vmem:[%s13323_s11 + $0x44] sm:$0xf] }
 0x514   : > { %v2834_v47 = vmul.f32 %v2826_v43, %v11617_v45  ;;  %v8150_v43 = vld [vmem:[%s13323_s11 + $0x48] sm:$0xf0] }
 0x515   : > { %v2832_v3 = vmax.f32 %v2824_v12, 0.0  ;;  %v2845_v31 = vadd.f32 %v2837_v15, %v11589_v22  ;;  %v2843_v19 = vadd.f32 %v2835_v10, %v11647_v33  ;;  %v11881_v10 = vld [vmem:[#allocation4 + $0x68] sm:$0xff] }
 0x516   : > { %v2842_v22 = vadd.f32 %v2834_v47, %v11628_v29  ;;  %v11884_v47 = vor.u32 %v9798_v52, %v8150_v43 }
 0x517   : > { %v2840_v8 = vmul.f32 %v2832_v3, %v11567_v53  ;;  %v2853_v6 = vpack.c.bf16 %v2845_v31, %v2845_v31  ;;  %v2851_v38 = vpack.c.bf16 %v2843_v19, %v2843_v19  ;;  %v8096_v3 = vld [vmem:[%s13323_s11 + $0x10] sm:$0xf]  ;;  %v11879_v31 = vld [vmem:[#allocation4 + $0x78] sm:$0xff] }
 0x518   : > { %v11779_v11 = vor.u32 %v9785_v5, %v8096_v3  ;;  %v8114_v19 = vld [vmem:[%s13323_s11 + $0x38] sm:$0xf0]  ;;  %v9803_v3 = vld [vmem:[%s13323_s11 + $0x64] sm:$0xf0]  ;;  %v9802_v5 = vld [vmem:[%s13323_s11 + $0x64] sm:$0xf] }
 0x519   : > { %2876 = vrot.lane.b32.xlu0 %v2855_v7, %s13316_s8  ;;  %v2848_v41 = vadd.f32 %v2840_v8, %v11565_v0 }
 0x51a   : > { %v2815_v54 = vpop.f32.mrf.mxu1 }
 0x51b   : > { %v2825_v58 = vadd.f32 %v2815_v54, %v2720_v42  ;;  %v2856_v14 = vpack.c.bf16 %v2848_v41, %v2848_v41  ;;  %v9782_v42 = vld [vmem:[%s13323_s11 + $0x4] sm:$0xf]  ;;  %v8090_v41 = vld [vmem:[%s13323_s11 + $0x8] sm:$0xf0] }
 0x51d   : > { %v2833_v20 = vmax.f32 %v2825_v58, 0.0  ;;  %2878 = vrot.lane.b32.xlu1 %v2856_v14, %s13316_s8  ;;  %v11791_v14 = vor.u32 %v9782_v42, %v8090_v41  ;;  %v1021_v42 = vld [vmem:[%s13324_s12 + $0x10] sm:$0xff] }
 0x51e   : > { %v1025_v41 = vld [vmem:[%s13324_s12 + $0x30] sm:$0xff] }
 0x51f   : > { %v2841_v56 = vmul.f32 %v2833_v20, %v11548_v34 }
 0x521   : > { %v2849_v2 = vadd.f32 %v2841_v56, %v11573_v62 }
 0x523   : > { %v2857_v37 = vpack.c.bf16 %v2849_v2, %v2849_v2 }
 0x525   : > { %2880 = vrot.lane.b32.xlu2 %v2857_v37, %s13316_s8  ;;  %v9784_v37 = vld [vmem:[%s13323_s11 + $0x14] sm:$0xf] }
 0x53b   : > { %v2492_v28 = vpop.permute.xlu2 %2491 }
 0x53c   : > { %2509 = vst.msk [vmem:[#allocation4 + $0x38] sm:$0xf] %vm1860_vm3, %v2492_v28  ;;  %v8098_v28 = vld [vmem:[%s13323_s11 + $0x18] sm:$0xf0] }
 0x543   : > { %v2490_v53 = vpop.permute.xlu2 %2489  ;;  %v2488_v55 = vpop.permute.xlu1 %2487 }
 0x544   : > { %2508 = vst.msk [vmem:[#allocation4 + $0x34] sm:$0xf] %vm1860_vm3, %v2490_v53  ;;  %v8104_v53 = vld [vmem:[%s13323_s11 + $0x20] sm:$0xf] }
 0x545   : > { %2507 = vst.msk [vmem:[#allocation4 + $0x30] sm:$0xf] %vm1860_vm3, %v2488_v55  ;;  %v9787_v55 = vld [vmem:[%s13323_s11 + $0x24] sm:$0xf0] }
 0x54b   : > { %v2480_v0 = vpop.permute.xlu2 %2479  ;;  %v2486_v49 = vpop.permute.xlu1 %2485 }
 0x54c   : > { %2503 = vst.msk [vmem:[#allocation4 + $0x20] sm:$0xf] %vm1860_vm3, %v2480_v0  ;;  %v11691_v30 = vld [vmem:[#allocation4 + $0x30] sm:$0xff] }
 0x54d   : > { %2506 = vst.msk [vmem:[#allocation4 + $0x2c] sm:$0xf] %vm1860_vm3, %v2486_v49  ;;  %3153 = vrot.lane.b32.xlu0 %v11691_v30, %s13318_s29  ;;  %v11815_v49 = vor.u32 %v9784_v37, %v8098_v28  ;;  %v8174_v37 = vld [vmem:[%s13323_s11 + $0x78] sm:$0xf0] }
 0x553   : > { %v2943_v34 = vpop.permute.xlu2 %2942  ;;  %v2945_v39 = vpop.permute.xlu1 %2944 }
 0x554   : > { %3011 = vmatpush.bf16.msra.mxu2 %v2945_v39 }
 0x558   : > { %3012 = vmatpush.bf16.msra.mxu2 %v2943_v34  ;;  %v11817_v34 = vor.u32 %v9787_v55, %v8104_v53  ;;  %v1026_v53 = vld [vmem:[%s13324_s12 + $0x38] sm:$0xff] }
 0x55b   : > { %v2494_v62 = vpop.permute.xlu0 %2493  ;;  %v2939_v17 = vpop.permute.xlu2 %2938 }
 0x55c   : > { %2510 = vst.msk [vmem:[#allocation4 + $0x3c] sm:$0xf] %vm1860_vm3, %v2494_v62  ;;  %v2955_v50 = vpop.permute.xlu1 %2954 }
 0x563   : > { %v2484_v27 = vpop.permute.xlu0 %2483  ;;  %v11697_v35 = vld [vmem:[#allocation4 + $0x38] sm:$0xff] }
 0x564   : > { %2505 = vst.msk [vmem:[#allocation4 + $0x28] sm:$0xf] %vm1860_vm3, %v2484_v27  ;;  %3167 = vrot.lane.b32.xlu0 %v11697_v35, %s13317_s30 }
 0x567   : > { %v2875_v51 = vpop.permute.xlu2 %2874 }
 0x568   : > { %2894 = vst.msk [vmem:[#allocation4 + $0x50] sm:$0xf] %vm1860_vm3, %v2875_v51  ;;  %v9786_v51 = vld [vmem:[%s13323_s11 + $0x24] sm:$0xf] }
 0x569   : > { %v11847_v21 = vor.u32 %v9786_v51, %v8106_v9 }
 0x56b   : > { %v2482_v24 = vpop.permute.xlu0 %2481  ;;  %v11706_v13 = vld [vmem:[#allocation4 + $0x28] sm:$0xff] }
 0x56c   : > { %2504 = vst.msk [vmem:[#allocation4 + $0x24] sm:$0xf] %vm1860_vm3, %v2482_v24  ;;  %2950 = vrot.lane.b32.xlu0 %v11660_v44, %s13317_s30  ;;  %3151 = vrot.lane.b32.xlu1 %v11706_v13, %s13318_s29  ;;  %v9789_v24 = vld [vmem:[%s13323_s11 + $0x34] sm:$0xf0] }
 0x56d   : > { %v11851_v60 = vor.u32 %v9789_v24, %v8112_v23 }
 0x573   : > { %v2941_v32 = vpop.permute.xlu0 %2940  ;;  %v11718_v48 = vld [vmem:[#allocation4 + $0x20] sm:$0xff] }
 0x574   : > { %3013 = vmatpush.bf16.msra.mxu2 %v2941_v32  ;;  %3149 = vrot.lane.b32.xlu2 %v11718_v48, %s13318_s29  ;;  %v9799_v32 = vld [vmem:[%s13323_s11 + $0x44] sm:$0xf0] }
 0x575   : > { %3161 = vrot.lane.b32.xlu0 %v11718_v48, %s13317_s30  ;;  %3155 = vrot.lane.b32.xlu1 %v11697_v35, %s13318_s29  ;;  %v11868_v15 = vor.u32 %v9799_v32, %v8148_v40 }
 0x578   : > { %3014 = vmatpush.bf16.msra.mxu2 %v2939_v17 }
 0x57b   : > { %v2957_v57 = vpop.permute.xlu0 %2956 }
 0x57c   : > { %3044 = vmatpush.bf16.msra.mxu3 %v2957_v57  ;;  %3015 = vmatpush.bf16.msra.mxu2 %v11624_v25  ;;  %v2850_v25 = vpack.c.bf16 %v2842_v22, %v2842_v22  ;;  %v11908_v22 = vld [vmem:[#allocation4 + $0x70] sm:$0xff] }
 0x57d   : > { %2952 = vrot.lane.b32.xlu2 %v11658_v16, %s13317_s30  ;;  %2872 = vrot.lane.b32.xlu1 %v2853_v6, %s13316_s8 }
 0x57f   : > { %v2881_v18 = vpop.permute.xlu2 %2880 }
 0x580   : > { %2897 = vst.msk [vmem:[#allocation4 + $0x5c] sm:$0xf] %vm1860_vm3, %v2881_v18  ;;  %3045 = vmatpush.bf16.msra.mxu3 %v2955_v50  ;;  %3016 = vmatpush.bf16.msra.mxu2 %v11643_v59  ;;  %v9788_v18 = vld [vmem:[%s13323_s11 + $0x34] sm:$0xf]  ;;  %v11906_v50 = vld [vmem:[#allocation4 + $0x60] sm:$0xff] }
 0x583   : > { %v2871_v45 = vpop.permute.xlu0 %2870 }
 0x584   : > { %2892 = vst.msk [vmem:[#allocation4 + $0x48] sm:$0xf] %vm1860_vm3, %v2871_v45  ;;  %3017 = vmatpush.bf16.msra.mxu2 %v11658_v16  ;;  %v11910_v45 = vor.u32 %v9788_v18, %v8114_v19 }
 0x585   : > { %2868 = vrot.lane.b32.xlu2 %v2851_v38, %s13316_s8  ;;  %2866 = vrot.lane.b32.xlu1 %v2850_v25, %s13316_s8  ;;  %v8156_v38 = vld [vmem:[%s13323_s11 + $0x50] sm:$0xf]  ;;  %v9801_v25 = vld [vmem:[%s13323_s11 + $0x54] sm:$0xf0] }
 0x588   : > { %3018 = vmatpush.bf16.msra.mxu2 %v11660_v44  ;;  %v8088_v44 = vld [vmem:[%s13323_s11] sm:$0xf] }
 0x589   : > { %v11766_v12 = vor.u32 %v9783_v61, %v8088_v44  ;;  %v8158_v44 = vld [vmem:[%s13323_s11 + $0x58] sm:$0xf0]  ;;  %v1019_v61 = vld [vmem:[%s13324_s12] sm:$0xff] }
 0x58b   : > { %v2877_v33 = vpop.permute.xlu0 %2876  ;;  %3019 = vmatmul.bf16.vlgmr.msra.gmra.mxu2 %v11766_v12 }
 0x58c   : > { %2895 = vst.msk [vmem:[#allocation4 + $0x54] sm:$0xf] %vm1860_vm3, %v2877_v33  ;;  %v11927_v33 = vor.u32 %v9801_v25, %v8156_v38  ;;  %v9811_v38 = vld [vmem:[%s13323_s11 + $0x84] sm:$0xf0] }
 0x58d   : > { %3163 = vrot.lane.b32.xlu2 %v11706_v13, %s13317_s30  ;;  %3165 = vrot.lane.b32.xlu1 %v11691_v30, %s13317_s30 }
 0x58f   : > { %v2879_v29 = vpop.permute.xlu1 %2878 }
 0x590   : > { %2896 = vst.msk [vmem:[#allocation4 + $0x58] sm:$0xf] %vm1860_vm3, %v2879_v29  ;;  %v9800_v29 = vld [vmem:[%s13323_s11 + $0x54] sm:$0xf] }
 0x593   : > { %v11750_v59 = vld [vmem:[#allocation4 + $0x50] sm:$0xff] }
 0x595   : > { %3332 = vrot.lane.b32.xlu2 %v11750_v59, %s13318_s29 }
 0x597   : > { %v11754_v16 = vld [vmem:[#allocation4 + $0x58] sm:$0xff] }
 0x598   : > { %3334 = vrot.lane.b32.xlu1 %v11754_v16, %s13318_s29 }
 0x59b   : > { %3024 = vmatmul.bf16.gmra.mxu2 %v11779_v11 }
 0x59d   : > { %3346 = vrot.lane.b32.xlu2 %v11754_v16, %s13317_s30 }
 0x5ab   : > { %3029 = vmatmul.bf16.gmra.mxu2 %v11817_v34 }
 0x5bb   : > { %3034 = vmatmul.bf16.gmra.mxu2 %v11851_v60 }
 0x5bf   : > { %v11769_v63 = vpop.permute.xlu0 %3153 }
 0x5ce   : > { %v11771_v1 = vpop.permute.xlu2 %3149 }
 0x5d6   : > { %v11782_v7 = vpop.permute.xlu0 %3167 }
 0x5d7   : > { %v2953_v8 = vpop.permute.xlu2 %2952  ;;  %3263 = vmatpush.bf16.msrb.mxu1 %v11782_v7 }
 0x5d8   : > { %3046 = vmatpush.bf16.msra.mxu3 %v2953_v8  ;;  %v8166_v8 = vld [vmem:[%s13323_s11 + $0x68] sm:$0xf0] }
 0x5de   : > { %v2951_v58 = vpop.permute.xlu0 %2950  ;;  %v11794_v20 = vpop.permute.xlu1 %3151 }
 0x5df   : > { %v2869_v54 = vpop.permute.xlu2 %2868  ;;  %3047 = vmatpush.bf16.msra.mxu3 %v2951_v58  ;;  %v8172_v58 = vld [vmem:[%s13323_s11 + $0x70] sm:$0xf] }
 0x5e0   : > { %2891 = vst.msk [vmem:[#allocation4 + $0x44] sm:$0xf] %vm1860_vm3, %v2869_v54  ;;  %v1024_v54 = vld [vmem:[%s13324_s12 + $0x28] sm:$0xff] }
 0x5e2   : > { %8118 = vmatmul.msk.bf16.vlgmr.msra.gmra.mxu3 %vm2998_vm5, %v11791_v14 }
 0x5e7   : > { %v11798_v56 = vpop.permute.xlu2 %3163  ;;  %v3156_v2 = vpop.permute.xlu1 %3155 }
 0x5e8   : > { %3230 = vmatpush.bf16.msrb.mxu0 %v3156_v2  ;;  %v3162_v57 = vpop.permute.xlu0 %3161 }
 0x5ec   : > { %3231 = vmatpush.bf16.msrb.mxu0 %v11769_v63 }
 0x5ef   : > { %v11813_v0 = vpop.permute.xlu2 %3332  ;;  %v2873_v62 = vpop.permute.xlu1 %2872 }
 0x5f0   : > { %2893 = vst.msk [vmem:[#allocation4 + $0x4c] sm:$0xf] %vm1860_vm3, %v2873_v62  ;;  %3232 = vmatpush.bf16.msrb.mxu0 %v11794_v20 }
 0x5f2   : > { %8119 = vmatmul.msk.bf16.gmra.mxu3 %vm2998_vm5, %v11815_v49 }
 0x5f4   : > { %3233 = vmatpush.bf16.msrb.mxu0 %v11771_v1 }
 0x5f7   : > { %v11825_v17 = vpop.permute.xlu2 %3346  ;;  %v2867_v39 = vpop.permute.xlu1 %2866  ;;  %v11828_v27 = vld [vmem:[#allocation4 + $0x48] sm:$0xff] }
 0x5f8   : > { %3442 = vmatpush.bf16.msrb.mxu3 %v11825_v17  ;;  %2890 = vst.msk [vmem:[#allocation4 + $0x40] sm:$0xf] %vm1860_vm3, %v2867_v39  ;;  %3234 = vmatpush.bf16.msrb.mxu0 %v11697_v35 }
 0x5f9   : > { %3330 = vrot.lane.b32.xlu0 %v11828_v27, %s13318_s29 }
 0x5fc   : > { %3235 = vmatpush.bf16.msrb.mxu0 %v11691_v30 }
 0x5ff   : > { %v3166_v46 = vpop.permute.xlu1 %3165  ;;  %v11849_v36 = vld [vmem:[#allocation4 + $0x40] sm:$0xff] }
 0x600   : > { %3236 = vmatpush.bf16.msrb.mxu0 %v11706_v13  ;;  %3264 = vmatpush.bf16.msrb.mxu1 %v3166_v46 }
 0x601   : > { %3344 = vrot.lane.b32.xlu0 %v11750_v59, %s13317_s30  ;;  %3340 = vrot.lane.b32.xlu2 %v11849_v36, %s13317_s30 }
 0x602   : > { %3328 = vrot.lane.b32.xlu1 %v11849_v36, %s13318_s29  ;;  %8120 = vmatmul.msk.bf16.gmra.mxu3 %vm2998_vm5, %v11847_v21 }
 0x604   : > { %3237 = vmatpush.bf16.msrb.mxu0 %v11718_v48  ;;  %3265 = vmatpush.bf16.msrb.mxu1 %v11798_v56 }
 0x607   : > { %3238 = vmatmul.bf16.vlgmr.msrb.gmra.mxu0 %v11868_v15 }
 0x608   : > { %3475 = vmatpush.bf16.msra.mxu0 %v3156_v2  ;;  %3266 = vmatpush.bf16.msrb.mxu1 %v3162_v57  ;;  %v9804_v2 = vld [vmem:[%s13323_s11 + $0x74] sm:$0xf] }
 0x609   : > { %3645 = vrot.lane.b32.xlu0 %v11879_v31, %s13318_s29  ;;  %3641 = vrot.lane.b32.xlu2 %v11881_v10, %s13318_s29  ;;  %v12007_v28 = vor.u32 %v9804_v2, %v8174_v37  ;;  %v8216_v2 = vld [vmem:[%s13323_s11 + $0x90] sm:$0xf]  ;;  %v9813_v37 = vld [vmem:[%s13323_s11 + $0x94] sm:$0xf0] }
 0x60a   : > { %v11892_v6 = vpop.permute.xlu1 %3334  ;;  %3342 = vrot.lane.b32.xlu1 %v11828_v27, %s13317_s30 }
 0x60b   : > { %8178 = vmatmul.msk.bf16.vlgmr.msrb.gmra.mxu1 %vm2998_vm5, %v11884_v47  ;;  %3409 = vmatpush.bf16.msrb.mxu2 %v11892_v6 }
 0x60c   : > { %3476 = vmatpush.bf16.msra.mxu0 %v11769_v63  ;;  %3508 = vmatpush.bf16.msra.mxu1 %v11782_v7  ;;  %v11942_v63 = vor.u32 %v9800_v29, %v8158_v44  ;;  %v1023_v7 = vld [vmem:[%s13324_s12 + $0x20] sm:$0xff] }
 0x60e   : > { %v3020_v55 = vpop.f32.mrf.mxu2 }
 0x60f   : > { %3410 = vmatpush.bf16.msrb.mxu2 %v11813_v0 }
 0x610   : > { %3477 = vmatpush.bf16.msra.mxu0 %v11794_v20  ;;  %3509 = vmatpush.bf16.msra.mxu1 %v3166_v46  ;;  %v9805_v20 = vld [vmem:[%s13323_s11 + $0x74] sm:$0xf0] }
 0x611   : > { %3639 = vrot.lane.b32.xlu0 %v11906_v50, %s13318_s29  ;;  %3655 = vrot.lane.b32.xlu2 %v11908_v22, %s13317_s30 }
 0x612   : > { %3643 = vrot.lane.b32.xlu1 %v11908_v22, %s13318_s29  ;;  %8121 = vmatmul.msk.bf16.gmra.mxu3 %vm2998_vm5, %v11910_v45 }
 0x614   : > { %3478 = vmatpush.bf16.msra.mxu0 %v11771_v1  ;;  %3510 = vmatpush.bf16.msra.mxu1 %v11798_v56  ;;  %v8164_v1 = vld [vmem:[%s13323_s11 + $0x60] sm:$0xf]  ;;  %v11998_v56 = vor.u32 %v9805_v20, %v8172_v58 }
 0x616   : > { %v12020_v62 = vpop.f32.mrf.mxu2 }
 0x617   : > { %3243 = vmatmul.bf16.gmra.mxu0 %v11927_v33 }
 0x618   : > { %3479 = vmatpush.bf16.msra.mxu0 %v11697_v35  ;;  %3511 = vmatpush.bf16.msra.mxu1 %v3162_v57  ;;  %v1020_v35 = vld [vmem:[%s13324_s12 + $0x8] sm:$0xff] }
 0x619   : > { %3653 = vrot.lane.b32.xlu0 %v11881_v10, %s13317_s30  ;;  %3071 = vperm.xlu2 %10353, %v1019_v61   ;;  %v8210_v57 = vld [vmem:[%s13323_s11 + $0x88] sm:$0xf0] }
 0x61a   : > { %3657 = vrot.lane.b32.xlu1 %v11879_v31, %s13317_s30 }
 0x61b   : > { %8179 = vmatmul.msk.bf16.gmra.mxu1 %vm2998_vm5, %v11942_v63 }
 0x61c   : > { %3480 = vmatpush.bf16.msra.mxu0 %v11691_v30  ;;  %v1022_v30 = vld [vmem:[%s13324_s12 + $0x18] sm:$0xff] }
 0x620   : > { %3481 = vmatpush.bf16.msra.mxu0 %v11706_v13  ;;  %v11967_v13 = vor.u32 %v9803_v3, %v8164_v1 }
 0x621   : > { %3076 = vperm.xlu0 %10354, %v1020_v35   ;;  %3086 = vperm.xlu2 %10353, %v1022_v30  }
 0x622   : > { %3651 = vrot.lane.b32.xlu1 %v11906_v50, %s13317_s30 }
 0x624   : > { %3482 = vmatpush.bf16.msra.mxu0 %v11718_v48  ;;  %v11979_v48 = vor.u32 %v9802_v5, %v8166_v8 }
 0x627   : > { %3248 = vmatmul.bf16.gmra.mxu0 %v11967_v13 }
 0x629   : > { %3091 = vperm.xlu0 %10354, %v1023_v7  }
 0x62a   : > { %3081 = vperm.xlu1 %10355, %v1021_v42  }
 0x62b   : > { %8180 = vmatmul.msk.bf16.gmra.mxu1 %vm2998_vm5, %v11979_v48 }
 0x631   : > { %3101 = vperm.xlu0 %10354, %v1025_v41  }
 0x632   : > { %3096 = vperm.xlu1 %10355, %v1024_v54   ;;  %v9812_v54 = vld [vmem:[%s13323_s11 + $0x94] sm:$0xf] }
 0x637   : > { %3253 = vmatmul.bf16.gmra.mxu0 %v11998_v56 }
 0x63a   : > { %3106 = vperm.xlu1 %10355, %v1026_v53  }
 0x63b   : > { %8181 = vmatmul.msk.bf16.gmra.mxu1 %vm2998_vm5, %v12007_v28 }
 0x647   : > { %3483 = vmatmul.bf16.vlgmr.msra.gmra.mxu0 %v11766_v12 }
 0x64b   : > { %8242 = vmatmul.msk.bf16.vlgmr.msra.gmra.mxu1 %vm2998_vm5, %v11791_v14  ;;  %v3025_v14 = vpop.f32.mrf.mxu2 }
 0x657   : > { %3488 = vmatmul.bf16.gmra.mxu0 %v11779_v11 }
 0x65b   : > { %8243 = vmatmul.msk.bf16.gmra.mxu1 %vm2998_vm5, %v11815_v49  ;;  %v3341_v9 = vpop.permute.xlu2 %3340 }
 0x663   : > { %v3642_v11 = vpop.permute.xlu2 %3641 }
 0x665   : > { %v3049_v39 = vpop.f32.mrf.mxu3 }
 0x666   : > { %v3050_v51 = vadd.f32 %v3049_v39, %v3020_v55  ;;  %v8217_v39 = vor.u32 %v9813_v37, %v8216_v2 }
 0x667   : > { %3493 = vmatmul.bf16.gmra.mxu0 %v11817_v34  ;;  %v12030_v34 = vpop.f32.mrf.mxu2 }
 0x66b   : > { %8244 = vmatmul.msk.bf16.gmra.mxu1 %vm2998_vm5, %v11847_v21  ;;  %v3331_v12 = vpop.permute.xlu0 %3330  ;;  %v3656_v21 = vpop.permute.xlu2 %3655 }
 0x66c   : > { %3411 = vmatpush.bf16.msrb.mxu2 %v3331_v12 }
 0x66d   : > { %v12025_v23 = vpop.f32.mrf.mxu3 }
 0x66f   : > { %v3030_v18 = vpop.f32.mrf.mxu2 }
 0x673   : > { %v3345_v24 = vpop.permute.xlu0 %3344  ;;  %v12056_v35 = vpop.permute.xlu2 %3071 }
 0x674   : > { %v3329_v46 = vpop.permute.xlu1 %3328  ;;  %3443 = vmatpush.bf16.msrb.mxu3 %v3345_v24 }
 0x675   : > { %3412 = vmatpush.bf16.msrb.mxu2 %v3329_v46  ;;  %v3054_v49 = vpop.f32.mrf.mxu3 }
 0x676   : > { %v12027_v40 = vadd.f32 %v3054_v49, %v3025_v14 }
 0x677   : > { %3498 = vmatmul.bf16.gmra.mxu0 %v11851_v60  ;;  %v9810_v60 = vld [vmem:[%s13323_s11 + $0x84] sm:$0xf]  ;;  %v12064_v8 = vpop.f32.mrf.mxu2 }
 0x678   : > { %v8213_v19 = vor.u32 %v9810_v60, %v8210_v57 }
 0x679   : > { %3413 = vmatpush.bf16.msrb.mxu2 %v11754_v16 }
 0x67b   : > { %8245 = vmatmul.msk.bf16.gmra.mxu1 %vm2998_vm5, %v11910_v45  ;;  %v3646_v32 = vpop.permute.xlu0 %3645  ;;  %v8208_v45 = vld [vmem:[%s13323_s11 + $0x80] sm:$0xf] }
 0x67c   : > { %v3343_v52 = vpop.permute.xlu1 %3342  ;;  %3663 = vmatpush.bf16.msrb.mxu0 %v3646_v32  ;;  %v12052_v29 = vor.u32 %v9811_v38, %v8208_v45 }
 0x67d   : > { %3414 = vmatpush.bf16.msrb.mxu2 %v11750_v59  ;;  %v12036_v43 = vpop.f32.mrf.mxu3  ;;  %3444 = vmatpush.bf16.msrb.mxu3 %v3343_v52 }
 0x681   : > { %3415 = vmatpush.bf16.msrb.mxu2 %v11828_v27  ;;  %3445 = vmatpush.bf16.msrb.mxu3 %v3341_v9 }
 0x683   : > { %v3640_v1 = vpop.permute.xlu0 %3639 }
 0x684   : > { %v3239_v25 = vpop.f32.mrf.mxu0  ;;  %8238 = vmatmul.msk.bf16.vlgmr.msrb.gmra.mxu3 %vm2998_vm5, %v8213_v19  ;;  %v3644_v44 = vpop.permute.xlu1 %3643 }
 0x685   : > { %3574 = vmatpush.bf16.msra.mxu3 %v11825_v17  ;;  %3416 = vmatpush.bf16.msrb.mxu2 %v11849_v36  ;;  %v3059_v61 = vpop.f32.mrf.mxu3  ;;  %v3109_v17 = vadd.f32 %v12056_v35, %v3050_v51  ;;  %v3035_v51 = vpop.f32.mrf.mxu2 }
 0x686   : > { %v12059_v30 = vadd.f32 %v3059_v61, %v3030_v18  ;;  %3664 = vmatpush.bf16.msrb.mxu0 %v3644_v44  ;;  %v8232_v61 = vld [vmem:[%s13323_s11 + $0xb0] sm:$0xf] }
 0x688   : > { %v3268_v3 = vpop.f32.mrf.mxu1  ;;  %3417 = vmatmul.bf16.vlgmr.msrb.gmra.mxu2 %v12052_v29 }
 0x689   : > { %3541 = vmatpush.bf16.msra.mxu2 %v11892_v6  ;;  %3575 = vmatpush.bf16.msra.mxu3 %v3345_v24  ;;  %v3269_v5 = vadd.f32 %v3268_v3, %v3239_v25  ;;  %v8234_v25 = vld [vmem:[%s13323_s11 + $0xb8] sm:$0xf0] }
 0x68a   : > { %3665 = vmatpush.bf16.msrb.mxu0 %v3642_v11 }
 0x68b   : > { %v12066_v7 = vadd.f32 %v3269_v5, %v3109_v17  ;;  %v3654_v53 = vpop.permute.xlu0 %3653 }
 0x68c   : > { %v12068_v6 = vpop.f32.mrf.mxu0  ;;  %v3658_v42 = vpop.permute.xlu1 %3657 }
 0x68d   : > { %3542 = vmatpush.bf16.msra.mxu2 %v11813_v0  ;;  %3576 = vmatpush.bf16.msra.mxu3 %v3343_v52  ;;  %v12070_v41 = vpop.f32.mrf.mxu3  ;;  %v8218_v0 = vld [vmem:[%s13323_s11 + $0x98] sm:$0xf0] }
 0x68e   : > { %3696 = vmatpush.bf16.msrb.mxu1 %v3658_v42  ;;  %3666 = vmatpush.bf16.msrb.mxu0 %v3640_v1  ;;  %v8221_v20 = vor.u32 %v9812_v54, %v8218_v0 }
 0x690   : > { %v12078_v58 = vpop.f32.mrf.mxu1 }
 0x691   : > { %3543 = vmatpush.bf16.msra.mxu2 %v3331_v12  ;;  %3577 = vmatpush.bf16.msra.mxu3 %v3341_v9 }
 0x692   : > { %3697 = vmatpush.bf16.msrb.mxu1 %v3656_v21  ;;  %3667 = vmatpush.bf16.msrb.mxu0 %v11879_v31 }
 0x693   : > { %v12092_v31 = vpop.permute.xlu0 %3076 }
 0x694   : > { %v3244_v55 = vpop.f32.mrf.mxu0  ;;  %8239 = vmatmul.msk.bf16.gmra.mxu3 %vm2998_vm5, %v8221_v20  ;;  %v3652_v9 = vpop.permute.xlu1 %3651 }
 0x695   : > { %3544 = vmatpush.bf16.msra.mxu2 %v3329_v46  ;;  %v3064_v12 = vpop.f32.mrf.mxu3 }
 0x696   : > { %3698 = vmatpush.bf16.msrb.mxu1 %v3654_v53  ;;  %v3065_v14 = vadd.f32 %v3064_v12, %v3035_v51  ;;  %3668 = vmatpush.bf16.msrb.mxu0 %v11908_v22 }
 0x698   : > { %v3273_v11 = vpop.f32.mrf.mxu1  ;;  %3422 = vmatmul.bf16.gmra.mxu2 %v8217_v39 }
 0x699   : > { %3545 = vmatpush.bf16.msra.mxu2 %v11754_v16  ;;  %v3274_v24 = vadd.f32 %v3273_v11, %v3244_v55 }
 0x69a   : > { %3699 = vmatpush.bf16.msrb.mxu1 %v3652_v9  ;;  %3669 = vmatpush.bf16.msrb.mxu0 %v11881_v10  ;;  %v8226_v10 = vld [vmem:[%s13323_s11 + $0xa8] sm:$0xf0] }
 0x69c   : > { %v12094_v46 = vpop.f32.mrf.mxu0  ;;  %v12096_v49 = vpop.permute.xlu1 %3081 }
 0x69d   : > { %3546 = vmatpush.bf16.msra.mxu2 %v11750_v59  ;;  %8266 = vmatmul.msk.bf16.vlgmr.msrb.gmra.mxu1 %vm2998_vm5, %v8213_v19  ;;  %v3111_v16 = vadd.f32 %v12096_v49, %v12027_v40  ;;  %v9814_v59 = vld [vmem:[%s13323_s11 + $0xa4] sm:$0xf]  ;;  %v8224_v40 = vld [vmem:[%s13323_s11 + $0xa0] sm:$0xf] }
 0x69e   : > { %3670 = vmatpush.bf16.msrb.mxu0 %v11906_v50  ;;  %v8229_v32 = vor.u32 %v9814_v59, %v8226_v10  ;;  %v12122_v50 = vpop.permute.xlu0 %3091 }
 0x69f   : > { %v12109_v22 = vadd.f32 %v3274_v24, %v3111_v16  ;;  %v3113_v18 = vadd.f32 %v12122_v50, %v12059_v30  ;;  %v9817_v30 = vld [vmem:[%s13323_s11 + $0xb4] sm:$0xf0] }
 0x6a0   : > { %v12111_v21 = vpop.f32.mrf.mxu1  ;;  %v8233_v3 = vor.u32 %v9817_v30, %v8232_v61 }
 0x6a1   : > { %3547 = vmatpush.bf16.msra.mxu2 %v11828_v27  ;;  %v9815_v27 = vld [vmem:[%s13323_s11 + $0xa4] sm:$0xf0]  ;;  %3671 = vmatmul.bf16.vlgmr.msrb.gmra.mxu0 %v12052_v29 }
 0x6a2   : > { %v8225_v60 = vor.u32 %v9815_v27, %v8224_v40  ;;  %v12183_v40 = vpop.f32.mrf.mxu3 }
 0x6a4   : > { %v3249_v52 = vpop.f32.mrf.mxu0  ;;  %8240 = vmatmul.msk.bf16.gmra.mxu3 %vm2998_vm5, %v8229_v32 }
 0x6a5   : > { %3548 = vmatpush.bf16.msra.mxu2 %v11849_v36  ;;  %v9816_v36 = vld [vmem:[%s13323_s11 + $0xb4] sm:$0xf] }
 0x6a6   : > { %v8237_v44 = vor.u32 %v9816_v36, %v8234_v25  ;;  %v12146_v17 = vpop.permute.xlu0 %3101 }
 0x6a7   : > { %v3115_v42 = vadd.f32 %v12146_v17, %v3065_v14 }
 0x6a8   : > { %v3278_v57 = vpop.f32.mrf.mxu1  ;;  %3427 = vmatmul.bf16.gmra.mxu2 %v8225_v60 }
 0x6a9   : > { %v3279_v19 = vadd.f32 %v3278_v57, %v3249_v52 }
 0x6ab   : > { %v12126_v45 = vadd.f32 %v3279_v19, %v3113_v18 }
 0x6ac   : > { %v12128_v38 = vpop.f32.mrf.mxu0 }
 0x6ad   : > { %8267 = vmatmul.msk.bf16.gmra.mxu1 %vm2998_vm5, %v8221_v20 }
 0x6b0   : > { %v12137_v29 = vpop.f32.mrf.mxu1 }
 0x6b1   : > { %3676 = vmatmul.bf16.gmra.mxu0 %v8217_v39 }
 0x6b4   : > { %v3254_v1 = vpop.f32.mrf.mxu0  ;;  %8241 = vmatmul.msk.bf16.gmra.mxu3 %vm2998_vm5, %v8237_v44 }
 0x6b8   : > { %v3283_v5 = vpop.f32.mrf.mxu1  ;;  %3432 = vmatmul.bf16.gmra.mxu2 %v8233_v3 }
 0x6b9   : > { %v3284_v54 = vadd.f32 %v3283_v5, %v3254_v1 }
 0x6bb   : > { %v3294_v0 = vadd.f32 %v3284_v54, %v3115_v42 }
 0x6bc   : > { %v12149_v20 = vpop.f32.mrf.mxu0 }
 0x6bd   : > { %8268 = vmatmul.msk.bf16.gmra.mxu1 %vm2998_vm5, %v8229_v32 }
 0x6c0   : > { %v12152_v2 = vpop.f32.mrf.mxu1 }
 0x6c1   : > { %3681 = vmatmul.bf16.gmra.mxu0 %v8225_v60 }
 0x6c4   : > { %v3484_v37 = vpop.f32.mrf.mxu0  ;;  %8246 = vmatmul.msk.bf16.vlgmr.msra.gmra.mxu3 %vm2998_vm5, %v11884_v47 }
 0x6c8   : > { %v3513_v53 = vpop.f32.mrf.mxu1  ;;  %3549 = vmatmul.bf16.vlgmr.msra.gmra.mxu2 %v11868_v15 }
 0x6c9   : > { %v3514_v55 = vadd.f32 %v3513_v53, %v3484_v37 }
 0x6cc   : > { %v12157_v39 = vpop.f32.mrf.mxu0 }
 0x6cd   : > { %8269 = vmatmul.msk.bf16.gmra.mxu1 %vm2998_vm5, %v8237_v44 }
 0x6d0   : > { %v3515_v51 = vpop.f32.mrf.mxu1 }
 0x6d1   : > { %3686 = vmatmul.bf16.gmra.mxu0 %v8233_v3 }
 0x6d4   : > { %v3489_v9 = vpop.f32.mrf.mxu0  ;;  %8247 = vmatmul.msk.bf16.gmra.mxu3 %vm2998_vm5, %v11942_v63 }
 0x6d8   : > { %v3518_v12 = vpop.f32.mrf.mxu1  ;;  %3554 = vmatmul.bf16.gmra.mxu2 %v11927_v33 }
 0x6d9   : > { %v12163_v14 = vadd.f32 %v3518_v12, %v3489_v9 }
 0x6dc   : > { %v12165_v47 = vpop.f32.mrf.mxu0 }
 0x6e0   : > { %v12167_v11 = vpop.f32.mrf.mxu1 }
 0x6e4   : > { %v3494_v15 = vpop.f32.mrf.mxu0  ;;  %8248 = vmatmul.msk.bf16.gmra.mxu3 %vm2998_vm5, %v11979_v48  ;;  %v12185_v48 = vpop.f32.mrf.mxu2 }
 0x6e8   : > { %v3523_v24 = vpop.f32.mrf.mxu1  ;;  %3559 = vmatmul.bf16.gmra.mxu2 %v11967_v13 }
 0x6e9   : > { %v12172_v16 = vadd.f32 %v3523_v24, %v3494_v15 }
 0x6ec   : > { %v12174_v59 = vpop.f32.mrf.mxu0 }
 0x6f0   : > { %v12176_v63 = vpop.f32.mrf.mxu1 }
 0x6f4   : > { %8249 = vmatmul.msk.bf16.gmra.mxu3 %vm2998_vm5, %v12007_v28  ;;  %v3499_v33 = vpop.f32.mrf.mxu0 }
 0x6f8   : > { %v3528_v10 = vpop.f32.mrf.mxu1  ;;  %3564 = vmatmul.bf16.gmra.mxu2 %v11998_v56 }
 0x6f9   : > { %v12181_v32 = vadd.f32 %v3528_v10, %v3499_v33 }
 0x700   : > { %v12202_v54 = vpop.f32.mrf.mxu1 }
 0x707   : > { %v3447_v13 = vpop.f32.mrf.mxu3 }
 0x70b   : > { %v3418_v27 = vpop.f32.mrf.mxu2 }
 0x70c   : > { %v3448_v52 = vadd.f32 %v3447_v13, %v3418_v27 }
 0x70e   : > { %v3467_v60 = vadd.f32 %v3448_v52, %v12066_v7  ;;  %v12198_v7 = vpop.f32.mrf.mxu0  ;;  %v3533_v52 = vadd.f32 %v3514_v55, %v12056_v35 }
 0x70f   : > { %v3449_v57 = vpop.f32.mrf.mxu3 }
 0x713   : > { %v3420_v18 = vpop.f32.mrf.mxu2 }
 0x717   : > { %v3452_v19 = vpop.f32.mrf.mxu3 }
 0x71a   : > { %v3701_v12 = vpop.f32.mrf.mxu1 }
 0x71b   : > { %v3423_v36 = vpop.f32.mrf.mxu2 }
 0x71c   : > { %v3453_v28 = vadd.f32 %v3452_v19, %v3423_v36 }
 0x71e   : > { %v3469_v25 = vadd.f32 %v3453_v28, %v12109_v22  ;;  %v3672_v53 = vpop.f32.mrf.mxu0  ;;  %v3052_v28 = vadd.f32 %v12025_v23, %v12020_v62 }
 0x71f   : > { %v12189_v44 = vpop.f32.mrf.mxu3  ;;  %v3702_v19 = vadd.f32 %v3701_v12, %v3672_v53  ;;  %v3450_v53 = vadd.f32 %v3449_v57, %v3420_v18  ;;  %v3521_v18 = vadd.f32 %v12167_v11, %v12165_v47 }
 0x720   : > { %v3110_v26 = vadd.f32 %v12092_v31, %v3052_v28 }
 0x722   : > { %v3703_v10 = vpop.f32.mrf.mxu1 }
 0x723   : > { %v12191_v56 = vpop.f32.mrf.mxu2 }
 0x727   : > { %v3457_v61 = vpop.f32.mrf.mxu3 }
 0x72b   : > { %v3428_v30 = vpop.f32.mrf.mxu2 }
 0x72c   : > { %v3458_v1 = vadd.f32 %v3457_v61, %v3428_v30 }
 0x72e   : > { %v12194_v3 = vadd.f32 %v3458_v1, %v12126_v45  ;;  %v3674_v45 = vpop.f32.mrf.mxu0 }
 0x72f   : > { %v12196_v5 = vpop.f32.mrf.mxu3  ;;  %v3704_v23 = vadd.f32 %v3703_v10, %v3674_v45 }
 0x733   : > { %v12200_v42 = vpop.f32.mrf.mxu2 }
 0x736   : > { %v3677_v30 = vpop.f32.mrf.mxu0 }
 0x737   : > { %v3462_v37 = vpop.f32.mrf.mxu3 }
 0x73b   : > { %v3433_v22 = vpop.f32.mrf.mxu2 }
 0x73c   : > { %v3463_v9 = vadd.f32 %v3462_v37, %v3433_v22  ;;  %v3706_v22 = vpop.f32.mrf.mxu1 }
 0x73e   : > { %v12204_v15 = vadd.f32 %v3463_v9, %v3294_v0  ;;  %v3516_v0 = vadd.f32 %v3515_v51, %v12157_v39  ;;  %v3271_v9 = vadd.f32 %v12078_v58, %v12068_v6  ;;  %v3535_v58 = vadd.f32 %v12163_v14, %v12096_v49  ;;  %v3087_v14 = vpop.permute.xlu2 %3086 }
 0x73f   : > { %v12206_v24 = vpop.f32.mrf.mxu3 }
 0x740   : > { %v3534_v55 = vadd.f32 %v3516_v0, %v12092_v31  ;;  %v3289_v62 = vadd.f32 %v3271_v9, %v3110_v26  ;;  %v3057_v26 = vadd.f32 %v12036_v43, %v12030_v34 }
 0x742   : > { %v3112_v0 = vadd.f32 %v3087_v14, %v3057_v26 }
 0x743   : > { %v12208_v33 = vpop.f32.mrf.mxu2 }
 0x747   : > { %v3579_v13 = vpop.f32.mrf.mxu3 }
 0x74b   : > { %v3550_v27 = vpop.f32.mrf.mxu2 }
 0x74c   : > { %v3580_v36 = vadd.f32 %v3579_v13, %v3550_v27  ;;  %v3468_v27 = vadd.f32 %v3450_v53, %v3289_v62 }
 0x74e   : > { %v3599_v61 = vadd.f32 %v3580_v36, %v3533_v52  ;;  %v3708_v36 = vpop.f32.mrf.mxu1 }
 0x74f   : > { %v3581_v37 = vpop.f32.mrf.mxu3 }
 0x750   : > { %v3721_v1 = vadd.f32 %v3702_v19, %v3599_v61  ;;  %v3679_v19 = vpop.f32.mrf.mxu0  ;;  %v3276_v61 = vadd.f32 %v12111_v21, %v12094_v46  ;;  %v3537_v21 = vadd.f32 %v12172_v16, %v12122_v50  ;;  %v3281_v50 = vadd.f32 %v12137_v29, %v12128_v38 }
 0x752   : > { %v12217_v4 = vmax.f32 %v3467_v60, %v3721_v1  ;;  %v3707_v60 = vadd.f32 %v3706_v22, %v3677_v30  ;;  %v3536_v1 = vadd.f32 %v3521_v18, %v3087_v14  ;;  %v3291_v43 = vadd.f32 %v3276_v61, %v3112_v0 }
 0x753   : > { %v3552_v35 = vpop.f32.mrf.mxu2  ;;  %v3067_v0 = vadd.f32 %v12183_v40, %v12185_v48  ;;  %v3286_v40 = vadd.f32 %v12152_v2, %v12149_v20  ;;  %v3465_v20 = vadd.f32 %v12206_v24, %v12208_v33  ;;  %v1030_v24 = vld [vmem:[%s13228_s13 + $0x18] sm:$0xff]  ;;  %v1031_v33 = vld [vmem:[%s13228_s13 + $0x20] sm:$0xff] }
 0x754   : > { %v3582_v12 = vadd.f32 %v3581_v37, %v3552_v35  ;;  %v3455_v37 = vadd.f32 %v12189_v44, %v12191_v56  ;;  %v3709_v35 = vadd.f32 %v3708_v36, %v3679_v19  ;;  %v3097_v36 = vpop.permute.xlu1 %3096 }
 0x756   : > { %v3600_v13 = vadd.f32 %v3582_v12, %v3534_v55  ;;  %v3711_v34 = vpop.f32.mrf.mxu1  ;;  %v3470_v11 = vadd.f32 %v3455_v37, %v3291_v43 }
 0x757   : > { %v3584_v51 = vpop.f32.mrf.mxu3 }
 0x758   : > { %v3722_v39 = vadd.f32 %v3704_v23, %v3600_v13  ;;  %v3682_v9 = vpop.f32.mrf.mxu0 }
 0x75a   : > { %v12220_v52 = vmax.f32 %v3468_v27, %v3722_v39  ;;  %v3062_v27 = vadd.f32 %v12070_v41, %v12064_v8  ;;  %v3526_v39 = vadd.f32 %v12176_v63, %v12174_v59  ;;  %v3460_v8 = vadd.f32 %v12196_v5, %v12200_v42 }
 0x75b   : > { %v3555_v6 = vpop.f32.mrf.mxu2  ;;  %v3539_v5 = vadd.f32 %v12181_v32, %v12146_v17  ;;  %v9743_v17 = vld [vmem:[%s13325_s27 + $0x38] sm:$0x30]  ;;  %v13326_v32 = vmov 65535  }
 0x75c   : > { %v3585_v28 = vadd.f32 %v3584_v51, %v3555_v6  ;;  %v10356_v31 = vpack.i.bf16 %v12220_v52, %v12217_v4  ;;  %v3842_v37 = vsel %vm1191_vm6, 4294967295, %v13326_v32  ;;  %vm3828_vm6 = vcmask 1006592  }
 0x75d   : > { %v3843_v43 = vsel %vm3841_vm7, %v3842_v37, 0 }
 0x75e   : > { %v3601_v57 = vadd.f32 %v3585_v28, %v3535_v58  ;;  %10357 = vrot.lane.b32.xlu2 %v10356_v31, %s13318_s29  ;;  %v3713_v13 = vpop.f32.mrf.mxu1  ;;  %v1033_v58 = vld [vmem:[%s13228_s13 + $0x30] sm:$0xff]  ;;  %v3538_v28 = vadd.f32 %v3526_v39, %v3097_v36 }
 0x75f   : > { %v3586_v10 = vpop.f32.mrf.mxu3 }
 0x760   : > { %v3723_v45 = vadd.f32 %v3707_v60, %v3601_v57  ;;  %v3684_v23 = vpop.f32.mrf.mxu0  ;;  %v3114_v60 = vadd.f32 %v3097_v36, %v3062_v27  ;;  %v9741_v27 = vld [vmem:[%s13325_s27 + $0x28] sm:$0xff]  ;;  %v9739_v36 = vld [vmem:[%s13325_s27 + $0x18] sm:$0xff] }
 0x761   : > { %v3714_v63 = vadd.f32 %v3713_v13, %v3684_v23 }
 0x762   : > { %v12233_v49 = vmax.f32 %v3469_v25, %v3723_v45  ;;  %v3712_v25 = vadd.f32 %v3711_v34, %v3682_v9  ;;  %v3293_v59 = vadd.f32 %v3281_v50, %v3114_v60  ;;  %v1027_v50 = vld [vmem:[%s13228_s13] sm:$0xff]  ;;  %v9738_v60 = vld [vmem:[%s13325_s27 + $0x10] sm:$0xff] }
 0x763   : > { %v3557_v30 = vpop.f32.mrf.mxu2 }
 0x764   : > { %v3587_v22 = vadd.f32 %v3586_v10, %v3557_v30  ;;  %v3472_v57 = vadd.f32 %v3460_v8, %v3293_v59  ;;  %v1042_v10 = vld [vmem:[%s13229_s14 + $0x38] sm:$0xff]  ;;  %v1036_v8 = vld [vmem:[%s13229_s14 + $0x8] sm:$0xff] }
 0x765   : > { %v1032_v59 = vld [vmem:[%s13228_s13 + $0x28] sm:$0xff] }
 0x766   : > { %v3602_v47 = vadd.f32 %v3587_v22, %v3536_v1  ;;  %v8300_v1 = vld [vmem:[%s13325_s27 + $0x38] sm:$0xf]  ;;  %v3531_v22 = vadd.f32 %v12202_v54, %v12198_v7 }
 0x767   : > { %v3589_v53 = vpop.f32.mrf.mxu3  ;;  %v8301_v34 = vor.u32 %v9743_v17, %v8300_v1  ;;  %v1034_v7 = vld [vmem:[%s13228_s13 + $0x38] sm:$0xff] }
 0x768   : > { %v3724_v55 = vadd.f32 %v3709_v35, %v3602_v47  ;;  %v3687_v29 = vpop.f32.mrf.mxu0  ;;  %v3107_v35 = vpop.permute.xlu1 %3106 }
 0x769   : > { %v3116_v54 = vadd.f32 %v3107_v35, %v3067_v0 }
 0x76a   : > { %v12237_v12 = vmax.f32 %v3470_v11, %v3724_v55  ;;  %v3845_v55 = vand.u32 %v8301_v34, %v3843_v43 }
 0x76b   : > { %v3560_v46 = vpop.f32.mrf.mxu2 }
 0x76c   : > { %v3590_v62 = vadd.f32 %v3589_v53, %v3560_v46  ;;  %v10361_v44 = vpack.i.bf16 %v12237_v12, %v12233_v49  ;;  %3847 = vmatpush.bf16.msrb.mxu2 %v3845_v55 }
 0x76e   : > { %v3603_v56 = vadd.f32 %v3590_v62, %v3537_v21  ;;  %10362 = vrot.lane.b32.xlu2 %v10361_v44, %s13318_s29  ;;  %v1039_v21 = vld [vmem:[%s13229_s14 + $0x20] sm:$0xff]  ;;  %v3295_v62 = vadd.f32 %v3286_v40, %v3116_v54 }
 0x76f   : > { %v3591_v19 = vpop.f32.mrf.mxu3 }
 0x770   : > { %v3725_v51 = vadd.f32 %v3712_v25, %v3603_v56  ;;  %v3689_v47 = vpop.f32.mrf.mxu0  ;;  %v3540_v25 = vadd.f32 %v3531_v22, %v3107_v35  ;;  %v3474_v23 = vadd.f32 %v3465_v20, %v3295_v62 }
 0x772   : > { %v12251_v16 = vmax.f32 %v12194_v3, %v3725_v51  ;;  %v3716_v3 = vpop.f32.mrf.mxu1 }
 0x773   : > { %v3562_v6 = vpop.f32.mrf.mxu2  ;;  %v3717_v42 = vadd.f32 %v3716_v3, %v3687_v29  ;;  %v1035_v29 = vld [vmem:[%s13229_s14] sm:$0xff] }
 0x774   : > { %v3592_v41 = vadd.f32 %v3591_v19, %v3562_v6  ;;  %v9740_v19 = vld [vmem:[%s13325_s27 + $0x20] sm:$0xff]  ;;  %v1040_v6 = vld [vmem:[%s13229_s14 + $0x28] sm:$0xff] }
 0x776   : > { %v3604_v31 = vadd.f32 %v3592_v41, %v3538_v28  ;;  %3916 = vperm.xlu2 %10353, %v1033_v58   ;;  %v1041_v58 = vld [vmem:[%s13229_s14 + $0x30] sm:$0xff]  ;;  %v9737_v28 = vld [vmem:[%s13325_s27 + $0x8] sm:$0xff] }
 0x777   : > { %v3594_v26 = vpop.f32.mrf.mxu3  ;;  %v1037_v41 = vld [vmem:[%s13229_s14 + $0x10] sm:$0xff] }
 0x778   : > { %v3726_v38 = vadd.f32 %v3714_v63, %v3604_v31  ;;  %v9736_v63 = vld [vmem:[%s13325_s27] sm:$0xff]  ;;  %v1028_v31 = vld [vmem:[%s13228_s13 + $0x8] sm:$0xff] }
 0x77a   : > { %v12258_v18 = vmax.f32 %v3472_v57, %v3726_v38  ;;  %v3718_v11 = vpop.f32.mrf.mxu1  ;;  %v1029_v57 = vld [vmem:[%s13228_s13 + $0x10] sm:$0xff]  ;;  %v1038_v38 = vld [vmem:[%s13229_s14 + $0x18] sm:$0xff] }
 0x77b   : > { %v3565_v45 = vpop.f32.mrf.mxu2  ;;  %v3719_v44 = vadd.f32 %v3718_v11, %v3689_v47 }
 0x77c   : > { %v3595_v61 = vadd.f32 %v3594_v26, %v3565_v45  ;;  %v10366_v14 = vpack.i.bf16 %v12258_v18, %v12251_v16 }
 0x77e   : > { %v3605_v30 = vadd.f32 %v3595_v61, %v3539_v5  ;;  %3969 = vperm.xlu2 %10353, %v1042_v10   ;;  %10367 = vrot.lane.b32.xlu0 %v10366_v14, %s13318_s29 }
 0x77f   : > { %v3596_v53 = vpop.f32.mrf.mxu3 }
 0x780   : > { %v3727_v9 = vadd.f32 %v3717_v42, %v3605_v30 }
 0x782   : > { %v12283_v48 = vmax.f32 %v12204_v15, %v3727_v9  ;;  %v9742_v15 = vld [vmem:[%s13325_s27 + $0x30] sm:$0xff] }
 0x783   : > { %v3567_v46 = vpop.f32.mrf.mxu2  ;;  %3848 = vmatpush.bf16.msrb.mxu2 %v9742_v15 }
 0x784   : > { %v3597_v2 = vadd.f32 %v3596_v53, %v3567_v46 }
 0x786   : > { %v3606_v56 = vadd.f32 %v3597_v2, %v3540_v25  ;;  %3954 = vperm.xlu2 %10353, %v1039_v21   ;;  %3921 = vperm.xlu0 %10354, %v1034_v7  }
 0x787   : > { %3849 = vmatpush.bf16.msrb.mxu2 %v9741_v27 }
 0x788   : > { %v3728_v13 = vadd.f32 %v3719_v44, %v3606_v56 }
 0x78a   : > { %v12299_v39 = vmax.f32 %v3474_v23, %v3728_v13 }
 0x78b   : > { %3850 = vmatpush.bf16.msrb.mxu2 %v9740_v19 }
 0x78c   : > { %v10371_v51 = vpack.i.bf16 %v12299_v39, %v12283_v48 }
 0x78e   : > { %3901 = vperm.xlu2 %10353, %v1030_v24   ;;  %3906 = vperm.xlu0 %10354, %v1031_v33  }
 0x78f   : > { %10372 = vrot.lane.b32.xlu1 %v10371_v51, %s13318_s29  ;;  %3851 = vmatpush.bf16.msrb.mxu2 %v9739_v36 }
 0x793   : > { %3852 = vmatpush.bf16.msrb.mxu2 %v9738_v60 }
 0x796   : > { %3886 = vperm.xlu2 %10353, %v1027_v50   ;;  %3959 = vperm.xlu0 %10354, %v1040_v6   ;;  %v13327_v50 = vmov 0  }
 0x797   : > { %3964 = vperm.xlu1 %10355, %v1041_v58   ;;  %3853 = vmatpush.bf16.msrb.mxu2 %v9737_v28  ;;  %962 = vst.msk [vmem:[#allocation5 + $0x10] sm:$0xf] %vm957_vm8, %v13327_v50 }
 0x798   : > { %958 = vst.msk [vmem:[#allocation5] sm:$0xf] %vm957_vm8, %v13327_v50 }
 0x799   : > { %959 = vst.msk [vmem:[#allocation5 + $0x4] sm:$0xf] %vm957_vm8, %v13327_v50 }
 0x79a   : > { %960 = vst.msk [vmem:[#allocation5 + $0x8] sm:$0xf] %vm957_vm8, %v13327_v50 }
 0x79b   : > { %3854 = vmatpush.bf16.msrb.mxu2 %v9736_v63  ;;  %961 = vst.msk [vmem:[#allocation5 + $0xc] sm:$0xf] %vm957_vm8, %v13327_v50 }
 0x79c   : > { %963 = vst.msk [vmem:[#allocation5 + $0x14] sm:$0xf] %vm957_vm8, %v13327_v50 }
 0x79d   : > { %964 = vst.msk [vmem:[#allocation5 + $0x18] sm:$0xf] %vm957_vm8, %v13327_v50 }
 0x79e   : > { %3939 = vperm.xlu2 %10353, %v1036_v8   ;;  %3944 = vperm.xlu0 %10354, %v1037_v41   ;;  %965 = vst.msk [vmem:[#allocation5 + $0x1c] sm:$0xf] %vm957_vm8, %v13327_v50  ;;  %v1086_v50 = vld [vmem:[%s13233_s18 + $0x58] sm:$0xff] }
 0x79f   : > { %3911 = vperm.xlu1 %10355, %v1032_v59  }
 0x7a6   : > { %3891 = vperm.xlu0 %10354, %v1028_v31  }
 0x7a7   : > { %3896 = vperm.xlu1 %10355, %v1029_v57  }
 0x7af   : > { %3949 = vperm.xlu1 %10355, %v1038_v38  }
 0x7b7   : > { %3934 = vperm.xlu1 %10355, %v1035_v29  }
 0x7b8   : > { %v10358_v3 = vpop.permute.xlu2 %10357 }
 0x7b9   : > { %v10360_v26 = vunpack.i.h.bf16 %v10358_v3  ;;  %v10359_v45 = vunpack.i.l.bf16 %v10358_v3 }
 0x7bb   : > { %v3770_v10 = vmax.f32 %v12220_v52, %v10360_v26  ;;  %v3769_v5 = vmax.f32 %v12217_v4, %v10359_v45 }
 0x7bd   : > { %v3777_v42 = vpack.c.bf16 %v3770_v10, %v3769_v5 }
 0x7bf   : > { %8302 = vmatmul.msk.bf16.vlgmr.msrb.gmra.mxu2 %vm3828_vm6, %v3777_v42 }
 0x7c8   : > { %v10363_v61 = vpop.permute.xlu2 %10362 }
 0x7c9   : > { %v10365_v14 = vunpack.i.h.bf16 %v10363_v61  ;;  %v10364_v30 = vunpack.i.l.bf16 %v10363_v61 }
 0x7cb   : > { %v3772_v0 = vmax.f32 %v12237_v12, %v10365_v14  ;;  %v3771_v1 = vmax.f32 %v12233_v49, %v10364_v30 }
 0x7cd   : > { %v3778_v17 = vpack.c.bf16 %v3772_v0, %v3771_v1 }
 0x7cf   : > { %8303 = vmatmul.msk.bf16.gmra.mxu2 %vm3828_vm6, %v3778_v17 }
 0x7d0   : > { %v3917_v55 = vpop.permute.xlu2 %3916 }
 0x7f0   : > { %v10368_v32 = vpop.permute.xlu0 %10367 }
 0x7f1   : > { %v10370_v37 = vunpack.i.h.bf16 %v10368_v32  ;;  %v10369_v22 = vunpack.i.l.bf16 %v10368_v32 }
 0x7f3   : > { %v3774_v52 = vmax.f32 %v12258_v18, %v10370_v37  ;;  %v3773_v4 = vmax.f32 %v12251_v16, %v10369_v22  ;;  %v3970_v16 = vpop.permute.xlu2 %3969 }
 0x7f5   : > { %v3779_v9 = vpack.c.bf16 %v3774_v52, %v3773_v4 }
 0x7f7   : > { %8304 = vmatmul.msk.bf16.gmra.mxu2 %vm3828_vm6, %v3779_v9 }
 0x7f8   : > { %v3922_v21 = vpop.permute.xlu0 %3921 }
 0x7fb   : > { %v3955_v54 = vpop.permute.xlu2 %3954 }
 0x800   : > { %v3907_v15 = vpop.permute.xlu0 %3906 }
 0x801   : > { %v10373_v34 = vpop.permute.xlu1 %10372 }
 0x802   : > { %v10375_v43 = vunpack.i.h.bf16 %v10373_v34  ;;  %v10374_v35 = vunpack.i.l.bf16 %v10373_v34 }
 0x803   : > { %v3902_v56 = vpop.permute.xlu2 %3901 }
 0x804   : > { %v3776_v12 = vmax.f32 %v12299_v39, %v10375_v43  ;;  %v3775_v49 = vmax.f32 %v12283_v48, %v10374_v35 }
 0x806   : > { %v3780_v40 = vpack.c.bf16 %v3776_v12, %v3775_v49 }
 0x808   : > { %8305 = vmatmul.msk.bf16.gmra.mxu2 %vm3828_vm6, %v3780_v40  ;;  %v3960_v36 = vpop.permute.xlu0 %3959 }
 0x809   : > { %v3965_v18 = vpop.permute.xlu1 %3964 }
 0x80b   : > { %v3887_v26 = vpop.permute.xlu2 %3886 }
 0x810   : > { %v3945_v29 = vpop.permute.xlu0 %3944 }
 0x811   : > { %v3912_v46 = vpop.permute.xlu1 %3911 }
 0x813   : > { %v3940_v22 = vpop.permute.xlu2 %3939 }
 0x818   : > { %v3892_v1 = vpop.permute.xlu0 %3891 }
 0x819   : > { %v3897_v25 = vpop.permute.xlu1 %3896 }
 0x821   : > { %v3950_v39 = vpop.permute.xlu1 %3949 }
 0x829   : > { %v3935_v61 = vpop.permute.xlu1 %3934 }
 0x842   : > { %v3856_v47 = vpop.f32.mrf.mxu2 }
 0x843   : > { %v3876_v63 = vmax.f32 %v3856_v47, 0.0 }
 0x845   : > { %v3924_v45 = vmul.f32 %v3887_v26, %v3876_v63  ;;  %v1081_v63 = vld [vmem:[%s13233_s18 + $0x30] sm:$0xff] }
 0x847   : > { %v3972_v14 = vadd.f32 %v3935_v61, %v3924_v45  ;;  %v1079_v45 = vld [vmem:[%s13233_s18 + $0x20] sm:$0xff] }
 0x849   : > { %v3980_v17 = vpack.c.bf16 %v3972_v14, %v3972_v14 }
 0x84a   : > { %v12367_v11 = vpop.f32.mrf.mxu2 }
 0x84b   : > { %v3877_v30 = vmax.f32 %v12367_v11, 0.0 }
 0x84d   : > { %v3925_v32 = vmul.f32 %v3892_v1, %v3877_v30  ;;  %v1062_v30 = vld [vmem:[%s13232_s17 + $0x18] sm:$0xff]  ;;  %v1044_v1 = vld [vmem:[%s13231_s16 + $0x8] sm:$0xff] }
 0x84f   : > { %v3973_v52 = vadd.f32 %v3940_v22, %v3925_v32  ;;  %v1077_v32 = vld [vmem:[%s13233_s18 + $0x10] sm:$0xff] }
 0x851   : > { %v3981_v4 = vpack.c.bf16 %v3973_v52, %v3973_v52  ;;  %v1061_v52 = vld [vmem:[%s13232_s17 + $0x10] sm:$0xff] }
 0x852   : > { %v3861_v53 = vpop.f32.mrf.mxu2 }
 0x853   : > { %v3878_v31 = vmax.f32 %v3861_v53, 0.0 }
 0x855   : > { %v3926_v10 = vmul.f32 %v3897_v25, %v3878_v31  ;;  %v1089_v25 = vld [vmem:[%s13233_s18 + $0x70] sm:$0xff] }
 0x856   : > { %v1065_v31 = vld [vmem:[%s13232_s17 + $0x30] sm:$0xff] }
 0x857   : > { %v3974_v0 = vadd.f32 %v3945_v29, %v3926_v10  ;;  %v1046_v29 = vld [vmem:[%s13231_s16 + $0x18] sm:$0xff]  ;;  %v1063_v10 = vld [vmem:[%s13232_s17 + $0x20] sm:$0xff] }
 0x859   : > { %v3982_v37 = vpack.c.bf16 %v3974_v0, %v3974_v0  ;;  %v1080_v0 = vld [vmem:[%s13233_s18 + $0x28] sm:$0xff] }
 0x85a   : > { %v3863_v7 = vpop.f32.mrf.mxu2 }
 0x85b   : > { %v3879_v62 = vmax.f32 %v3863_v7, 0.0  ;;  %v1058_v7 = vld [vmem:[%s13231_s16 + $0x78] sm:$0xff] }
 0x85d   : > { %v3927_v23 = vmul.f32 %v3902_v56, %v3879_v62  ;;  %v1054_v62 = vld [vmem:[%s13231_s16 + $0x58] sm:$0xff]  ;;  %v1071_v56 = vld [vmem:[%s13232_s17 + $0x60] sm:$0xff] }
 0x85f   : > { %v3975_v24 = vadd.f32 %v3950_v39, %v3927_v23  ;;  %v1051_v23 = vld [vmem:[%s13231_s16 + $0x40] sm:$0xff]  ;;  %v1088_v39 = vld [vmem:[%s13233_s18 + $0x68] sm:$0xff] }
 0x861   : > { %v3983_v33 = vpack.c.bf16 %v3975_v24, %v3975_v24  ;;  %v1085_v24 = vld [vmem:[%s13233_s18 + $0x50] sm:$0xff] }
 0x87a   : > { %v3866_v20 = vpop.f32.mrf.mxu2 }
 0x87b   : > { %v3880_v2 = vmax.f32 %v3866_v20, 0.0  ;;  %v1073_v20 = vld [vmem:[%s13232_s17 + $0x70] sm:$0xff] }
 0x87d   : > { %v3928_v48 = vmul.f32 %v3907_v15, %v3880_v2  ;;  %v1053_v2 = vld [vmem:[%s13231_s16 + $0x50] sm:$0xff]  ;;  %v1072_v15 = vld [vmem:[%s13232_s17 + $0x68] sm:$0xff] }
 0x87f   : > { %v3976_v44 = vadd.f32 %v3955_v54, %v3928_v48  ;;  %v1056_v54 = vld [vmem:[%s13231_s16 + $0x68] sm:$0xff]  ;;  %v1090_v48 = vld [vmem:[%s13233_s18 + $0x78] sm:$0xff] }
 0x881   : > { %v3984_v13 = vpack.c.bf16 %v3976_v44, %v3976_v44  ;;  %v1087_v44 = vld [vmem:[%s13233_s18 + $0x60] sm:$0xff] }
 0x882   : > { %v3868_v27 = vpop.f32.mrf.mxu2 }
 0x883   : > { %4004 = vrot.lane.b32.xlu2 %v3984_v13, %s13316_s8  ;;  %v3881_v6 = vmax.f32 %v3868_v27, 0.0  ;;  %v1070_v13 = vld [vmem:[%s13232_s17 + $0x58] sm:$0xff]  ;;  %v1052_v27 = vld [vmem:[%s13231_s16 + $0x48] sm:$0xff] }
 0x885   : > { %v3929_v28 = vmul.f32 %v3912_v46, %v3881_v6  ;;  %v1057_v46 = vld [vmem:[%s13231_s16 + $0x70] sm:$0xff]  ;;  %v1083_v6 = vld [vmem:[%s13233_s18 + $0x40] sm:$0xff] }
 0x887   : > { %v3977_v57 = vadd.f32 %v3960_v36, %v3929_v28  ;;  %v1050_v36 = vld [vmem:[%s13231_s16 + $0x38] sm:$0xff] }
 0x889   : > { %v3985_v5 = vpack.c.bf16 %v3977_v57, %v3977_v57  ;;  %v1045_v57 = vld [vmem:[%s13231_s16 + $0x10] sm:$0xff] }
 0x88b   : > { %v3871_v51 = vpop.f32.mrf.mxu2  ;;  %4002 = vrot.lane.b32.xlu2 %v3983_v33, %s13316_s8  ;;  %v1069_v33 = vld [vmem:[%s13232_s17 + $0x50] sm:$0xff] }
 0x88c   : > { %v3882_v19 = vmax.f32 %v3871_v51, 0.0  ;;  %v1049_v51 = vld [vmem:[%s13231_s16 + $0x30] sm:$0xff] }
 0x88e   : > { %v3930_v58 = vmul.f32 %v3917_v55, %v3882_v19  ;;  %v1068_v19 = vld [vmem:[%s13232_s17 + $0x48] sm:$0xff] }
 0x890   : > { %v3978_v60 = vadd.f32 %v3965_v18, %v3930_v58  ;;  %v1067_v58 = vld [vmem:[%s13232_s17 + $0x40] sm:$0xff] }
 0x892   : > { %v3986_v8 = vpack.c.bf16 %v3978_v60, %v3978_v60  ;;  %v1047_v60 = vld [vmem:[%s13231_s16 + $0x20] sm:$0xff] }
 0x893   : > { %v3873_v41 = vpop.f32.mrf.mxu2 }
 0x894   : > { %v3883_v59 = vmax.f32 %v3873_v41, 0.0  ;;  %4008 = vrot.lane.b32.xlu0 %v3986_v8, %s13316_s8  ;;  %v1066_v8 = vld [vmem:[%s13232_s17 + $0x38] sm:$0xff]  ;;  %v1048_v41 = vld [vmem:[%s13231_s16 + $0x28] sm:$0xff] }
 0x896   : > { %v3931_v38 = vmul.f32 %v3922_v21, %v3883_v59  ;;  %v1074_v21 = vld [vmem:[%s13232_s17 + $0x78] sm:$0xff]  ;;  %v1084_v59 = vld [vmem:[%s13233_s18 + $0x48] sm:$0xff] }
 0x898   : > { %v3979_v3 = vadd.f32 %v3970_v16, %v3931_v38  ;;  %v1055_v16 = vld [vmem:[%s13231_s16 + $0x60] sm:$0xff]  ;;  %v1064_v38 = vld [vmem:[%s13232_s17 + $0x28] sm:$0xff] }
 0x89a   : > { %v3987_v42 = vpack.c.bf16 %v3979_v3, %v3979_v3  ;;  %v1082_v3 = vld [vmem:[%s13233_s18 + $0x38] sm:$0xff] }
 0x89c   : > { %4006 = vrot.lane.b32.xlu0 %v3985_v5, %s13316_s8  ;;  %4010 = vrot.lane.b32.xlu1 %v3987_v42, %s13316_s8  ;;  %v1043_v5 = vld [vmem:[%s13231_s16] sm:$0xff] }
 0x8a4   : > { %3996 = vrot.lane.b32.xlu0 %v3980_v17, %s13316_s8  ;;  %4000 = vrot.lane.b32.xlu1 %v3982_v37, %s13316_s8  ;;  %v1059_v37 = vld [vmem:[%s13232_s17] sm:$0xff] }
 0x8ac   : > { %3998 = vrot.lane.b32.xlu1 %v3981_v4, %s13316_s8  ;;  %v9826_v4 = vld [vmem:[%s13230_s15 + $0x4] sm:$0xf] }
 0x8dd   : > { %v4005_v9 = vpop.permute.xlu2 %4004 }
 0x8de   : > { %4025 = vst.msk [vmem:[#allocation5 + $0x10] sm:$0xf] %vm4020_vm9, %v4005_v9  ;;  %v8326_v9 = vld [vmem:[%s13230_s15 + $0x8] sm:$0xf0] }
 0x8e5   : > { %v4003_v34 = vpop.permute.xlu2 %4002 }
 0x8e6   : > { %4024 = vst.msk [vmem:[#allocation5 + $0xc] sm:$0xf] %vm4020_vm9, %v4003_v34 }
 0x906   : > { %v4009_v43 = vpop.permute.xlu0 %4008 }
 0x907   : > { %4027 = vst.msk [vmem:[#allocation5 + $0x18] sm:$0xf] %vm4020_vm9, %v4009_v43  ;;  %v8329_v43 = vor.u32 %v9826_v4, %v8326_v9 }
 0x90e   : > { %v4007_v35 = vpop.permute.xlu0 %4006  ;;  %v4011_v12 = vpop.permute.xlu1 %4010 }
 0x90f   : > { %4026 = vst.msk [vmem:[#allocation5 + $0x14] sm:$0xf] %vm4020_vm9, %v4007_v35  ;;  %v8324_v35 = vld [vmem:[%s13230_s15] sm:$0xf] }
 0x910   : > { %4028 = vst.msk [vmem:[#allocation5 + $0x1c] sm:$0xf] %vm4020_vm9, %v4011_v12  ;;  %v9827_v12 = vld [vmem:[%s13230_s15 + $0x4] sm:$0xf0] }
 0x916   : > { %v3997_v49 = vpop.permute.xlu0 %3996  ;;  %v4001_v40 = vpop.permute.xlu1 %4000  ;;  %v12399_v47 = vld [vmem:[#allocation5 + $0x10] sm:$0xff] }
 0x917   : > { %4021 = vst.msk [vmem:[#allocation5] sm:$0xf] %vm4020_vm9, %v3997_v49  ;;  %v12402_v11 = vld [vmem:[#allocation5 + $0x18] sm:$0xff]  ;;  %4065 = vrot.lane.b32.xlu0 %v12399_v47, %s13318_s29  ;;  %v1060_v49 = vld [vmem:[%s13232_s17 + $0x8] sm:$0xff] }
 0x918   : > { %4023 = vst.msk [vmem:[#allocation5 + $0x8] sm:$0xf] %vm4020_vm9, %v4001_v40  ;;  %4067 = vrot.lane.b32.xlu2 %v12402_v11, %s13318_s29  ;;  %v1076_v40 = vld [vmem:[%s13233_s18 + $0x8] sm:$0xff] }
 0x91e   : > { %v3999_v55 = vpop.permute.xlu1 %3998 }
 0x91f   : > { %4022 = vst.msk [vmem:[#allocation5 + $0x4] sm:$0xf] %vm4020_vm9, %v3999_v55  ;;  %v12410_v18 = vld [vmem:[#allocation5 + $0x8] sm:$0xff]  ;;  %4079 = vrot.lane.b32.xlu0 %v12402_v11, %s13317_s30  ;;  %v1091_v55 = vld [vmem:[%s13235_s20] sm:$0xff] }
 0x920   : > { %4063 = vrot.lane.b32.xlu1 %v12410_v18, %s13318_s29 }
 0x926   : > { %v12416_v53 = vld [vmem:[#allocation5] sm:$0xff] }
 0x927   : > { %4073 = vrot.lane.b32.xlu0 %v12416_v53, %s13317_s30  ;;  %4061 = vrot.lane.b32.xlu2 %v12416_v53, %s13318_s29 }
 0x928   : > { %4077 = vrot.lane.b32.xlu1 %v12399_v47, %s13317_s30 }
 0x92f   : > { %4163 = vperm.xlu0 %10354, %v1055_v16   ;;  %4075 = vrot.lane.b32.xlu2 %v12410_v18, %s13317_s30  ;;  %v9828_v16 = vld [vmem:[%s13230_s15 + $0x14] sm:$0xf]  ;;  %s844_s30 = scalar_lea.vmem [#allocation11], %s843_s3 }
 0x930   : > { %4173 = vperm.xlu1 %10355, %v1057_v46   ;;  %s7693_s8 = sshll.u32 %s844_s30, 4  ;;  %s7694_s8 = int_to_ptr.vmem [resolvable:$true] %s7693_s8 }
 0x937   : > { %4468 = vperm.xlu0 %10354, %v1074_v21   ;;  %4178 = vperm.xlu2 %10353, %v1058_v7   ;;  %v8332_v21 = vld [vmem:[%s13230_s15 + $0x10] sm:$0xf]  ;;  %v9829_v7 = vld [vmem:[%s13230_s15 + $0x14] sm:$0xf0] }
 0x938   : > { %4168 = vperm.xlu1 %10355, %v1056_v54  }
 0x93f   : > { %4559 = vperm.xlu0 %10354, %v1089_v25   ;;  %4463 = vperm.xlu2 %10353, %v1073_v20   ;;  %v1092_v25 = vld [vmem:[%s13235_s20 + $0x8] sm:$0x3]  ;;  %v8333_v20 = vor.u32 %v9829_v7, %v8332_v21 }
 0x940   : > { %4153 = vperm.xlu1 %10355, %v1053_v2  }
 0x947   : > { %4458 = vperm.xlu0 %10354, %v1072_v15   ;;  %4158 = vperm.xlu2 %10353, %v1054_v62   ;;  %v9830_v15 = vld [vmem:[%s13230_s15 + $0x24] sm:$0xf]  ;;  %v8342_v62 = vld [vmem:[%s13230_s15 + $0x28] sm:$0xf0] }
 0x948   : > { %4564 = vperm.xlu1 %10355, %v1090_v48   ;;  %v8345_v48 = vor.u32 %v9830_v15, %v8342_v62 }
 0x94f   : > { %4549 = vperm.xlu0 %10354, %v1087_v44   ;;  %4453 = vperm.xlu2 %10353, %v1071_v56   ;;  %v8340_v44 = vld [vmem:[%s13230_s15 + $0x20] sm:$0xf]  ;;  %v9831_v56 = vld [vmem:[%s13230_s15 + $0x24] sm:$0xf0] }
 0x950   : > { %4143 = vperm.xlu1 %10355, %v1051_v23   ;;  %v8341_v23 = vor.u32 %v9831_v56, %v8340_v44 }
 0x957   : > { %4448 = vperm.xlu0 %10354, %v1070_v13   ;;  %4148 = vperm.xlu2 %10353, %v1052_v27   ;;  %v9832_v27 = vld [vmem:[%s13230_s15 + $0x34] sm:$0xf] }
 0x958   : > { %4554 = vperm.xlu1 %10355, %v1088_v39   ;;  %v8350_v39 = vld [vmem:[%s13230_s15 + $0x38] sm:$0xf0] }
 0x95f   : > { %4539 = vperm.xlu0 %10354, %v1085_v24   ;;  %4443 = vperm.xlu2 %10353, %v1069_v33   ;;  %v8353_v24 = vor.u32 %v9832_v27, %v8350_v39 }
 0x960   : > { %4133 = vperm.xlu1 %10355, %v1049_v51   ;;  %v8348_v51 = vld [vmem:[%s13230_s15 + $0x30] sm:$0xf] }
 0x967   : > { %4438 = vperm.xlu0 %10354, %v1068_v19   ;;  %4138 = vperm.xlu2 %10353, %v1050_v36   ;;  %v9833_v19 = vld [vmem:[%s13230_s15 + $0x34] sm:$0xf0] }
 0x968   : > { %4544 = vperm.xlu1 %10355, %v1086_v50   ;;  %v8349_v36 = vor.u32 %v9833_v19, %v8348_v51 }
 0x96f   : > { %4529 = vperm.xlu0 %10354, %v1083_v6   ;;  %4433 = vperm.xlu2 %10353, %v1067_v58   ;;  %v9834_v6 = vld [vmem:[%s13230_s15 + $0x44] sm:$0xf]  ;;  %v8358_v58 = vld [vmem:[%s13230_s15 + $0x48] sm:$0xf0] }
 0x970   : > { %4123 = vperm.xlu1 %10355, %v1047_v60   ;;  %v8361_v60 = vor.u32 %v9834_v6, %v8358_v58 }
 0x972   : > { %v4068_v28 = vpop.permute.xlu2 %4067 }
 0x973   : > { %4277 = vmatpush.bf16.msrb.mxu3 %v4068_v28  ;;  %v8356_v28 = vld [vmem:[%s13230_s15 + $0x40] sm:$0xf] }
 0x977   : > { %4428 = vperm.xlu0 %10354, %v1066_v8   ;;  %4128 = vperm.xlu2 %10353, %v1048_v41   ;;  %v9835_v8 = vld [vmem:[%s13230_s15 + $0x44] sm:$0xf0] }
 0x978   : > { %4534 = vperm.xlu1 %10355, %v1084_v59   ;;  %v8357_v41 = vor.u32 %v9835_v8, %v8356_v28 }
 0x97f   : > { %4519 = vperm.xlu0 %10354, %v1081_v63   ;;  %4423 = vperm.xlu2 %10353, %v1065_v31   ;;  %v9836_v63 = vld [vmem:[%s13230_s15 + $0x54] sm:$0xf]  ;;  %v8366_v31 = vld [vmem:[%s13230_s15 + $0x58] sm:$0xf0] }
 0x980   : > { %4113 = vperm.xlu1 %10355, %v1045_v57  }
 0x981   : > { %v4062_v14 = vpop.permute.xlu2 %4061 }
 0x987   : > { %4418 = vperm.xlu0 %10354, %v1064_v38   ;;  %4118 = vperm.xlu2 %10353, %v1046_v29   ;;  %v8369_v38 = vor.u32 %v9836_v63, %v8366_v31  ;;  %v8364_v29 = vld [vmem:[%s13230_s15 + $0x50] sm:$0xf] }
 0x988   : > { %4524 = vperm.xlu1 %10355, %v1082_v3   ;;  %v9837_v3 = vld [vmem:[%s13230_s15 + $0x54] sm:$0xf0] }
 0x989   : > { %v4066_v26 = vpop.permute.xlu0 %4065  ;;  %v4076_v22 = vpop.permute.xlu2 %4075 }
 0x98a   : > { %4278 = vmatpush.bf16.msrb.mxu3 %v4066_v26  ;;  %v8365_v26 = vor.u32 %v9837_v3, %v8364_v29 }
 0x98f   : > { %4509 = vperm.xlu0 %10354, %v1079_v45   ;;  %4413 = vperm.xlu2 %10353, %v1063_v10   ;;  %v9838_v10 = vld [vmem:[%s13230_s15 + $0x64] sm:$0xf] }
 0x990   : > { %4103 = vperm.xlu1 %10355, %v1043_v5   ;;  %v8374_v5 = vld [vmem:[%s13230_s15 + $0x68] sm:$0xf0] }
 0x991   : > { %v4080_v42 = vpop.permute.xlu0 %4079 }
 0x992   : > { %v4064_v61 = vpop.permute.xlu1 %4063  ;;  %4330 = vmatpush.bf16.msra.mxu0 %v4080_v42  ;;  %v8377_v42 = vor.u32 %v9838_v10, %v8374_v5 }
 0x993   : > { %4279 = vmatpush.bf16.msrb.mxu3 %v4064_v61  ;;  %v8372_v61 = vld [vmem:[%s13230_s15 + $0x60] sm:$0xf] }
 0x997   : > { %4280 = vmatpush.bf16.msrb.mxu3 %v4062_v14  ;;  %4408 = vperm.xlu0 %10354, %v1062_v30   ;;  %v9839_v14 = vld [vmem:[%s13230_s15 + $0x64] sm:$0xf0] }
 0x998   : > { %4514 = vperm.xlu1 %10355, %v1080_v0   ;;  %4108 = vperm.xlu2 %10353, %v1044_v1   ;;  %v8373_v0 = vor.u32 %v9839_v14, %v8372_v61 }
 0x999   : > { %v4074_v34 = vpop.permute.xlu0 %4073 }
 0x99a   : > { %v4078_v17 = vpop.permute.xlu1 %4077 }
 0x99b   : > { %4281 = vmatpush.bf16.msrb.mxu3 %v12402_v11  ;;  %4331 = vmatpush.bf16.msra.mxu0 %v4078_v17  ;;  %v8325_v11 = vor.u32 %v9827_v12, %v8324_v35  ;;  %v9840_v17 = vld [vmem:[%s13230_s15 + $0x74] sm:$0xf] }
 0x99f   : > { %4282 = vmatpush.bf16.msrb.mxu3 %v12399_v47  ;;  %4332 = vmatpush.bf16.msra.mxu0 %v4076_v22  ;;  %v1078_v47 = vld [vmem:[%s13233_s18 + $0x18] sm:$0xff]  ;;  %v8380_v22 = vld [vmem:[%s13230_s15 + $0x70] sm:$0xf] }
 0x9a0   : > { %4499 = vperm.xlu1 %10355, %v1077_v32   ;;  %4393 = vperm.xlu0 %10354, %v1059_v37   ;;  %v8382_v32 = vld [vmem:[%s13230_s15 + $0x78] sm:$0xf0] }
 0x9a1   : > { %4403 = vperm.xlu2 %10353, %v1061_v52   ;;  %v8385_v37 = vor.u32 %v9840_v17, %v8382_v32  ;;  %v9841_v52 = vld [vmem:[%s13230_s15 + $0x74] sm:$0xf0]  ;;  %v12704_v12 = vpop.permute.xlu0 %4163 }
 0x9a2   : > { %v12602_v54 = vpop.permute.xlu1 %4173  ;;  %v8381_v4 = vor.u32 %v9841_v52, %v8380_v22 }
 0x9a3   : > { %4283 = vmatpush.bf16.msrb.mxu3 %v12410_v18  ;;  %4333 = vmatpush.bf16.msra.mxu0 %v4074_v34  ;;  %v1075_v18 = vld [vmem:[%s13233_s18] sm:$0xff] }
 0x9a6   : > { %8386 = vmatmul.msk.bf16.vlgmr.msra.gmra.mxu0 %vm2998_vm5, %v8329_v43 }
 0x9a7   : > { %4284 = vmatpush.bf16.msrb.mxu3 %v12416_v53  ;;  %v8334_v53 = vld [vmem:[%s13230_s15 + $0x18] sm:$0xf0] }
 0x9a8   : > { %4398 = vperm.xlu1 %10355, %v1060_v49   ;;  %4494 = vperm.xlu0 %10354, %v1076_v40   ;;  %v8337_v46 = vor.u32 %v9828_v16, %v8334_v53 }
 0x9a9   : > { %4504 = vperm.xlu2 %10353, %v1078_v47   ;;  %v12712_v53 = vpop.permute.xlu0 %4468 }
 0x9aa   : > { %4285 = vmatmul.bf16.vlgmr.msrb.gmra.mxu3 %v8325_v11  ;;  %v12608_v2 = vpop.permute.xlu1 %4168 }
 0x9b0   : > { %4595 = vperm.xlu1 %10355, %v1091_v55   ;;  %v12708_v55 = vpop.permute.xlu2 %4178 }
 0x9b1   : > { %4489 = vperm.xlu2 %10353, %v1075_v18   ;;  %v12720_v15 = vpop.permute.xlu0 %4559 }
 0x9b2   : > { %v12623_v13 = vpop.permute.xlu1 %4153 }
 0x9b6   : > { %8387 = vmatmul.msk.bf16.gmra.mxu0 %vm2998_vm5, %v8337_v46 }
 0x9b8   : > { %v12716_v21 = vpop.permute.xlu2 %4463 }
 0x9b9   : > { %4600 = vperm.xlu2 %10353, %v1092_v25   ;;  %v4459_v56 = vpop.permute.xlu0 %4458 }
 0x9ba   : > { %4290 = vmatmul.bf16.gmra.mxu3 %v8333_v20  ;;  %v12631_v33 = vpop.permute.xlu1 %4564 }
 0x9c0   : > { %v12724_v44 = vpop.permute.xlu2 %4158 }
 0x9c2   : > { %v12640_v50 = vpop.permute.xlu1 %4143 }
 0x9c6   : > { %8388 = vmatmul.msk.bf16.gmra.mxu0 %vm2998_vm5, %v8345_v48 }
 0x9c8   : > { %v4454_v51 = vpop.permute.xlu2 %4453 }
 0x9ca   : > { %4295 = vmatmul.bf16.gmra.mxu3 %v8341_v23  ;;  %v12655_v59 = vpop.permute.xlu1 %4554 }
 0x9d0   : > { %v4149_v58 = vpop.permute.xlu2 %4148 }
 0x9d2   : > { %v4134_v57 = vpop.permute.xlu1 %4133 }
 0x9d6   : > { %8389 = vmatmul.msk.bf16.gmra.mxu0 %vm2998_vm5, %v8353_v24 }
 0x9da   : > { %4300 = vmatmul.bf16.gmra.mxu3 %v8349_v36  ;;  %v12670_v45 = vpop.permute.xlu1 %4544  ;;  %v4550_v36 = vpop.permute.xlu0 %4549 }
 0x9e2   : > { %v4124_v30 = vpop.permute.xlu1 %4123 }
 0x9e6   : > { %8390 = vmatmul.msk.bf16.gmra.mxu0 %vm2998_vm5, %v8361_v60 }
 0x9ea   : > { %4305 = vmatmul.bf16.gmra.mxu3 %v8357_v41  ;;  %v12685_v1 = vpop.permute.xlu1 %4534  ;;  %v12734_v41 = vpop.permute.xlu0 %4448 }
 0x9f2   : > { %v4114_v9 = vpop.permute.xlu1 %4113  ;;  %v12742_v3 = vpop.permute.xlu0 %4539 }
 0x9f6   : > { %8391 = vmatmul.msk.bf16.gmra.mxu0 %vm2998_vm5, %v8369_v38  ;;  %v12738_v38 = vpop.permute.xlu2 %4443 }
 0x9fa   : > { %4310 = vmatmul.bf16.gmra.mxu3 %v8365_v26  ;;  %v12700_v34 = vpop.permute.xlu1 %4524  ;;  %v4439_v14 = vpop.permute.xlu0 %4438 }
 0xa02   : > { %v4104_v49 = vpop.permute.xlu1 %4103 }
 0xa06   : > { %8392 = vmatmul.msk.bf16.gmra.mxu0 %vm2998_vm5, %v8377_v42  ;;  %v4139_v42 = vpop.permute.xlu2 %4138 }
 0xa0a   : > { %4315 = vmatmul.bf16.gmra.mxu3 %v8373_v0 }
 0xa16   : > { %8393 = vmatmul.msk.bf16.gmra.mxu0 %vm2998_vm5, %v8385_v37  ;;  %v4434_v37 = vpop.permute.xlu2 %4433 }
 0xa1a   : > { %4320 = vmatmul.bf16.gmra.mxu3 %v8381_v4 }
 0xa23   : > { %v4335_v43 = vpop.f32.mrf.mxu0 }
 0xa2b   : > { %v12702_v35 = vpop.f32.mrf.mxu0 }
 0xa2d   : > { %v4286_v40 = vpop.f32.mrf.mxu3 }
 0xa2e   : > { %v4287_v47 = vadd.f32 %v4286_v40, %v4104_v49 }
 0xa30   : > { %v12706_v11 = vadd.f32 %v4335_v43, %v4287_v47 }
 0xa33   : > { %v4340_v18 = vpop.f32.mrf.mxu0 }
 0xa35   : > { %v12710_v16 = vpop.f32.mrf.mxu3 }
 0xa3b   : > { %v12714_v46 = vpop.f32.mrf.mxu0 }
 0xa3d   : > { %v4291_v7 = vpop.f32.mrf.mxu3 }
 0xa3e   : > { %v4292_v25 = vadd.f32 %v4291_v7, %v4114_v9  ;;  %v4530_v9 = vpop.permute.xlu0 %4529 }
 0xa40   : > { %v12718_v20 = vadd.f32 %v4340_v18, %v4292_v25  ;;  %v4129_v18 = vpop.permute.xlu2 %4128 }
 0xa43   : > { %v4345_v62 = vpop.f32.mrf.mxu0 }
 0xa45   : > { %v12722_v48 = vpop.f32.mrf.mxu3 }
 0xa4b   : > { %v12726_v23 = vpop.f32.mrf.mxu0 }
 0xa4d   : > { %v4296_v27 = vpop.f32.mrf.mxu3 }
 0xa4e   : > { %v4297_v39 = vadd.f32 %v4296_v27, %v4124_v30  ;;  %v12754_v27 = vpop.permute.xlu2 %4423 }
 0xa50   : > { %v12728_v24 = vadd.f32 %v4345_v62, %v4297_v39  ;;  %v12752_v62 = vpop.permute.xlu0 %4428 }
 0xa53   : > { %v4350_v19 = vpop.f32.mrf.mxu0 }
 0xa55   : > { %v12730_v6 = vpop.f32.mrf.mxu3 }
 0xa5b   : > { %v12732_v60 = vpop.f32.mrf.mxu0 }
 0xa5d   : > { %v4301_v28 = vpop.f32.mrf.mxu3 }
 0xa5e   : > { %v4302_v8 = vadd.f32 %v4301_v28, %v4134_v57 }
 0xa60   : > { %v12736_v63 = vadd.f32 %v4350_v19, %v4302_v8 }
 0xa63   : > { %v4355_v31 = vpop.f32.mrf.mxu0 }
 0xa65   : > { %v12740_v29 = vpop.f32.mrf.mxu3 }
 0xa6b   : > { %v4357_v26 = vpop.f32.mrf.mxu0 }
 0xa6d   : > { %v4306_v10 = vpop.f32.mrf.mxu3 }
 0xa6e   : > { %v4307_v5 = vadd.f32 %v4306_v10, %v12640_v50 }
 0xa70   : > { %v4356_v61 = vadd.f32 %v4355_v31, %v4307_v5 }
 0xa72   : > { %v4383_v0 = vmax.f32 %v4356_v61, 0.0  ;;  %v4119_v61 = vpop.permute.xlu2 %4118 }
 0xa73   : > { %v4360_v57 = vpop.f32.mrf.mxu0 }
 0xa74   : > { %v4479_v22 = vmul.f32 %v4434_v37, %v4383_v0 }
 0xa75   : > { %v4308_v30 = vpop.f32.mrf.mxu3 }
 0xa76   : > { %v4309_v17 = vadd.f32 %v4308_v30, %v4149_v58  ;;  %v12745_v49 = vadd.f32 %v4530_v9, %v4479_v22 }
 0xa78   : > { %v4358_v32 = vadd.f32 %v4357_v26, %v4309_v17 }
 0xa7a   : > { %v4384_v52 = vmax.f32 %v4358_v32, 0.0 }
 0xa7b   : > { %v4362_v50 = vpop.f32.mrf.mxu0 }
 0xa7c   : > { %v4480_v4 = vmul.f32 %v4439_v14, %v4384_v52 }
 0xa7d   : > { %v4311_v43 = vpop.f32.mrf.mxu3 }
 0xa7e   : > { %v12748_v40 = vadd.f32 %v12685_v1, %v4480_v4  ;;  %v12757_v1 = vpop.permute.xlu0 %4519 }
 0xa80   : > { %v4589_v47 = vpack.c.bf16 %v12748_v40, %v12745_v49  ;;  %v8450_v49 = vld [vmem:[#allocation6 + $0x70] sm:$0x70] }
 0xa83   : > { %v4365_v25 = vpop.f32.mrf.mxu0 }
 0xa85   : > { %v4313_v7 = vpop.f32.mrf.mxu3 }
 0xa86   : > { %v12762_v22 = vpop.permute.xlu0 %4418  ;;  %v4314_v9 = vadd.f32 %v4313_v7, %v12724_v44 }
 0xa8b   : > { %v4367_v8 = vpop.f32.mrf.mxu0 }
 0xa8d   : > { %v4316_v39 = vpop.f32.mrf.mxu3 }
 0xa8e   : > { %v4317_v19 = vadd.f32 %v4316_v39, %v12704_v12 }
 0xa90   : > { %v4366_v58 = vadd.f32 %v4365_v25, %v4317_v19  ;;  %v4363_v19 = vadd.f32 %v4362_v50, %v4314_v9  ;;  %v4299_v50 = vadd.f32 %v12730_v6, %v4129_v18 }
 0xa92   : > { %v4387_v28 = vmax.f32 %v4366_v58, 0.0  ;;  %v4348_v6 = vadd.f32 %v12726_v23, %v4299_v50  ;;  %v8416_v23 = vld [vmem:[#allocation6 + $0x20] sm:$0xf] }
 0xa93   : > { %v4370_v17 = vpop.f32.mrf.mxu0 }
 0xa94   : > { %v4483_v31 = vmul.f32 %v4454_v51, %v4387_v28  ;;  %v12764_v51 = vpop.permute.xlu2 %4413 }
 0xa95   : > { %v4318_v26 = vpop.f32.mrf.mxu3 }
 0xa96   : > { %v4319_v10 = vadd.f32 %v4318_v26, %v12608_v2  ;;  %v4579_v5 = vadd.f32 %v4550_v36, %v4483_v31  ;;  %v4312_v36 = vadd.f32 %v4311_v43, %v12623_v13  ;;  %v4304_v26 = vadd.f32 %v12740_v29, %v4139_v42  ;;  %v4515_v43 = vpop.permute.xlu1 %4514  ;;  %v8586_v42 = vld [vmem:[#allocation6 + $0x170] sm:$0x70] }
 0xa98   : > { %v4368_v14 = vadd.f32 %v4367_v8, %v4319_v10  ;;  %v4386_v10 = vmax.f32 %v4363_v19, 0.0 }
 0xa9a   : > { %v4388_v30 = vmax.f32 %v4368_v14, 0.0  ;;  %v8448_v14 = vld [vmem:[#allocation6 + $0x60] sm:$0xf] }
 0xa9b   : > { %v4372_v39 = vpop.f32.mrf.mxu0 }
 0xa9c   : > { %v4484_v0 = vmul.f32 %v4459_v56, %v4388_v30  ;;  %v4109_v31 = vpop.permute.xlu2 %4108  ;;  %v9857_v30 = vld [vmem:[#allocation6 + $0x6c] sm:$0x70] }
 0xa9d   : > { %v4321_v32 = vpop.f32.mrf.mxu3 }
 0xa9e   : > { %v4322_v37 = vadd.f32 %v4321_v32, %v12602_v54  ;;  %v4580_v12 = vadd.f32 %v12655_v59, %v4484_v0  ;;  %v12769_v54 = vpop.permute.xlu0 %4509  ;;  %v4361_v59 = vadd.f32 %v4360_v57, %v4312_v36  ;;  %v4482_v57 = vmul.f32 %v12734_v41, %v4386_v10  ;;  %v9887_v0 = vld [vmem:[#allocation6 + $0x164] sm:$0xf] }
 0xa9f   : > { %v4381_v36 = vmax.f32 %v12736_v63, 0.0 }
 0xaa0   : > { %v4591_v52 = vpack.c.bf16 %v4580_v12, %v4579_v5  ;;  %v4371_v4 = vadd.f32 %v4370_v17, %v4322_v37  ;;  %v4385_v7 = vmax.f32 %v4361_v59, 0.0  ;;  %v4353_v5 = vadd.f32 %v12732_v60, %v4304_v26  ;;  %v8432_v17 = vld [vmem:[#allocation6 + $0x40] sm:$0xf]  ;;  %v9920_v12 = vld [vmem:[#allocation6 + $0x26c] sm:$0xf] }
 0xaa1   : > { %v8589_v37 = vor.u32 %v9887_v0, %v8586_v42  ;;  %v4578_v41 = vadd.f32 %v12670_v45, %v4482_v57  ;;  %v4289_v45 = vadd.f32 %v12710_v16, %v4109_v31  ;;  %v4377_v26 = vmax.f32 %v12718_v20, 0.0  ;;  %v9855_v57 = vld [vmem:[#allocation6 + $0x64] sm:$0xf] }
 0xaa2   : > { %v4389_v25 = vmax.f32 %v4371_v4, 0.0  ;;  %v4481_v29 = vmul.f32 %v12738_v38, %v4385_v7  ;;  %v4382_v60 = vmax.f32 %v4353_v5, 0.0  ;;  %v9842_v0 = vld [vmem:[%s13234_s19] sm:$0x10] }
 0xaa3   : > { %v5078_v38 = vsel %vm1197_vm12, %v8589_v37, 0  ;;  %v9851_v42 = vld [vmem:[#allocation6 + $0x44] sm:$0xf]  ;;  %v8418_v37 = vld [vmem:[#allocation6 + $0x30] sm:$0xf0] }
 0xaa4   : > { %v4485_v28 = vmul.f32 %v12716_v21, %v4389_v25  ;;  %v4404_v4 = vpop.permute.xlu2 %4403  ;;  %5103 = vmatpush.bf16.msra.mxu3 %v5078_v38  ;;  %v9849_v25 = vld [vmem:[#allocation6 + $0x2c] sm:$0xf0]  ;;  %v4478_v19 = vmul.f32 %v12752_v62, %v4382_v60  ;;  %v9883_v60 = vld [vmem:[#allocation6 + $0x144] sm:$0xf] }
 0xaa5   : > { %v4323_v2 = vpop.f32.mrf.mxu3  ;;  %v8417_v63 = vor.u32 %v9849_v25, %v8416_v23  ;;  %v9879_v25 = vld [vmem:[#allocation6 + $0x124] sm:$0xf] }
 0xaa6   : > { %v4324_v56 = vadd.f32 %v4323_v2, %v12708_v55  ;;  %v4581_v13 = vadd.f32 %v12720_v15, %v4485_v28  ;;  %v9853_v15 = vld [vmem:[#allocation6 + $0x4c] sm:$0xf0]  ;;  %v4409_v32 = vpop.permute.xlu0 %4408  ;;  %v8730_v2 = vld [vmem:[#allocation6 + $0x278] sm:$0x70]  ;;  %v4500_v28 = vpop.permute.xlu1 %4499  ;;  %v4574_v31 = vadd.f32 %v12700_v34, %v4478_v19  ;;  %v4473_v34 = vmul.f32 %v4404_v4, %v4377_v26 }
 0xaa7   : > { %v8433_v9 = vor.u32 %v9853_v15, %v8432_v17  ;;  %v8434_v17 = vld [vmem:[#allocation6 + $0x50] sm:$0xf0]  ;;  %v8714_v4 = vld [vmem:[#allocation6 + $0x258] sm:$0xf0] }
 0xaa8   : > { %v4373_v58 = vadd.f32 %v4372_v39, %v4324_v56  ;;  %v4380_v39 = vmax.f32 %v4348_v6, 0.0  ;;  %v8698_v19 = vld [vmem:[#allocation6 + $0x238] sm:$0xf0] }
 0xaaa   : > { %v4390_v8 = vmax.f32 %v4373_v58, 0.0 }
 0xaac   : > { %v4486_v44 = vmul.f32 %v12712_v53, %v4390_v8  ;;  %v8449_v53 = vor.u32 %v9857_v30, %v8448_v14  ;;  %v4338_v8 = vadd.f32 %v12702_v35, %v4289_v45  ;;  %v8453_v30 = vor.u32 %v9855_v57, %v8450_v49  ;;  %v8554_v45 = vld [vmem:[#allocation6 + $0x130] sm:$0xf0] }
 0xaae   : > { %v4582_v55 = vadd.f32 %v12631_v33, %v4486_v44  ;;  %v4294_v33 = vadd.f32 %v12722_v48, %v4119_v61  ;;  %v4722_v18 = vsel %vm1197_vm12, %v8449_v53, 0  ;;  %v4577_v48 = vadd.f32 %v12742_v3, %v4481_v29  ;;  %v4394_v62 = vpop.permute.xlu0 %4393  ;;  %v4399_v20 = vpop.permute.xlu1 %4398 }
 0xaaf   : > { %4737 = vmatpush.bf16.msra.mxu2 %v4722_v18  ;;  %v8733_v61 = vor.u32 %v9920_v12, %v8730_v2  ;;  %v4379_v3 = vmax.f32 %v12728_v24, 0.0  ;;  %v4376_v44 = vmax.f32 %v4338_v8, 0.0  ;;  %v4725_v53 = vsel %vm1197_vm12, %v8453_v30, 0  ;;  %v9916_v18 = vld [vmem:[#allocation6 + $0x24c] sm:$0xf] }
 0xab0   : > { %v4592_v21 = vpack.c.bf16 %v4582_v55, %v4581_v13  ;;  %v4343_v56 = vadd.f32 %v12714_v46, %v4294_v33  ;;  %v4590_v58 = vpack.c.bf16 %v4578_v41, %v4577_v48  ;;  %v4476_v46 = vmul.f32 %v12762_v22, %v4380_v39  ;;  %v9847_v33 = vld [vmem:[#allocation6 + $0x24] sm:$0xf]  ;;  %v8570_v41 = vld [vmem:[#allocation6 + $0x150] sm:$0xf0]  ;;  %v9845_v2 = vld [vmem:[#allocation6 + $0xc] sm:$0xf0] }
 0xab1   : > { %v5430_v59 = vsel %vm1197_vm12, %v8733_v61, 0  ;;  %v4475_v10 = vmul.f32 %v12764_v51, %v4379_v3  ;;  %v4375_v22 = vmax.f32 %v12706_v11, 0.0  ;;  %v4472_v50 = vmul.f32 %v4399_v20, %v4376_v44  ;;  %v8402_v61 = vld [vmem:[#allocation6 + $0x10] sm:$0xf0]  ;;  %v9856_v3 = vld [vmem:[#allocation6 + $0x6c] sm:$0xf] }
 0xab2   : > { %4609 = vmatpush.bf16.msra.mxu1 %v4592_v21  ;;  %5475 = vmatpush.bf16.msrb.mxu0 %v5430_v59  ;;  %v4378_v16 = vmax.f32 %v4343_v56, 0.0  ;;  %v4572_v13 = vadd.f32 %v4515_v43, %v4476_v46  ;;  %v8421_v6 = vor.u32 %v9847_v33, %v8418_v37  ;;  %v8573_v12 = vor.u32 %v9883_v60, %v8570_v41  ;;  %v9912_v56 = vld [vmem:[#allocation6 + $0x22c] sm:$0xf]  ;;  %v9858_v59 = vld [vmem:[#allocation6 + $0x74] sm:$0x70] }
 0xab3   : > { %4738 = vmatpush.bf16.msra.mxu2 %v8433_v9  ;;  %v4571_v55 = vadd.f32 %v12769_v54, %v4475_v10  ;;  %v4471_v40 = vmul.f32 %v4394_v62, %v4375_v22  ;;  %v8396_v54 = vld [vmem:[%s13234_s19] sm:$0xf]  ;;  %v8717_v38 = vor.u32 %v9916_v18, %v8714_v4  ;;  %v8557_v39 = vor.u32 %v9879_v25, %v8554_v45  ;;  %v9875_v46 = vld [vmem:[#allocation6 + $0x104] sm:$0xf]  ;;  %v9908_v10 = vld [vmem:[#allocation6 + $0x20c] sm:$0xf] }
 0xab4   : > { %v4474_v35 = vmul.f32 %v4409_v32, %v4378_v16  ;;  %v8397_v15 = vor.u32 %v9842_v0, %v8396_v54  ;;  %v8437_v32 = vor.u32 %v9851_v42, %v8434_v17  ;;  %v8400_v9 = vld [vmem:[#allocation6] sm:$0xf]  ;;  %5104 = vmatpush.bf16.msra.mxu3 %v8573_v12  ;;  %v8440_v44 = vld [vmem:[#allocation6 + $0x48] sm:$0xf]  ;;  %v8442_v22 = vld [vmem:[#allocation6 + $0x58] sm:$0xf0] }
 0xab5   : > { %v4587_v51 = vpack.c.bf16 %v4572_v13, %v4571_v55  ;;  %v8401_v48 = vor.u32 %v9845_v2, %v8400_v9  ;;  %v9905_v55 = vld [vmem:[#allocation6 + $0x1ec] sm:$0x70]  ;;  %v8426_v30 = vld [vmem:[#allocation6 + $0x38] sm:$0xf0]  ;;  %v9932_v0 = vld [vmem:[#allocation6 + $0x2cc] sm:$0xf] }
 0xab6   : > { %4610 = vmatpush.bf16.msra.mxu1 %v4591_v52  ;;  %v4477_v52 = vmul.f32 %v12754_v27, %v4381_v36  ;;  %v4505_v27 = vpop.permute.xlu2 %4504  ;;  %v9843_v36 = vld [vmem:[#allocation6 + $0x4] sm:$0xf]  ;;  %5476 = vmatpush.bf16.msrb.mxu0 %v8717_v38  ;;  %v9901_v54 = vld [vmem:[#allocation6 + $0x1cc] sm:$0xf0]  ;;  %v8408_v42 = vld [vmem:[#allocation6 + $0x8] sm:$0xf] }
 0xab7   : > { %4739 = vmatpush.bf16.msra.mxu2 %v8417_v63  ;;  %v4570_v5 = vadd.f32 %v4505_v27, %v4474_v35  ;;  %v8405_v23 = vor.u32 %v9843_v36, %v8402_v61  ;;  %v9854_v35 = vld [vmem:[#allocation6 + $0x54] sm:$0xf0]  ;;  %v9844_v33 = vld [vmem:[#allocation6 + $0xc] sm:$0xf]  ;;  %v8410_v37 = vld [vmem:[#allocation6 + $0x18] sm:$0xf0] }
 0xab8   : > { %v4573_v24 = vadd.f32 %v12757_v1, %v4477_v52  ;;  %v4495_v1 = vpop.permute.xlu0 %4494  ;;  %v8458_v52 = vld [vmem:[#allocation6 + $0x78] sm:$0x70]  ;;  %5105 = vmatpush.bf16.msra.mxu3 %v8557_v39  ;;  %v8441_v13 = vor.u32 %v9854_v35, %v8440_v44  ;;  %v9846_v17 = vld [vmem:[#allocation6 + $0x14] sm:$0xf0]  ;;  %v8413_v60 = vor.u32 %v9844_v33, %v8410_v37  ;;  %v9897_v41 = vld [vmem:[#allocation6 + $0x1ac] sm:$0xf0] }
 0xab9   : > { %v4568_v14 = vadd.f32 %v4495_v1, %v4472_v50  ;;  %v8461_v8 = vor.u32 %v9856_v3, %v8458_v52  ;;  %v9928_v18 = vld [vmem:[#allocation6 + $0x2ac] sm:$0xf]  ;;  %v8766_v12 = vld [vmem:[#allocation6 + $0x2b8] sm:$0xf0]  ;;  %v8604_v9 = vld [vmem:[#allocation6 + $0x180] sm:$0xf] }
 0xaba   : > { %4611 = vmatpush.bf16.msra.mxu1 %v4590_v58  ;;  %v4588_v7 = vpack.c.bf16 %v4574_v31, %v4573_v24  ;;  %v8456_v58 = vld [vmem:[#allocation6 + $0x68] sm:$0xf]  ;;  %v8538_v31 = vld [vmem:[#allocation6 + $0x110] sm:$0xf0]  ;;  %v8682_v24 = vld [vmem:[#allocation6 + $0x218] sm:$0xf0]  ;;  %v8769_v38 = vor.u32 %v9928_v18, %v8766_v12 }
 0xabb   : > { %4740 = vmatpush.bf16.msra.mxu2 %v8401_v48  ;;  %v8457_v63 = vor.u32 %v9858_v59, %v8456_v58  ;;  %v4731_v62 = vsel %vm1197_vm12, %v8461_v8, 0  ;;  %v8541_v26 = vor.u32 %v9875_v46, %v8538_v31  ;;  %v8685_v27 = vor.u32 %v9908_v10, %v8682_v24  ;;  %v9893_v2 = vld [vmem:[#allocation6 + $0x18c] sm:$0xf0]  ;;  %v9924_v36 = vld [vmem:[#allocation6 + $0x28c] sm:$0xf]  ;;  %v4596_v59 = vpop.permute.xlu1 %4595 }
 0xabc   : > { %v8750_v48 = vld [vmem:[#allocation6 + $0x298] sm:$0xf0]  ;;  %v8605_v61 = vor.u32 %v9893_v2, %v8604_v9  ;;  %v8516_v25 = vld [vmem:[#allocation6 + $0xe0] sm:$0xf]  ;;  %v9873_v45 = vld [vmem:[#allocation6 + $0xec] sm:$0x70] }
 0xabd   : > { %v4728_v16 = vsel %vm1197_vm12, %v8457_v63, 0  ;;  %5106 = vmatpush.bf16.msra.mxu3 %v8541_v26  ;;  %v8518_v39 = vld [vmem:[#allocation6 + $0xf0] sm:$0x70]  ;;  %v8500_v3 = vld [vmem:[#allocation6 + $0xc0] sm:$0xf] }
 0xabe   : > { %4612 = vmatpush.bf16.msra.mxu1 %v4589_v47  ;;  %v4569_v47 = vadd.f32 %v4500_v28, %v4473_v34  ;;  %v4490_v43 = vpop.permute.xlu2 %4489  ;;  %v8701_v28 = vor.u32 %v9912_v56, %v8698_v19  ;;  %v8652_v34 = vld [vmem:[#allocation6 + $0x1e0] sm:$0xf]  ;;  %v9871_v56 = vld [vmem:[#allocation6 + $0xe4] sm:$0xf]  ;;  %v8517_v19 = vor.u32 %v9873_v45, %v8516_v25  ;;  %v9869_v52 = vld [vmem:[#allocation6 + $0xcc] sm:$0xf0] }
 0xabf   : > { %v4567_v11 = vadd.f32 %v4490_v43, %v4471_v40  ;;  %4763 = vmatpush.bf16.msrb.mxu2 %v4728_v16  ;;  %v8653_v50 = vor.u32 %v9905_v55, %v8652_v34  ;;  %v8424_v40 = vld [vmem:[#allocation6 + $0x28] sm:$0xf]  ;;  %v8521_v58 = vor.u32 %v9871_v56, %v8518_v39  ;;  %v9904_v8 = vld [vmem:[#allocation6 + $0x1ec] sm:$0xf]  ;;  %v8662_v16 = vld [vmem:[#allocation6 + $0x1f8] sm:$0x70] }
 0xac0   : > { %v4586_v21 = vpack.c.bf16 %v4570_v5, %v4569_v47  ;;  %5477 = vmatpush.bf16.msrb.mxu0 %v8701_v28  ;;  %v8798_v5 = vld [vmem:[#allocation6 + $0x2f8] sm:$0x70]  ;;  %v9850_v47 = vld [vmem:[#allocation6 + $0x34] sm:$0xf0]  ;;  %v9952_v46 = vld [vmem:[#allocation6 + $0x36c] sm:$0xf]  ;;  %v8665_v35 = vor.u32 %v9904_v8, %v8662_v16 }
 0xac1   : > { %v4585_v29 = vpack.c.bf16 %v4568_v14, %v4567_v11  ;;  %v5248_v49 = vsel %vm1197_vm12, %v8653_v50, 0  ;;  %v9848_v14 = vld [vmem:[#allocation6 + $0x2c] sm:$0xf]  ;;  %v8636_v11 = vld [vmem:[#allocation6 + $0x1c0] sm:$0xf]  ;;  %v4902_v26 = vsel %vm1197_vm12, %v8517_v19, 0 }
 0xac2   : > { %4613 = vmatpush.bf16.msra.mxu1 %v4588_v7  ;;  %v9852_v7 = vld [vmem:[#allocation6 + $0x4c] sm:$0xf]  ;;  %5263 = vmatpush.bf16.msrb.mxu3 %v5248_v49  ;;  %v8429_v43 = vor.u32 %v9848_v14, %v8426_v30  ;;  %v8866_v31 = vld [vmem:[#allocation6 + $0x378] sm:$0x70]  ;;  %v4905_v10 = vsel %vm1197_vm12, %v8521_v58, 0 }
 0xac3   : > { %v8445_v20 = vor.u32 %v9852_v7, %v8442_v22  ;;  %4764 = vmatpush.bf16.msrb.mxu2 %v8441_v13  ;;  %v9867_v24 = vld [vmem:[#allocation6 + $0xc4] sm:$0xf]  ;;  %v8869_v7 = vor.u32 %v9952_v46, %v8866_v31  ;;  %v8501_v13 = vor.u32 %v9869_v52, %v8500_v3  ;;  %v8484_v34 = vld [vmem:[#allocation6 + $0xa0] sm:$0xf]  ;;  %v9948_v49 = vld [vmem:[#allocation6 + $0x34c] sm:$0xf] }
 0xac4   : > { %5478 = vmatpush.bf16.msrb.mxu0 %v8685_v27  ;;  %v8502_v27 = vld [vmem:[#allocation6 + $0xd0] sm:$0xf0]  ;;  %v9863_v50 = vld [vmem:[#allocation6 + $0xa4] sm:$0xf]  ;;  %v8850_v14 = vld [vmem:[#allocation6 + $0x358] sm:$0xf0] }
 0xac5   : > { %v8505_v22 = vor.u32 %v9867_v24, %v8502_v27  ;;  %v9872_v33 = vld [vmem:[#allocation6 + $0xec] sm:$0xf]  ;;  %v8526_v37 = vld [vmem:[#allocation6 + $0xf8] sm:$0x70]  ;;  %v8508_v25 = vld [vmem:[#allocation6 + $0xc8] sm:$0xf] }
 0xac6   : > { %4614 = vmatpush.bf16.msra.mxu1 %v4587_v51  ;;  %v9936_v51 = vld [vmem:[#allocation6 + $0x2ec] sm:$0xf]  ;;  %v9870_v45 = vld [vmem:[#allocation6 + $0xd4] sm:$0xf0]  ;;  %v8728_v56 = vld [vmem:[#allocation6 + $0x268] sm:$0xf] }
 0xac7   : > { %v8801_v57 = vor.u32 %v9936_v51, %v8798_v5  ;;  %v8486_v51 = vld [vmem:[#allocation6 + $0xb0] sm:$0xf0]  ;;  %v9900_v5 = vld [vmem:[#allocation6 + $0x1cc] sm:$0xf]  ;;  %v9922_v39 = vld [vmem:[#allocation6 + $0x274] sm:$0x70] }
 0xac8   : > { %v9892_v9 = vld [vmem:[#allocation6 + $0x18c] sm:$0xf]  ;;  %v8934_v58 = vld [vmem:[#allocation6 + $0x3f8] sm:$0x70]  ;;  %v8729_v46 = vor.u32 %v9922_v39, %v8728_v56  ;;  %v8492_v24 = vld [vmem:[#allocation6 + $0xa8] sm:$0xf] }
 0xac9   : > { %v5603_v1 = vsel %vm1197_vm12, %v8801_v57, 0  ;;  %v8646_v57 = vld [vmem:[#allocation6 + $0x1d8] sm:$0xf0]  ;;  %v9968_v19 = vld [vmem:[#allocation6 + $0x3ec] sm:$0xf] }
 0xaca   : > { %4615 = vmatpush.bf16.msra.mxu1 %v4586_v21  ;;  %v8425_v21 = vor.u32 %v9850_v47, %v8424_v40  ;;  %5648 = vmatpush.bf16.msra.mxu0 %v5603_v1  ;;  %v5257_v1 = vsel %vm1197_vm12, %v8665_v35, 0  ;;  %v8510_v3 = vld [vmem:[#allocation6 + $0xd8] sm:$0xf0]  ;;  %v8937_v31 = vor.u32 %v9968_v19, %v8934_v58  ;;  %v9866_v27 = vld [vmem:[#allocation6 + $0xb4] sm:$0xf0] }
 0xacb   : > { %v8494_v35 = vld [vmem:[#allocation6 + $0xb8] sm:$0xf0]  ;;  %v8576_v56 = vld [vmem:[#allocation6 + $0x148] sm:$0xf]  ;;  %v9886_v39 = vld [vmem:[#allocation6 + $0x154] sm:$0xf0] }
 0xacc   : > { %4765 = vmatpush.bf16.msrb.mxu2 %v8425_v21  ;;  %v5776_v21 = vsel %vm1197_vm12, %v8869_v7, 0 }
 0xace   : > { %4616 = vmatpush.bf16.msra.mxu1 %v4585_v29  ;;  %v8637_v29 = vor.u32 %v9901_v54, %v8636_v11  ;;  %v8468_v11 = vld [vmem:[#allocation6 + $0x80] sm:$0xf]  ;;  %v9861_v54 = vld [vmem:[#allocation6 + $0x8c] sm:$0xf0] }
 0xacf   : > { %v8469_v18 = vor.u32 %v9861_v54, %v8468_v11 }
 0xad0   : > { %5264 = vmatpush.bf16.msrb.mxu3 %v8637_v29  ;;  %v8470_v29 = vld [vmem:[#allocation6 + $0x90] sm:$0xf0] }
 0xad1   : > { %4617 = vmatmul.bf16.vlgmr.msra.gmra.mxu1 %v8397_v15 }
 0xad2   : > { %4750 = vmatpush.bf16.msrb.mxu1 %v4725_v53  ;;  %v8782_v53 = vld [vmem:[#allocation6 + $0x2d8] sm:$0xf0] }
 0xad3   : > { %v8785_v15 = vor.u32 %v9932_v0, %v8782_v53  ;;  %v9859_v0 = vld [vmem:[#allocation6 + $0x84] sm:$0xf]  ;;  %v9896_v53 = vld [vmem:[#allocation6 + $0x1ac] sm:$0xf] }
 0xad4   : > { %v8473_v12 = vor.u32 %v9859_v0, %v8470_v29  ;;  %v9889_v0 = vld [vmem:[#allocation6 + $0x16c] sm:$0x70]  ;;  %v8592_v29 = vld [vmem:[#allocation6 + $0x168] sm:$0xf] }
 0xad5   : > { %5649 = vmatpush.bf16.msra.mxu0 %v8785_v15  ;;  %v8853_v15 = vor.u32 %v9948_v49, %v8850_v14  ;;  %v8476_v49 = vld [vmem:[#allocation6 + $0x88] sm:$0xf]  ;;  %v8478_v14 = vld [vmem:[#allocation6 + $0x98] sm:$0xf0] }
 0xad6   : > { %4751 = vmatpush.bf16.msrb.mxu1 %v8437_v32  ;;  %v8409_v32 = vor.u32 %v9846_v17, %v8408_v42  ;;  %v8524_v42 = vld [vmem:[#allocation6 + $0xe8] sm:$0xf]  ;;  %v8649_v17 = vor.u32 %v9900_v5, %v8646_v57  ;;  %v8493_v5 = vor.u32 %v9866_v27, %v8492_v24  ;;  %v9934_v24 = vld [vmem:[#allocation6 + $0x2d4] sm:$0xf0] }
 0xad8   : > { %4766 = vmatpush.bf16.msrb.mxu2 %v8409_v32  ;;  %v9874_v32 = vld [vmem:[#allocation6 + $0xf4] sm:$0x70] }
 0xad9   : > { %5650 = vmatpush.bf16.msra.mxu0 %v8769_v38  ;;  %v8529_v38 = vor.u32 %v9872_v33, %v8526_v37 }
 0xada   : > { %4752 = vmatpush.bf16.msrb.mxu1 %v8421_v6  ;;  %v8620_v6 = vld [vmem:[#allocation6 + $0x1a0] sm:$0xf] }
 0xadb   : > { %v8621_v4 = vor.u32 %v9897_v41, %v8620_v6  ;;  %v8630_v6 = vld [vmem:[#allocation6 + $0x1b8] sm:$0xf0] }
 0xadc   : > { %v8834_v41 = vld [vmem:[#allocation6 + $0x338] sm:$0xf0]  ;;  %v8633_v2 = vor.u32 %v9896_v53, %v8630_v6  ;;  %v9890_v53 = vld [vmem:[#allocation6 + $0x174] sm:$0x70] }
 0xadd   : > { %5265 = vmatpush.bf16.msrb.mxu3 %v8621_v4  ;;  %v8525_v4 = vor.u32 %v9874_v32, %v8524_v42  ;;  %v9914_v42 = vld [vmem:[#allocation6 + $0x234] sm:$0xf0]  ;;  %v8593_v6 = vor.u32 %v9890_v53, %v8592_v29 }
 0xade   : > { %4753 = vmatpush.bf16.msrb.mxu1 %v8405_v23  ;;  %v8753_v23 = vor.u32 %v9924_v36, %v8750_v48  ;;  %v8614_v48 = vld [vmem:[#allocation6 + $0x198] sm:$0xf0] }
 0xadf   : > { %v8617_v8 = vor.u32 %v9892_v9, %v8614_v48  ;;  %v8568_v9 = vld [vmem:[#allocation6 + $0x140] sm:$0xf]  ;;  %v9938_v48 = vld [vmem:[#allocation6 + $0x2f4] sm:$0x70] }
 0xae0   : > { %5651 = vmatpush.bf16.msra.mxu0 %v8753_v23  ;;  %v8818_v23 = vld [vmem:[#allocation6 + $0x318] sm:$0xf0] }
 0xae1   : > { %5266 = vmatpush.bf16.msrb.mxu3 %v8605_v61  ;;  %v9940_v61 = vld [vmem:[#allocation6 + $0x30c] sm:$0xf] }
 0xae2   : > { %4776 = vmatpush.bf16.msra.mxu1 %v4731_v62  ;;  %v8821_v16 = vor.u32 %v9940_v61, %v8818_v23  ;;  %v9984_v61 = vld [vmem:[#allocation6 + $0x46c] sm:$0xf]  ;;  %v9002_v23 = vld [vmem:[#allocation6 + $0x478] sm:$0x70] }
 0xae6   : > { %4777 = vmatpush.bf16.msra.mxu1 %v8445_v20  ;;  %v9865_v20 = vld [vmem:[#allocation6 + $0xac] sm:$0xf0] }
 0xae7   : > { %v8485_v30 = vor.u32 %v9865_v20, %v8484_v34  ;;  %v5427_v34 = vsel %vm1197_vm12, %v8729_v46, 0  ;;  %v5949_v20 = vsel %vm1197_vm12, %v8937_v31, 0  ;;  %v8560_v46 = vld [vmem:[#allocation6 + $0x128] sm:$0xf]  ;;  %v9882_v31 = vld [vmem:[#allocation6 + $0x134] sm:$0xf0] }
 0xaea   : > { %4778 = vmatpush.bf16.msra.mxu1 %v8429_v43  ;;  %v8489_v43 = vor.u32 %v9863_v50, %v8486_v51  ;;  %v9964_v50 = vld [vmem:[#allocation6 + $0x3cc] sm:$0xf]  ;;  %v8918_v51 = vld [vmem:[#allocation6 + $0x3d8] sm:$0xf0] }
 0xaeb   : > { %v8921_v54 = vor.u32 %v9964_v50, %v8918_v51  ;;  %v9877_v50 = vld [vmem:[#allocation6 + $0x10c] sm:$0xf0]  ;;  %v8544_v51 = vld [vmem:[#allocation6 + $0x108] sm:$0xf] }
 0xaee   : > { %4779 = vmatpush.bf16.msra.mxu1 %v8413_v60  ;;  %v9944_v60 = vld [vmem:[#allocation6 + $0x32c] sm:$0xf] }
 0xaef   : > { %v8837_v36 = vor.u32 %v9944_v60, %v8834_v41  ;;  %v8680_v60 = vld [vmem:[#allocation6 + $0x208] sm:$0xf] }
 0xb4e   : > { %v4618_v28 = vpop.f32.mrf.mxu1 }
 0xb4f   : > { %v4619_v63 = vadd.f32 %v4618_v28, %v4596_v59  ;;  %v4908_v59 = vsel %vm1197_vm12, %v8525_v4, 0  ;;  %v4911_v28 = vsel %vm1197_vm12, %v8529_v38, 0  ;;  %v9956_v4 = vld [vmem:[#allocation6 + $0x38c] sm:$0xf]  ;;  %v8886_v38 = vld [vmem:[#allocation6 + $0x398] sm:$0xf0] }
 0xb50   : > { %v8889_v58 = vor.u32 %v9956_v4, %v8886_v38  ;;  %v10000_v4 = vld [vmem:[#allocation6 + $0x4ec] sm:$0xf]  ;;  %v9070_v38 = vld [vmem:[#allocation6 + $0x4f8] sm:$0x70] }
 0xb51   : > { %v12815_v62 = vpack.c.bf16 %v4619_v63, %v4619_v63  ;;  %v9868_v63 = vld [vmem:[#allocation6 + $0xcc] sm:$0xf] }
 0xb53   : > { %v4817_v44 = vunpack.c.l.b16 %v12815_v62  ;;  %8462 = vmatmul.msk.bf16.vlgmr.msra.gmra.mxu2 %vm4717_vm11, %v12815_v62  ;;  %8463 = vmatmul.msk.bf16.vlgmr.msrb.gmra.mxu1 %vm4717_vm11, %v12815_v62 }
 0xb54   : > { %4917 = vmatpush.bf16.msra.mxu2 %v4902_v26  ;;  %4930 = vmatpush.bf16.msrb.mxu1 %v4905_v10  ;;  %v8509_v26 = vor.u32 %v9870_v45, %v8508_v25  ;;  %v8513_v10 = vor.u32 %v9868_v63, %v8510_v3  ;;  %v5081_v45 = vsel %vm1197_vm12, %v8593_v6, 0  ;;  %v8577_v3 = vor.u32 %v9886_v39, %v8576_v56  ;;  %v8954_v6 = vld [vmem:[#allocation6 + $0x418] sm:$0xf0] }
 0xb55   : > { %v12824_v55 = vpack.c.b16 %v4817_v44, %v4817_v44  ;;  %v9864_v44 = vld [vmem:[#allocation6 + $0xac] sm:$0xf] }
 0xb56   : > { %v8497_v57 = vor.u32 %v9864_v44, %v8494_v35  ;;  %v9980_v35 = vld [vmem:[#allocation6 + $0x44c] sm:$0xf] }
 0xb57   : > { %v12827_v40 = vrot.slane %v12824_v55, 1  ;;  %v12830_v47 = vrot.slane %v12824_v55, 2  ;;  %v12841_v52 = vshrl.u32 %v12824_v55, 16 }
 0xb58   : > { %4918 = vmatpush.bf16.msra.mxu2 %v8501_v13  ;;  %4931 = vmatpush.bf16.msrb.mxu1 %v8505_v22  ;;  %v8712_v22 = vld [vmem:[#allocation6 + $0x248] sm:$0xf] }
 0xb59   : > { %8599 = vmatmul.msk.bf16.vlgmr.msra.gmra.mxu3 %vm4717_vm11, %v12827_v40  ;;  %8737 = vmatmul.msk.bf16.vlgmr.msrb.gmra.mxu0 %vm4717_vm11, %v12830_v47  ;;  %v12848_v7 = vrot.slane %v12841_v52, 1  ;;  %v12851_v13 = vrot.slane %v12841_v52, 2 }
 0xb5a   : > { %5302 = vmatpush.bf16.msra.mxu3 %v5257_v1  ;;  %5821 = vmatpush.bf16.msrb.mxu0 %v5776_v21  ;;  %v9862_v1 = vld [vmem:[#allocation6 + $0x94] sm:$0xf0]  ;;  %v9860_v21 = vld [vmem:[#allocation6 + $0x8c] sm:$0xf] }
 0xb5b   : > { %v8477_v32 = vor.u32 %v9862_v1, %v8476_v49  ;;  %v8481_v33 = vor.u32 %v9860_v21, %v8478_v14  ;;  %v8594_v21 = vld [vmem:[#allocation6 + $0x178] sm:$0x70]  ;;  %v9903_v14 = vld [vmem:[#allocation6 + $0x1e4] sm:$0xf] }
 0xb5c   : > { %4919 = vmatpush.bf16.msra.mxu2 %v8485_v30  ;;  %4932 = vmatpush.bf16.msrb.mxu1 %v8489_v43  ;;  %v8696_v30 = vld [vmem:[#allocation6 + $0x228] sm:$0xf]  ;;  %v8584_v43 = vld [vmem:[#allocation6 + $0x160] sm:$0xf] }
 0xb5d   : > { %v8585_v37 = vor.u32 %v9889_v0, %v8584_v43  ;;  %v8697_v41 = vor.u32 %v9914_v42, %v8696_v30  ;;  %v8654_v30 = vld [vmem:[#allocation6 + $0x1f0] sm:$0x70]  ;;  %v9930_v43 = vld [vmem:[#allocation6 + $0x2b4] sm:$0xf0] }
 0xb5e   : > { %5303 = vmatpush.bf16.msra.mxu3 %v8649_v17  ;;  %5822 = vmatpush.bf16.msrb.mxu0 %v8853_v15  ;;  %v9960_v17 = vld [vmem:[#allocation6 + $0x3ac] sm:$0xf]  ;;  %v8902_v15 = vld [vmem:[#allocation6 + $0x3b8] sm:$0xf0]  ;;  %v8657_v42 = vor.u32 %v9903_v14, %v8654_v30 }
 0xb5f   : > { %v5075_v25 = vsel %vm1197_vm12, %v8585_v37, 0  ;;  %v9972_v37 = vld [vmem:[#allocation6 + $0x40c] sm:$0xf] }
 0xb60   : > { %4920 = vmatpush.bf16.msra.mxu2 %v8469_v18  ;;  %4933 = vmatpush.bf16.msrb.mxu1 %v8473_v12  ;;  %v8905_v18 = vor.u32 %v9960_v17, %v8902_v15  ;;  %v9910_v12 = vld [vmem:[#allocation6 + $0x214] sm:$0xf0]  ;;  %v8748_v17 = vld [vmem:[#allocation6 + $0x288] sm:$0xf] }
 0xb61   : > { %v8681_v19 = vor.u32 %v9910_v12, %v8680_v60  ;;  %v9884_v60 = vld [vmem:[#allocation6 + $0x14c] sm:$0xf]  ;;  %v9954_v12 = vld [vmem:[#allocation6 + $0x374] sm:$0x70] }
 0xb62   : > { %5304 = vmatpush.bf16.msra.mxu3 %v8633_v2  ;;  %5823 = vmatpush.bf16.msrb.mxu0 %v8837_v36  ;;  %v9885_v2 = vld [vmem:[#allocation6 + $0x14c] sm:$0xf0]  ;;  %v8796_v36 = vld [vmem:[#allocation6 + $0x2e8] sm:$0xf] }
 0xb63   : > { %8464 = vmatmul.msk.bf16.vlgmr.msrb.gmra.mxu2 %vm4717_vm11, %v12815_v62  ;;  %8465 = vmatmul.msk.bf16.vlgmr.msra.gmra.mxu1 %vm4717_vm11, %v12815_v62  ;;  %v9918_v62 = vld [vmem:[#allocation6 + $0x254] sm:$0xf0]  ;;  %v8569_v63 = vor.u32 %v9885_v2, %v8568_v9  ;;  %v5251_v2 = vsel %vm1197_vm12, %v8657_v42, 0  ;;  %v9022_v42 = vld [vmem:[#allocation6 + $0x498] sm:$0xf0] }
 0xb64   : > { %4943 = vmatpush.bf16.msrb.mxu2 %v4908_v59  ;;  %4956 = vmatpush.bf16.msra.mxu1 %v4911_v28  ;;  %v8713_v11 = vor.u32 %v9918_v62, %v8712_v22  ;;  %v8797_v59 = vor.u32 %v9938_v48, %v8796_v36  ;;  %v9005_v28 = vor.u32 %v9984_v61, %v9002_v23  ;;  %v8986_v22 = vld [vmem:[#allocation6 + $0x458] sm:$0xf0]  ;;  %v9899_v36 = vld [vmem:[#allocation6 + $0x1c4] sm:$0xf]  ;;  %v8638_v48 = vld [vmem:[#allocation6 + $0x1d0] sm:$0xf0] }
 0xb65   : > { %v8989_v1 = vor.u32 %v9980_v35, %v8986_v22  ;;  %v8957_v23 = vor.u32 %v9972_v37, %v8954_v6  ;;  %v8641_v39 = vor.u32 %v9899_v36, %v8638_v48  ;;  %v8546_v35 = vld [vmem:[#allocation6 + $0x118] sm:$0xf0]  ;;  %v9891_v22 = vld [vmem:[#allocation6 + $0x184] sm:$0xf]  ;;  %v9970_v37 = vld [vmem:[#allocation6 + $0x3f4] sm:$0x70] }
 0xb66   : > { %5305 = vmatpush.bf16.msra.mxu3 %v8617_v8  ;;  %5824 = vmatpush.bf16.msrb.mxu0 %v8821_v16  ;;  %v8552_v8 = vld [vmem:[#allocation6 + $0x120] sm:$0xf]  ;;  %v9881_v16 = vld [vmem:[#allocation6 + $0x12c] sm:$0xf0]  ;;  %v5600_v27 = vsel %vm1197_vm12, %v8797_v59, 0  ;;  %v6121_v44 = vsel %vm1197_vm12, %v9005_v28, 0 }
 0xb67   : > { %v8553_v62 = vor.u32 %v9881_v16, %v8552_v8  ;;  %v9895_v59 = vld [vmem:[#allocation6 + $0x1a4] sm:$0xf]  ;;  %v8622_v28 = vld [vmem:[#allocation6 + $0x1b0] sm:$0xf0]  ;;  %v9950_v8 = vld [vmem:[#allocation6 + $0x354] sm:$0xf0] }
 0xb68   : > { %4944 = vmatpush.bf16.msrb.mxu2 %v8509_v26  ;;  %4957 = vmatpush.bf16.msra.mxu1 %v8513_v10  ;;  %v12866_v26 = vrot.slane %v12824_v55, 3  ;;  %v8780_v10 = vld [vmem:[#allocation6 + $0x2c8] sm:$0xf]  ;;  %v9878_v55 = vld [vmem:[#allocation6 + $0x114] sm:$0xf0] }
 0xb69   : > { %8666 = vmatmul.msk.bf16.vlgmr.msrb.gmra.mxu3 %vm4717_vm11, %v12848_v7  ;;  %8805 = vmatmul.msk.bf16.vlgmr.msra.gmra.mxu0 %vm4717_vm11, %v12851_v13  ;;  %v8781_v49 = vor.u32 %v9934_v24, %v8780_v10  ;;  %v8545_v29 = vor.u32 %v9878_v55, %v8544_v51  ;;  %v9054_v10 = vld [vmem:[#allocation6 + $0x4d8] sm:$0xf0]  ;;  %v9906_v51 = vld [vmem:[#allocation6 + $0x1f4] sm:$0x70]  ;;  %v8720_v55 = vld [vmem:[#allocation6 + $0x260] sm:$0xf] }
 0xb6a   : > { %5462 = vmatpush.bf16.msrb.mxu3 %v5427_v34  ;;  %5994 = vmatpush.bf16.msra.mxu0 %v5949_v20  ;;  %v8561_v34 = vor.u32 %v9882_v31, %v8560_v46  ;;  %v8536_v20 = vld [vmem:[#allocation6 + $0x100] sm:$0xf]  ;;  %v9996_v31 = vld [vmem:[#allocation6 + $0x4cc] sm:$0xf] }
 0xb6b   : > { %v8537_v0 = vor.u32 %v9877_v50, %v8536_v20  ;;  %v9057_v50 = vor.u32 %v9996_v31, %v9054_v10  ;;  %v9919_v31 = vld [vmem:[#allocation6 + $0x264] sm:$0xf] }
 0xb6c   : > { %4945 = vmatpush.bf16.msrb.mxu2 %v8493_v5  ;;  %4958 = vmatpush.bf16.msra.mxu1 %v8497_v57  ;;  %v8764_v5 = vld [vmem:[#allocation6 + $0x2a8] sm:$0xf]  ;;  %v9888_v57 = vld [vmem:[#allocation6 + $0x16c] sm:$0xf] }
 0xb6d   : > { %v8597_v53 = vor.u32 %v9888_v57, %v8594_v21  ;;  %v8765_v15 = vor.u32 %v9930_v43, %v8764_v5  ;;  %v9921_v5 = vld [vmem:[#allocation6 + $0x26c] sm:$0x70]  ;;  %v9946_v57 = vld [vmem:[#allocation6 + $0x334] sm:$0xf0] }
 0xb6e   : > { %5463 = vmatpush.bf16.msrb.mxu3 %v8713_v11  ;;  %5995 = vmatpush.bf16.msra.mxu0 %v8921_v54  ;;  %v9976_v11 = vld [vmem:[#allocation6 + $0x42c] sm:$0xf]  ;;  %v8970_v54 = vld [vmem:[#allocation6 + $0x438] sm:$0xf0]  ;;  %v8721_v43 = vor.u32 %v9921_v5, %v8720_v55  ;;  %v8884_v55 = vld [vmem:[#allocation6 + $0x388] sm:$0xf] }
 0xb6f   : > { %v5084_v9 = vsel %vm1197_vm12, %v8597_v53, 0  ;;  %v9988_v53 = vld [vmem:[#allocation6 + $0x48c] sm:$0xf]  ;;  %v9958_v5 = vld [vmem:[#allocation6 + $0x394] sm:$0xf0] }
 0xb70   : > { %4946 = vmatpush.bf16.msrb.mxu2 %v8477_v32  ;;  %4959 = vmatpush.bf16.msra.mxu1 %v8481_v33  ;;  %v8973_v32 = vor.u32 %v9976_v11, %v8970_v54  ;;  %v9926_v33 = vld [vmem:[#allocation6 + $0x294] sm:$0xf0] }
 0xb71   : > { %v8749_v61 = vor.u32 %v9926_v33, %v8748_v17  ;;  %v8644_v17 = vld [vmem:[#allocation6 + $0x1c8] sm:$0xf] }
 0xb72   : > { %5464 = vmatpush.bf16.msrb.mxu3 %v8697_v41  ;;  %5996 = vmatpush.bf16.msra.mxu0 %v8905_v18  ;;  %v8578_v41 = vld [vmem:[#allocation6 + $0x158] sm:$0xf0]  ;;  %v8864_v18 = vld [vmem:[#allocation6 + $0x368] sm:$0xf] }
 0xb73   : > { %8530 = vmatmul.msk.bf16.vlgmr.msra.gmra.mxu2 %vm4717_vm11, %v12841_v52  ;;  %8531 = vmatmul.msk.bf16.vlgmr.msrb.gmra.mxu1 %vm4717_vm11, %v12841_v52  ;;  %v8581_v56 = vor.u32 %v9884_v60, %v8578_v41  ;;  %v8932_v33 = vld [vmem:[#allocation6 + $0x3e8] sm:$0xf]  ;;  %v5421_v60 = vsel %vm1197_vm12, %v8721_v43, 0  ;;  %v8704_v41 = vld [vmem:[#allocation6 + $0x240] sm:$0xf] }
 0xb74   : > { %5090 = vmatpush.bf16.msra.mxu2 %v5075_v25  ;;  %5116 = vmatpush.bf16.msrb.mxu1 %v5081_v45  ;;  %v8865_v25 = vor.u32 %v9954_v12, %v8864_v18  ;;  %v9073_v45 = vor.u32 %v10000_v4, %v9070_v38  ;;  %v9917_v18 = vld [vmem:[#allocation6 + $0x24c] sm:$0xf0]  ;;  %v4601_v12 = vpop.permute.xlu2 %4600  ;;  %v9025_v38 = vor.u32 %v9988_v53, %v9022_v42  ;;  %v8772_v43 = vld [vmem:[#allocation6 + $0x2c0] sm:$0xf] }
 0xb75   : > { %v8705_v48 = vor.u32 %v9917_v18, %v8704_v41  ;;  %v9982_v41 = vld [vmem:[#allocation6 + $0x454] sm:$0xf0] }
 0xb76   : > { %5465 = vmatpush.bf16.msrb.mxu3 %v8681_v19  ;;  %5997 = vmatpush.bf16.msra.mxu0 %v8889_v58  ;;  %v9880_v19 = vld [vmem:[#allocation6 + $0x12c] sm:$0xf]  ;;  %v8562_v58 = vld [vmem:[#allocation6 + $0x138] sm:$0xf0]  ;;  %v5773_v16 = vsel %vm1197_vm12, %v8865_v25, 0  ;;  %v6299_v46 = vsel %vm1197_vm12, %v9073_v45, 0 }
 0xb77   : > { %v8565_v24 = vor.u32 %v9880_v19, %v8562_v58  ;;  %v8688_v25 = vld [vmem:[#allocation6 + $0x220] sm:$0xf]  ;;  %v9913_v45 = vld [vmem:[#allocation6 + $0x22c] sm:$0xf0]  ;;  %v8916_v19 = vld [vmem:[#allocation6 + $0x3c8] sm:$0xf] }
 0xb78   : > { %5091 = vmatpush.bf16.msra.mxu2 %v8569_v63  ;;  %5117 = vmatpush.bf16.msrb.mxu1 %v8577_v3  ;;  %v12881_v63 = vrot.slane %v12841_v52, 3  ;;  %v8848_v3 = vld [vmem:[#allocation6 + $0x348] sm:$0xf]  ;;  %v9966_v58 = vld [vmem:[#allocation6 + $0x3d4] sm:$0xf0] }
 0xb79   : > { %8669 = vmatmul.msk.bf16.vlgmr.msra.gmra.mxu3 %vm4717_vm11, %v12848_v7  ;;  %8873 = vmatmul.msk.bf16.vlgmr.msrb.gmra.mxu0 %vm4717_vm11, %v12866_v26  ;;  %v8849_v20 = vor.u32 %v9950_v8, %v8848_v3  ;;  %v8612_v3 = vld [vmem:[#allocation6 + $0x188] sm:$0xf]  ;;  %v9894_v8 = vld [vmem:[#allocation6 + $0x194] sm:$0xf0]  ;;  %v8917_v10 = vor.u32 %v9966_v58, %v8916_v19 }
 0xb7a   : > { %5635 = vmatpush.bf16.msra.mxu3 %v5600_v27  ;;  %6166 = vmatpush.bf16.msrb.mxu0 %v6121_v44  ;;  %v8625_v27 = vor.u32 %v9895_v59, %v8622_v28  ;;  %v9876_v44 = vld [vmem:[#allocation6 + $0x10c] sm:$0xf]  ;;  %v8689_v28 = vor.u32 %v9913_v45, %v8688_v25  ;;  %v8968_v25 = vld [vmem:[#allocation6 + $0x428] sm:$0xf]  ;;  %v9978_v45 = vld [vmem:[#allocation6 + $0x434] sm:$0xf0] }
 0xb7b   : > { %v8549_v21 = vor.u32 %v9876_v44, %v8546_v35  ;;  %v9937_v44 = vld [vmem:[#allocation6 + $0x2ec] sm:$0x70]  ;;  %v8900_v35 = vld [vmem:[#allocation6 + $0x3a8] sm:$0xf] }
 0xb7c   : > { %5092 = vmatpush.bf16.msra.mxu2 %v8553_v62  ;;  %5118 = vmatpush.bf16.msrb.mxu1 %v8561_v34  ;;  %v8832_v62 = vld [vmem:[#allocation6 + $0x328] sm:$0xf] }
 0xb7d   : > { %v8660_v34 = vld [vmem:[#allocation6 + $0x1e8] sm:$0xf]  ;;  %v8833_v11 = vor.u32 %v9946_v57, %v8832_v62  ;;  %v9915_v57 = vld [vmem:[#allocation6 + $0x244] sm:$0xf] }
 0xb7e   : > { %5636 = vmatpush.bf16.msra.mxu3 %v8781_v49  ;;  %6167 = vmatpush.bf16.msrb.mxu0 %v8989_v1  ;;  %v9992_v49 = vld [vmem:[#allocation6 + $0x4ac] sm:$0xf]  ;;  %v9038_v1 = vld [vmem:[#allocation6 + $0x4b8] sm:$0xf0]  ;;  %v8661_v30 = vor.u32 %v9906_v51, %v8660_v34 }
 0xb7f   : > { %v9041_v54 = vor.u32 %v9992_v49, %v9038_v1  ;;  %v8706_v49 = vld [vmem:[#allocation6 + $0x250] sm:$0xf0]  ;;  %v9000_v1 = vld [vmem:[#allocation6 + $0x468] sm:$0xf] }
 0xb80   : > { %5093 = vmatpush.bf16.msra.mxu2 %v8537_v0  ;;  %5119 = vmatpush.bf16.msrb.mxu1 %v8545_v29  ;;  %v8816_v0 = vld [vmem:[#allocation6 + $0x308] sm:$0xf]  ;;  %v9942_v29 = vld [vmem:[#allocation6 + $0x314] sm:$0xf0]  ;;  %v5254_v6 = vsel %vm1197_vm12, %v8661_v30, 0  ;;  %v8709_v53 = vor.u32 %v9915_v57, %v8706_v49 }
 0xb81   : > { %v8817_v4 = vor.u32 %v9942_v29, %v8816_v0  ;;  %v9998_v57 = vld [vmem:[#allocation6 + $0x4d4] sm:$0xf0] }
 0xb82   : > { %5637 = vmatpush.bf16.msra.mxu3 %v8765_v15  ;;  %6168 = vmatpush.bf16.msrb.mxu0 %v8973_v32  ;;  %v4620_v15 = vpop.f32.mrf.mxu1  ;;  %v9902_v32 = vld [vmem:[#allocation6 + $0x1d4] sm:$0xf0] }
 0xb83   : > { %8532 = vmatmul.msk.bf16.vlgmr.msrb.gmra.mxu2 %vm4717_vm11, %v12841_v52  ;;  %8533 = vmatmul.msk.bf16.vlgmr.msra.gmra.mxu1 %vm4717_vm11, %v12841_v52  ;;  %v8606_v52 = vld [vmem:[#allocation6 + $0x190] sm:$0xf0]  ;;  %v8645_v36 = vor.u32 %v9902_v32, %v8644_v17  ;;  %v9911_v17 = vld [vmem:[#allocation6 + $0x224] sm:$0xf]  ;;  %v8756_v32 = vld [vmem:[#allocation6 + $0x2a0] sm:$0xf] }
 0xb84   : > { %5129 = vmatpush.bf16.msrb.mxu2 %v5084_v9  ;;  %5276 = vmatpush.bf16.msra.mxu1 %v5251_v2  ;;  %v8609_v14 = vor.u32 %v9891_v22, %v8606_v52  ;;  %v4621_v9 = vadd.f32 %v4620_v15, %v4601_v12  ;;  %v8933_v2 = vor.u32 %v9970_v37, %v8932_v33  ;;  %v9962_v22 = vld [vmem:[#allocation6 + $0x3b4] sm:$0xf0]  ;;  %v8690_v15 = vld [vmem:[#allocation6 + $0x230] sm:$0xf0]  ;;  %v9929_v33 = vld [vmem:[#allocation6 + $0x2ac] sm:$0xf0] }
 0xb85   : > { %v8613_v52 = vor.u32 %v9894_v8, %v8612_v3  ;;  %v8757_v18 = vor.u32 %v9929_v33, %v8756_v32  ;;  %v9907_v12 = vld [vmem:[#allocation6 + $0x204] sm:$0xf]  ;;  %v8952_v3 = vld [vmem:[#allocation6 + $0x408] sm:$0xf]  ;;  %v9974_v8 = vld [vmem:[#allocation6 + $0x414] sm:$0xf0] }
 0xb86   : > { %5638 = vmatpush.bf16.msra.mxu3 %v8749_v61  ;;  %6169 = vmatpush.bf16.msrb.mxu0 %v8957_v23  ;;  %v8628_v61 = vld [vmem:[#allocation6 + $0x1a8] sm:$0xf]  ;;  %v9898_v23 = vld [vmem:[#allocation6 + $0x1b4] sm:$0xf0] }
 0xb87   : > { %v8629_v59 = vor.u32 %v9898_v23, %v8628_v61  ;;  %v8856_v61 = vld [vmem:[#allocation6 + $0x360] sm:$0xf]  ;;  %v9953_v23 = vld [vmem:[#allocation6 + $0x36c] sm:$0x70] }
 0xb88   : > { %5130 = vmatpush.bf16.msrb.mxu2 %v8581_v56  ;;  %5277 = vmatpush.bf16.msra.mxu1 %v8641_v39  ;;  %v12895_v56 = vpack.c.bf16 %v4621_v9, %v4621_v9  ;;  %v5946_v39 = vsel %vm1197_vm12, %v8933_v2, 0  ;;  %v9925_v9 = vld [vmem:[#allocation6 + $0x28c] sm:$0xf0]  ;;  %v9935_v2 = vld [vmem:[#allocation6 + $0x2e4] sm:$0xf] }
 0xb89   : > { %8736 = vmatmul.msk.bf16.vlgmr.msrb.gmra.mxu3 %vm4717_vm11, %v12830_v47  ;;  %8941 = vmatmul.msk.bf16.vlgmr.msra.gmra.mxu0 %vm4717_vm11, %v12881_v63 }
 0xb8a   : > { %5808 = vmatpush.bf16.msrb.mxu3 %v5773_v16  ;;  %6344 = vmatpush.bf16.msra.mxu0 %v6299_v46  ;;  %v8672_v16 = vld [vmem:[#allocation6 + $0x200] sm:$0xf]  ;;  %v9909_v46 = vld [vmem:[#allocation6 + $0x20c] sm:$0xf0]  ;;  %v6205_v51 = vunpack.c.l.b16 %v12895_v56 }
 0xb8b   : > { %v8673_v62 = vor.u32 %v9909_v46, %v8672_v16  ;;  %v9931_v16 = vld [vmem:[#allocation6 + $0x2c4] sm:$0xf]  ;;  %v8774_v46 = vld [vmem:[#allocation6 + $0x2d0] sm:$0xf0] }
 0xb8c   : > { %5131 = vmatpush.bf16.msrb.mxu2 %v8565_v24  ;;  %5278 = vmatpush.bf16.msra.mxu1 %v8625_v27  ;;  %v8722_v24 = vld [vmem:[#allocation6 + $0x270] sm:$0x70]  ;;  %v8788_v27 = vld [vmem:[#allocation6 + $0x2e0] sm:$0xf]  ;;  %v6206_v0 = vpack.c.b16 %v6205_v51, %v6205_v51 }
 0xb8d   : > { %v8725_v34 = vor.u32 %v9919_v31, %v8722_v24  ;;  %v9068_v31 = vld [vmem:[#allocation6 + $0x4e8] sm:$0xf]  ;;  %v8824_v51 = vld [vmem:[#allocation6 + $0x320] sm:$0xf] }
 0xb8e   : > { %5809 = vmatpush.bf16.msrb.mxu3 %v8849_v20  ;;  %6345 = vmatpush.bf16.msra.mxu0 %v9057_v50  ;;  %v8789_v20 = vor.u32 %v9937_v44, %v8788_v27  ;;  %v8901_v50 = vor.u32 %v9962_v22, %v8900_v35  ;;  %v12909_v37 = vshrl.u32 %v6206_v0, 16  ;;  %v8840_v44 = vld [vmem:[#allocation6 + $0x340] sm:$0xf]  ;;  %v9949_v35 = vld [vmem:[#allocation6 + $0x34c] sm:$0xf0]  ;;  %v8953_v22 = vor.u32 %v9974_v8, %v8952_v3 }
 0xb8f   : > { %v8924_v0 = vld [vmem:[#allocation6 + $0x3e0] sm:$0xf]  ;;  %v9967_v8 = vld [vmem:[#allocation6 + $0x3e4] sm:$0xf] }
 0xb90   : > { %5132 = vmatpush.bf16.msrb.mxu2 %v8549_v21  ;;  %5279 = vmatpush.bf16.msra.mxu1 %v8609_v14  ;;  %v9986_v21 = vld [vmem:[#allocation6 + $0x474] sm:$0x70]  ;;  %v5424_v14 = vsel %vm1197_vm12, %v8725_v34, 0  ;;  %v5594_v30 = vsel %vm1197_vm12, %v8789_v20, 0  ;;  %v8841_v34 = vor.u32 %v9949_v35, %v8840_v44  ;;  %v9927_v20 = vld [vmem:[#allocation6 + $0x2a4] sm:$0xf] }
 0xb91   : > { %v9001_v29 = vor.u32 %v9986_v21, %v9000_v1  ;;  %v9923_v1 = vld [vmem:[#allocation6 + $0x284] sm:$0xf]  ;;  %v8742_v21 = vld [vmem:[#allocation6 + $0x290] sm:$0xf0]  ;;  %v8876_v3 = vld [vmem:[#allocation6 + $0x380] sm:$0xf] }
 0xb92   : > { %5810 = vmatpush.bf16.msrb.mxu3 %v8833_v11  ;;  %6346 = vmatpush.bf16.msra.mxu0 %v9041_v54  ;;  %v9933_v11 = vld [vmem:[#allocation6 + $0x2cc] sm:$0xf0]  ;;  %v8885_v54 = vor.u32 %v9958_v5, %v8884_v55  ;;  %v9052_v5 = vld [vmem:[#allocation6 + $0x4c8] sm:$0xf] }
 0xb93   : > { %8598 = vmatmul.msk.bf16.vlgmr.msra.gmra.mxu2 %vm4717_vm11, %v12827_v40  ;;  %8600 = vmatmul.msk.bf16.vlgmr.msrb.gmra.mxu1 %vm4717_vm11, %v12827_v40  ;;  %v8773_v42 = vor.u32 %v9933_v11, %v8772_v43  ;;  %v9945_v55 = vld [vmem:[#allocation6 + $0x32c] sm:$0xf0]  ;;  %v9951_v11 = vld [vmem:[#allocation6 + $0x364] sm:$0xf] }
 0xb94   : > { %5289 = vmatpush.bf16.msra.mxu2 %v5254_v6  ;;  %5436 = vmatpush.bf16.msrb.mxu1 %v5421_v60  ;;  %v6118_v6 = vsel %vm1197_vm12, %v9001_v29, 0  ;;  %v8984_v60 = vld [vmem:[#allocation6 + $0x448] sm:$0xf]  ;;  %v9941_v43 = vld [vmem:[#allocation6 + $0x30c] sm:$0xf0] }
 0xb95   : > { %v9969_v29 = vld [vmem:[#allocation6 + $0x3ec] sm:$0x70] }
 0xb96   : > { %5811 = vmatpush.bf16.msrb.mxu3 %v8817_v4  ;;  %6347 = vmatpush.bf16.msra.mxu0 %v9025_v38  ;;  %v8674_v4 = vld [vmem:[#allocation6 + $0x210] sm:$0xf0]  ;;  %v8740_v38 = vld [vmem:[#allocation6 + $0x280] sm:$0xf] }
 0xb97   : > { %v8741_v19 = vor.u32 %v9925_v9, %v8740_v38  ;;  %v8842_v38 = vld [vmem:[#allocation6 + $0x350] sm:$0xf0]  ;;  %v8908_v9 = vld [vmem:[#allocation6 + $0x3c0] sm:$0xf] }
 0xb98   : > { %5290 = vmatpush.bf16.msra.mxu2 %v8645_v36  ;;  %5437 = vmatpush.bf16.msrb.mxu1 %v8705_v48  ;;  %v8985_v36 = vor.u32 %v9982_v41, %v8984_v60  ;;  %v8790_v48 = vld [vmem:[#allocation6 + $0x2f0] sm:$0x70]  ;;  %v9020_v41 = vld [vmem:[#allocation6 + $0x488] sm:$0xf] }
 0xb99   : > { %8804 = vmatmul.msk.bf16.vlgmr.msra.gmra.mxu3 %vm4717_vm11, %v12851_v13  ;;  %9009 = vmatmul.msk.bf16.vlgmr.msrb.gmra.mxu0 %vm4717_vm11, %v12895_v56  ;;  %v8793_v58 = vor.u32 %v9935_v2, %v8790_v48  ;;  %v9965_v2 = vld [vmem:[#allocation6 + $0x3cc] sm:$0xf0] }
 0xb9a   : > { %5981 = vmatpush.bf16.msra.mxu3 %v5946_v39  ;;  %v8677_v39 = vor.u32 %v9907_v12, %v8674_v4  ;;  %v9947_v4 = vld [vmem:[#allocation6 + $0x344] sm:$0xf] }
 0xb9b   : > { %v5597_v24 = vsel %vm1197_vm12, %v8793_v58, 0  ;;  %v8845_v48 = vor.u32 %v9947_v4, %v8842_v38  ;;  %v8810_v58 = vld [vmem:[#allocation6 + $0x310] sm:$0xf0] }
 0xb9c   : > { %5291 = vmatpush.bf16.msra.mxu2 %v8629_v59  ;;  %5438 = vmatpush.bf16.msrb.mxu1 %v8689_v28  ;;  %v8857_v59 = vor.u32 %v9953_v23, %v8856_v61  ;;  %v8969_v28 = vor.u32 %v9978_v45, %v8968_v25  ;;  %v8909_v61 = vor.u32 %v9965_v2, %v8908_v9  ;;  %v9943_v23 = vld [vmem:[#allocation6 + $0x324] sm:$0xf]  ;;  %v8826_v25 = vld [vmem:[#allocation6 + $0x330] sm:$0xf0]  ;;  %v8892_v45 = vld [vmem:[#allocation6 + $0x3a0] sm:$0xf] }
 0xb9d   : > { %v9979_v2 = vld [vmem:[#allocation6 + $0x444] sm:$0xf] }
 0xb9e   : > { %5982 = vmatpush.bf16.msra.mxu3 %v8917_v10  ;;  %v10002_v10 = vld [vmem:[#allocation6 + $0x4f4] sm:$0x70]  ;;  %v5767_v27 = vsel %vm1197_vm12, %v8857_v59, 0  ;;  %v8829_v59 = vor.u32 %v9943_v23, %v8826_v25 }
 0xba0   : > { %5292 = vmatpush.bf16.msra.mxu2 %v8613_v52  ;;  %5439 = vmatpush.bf16.msrb.mxu1 %v8673_v62  ;;  %v9069_v52 = vor.u32 %v10002_v10, %v9068_v31  ;;  %v8777_v62 = vor.u32 %v9931_v16, %v8774_v46  ;;  %v8926_v16 = vld [vmem:[#allocation6 + $0x3f0] sm:$0x70]  ;;  %v8992_v46 = vld [vmem:[#allocation6 + $0x460] sm:$0xf]  ;;  %v9985_v31 = vld [vmem:[#allocation6 + $0x46c] sm:$0x70] }
 0xba1   : > { %v8993_v44 = vor.u32 %v9985_v31, %v8992_v46  ;;  %v9971_v31 = vld [vmem:[#allocation6 + $0x404] sm:$0xf] }
 0xba2   : > { %5983 = vmatpush.bf16.msra.mxu3 %v8901_v50  ;;  %v8758_v50 = vld [vmem:[#allocation6 + $0x2b0] sm:$0xf0]  ;;  %v6296_v49 = vsel %vm1197_vm12, %v9069_v52, 0 }
 0xba3   : > { %8601 = vmatmul.msk.bf16.vlgmr.msrb.gmra.mxu2 %vm4717_vm11, %v12827_v40  ;;  %8667 = vmatmul.msk.bf16.vlgmr.msra.gmra.mxu1 %vm4717_vm11, %v12848_v7  ;;  %v8693_v40 = vor.u32 %v9911_v17, %v8690_v15  ;;  %v9036_v17 = vld [vmem:[#allocation6 + $0x4a8] sm:$0xf]  ;;  %v9994_v15 = vld [vmem:[#allocation6 + $0x4b4] sm:$0xf0]  ;;  %v6112_v52 = vsel %vm1197_vm12, %v8993_v44, 0 }
 0xba4   : > { %5449 = vmatpush.bf16.msrb.mxu2 %v5424_v14  ;;  %5609 = vmatpush.bf16.msra.mxu1 %v5594_v30  ;;  %v8825_v14 = vor.u32 %v9945_v55, %v8824_v51  ;;  %v8808_v30 = vld [vmem:[#allocation6 + $0x300] sm:$0xf]  ;;  %v9037_v60 = vor.u32 %v9994_v15, %v9036_v17  ;;  %v8994_v17 = vld [vmem:[#allocation6 + $0x470] sm:$0x70]  ;;  %v9989_v44 = vld [vmem:[#allocation6 + $0x48c] sm:$0xf0] }
 0xba5   : > { %v8809_v32 = vor.u32 %v9941_v43, %v8808_v30  ;;  %v9955_v43 = vld [vmem:[#allocation6 + $0x384] sm:$0xf]  ;;  %v9060_v15 = vld [vmem:[#allocation6 + $0x4e0] sm:$0xf] }
 0xba6   : > { %5984 = vmatpush.bf16.msra.mxu3 %v8885_v54  ;;  %v8858_v54 = vld [vmem:[#allocation6 + $0x370] sm:$0x70] }
 0xba7   : > { %v8861_v33 = vor.u32 %v9951_v11, %v8858_v54 }
 0xba8   : > { %5450 = vmatpush.bf16.msrb.mxu2 %v8709_v53  ;;  %5610 = vmatpush.bf16.msra.mxu1 %v8773_v42  ;;  %v9053_v53 = vor.u32 %v9998_v57, %v9052_v5  ;;  %v8745_v42 = vor.u32 %v9923_v1, %v8742_v21  ;;  %v9959_v5 = vld [vmem:[#allocation6 + $0x3a4] sm:$0xf]  ;;  %v8894_v57 = vld [vmem:[#allocation6 + $0x3b0] sm:$0xf0]  ;;  %v8960_v1 = vld [vmem:[#allocation6 + $0x420] sm:$0xf] }
 0xba9   : > { %8872 = vmatmul.msk.bf16.vlgmr.msrb.gmra.mxu3 %vm4717_vm11, %v12866_v26  ;;  %9077 = vmatmul.msk.bf16.vlgmr.msra.gmra.mxu0 %vm4717_vm11, %v12909_v37  ;;  %v9977_v21 = vld [vmem:[#allocation6 + $0x42c] sm:$0xf0]  ;;  %v8897_v54 = vor.u32 %v9959_v5, %v8894_v57 }
 0xbaa   : > { %6153 = vmatpush.bf16.msrb.mxu3 %v6118_v6  ;;  %v8925_v6 = vor.u32 %v9969_v29, %v8924_v0  ;;  %v8961_v0 = vor.u32 %v9977_v21, %v8960_v1  ;;  %v8944_v29 = vld [vmem:[#allocation6 + $0x400] sm:$0xf]  ;;  %v9046_v1 = vld [vmem:[#allocation6 + $0x4d0] sm:$0xf0] }
 0xbac   : > { %5451 = vmatpush.bf16.msrb.mxu2 %v8693_v40  ;;  %5611 = vmatpush.bf16.msra.mxu1 %v8757_v18  ;;  %v9990_v40 = vld [vmem:[#allocation6 + $0x494] sm:$0xf0]  ;;  %v5770_v18 = vsel %vm1197_vm12, %v8861_v33, 0  ;;  %v5940_v12 = vsel %vm1197_vm12, %v8925_v6, 0 }
 0xbae   : > { %6154 = vmatpush.bf16.msrb.mxu3 %v8985_v36  ;;  %v9021_v36 = vor.u32 %v9990_v40, %v9020_v41 }
 0xbb0   : > { %5452 = vmatpush.bf16.msrb.mxu2 %v8677_v39  ;;  %5612 = vmatpush.bf16.msra.mxu1 %v8741_v19  ;;  %v9961_v39 = vld [vmem:[#allocation6 + $0x3ac] sm:$0xf0]  ;;  %v9939_v19 = vld [vmem:[#allocation6 + $0x304] sm:$0xf] }
 0xbb1   : > { %v8813_v10 = vor.u32 %v9939_v19, %v8810_v58  ;;  %v8962_v19 = vld [vmem:[#allocation6 + $0x430] sm:$0xf0]  ;;  %v9028_v58 = vld [vmem:[#allocation6 + $0x4a0] sm:$0xf] }
 0xbb2   : > { %6155 = vmatpush.bf16.msrb.mxu3 %v8969_v28  ;;  %v8893_v28 = vor.u32 %v9961_v39, %v8892_v45  ;;  %v9975_v39 = vld [vmem:[#allocation6 + $0x424] sm:$0xf] }
 0xbb3   : > { %8668 = vmatmul.msk.bf16.vlgmr.msra.gmra.mxu2 %vm4717_vm11, %v12848_v7  ;;  %8734 = vmatmul.msk.bf16.vlgmr.msrb.gmra.mxu1 %vm4717_vm11, %v12830_v47  ;;  %v8761_v7 = vor.u32 %v9927_v20, %v8758_v50  ;;  %v8976_v20 = vld [vmem:[#allocation6 + $0x440] sm:$0xf]  ;;  %v9981_v50 = vld [vmem:[#allocation6 + $0x44c] sm:$0xf0] }
 0xbb4   : > { %5622 = vmatpush.bf16.msra.mxu2 %v5597_v24  ;;  %5782 = vmatpush.bf16.msrb.mxu1 %v5767_v27  ;;  %v8929_v27 = vor.u32 %v9967_v8, %v8926_v16  ;;  %v8977_v55 = vor.u32 %v9981_v50, %v8976_v20 }
 0xbb6   : > { %6156 = vmatpush.bf16.msrb.mxu3 %v8953_v22  ;;  %v5943_v22 = vsel %vm1197_vm12, %v8929_v27, 0  ;;  %v9012_v27 = vld [vmem:[#allocation6 + $0x480] sm:$0xf] }
 0xbb7   : > { %v9013_v20 = vor.u32 %v9989_v44, %v9012_v27 }
 0xbb8   : > { %5623 = vmatpush.bf16.msra.mxu2 %v8777_v62  ;;  %5783 = vmatpush.bf16.msrb.mxu1 %v8841_v34  ;;  %v9963_v62 = vld [vmem:[#allocation6 + $0x3c4] sm:$0xf]  ;;  %v8910_v34 = vld [vmem:[#allocation6 + $0x3d0] sm:$0xf0] }
 0xbb9   : > { %8940 = vmatmul.msk.bf16.vlgmr.msra.gmra.mxu3 %vm4717_vm11, %v12881_v63  ;;  %v8913_v51 = vor.u32 %v9963_v62, %v8910_v34 }
 0xbba   : > { %6331 = vmatpush.bf16.msra.mxu3 %v6296_v49 }
 0xbbc   : > { %5624 = vmatpush.bf16.msra.mxu2 %v8761_v7  ;;  %5784 = vmatpush.bf16.msrb.mxu1 %v8825_v14 }
 0xbbe   : > { %6332 = vmatpush.bf16.msra.mxu3 %v9053_v53  ;;  %v9973_v53 = vld [vmem:[#allocation6 + $0x40c] sm:$0xf0] }
 0xbc0   : > { %5625 = vmatpush.bf16.msra.mxu2 %v8745_v42  ;;  %5785 = vmatpush.bf16.msrb.mxu1 %v8809_v32  ;;  %v9983_v42 = vld [vmem:[#allocation6 + $0x464] sm:$0xf]  ;;  %v10001_v32 = vld [vmem:[#allocation6 + $0x4ec] sm:$0x70] }
 0xbc1   : > { %v8997_v41 = vor.u32 %v9983_v42, %v8994_v17  ;;  %v9061_v40 = vor.u32 %v10001_v32, %v9060_v15  ;;  %v9987_v42 = vld [vmem:[#allocation6 + $0x484] sm:$0xf]  ;;  %v9014_v17 = vld [vmem:[#allocation6 + $0x490] sm:$0xf0] }
 0xbc2   : > { %6333 = vmatpush.bf16.msra.mxu3 %v9037_v60  ;;  %v8945_v60 = vor.u32 %v9973_v53, %v8944_v29  ;;  %v9017_v15 = vor.u32 %v9987_v42, %v9014_v17 }
 0xbc3   : > { %8735 = vmatmul.msk.bf16.vlgmr.msrb.gmra.mxu2 %vm4717_vm11, %v12830_v47  ;;  %8802 = vmatmul.msk.bf16.vlgmr.msra.gmra.mxu1 %vm4717_vm11, %v12851_v13  ;;  %v9957_v47 = vld [vmem:[#allocation6 + $0x38c] sm:$0xf0]  ;;  %v6115_v38 = vsel %vm1197_vm12, %v8997_v41, 0  ;;  %v6290_v9 = vsel %vm1197_vm12, %v9061_v40, 0  ;;  %v1093_v40 = vld [vmem:[%s13237_s22] sm:$0xf] }
 0xbc4   : > { %5795 = vmatpush.bf16.msrb.mxu2 %v5770_v18  ;;  %5955 = vmatpush.bf16.msra.mxu1 %v5940_v12  ;;  %v8877_v24 = vor.u32 %v9957_v47, %v8876_v3 }
 0xbc6   : > { %6334 = vmatpush.bf16.msra.mxu3 %v9021_v36  ;;  %v8978_v36 = vld [vmem:[#allocation6 + $0x450] sm:$0xf0] }
 0xbc7   : > { %v8981_v25 = vor.u32 %v9979_v2, %v8978_v36 }
 0xbc8   : > { %5796 = vmatpush.bf16.msrb.mxu2 %v8845_v48  ;;  %5956 = vmatpush.bf16.msra.mxu1 %v8909_v61  ;;  %v9044_v48 = vld [vmem:[#allocation6 + $0x4c0] sm:$0xf]  ;;  %v9997_v61 = vld [vmem:[#allocation6 + $0x4cc] sm:$0xf0] }
 0xbc9   : > { %9008 = vmatmul.msk.bf16.vlgmr.msrb.gmra.mxu3 %vm4717_vm11, %v12895_v56  ;;  %v9045_v45 = vor.u32 %v9997_v61, %v9044_v48 }
 0xbcc   : > { %5797 = vmatpush.bf16.msrb.mxu2 %v8829_v59  ;;  %5957 = vmatpush.bf16.msra.mxu1 %v8893_v28  ;;  %v9993_v59 = vld [vmem:[#allocation6 + $0x4ac] sm:$0xf0] }
 0xbcd   : > { %v9029_v46 = vor.u32 %v9993_v59, %v9028_v58 }
 0xbd0   : > { %v4755_v35 = vpop.f32.mrf.mxu1  ;;  %5798 = vmatpush.bf16.msrb.mxu2 %v8813_v10  ;;  %5958 = vmatpush.bf16.msra.mxu1 %v8877_v24  ;;  %v8946_v24 = vld [vmem:[#allocation6 + $0x410] sm:$0xf0] }
 0xbd1   : > { %v4789_v49 = vrot.slane %v4755_v35, 7  ;;  %v8949_v34 = vor.u32 %v9971_v31, %v8946_v24 }
 0xbd3   : > { %8803 = vmatmul.msk.bf16.vlgmr.msra.gmra.mxu2 %vm4717_vm11, %v12851_v13  ;;  %8870 = vmatmul.msk.bf16.vlgmr.msrb.gmra.mxu1 %vm4717_vm11, %v12866_v26  ;;  %v8878_v13 = vld [vmem:[#allocation6 + $0x390] sm:$0xf0] }
 0xbd4   : > { %5968 = vmatpush.bf16.msra.mxu2 %v5943_v22  ;;  %6127 = vmatpush.bf16.msrb.mxu1 %v6112_v52  ;;  %v8881_v33 = vor.u32 %v9955_v43, %v8878_v13  ;;  %v9999_v22 = vld [vmem:[#allocation6 + $0x4e4] sm:$0xf]  ;;  %v9062_v52 = vld [vmem:[#allocation6 + $0x4f0] sm:$0x70] }
 0xbd5   : > { %v9065_v50 = vor.u32 %v9999_v22, %v9062_v52  ;;  %v9991_v43 = vld [vmem:[#allocation6 + $0x4a4] sm:$0xf]  ;;  %v9030_v13 = vld [vmem:[#allocation6 + $0x4b0] sm:$0xf0] }
 0xbd6   : > { %v4742_v7 = vpop.f32.mrf.mxu2  ;;  %v12939_v14 = vpop.f32.mrf.mxu0  ;;  %v9033_v53 = vor.u32 %v9991_v43, %v9030_v13 }
 0xbd7   : > { %v4793_v30 = vsel %vm4792_vm13, %v4742_v7, %v4789_v49  ;;  %v6293_v57 = vsel %vm1197_vm12, %v9065_v50, 0  ;;  %v9995_v49 = vld [vmem:[#allocation6 + $0x4c4] sm:$0xf] }
 0xbd8   : > { %v4757_v11 = vpop.f32.mrf.mxu1  ;;  %5969 = vmatpush.bf16.msra.mxu2 %v8913_v51  ;;  %6128 = vmatpush.bf16.msrb.mxu1 %v8977_v55  ;;  %v9049_v7 = vor.u32 %v9995_v49, %v9046_v1 }
 0xbd9   : > { %9076 = vmatmul.msk.bf16.vlgmr.msra.gmra.mxu3 %vm4717_vm11, %v12909_v37 }
 0xbdc   : > { %v12944_v6 = vpop.f32.mrf.mxu3  ;;  %5970 = vmatpush.bf16.msra.mxu2 %v8897_v54  ;;  %6129 = vmatpush.bf16.msrb.mxu1 %v8961_v0 }
 0xbde   : > { %v4744_v18 = vpop.f32.mrf.mxu2  ;;  %v5482_v12 = vpop.f32.mrf.mxu0 }
 0xbe0   : > { %v4781_v4 = vpop.f32.mrf.mxu1  ;;  %5971 = vmatpush.bf16.msra.mxu2 %v8881_v33  ;;  %6130 = vmatpush.bf16.msrb.mxu1 %v8945_v60 }
 0xbe1   : > { %v4791_v47 = vrot.slane %v4781_v4, 5 }
 0xbe3   : > { %8871 = vmatmul.msk.bf16.vlgmr.msrb.gmra.mxu2 %vm4717_vm11, %v12866_v26  ;;  %8938 = vmatmul.msk.bf16.vlgmr.msra.gmra.mxu1 %vm4717_vm11, %v12881_v63  ;;  %v8965_v26 = vor.u32 %v9975_v39, %v8962_v19 }
 0xbe4   : > { %v5110_v23 = vpop.f32.mrf.mxu3  ;;  %6140 = vmatpush.bf16.msrb.mxu2 %v6115_v38  ;;  %6305 = vmatpush.bf16.msra.mxu1 %v6290_v9 }
 0xbe5   : > { %v5490_v23 = vrot.slane %v12939_v14, 5 }
 0xbe6   : > { %v4768_v28 = vpop.f32.mrf.mxu2  ;;  %v12952_v3 = vpop.f32.mrf.mxu0 }
 0xbe7   : > { %v4790_v8 = vrot.slane %v4768_v28, 6  ;;  %v5142_v28 = vrot.slane %v12944_v6, 7  ;;  %v5663_v14 = vrot.slane %v12952_v3, 5 }
 0xbe8   : > { %v4783_v16 = vpop.f32.mrf.mxu1  ;;  %6141 = vmatpush.bf16.msrb.mxu2 %v8981_v25  ;;  %6306 = vmatpush.bf16.msra.mxu1 %v9045_v45 }
 0xbe9   : > { %v4795_v10 = vsel %vm4794_vm14, %v4790_v8, %v4791_v47 }
 0xbea   : > { %v4796_v35 = vsel %vm1194_vm10, %v4793_v30, %v4795_v10 }
 0xbeb   : > { %v4798_v2 = vadd.f32 %v4796_v35, %v1093_v40 }
 0xbec   : > { %v12956_v62 = vpop.f32.mrf.mxu3  ;;  %6142 = vmatpush.bf16.msrb.mxu2 %v8965_v26  ;;  %6307 = vmatpush.bf16.msra.mxu1 %v9029_v46 }
 0xbee   : > { %v4770_v51 = vpop.f32.mrf.mxu2  ;;  %v5655_v55 = vpop.f32.mrf.mxu0 }
 0xbf0   : > { %v4935_v5 = vpop.f32.mrf.mxu1  ;;  %6143 = vmatpush.bf16.msrb.mxu2 %v8949_v34  ;;  %6308 = vmatpush.bf16.msra.mxu1 %v9013_v20 }
 0xbf1   : > { %v4969_v30 = vrot.slane %v4935_v5, 7 }
 0xbf3   : > { %8939 = vmatmul.msk.bf16.vlgmr.msra.gmra.mxu2 %vm4717_vm11, %v12881_v63  ;;  %9006 = vmatmul.msk.bf16.vlgmr.msrb.gmra.mxu1 %vm4717_vm11, %v12895_v56 }
 0xbf4   : > { %v5270_v21 = vpop.f32.mrf.mxu3  ;;  %6318 = vmatpush.bf16.msra.mxu2 %v6293_v57 }
 0xbf6   : > { %v4922_v11 = vpop.f32.mrf.mxu2  ;;  %v12963_v54 = vpop.f32.mrf.mxu0 }
 0xbf7   : > { %v4972_v0 = vsel %vm4792_vm13, %v4922_v11, %v4969_v30  ;;  %v5836_v57 = vrot.slane %v12963_v54, 5 }
 0xbf8   : > { %v4937_v29 = vpop.f32.mrf.mxu1  ;;  %6319 = vmatpush.bf16.msra.mxu2 %v9049_v7 }
 0xbfc   : > { %v12966_v63 = vpop.f32.mrf.mxu3  ;;  %6320 = vmatpush.bf16.msra.mxu2 %v9033_v53 }
 0xbfd   : > { %v5317_v13 = vrot.slane %v12966_v63, 5 }
 0xbfe   : > { %v4924_v32 = vpop.f32.mrf.mxu2  ;;  %v5828_v33 = vpop.f32.mrf.mxu0 }
 0xc00   : > { %v4961_v60 = vpop.f32.mrf.mxu1  ;;  %6321 = vmatpush.bf16.msra.mxu2 %v9017_v15 }
 0xc01   : > { %v4971_v4 = vrot.slane %v4961_v60, 5 }
 0xc03   : > { %9007 = vmatmul.msk.bf16.vlgmr.msrb.gmra.mxu2 %vm4717_vm11, %v12895_v56  ;;  %9074 = vmatmul.msk.bf16.vlgmr.msra.gmra.mxu1 %vm4717_vm11, %v12909_v37 }
 0xc04   : > { %v5309_v41 = vpop.f32.mrf.mxu3 }
 0xc06   : > { %v4948_v18 = vpop.f32.mrf.mxu2  ;;  %v5999_v12 = vpop.f32.mrf.mxu0 }
 0xc07   : > { %v4970_v38 = vrot.slane %v4948_v18, 6  ;;  %v6009_v54 = vrot.slane %v5999_v12, 5 }
 0xc08   : > { %v4963_v9 = vpop.f32.mrf.mxu1 }
 0xc09   : > { %v4973_v36 = vsel %vm4794_vm14, %v4970_v38, %v4971_v4  ;;  %v9192_v9 = vld [vmem:[#allocation9 + $0xe0] sm:$0xf] }
 0xc0a   : > { %v4974_v48 = vsel %vm1194_vm10, %v4972_v0, %v4973_v36  ;;  %v9320_v36 = vld [vmem:[#allocation9 + $0x1e0] sm:$0xf] }
 0xc0b   : > { %v4976_v61 = vadd.f32 %v4974_v48, %v4798_v2  ;;  %v10033_v2 = vld [vmem:[#allocation9 + $0xec] sm:$0xf0] }
 0xc0c   : > { %v5467_v56 = vpop.f32.mrf.mxu3  ;;  %v9193_v12 = vor.u32 %v10033_v2, %v9192_v9 }
 0xc0d   : > { %v5489_v25 = vrot.slane %v5467_v56, 6  ;;  %v9448_v56 = vld [vmem:[#allocation9 + $0x2e0] sm:$0xf] }
 0xc0e   : > { %v4950_v45 = vpop.f32.mrf.mxu2  ;;  %v6001_v39 = vpop.f32.mrf.mxu0  ;;  %7156 = vmatpush.bf16.msrb.mxu1 %v9193_v12  ;;  %v10017_v12 = vld [vmem:[#allocation9 + $0x6c] sm:$0xf0] }
 0xc0f   : > { %v5492_v19 = vsel %vm4794_vm14, %v5489_v25, %v5490_v23  ;;  %v10097_v23 = vld [vmem:[#allocation9 + $0x2ec] sm:$0xf0] }
 0xc10   : > { %v5121_v58 = vpop.f32.mrf.mxu1  ;;  %v9449_v39 = vor.u32 %v10097_v23, %v9448_v56 }
 0xc11   : > { %v5143_v34 = vrot.slane %v5121_v58, 6  ;;  %v9576_v58 = vld [vmem:[#allocation9 + $0x3e0] sm:$0xf] }
 0xc12   : > { %7182 = vmatpush.bf16.msrb.mxu3 %v9449_v39  ;;  %v10081_v39 = vld [vmem:[#allocation9 + $0x26c] sm:$0xf0] }
 0xc13   : > { %9075 = vmatmul.msk.bf16.vlgmr.msra.gmra.mxu2 %vm4717_vm11, %v12909_v37 }
 0xc14   : > { %v5469_v59 = vpop.f32.mrf.mxu3 }
 0xc15   : > { %v10129_v59 = vld [vmem:[#allocation9 + $0x3ec] sm:$0xf0] }
 0xc16   : > { %v5095_v47 = vpop.f32.mrf.mxu2  ;;  %v12982_v8 = vpop.f32.mrf.mxu0 }
 0xc17   : > { %v5145_v16 = vsel %vm4792_vm13, %v5095_v47, %v5142_v28  ;;  %v9176_v28 = vld [vmem:[#allocation9 + $0xc0] sm:$0xf]  ;;  %v6181_v47 = vrot.slane %v12982_v8, 5  ;;  %v10125_v8 = vld [vmem:[#allocation9 + $0x3cc] sm:$0xf0] }
 0xc18   : > { %v5123_v26 = vpop.f32.mrf.mxu1 }
 0xc19   : > { %v10029_v26 = vld [vmem:[#allocation9 + $0xcc] sm:$0xf0] }
 0xc1c   : > { %v5640_v46 = vpop.f32.mrf.mxu3 }
 0xc1d   : > { %v5662_v31 = vrot.slane %v5640_v46, 6  ;;  %v9304_v46 = vld [vmem:[#allocation9 + $0x1c0] sm:$0xf] }
 0xc1e   : > { %v5097_v10 = vpop.f32.mrf.mxu2  ;;  %v6173_v24 = vpop.f32.mrf.mxu0 }
 0xc1f   : > { %v12987_v27 = vsel %vm4794_vm14, %v5662_v31, %v5663_v14  ;;  %v9177_v31 = vor.u32 %v10029_v26, %v9176_v28  ;;  %v10061_v10 = vld [vmem:[#allocation9 + $0x1cc] sm:$0xf0]  ;;  %v9432_v24 = vld [vmem:[#allocation9 + $0x2c0] sm:$0xf] }
 0xc20   : > { %v5281_v44 = vpop.f32.mrf.mxu1  ;;  %v9512_v28 = vld [vmem:[#allocation9 + $0x360] sm:$0xf] }
 0xc21   : > { %v5315_v37 = vrot.slane %v5281_v44, 7  ;;  %v10093_v44 = vld [vmem:[#allocation9 + $0x2cc] sm:$0xf0]  ;;  %7157 = vmatpush.bf16.msrb.mxu1 %v9177_v31  ;;  %v9240_v26 = vld [vmem:[#allocation9 + $0x140] sm:$0xf] }
 0xc22   : > { %v9368_v31 = vld [vmem:[#allocation9 + $0x240] sm:$0xf] }
 0xc23   : > { %v5318_v6 = vsel %vm4792_vm13, %v12956_v62, %v5315_v37 }
 0xc24   : > { %v5642_v35 = vpop.f32.mrf.mxu3 }
 0xc25   : > { %v9433_v35 = vor.u32 %v10093_v44, %v9432_v24 }
 0xc26   : > { %v5134_v22 = vpop.f32.mrf.mxu2  ;;  %v12991_v52 = vpop.f32.mrf.mxu0 }
 0xc27   : > { %v5144_v20 = vrot.slane %v5134_v22, 5  ;;  %v9560_v22 = vld [vmem:[#allocation9 + $0x3c0] sm:$0xf]  ;;  %7183 = vmatpush.bf16.msrb.mxu3 %v9433_v35  ;;  %v10109_v35 = vld [vmem:[#allocation9 + $0x34c] sm:$0xf0] }
 0xc28   : > { %v5283_v50 = vpop.f32.mrf.mxu1 }
 0xc29   : > { %v5146_v3 = vsel %vm4794_vm14, %v5143_v34, %v5144_v20  ;;  %v9561_v20 = vor.u32 %v10125_v8, %v9560_v22  ;;  %v9160_v50 = vld [vmem:[#allocation9 + $0xa0] sm:$0xf] }
 0xc2a   : > { %v5147_v51 = vsel %vm1194_vm10, %v5145_v16, %v5146_v3  ;;  %v10025_v3 = vld [vmem:[#allocation9 + $0xac] sm:$0xf0] }
 0xc2b   : > { %v5149_v55 = vadd.f32 %v5147_v51, %v4976_v61  ;;  %v10065_v61 = vld [vmem:[#allocation9 + $0x1ec] sm:$0xf0]  ;;  %v9288_v51 = vld [vmem:[#allocation9 + $0x1a0] sm:$0xf] }
 0xc2c   : > { %v5813_v5 = vpop.f32.mrf.mxu3  ;;  %v9321_v45 = vor.u32 %v10065_v61, %v9320_v36  ;;  %v9128_v36 = vld [vmem:[#allocation9 + $0x60] sm:$0xf] }
 0xc2d   : > { %v5835_v49 = vrot.slane %v5813_v5, 6  ;;  %v10057_v5 = vld [vmem:[#allocation9 + $0x1ac] sm:$0xf0]  ;;  %v9256_v61 = vld [vmem:[#allocation9 + $0x160] sm:$0xf]  ;;  %v9129_v23 = vor.u32 %v10017_v12, %v9128_v36 }
 0xc2e   : > { %v5136_v1 = vpop.f32.mrf.mxu2  ;;  %v6351_v21 = vpop.f32.mrf.mxu0  ;;  %7169 = vmatpush.bf16.msrb.mxu2 %v9321_v45  ;;  %v9384_v45 = vld [vmem:[#allocation9 + $0x260] sm:$0xf]  ;;  %v10063_v36 = vld [vmem:[#allocation9 + $0x1e4] sm:$0xf]  ;;  %v9322_v12 = vld [vmem:[#allocation9 + $0x1f0] sm:$0xf0] }
 0xc2f   : > { %v12997_v62 = vsel %vm4794_vm14, %v5835_v49, %v5836_v57  ;;  %v9416_v57 = vld [vmem:[#allocation9 + $0x2a0] sm:$0xf]  ;;  %v10089_v49 = vld [vmem:[#allocation9 + $0x2ac] sm:$0xf0]  ;;  %v9289_v1 = vor.u32 %v10057_v5, %v9288_v51 }
 0xc30   : > { %v5441_v7 = vpop.f32.mrf.mxu1  ;;  %v9417_v21 = vor.u32 %v10089_v49, %v9416_v57  ;;  %v9352_v5 = vld [vmem:[#allocation9 + $0x220] sm:$0xf]  ;;  %v10073_v57 = vld [vmem:[#allocation9 + $0x22c] sm:$0xf0] }
 0xc32   : > { %7184 = vmatpush.bf16.msrb.mxu3 %v9417_v21  ;;  %v9480_v21 = vld [vmem:[#allocation9 + $0x320] sm:$0xf] }
 0xc34   : > { %v5815_v30 = vpop.f32.mrf.mxu3 }
 0xc35   : > { %v10121_v30 = vld [vmem:[#allocation9 + $0x3ac] sm:$0xf0] }
 0xc36   : > { %v5294_v43 = vpop.f32.mrf.mxu2 }
 0xc37   : > { %v5316_v11 = vrot.slane %v5294_v43, 6  ;;  %v9144_v43 = vld [vmem:[#allocation9 + $0x80] sm:$0xf] }
 0xc38   : > { %v5443_v0 = vpop.f32.mrf.mxu1 }
 0xc39   : > { %v5319_v29 = vsel %vm4794_vm14, %v5316_v11, %v5317_v13  ;;  %v10021_v11 = vld [vmem:[#allocation9 + $0x8c] sm:$0xf0]  ;;  %v9272_v0 = vld [vmem:[#allocation9 + $0x180] sm:$0xf] }
 0xc3a   : > { %v5320_v53 = vsel %vm1194_vm10, %v5318_v6, %v5319_v29  ;;  %v9305_v6 = vor.u32 %v10061_v10, %v9304_v46  ;;  %v10053_v29 = vld [vmem:[#allocation9 + $0x18c] sm:$0xf0] }
 0xc3b   : > { %v5322_v42 = vadd.f32 %v5320_v53, %v5149_v55  ;;  %v9161_v55 = vor.u32 %v10025_v3, %v9160_v50  ;;  %v10077_v10 = vld [vmem:[#allocation9 + $0x24c] sm:$0xf0]  ;;  %v9224_v3 = vld [vmem:[#allocation9 + $0x120] sm:$0xf] }
 0xc3c   : > { %v5986_v17 = vpop.f32.mrf.mxu3  ;;  %7170 = vmatpush.bf16.msrb.mxu2 %v9305_v6  ;;  %v9369_v44 = vor.u32 %v10077_v10, %v9368_v31  ;;  %v9496_v6 = vld [vmem:[#allocation9 + $0x340] sm:$0xf]  ;;  %v10009_v50 = vld [vmem:[#allocation9 + $0x2c] sm:$0xf0]  ;;  %v10123_v10 = vld [vmem:[#allocation9 + $0x3c4] sm:$0xf] }
 0xc3d   : > { %v6008_v15 = vrot.slane %v5986_v17, 6  ;;  %v10085_v17 = vld [vmem:[#allocation9 + $0x28c] sm:$0xf0]  ;;  %7158 = vmatpush.bf16.msrb.mxu1 %v9161_v55  ;;  %v9497_v8 = vor.u32 %v10109_v35, %v9496_v6  ;;  %v9162_v35 = vld [vmem:[#allocation9 + $0xb0] sm:$0xf0] }
 0xc3e   : > { %v5296_v32 = vpop.f32.mrf.mxu2  ;;  %v10041_v55 = vld [vmem:[#allocation9 + $0x12c] sm:$0xf0] }
 0xc3f   : > { %v13003_v33 = vsel %vm4794_vm14, %v6008_v15, %v6009_v54  ;;  %v9528_v54 = vld [vmem:[#allocation9 + $0x380] sm:$0xf]  ;;  %v9145_v15 = vor.u32 %v10021_v11, %v9144_v43  ;;  %v10117_v32 = vld [vmem:[#allocation9 + $0x38c] sm:$0xf0]  ;;  %v9225_v49 = vor.u32 %v10041_v55, %v9224_v3  ;;  %v10087_v3 = vld [vmem:[#allocation9 + $0x2a4] sm:$0xf] }
 0xc40   : > { %v13005_v60 = vpop.f32.mrf.mxu1  ;;  %7171 = vmatpush.bf16.msrb.mxu2 %v9289_v1  ;;  %v9353_v1 = vor.u32 %v10073_v57, %v9352_v5  ;;  %v9208_v11 = vld [vmem:[#allocation9 + $0x100] sm:$0xf] }
 0xc41   : > { %7159 = vmatpush.bf16.msrb.mxu1 %v9145_v15  ;;  %v10101_v15 = vld [vmem:[#allocation9 + $0x30c] sm:$0xf0] }
 0xc44   : > { %v5988_v41 = vpop.f32.mrf.mxu3 }
 0xc45   : > { %7160 = vmatpush.bf16.msrb.mxu1 %v9129_v23 }
 0xc46   : > { %v5454_v40 = vpop.f32.mrf.mxu2 }
 0xc47   : > { %v5488_v18 = vrot.slane %v5454_v40, 7  ;;  %v9273_v40 = vor.u32 %v10053_v29, %v9272_v0  ;;  %v10037_v0 = vld [vmem:[#allocation9 + $0x10c] sm:$0xf0] }
 0xc48   : > { %v5616_v63 = vpop.f32.mrf.mxu1 }
 0xc49   : > { %v5491_v4 = vsel %vm4792_vm13, %v5441_v7, %v5488_v18  ;;  %v9544_v7 = vld [vmem:[#allocation9 + $0x3a0] sm:$0xf]  ;;  %7172 = vmatpush.bf16.msrb.mxu2 %v9273_v40 }
 0xc4a   : > { %v5493_v38 = vsel %vm1194_vm10, %v5491_v4, %v5492_v19  ;;  %v9577_v19 = vor.u32 %v10129_v59, %v9576_v58  ;;  %v9545_v13 = vor.u32 %v10121_v30, %v9544_v7  ;;  %v9529_v4 = vor.u32 %v10117_v32, %v9528_v54  ;;  %v10105_v7 = vld [vmem:[#allocation9 + $0x32c] sm:$0xf0]  ;;  %v9080_v30 = vld [vmem:[#allocation9] sm:$0xf] }
 0xc4b   : > { %v13009_v48 = vadd.f32 %v5493_v38, %v5322_v42  ;;  %v9400_v42 = vld [vmem:[#allocation9 + $0x280] sm:$0xf]  ;;  %v9385_v59 = vor.u32 %v10081_v39, %v9384_v45  ;;  %v9481_v43 = vor.u32 %v10105_v7, %v9480_v21  ;;  %v9450_v45 = vld [vmem:[#allocation9 + $0x2f0] sm:$0xf0]  ;;  %v10127_v39 = vld [vmem:[#allocation9 + $0x3e4] sm:$0xf] }
 0xc4c   : > { %v6158_v25 = vpop.f32.mrf.mxu3  ;;  %7195 = vmatpush.bf16.msrb.mxu0 %v9577_v19  ;;  %v9401_v18 = vor.u32 %v10085_v17, %v9400_v42  ;;  %v10013_v19 = vld [vmem:[#allocation9 + $0x4c] sm:$0xf0]  ;;  %v9464_v17 = vld [vmem:[#allocation9 + $0x300] sm:$0xf]  ;;  %v10019_v21 = vld [vmem:[#allocation9 + $0x84] sm:$0xf] }
 0xc4d   : > { %v6180_v16 = vrot.slane %v6158_v25, 6  ;;  %v10049_v25 = vld [vmem:[#allocation9 + $0x16c] sm:$0xf0] }
 0xc4e   : > { %v5456_v14 = vpop.f32.mrf.mxu2  ;;  %7185 = vmatpush.bf16.msrb.mxu3 %v9401_v18  ;;  %v10069_v42 = vld [vmem:[#allocation9 + $0x20c] sm:$0xf0] }
 0xc4f   : > { %v13013_v37 = vsel %vm4794_vm14, %v6180_v16, %v6181_v47  ;;  %v10113_v47 = vld [vmem:[#allocation9 + $0x36c] sm:$0xf0] }
 0xc50   : > { %v13015_v34 = vpop.f32.mrf.mxu1  ;;  %7196 = vmatpush.bf16.msrb.mxu0 %v9561_v20  ;;  %v9513_v16 = vor.u32 %v10113_v47, %v9512_v28  ;;  %v10045_v14 = vld [vmem:[#allocation9 + $0x14c] sm:$0xf0]  ;;  %v9096_v20 = vld [vmem:[#allocation9 + $0x20] sm:$0xf] }
 0xc51   : > { %v9241_v24 = vor.u32 %v10045_v14, %v9240_v26  ;;  %v9097_v51 = vor.u32 %v10009_v50, %v9096_v20  ;;  %v9434_v14 = vld [vmem:[#allocation9 + $0x2d0] sm:$0xf0] }
 0xc52   : > { %7186 = vmatpush.bf16.msrb.mxu3 %v9385_v59  ;;  %v9290_v50 = vld [vmem:[#allocation9 + $0x1b0] sm:$0xf0] }
 0xc54   : > { %v6160_v53 = vpop.f32.mrf.mxu3  ;;  %7197 = vmatpush.bf16.msrb.mxu0 %v9545_v13  ;;  %v10005_v13 = vld [vmem:[#allocation9 + $0xc] sm:$0xf0] }
 0xc55   : > { %v9336_v53 = vld [vmem:[#allocation9 + $0x200] sm:$0xf]  ;;  %v9081_v54 = vor.u32 %v10005_v13, %v9080_v30  ;;  %v9146_v30 = vld [vmem:[#allocation9 + $0x90] sm:$0xf0] }
 0xc56   : > { %v5627_v41 = vpop.f32.mrf.mxu2  ;;  %7187 = vmatpush.bf16.msrb.mxu3 %v9369_v44  ;;  %v9337_v40 = vor.u32 %v10069_v42, %v9336_v53  ;;  %v9274_v13 = vld [vmem:[#allocation9 + $0x190] sm:$0xf0]  ;;  %v9149_v53 = vor.u32 %v10019_v21, %v9146_v30 }
 0xc57   : > { %v5661_v63 = vrot.slane %v5627_v41, 7  ;;  %v9209_v41 = vor.u32 %v10037_v0, %v9208_v11  ;;  %v10083_v11 = vld [vmem:[#allocation9 + $0x284] sm:$0xf]  ;;  %v9402_v0 = vld [vmem:[#allocation9 + $0x290] sm:$0xf0] }
 0xc58   : > { %v5789_v38 = vpop.f32.mrf.mxu1  ;;  %7198 = vmatpush.bf16.msrb.mxu0 %v9529_v4  ;;  %v10031_v4 = vld [vmem:[#allocation9 + $0xe4] sm:$0xf]  ;;  %v9530_v42 = vld [vmem:[#allocation9 + $0x390] sm:$0xf0] }
 0xc59   : > { %v5664_v9 = vsel %vm4792_vm13, %v13005_v60, %v5661_v63  ;;  %v9257_v60 = vor.u32 %v10049_v25, %v9256_v61  ;;  %v9465_v63 = vor.u32 %v10101_v15, %v9464_v17  ;;  %v9194_v38 = vld [vmem:[#allocation9 + $0xf0] sm:$0xf0]  ;;  %v10095_v61 = vld [vmem:[#allocation9 + $0x2e4] sm:$0xf]  ;;  %v9325_v25 = vor.u32 %v10063_v36, %v9322_v12 }
 0xc5a   : > { %v5666_v2 = vsel %vm1194_vm10, %v5664_v9, %v12987_v27  ;;  %v9112_v27 = vld [vmem:[#allocation9 + $0x40] sm:$0xf]  ;;  %7188 = vmatpush.bf16.msrb.mxu3 %v9353_v1  ;;  %v9453_v28 = vor.u32 %v10095_v61, %v9450_v45  ;;  %v9546_v1 = vld [vmem:[#allocation9 + $0x3b0] sm:$0xf0] }
 0xc5b   : > { %v13022_v56 = vadd.f32 %v5666_v2, %v13009_v48  ;;  %7173 = vmatpush.bf16.msrb.mxu2 %v9257_v60  ;;  %v9113_v48 = vor.u32 %v10013_v19, %v9112_v27  ;;  %v9197_v2 = vor.u32 %v10031_v4, %v9194_v38  ;;  %v9578_v60 = vld [vmem:[#allocation9 + $0x3f0] sm:$0xf0]  ;;  %v10047_v38 = vld [vmem:[#allocation9 + $0x164] sm:$0xf] }
 0xc5c   : > { %v13024_v58 = vpop.f32.mrf.mxu3  ;;  %7199 = vmatpush.bf16.msrb.mxu0 %v9513_v16  ;;  %v9581_v47 = vor.u32 %v10127_v39, %v9578_v60  ;;  %v10027_v16 = vld [vmem:[#allocation9 + $0xc4] sm:$0xf]  ;;  %v9178_v19 = vld [vmem:[#allocation9 + $0xd0] sm:$0xf0] }
 0xc5d   : > { %7161 = vmatpush.bf16.msrb.mxu1 %v9113_v48  ;;  %v9181_v26 = vor.u32 %v10027_v16, %v9178_v19  ;;  %v10091_v48 = vld [vmem:[#allocation9 + $0x2c4] sm:$0xf]  ;;  %v9386_v61 = vld [vmem:[#allocation9 + $0x270] sm:$0xf0] }
 0xc5e   : > { %v5629_v46 = vpop.f32.mrf.mxu2  ;;  %7189 = vmatpush.bf16.msrb.mxu3 %v9337_v40  ;;  %v9437_v31 = vor.u32 %v10091_v48, %v9434_v14  ;;  %v10015_v40 = vld [vmem:[#allocation9 + $0x64] sm:$0xf]  ;;  %v9210_v21 = vld [vmem:[#allocation9 + $0x110] sm:$0xf0] }
 0xc5f   : > { %7174 = vmatpush.bf16.msrb.mxu2 %v9241_v24  ;;  %v9306_v46 = vld [vmem:[#allocation9 + $0x1d0] sm:$0xf0]  ;;  %v10043_v16 = vld [vmem:[#allocation9 + $0x144] sm:$0xf] }
 0xc60   : > { %v13026_v22 = vpop.f32.mrf.mxu1  ;;  %7200 = vmatpush.bf16.msrb.mxu0 %v9497_v8  ;;  %v9562_v24 = vld [vmem:[#allocation9 + $0x3d0] sm:$0xf0]  ;;  %v10055_v8 = vld [vmem:[#allocation9 + $0x1a4] sm:$0xf] }
 0xc61   : > { %7162 = vmatpush.bf16.msrb.mxu1 %v9097_v51  ;;  %v9565_v6 = vor.u32 %v10123_v10, %v9562_v24  ;;  %v9418_v51 = vld [vmem:[#allocation9 + $0x2b0] sm:$0xf0]  ;;  %v9293_v5 = vor.u32 %v10055_v8, %v9290_v50  ;;  %v10107_v14 = vld [vmem:[#allocation9 + $0x344] sm:$0xf] }
 0xc62   : > { %7234 = vmatpush.bf16.msra.mxu3 %v9453_v28  ;;  %v9421_v57 = vor.u32 %v10087_v3, %v9418_v51  ;;  %v10011_v28 = vld [vmem:[#allocation9 + $0x44] sm:$0xf]  ;;  %v9098_v24 = vld [vmem:[#allocation9 + $0x30] sm:$0xf0] }
 0xc63   : > { %7175 = vmatpush.bf16.msrb.mxu2 %v9225_v49  ;;  %v10119_v49 = vld [vmem:[#allocation9 + $0x3a4] sm:$0xf]  ;;  %v9482_v51 = vld [vmem:[#allocation9 + $0x330] sm:$0xf0] }
 0xc64   : > { %v6338_v29 = vpop.f32.mrf.mxu3  ;;  %7201 = vmatpush.bf16.msrb.mxu0 %v9481_v43  ;;  %v9549_v7 = vor.u32 %v10119_v49, %v9546_v1  ;;  %v10051_v43 = vld [vmem:[#allocation9 + $0x184] sm:$0xf]  ;;  %v9082_v49 = vld [vmem:[#allocation9 + $0x10] sm:$0xf0] }
 0xc65   : > { %7163 = vmatpush.bf16.msrb.mxu1 %v9081_v54  ;;  %v10115_v29 = vld [vmem:[#allocation9 + $0x384] sm:$0xf]  ;;  %v9277_v17 = vor.u32 %v10051_v43, %v9274_v13  ;;  %v9405_v54 = vor.u32 %v10083_v11, %v9402_v0  ;;  %v9338_v30 = vld [vmem:[#allocation9 + $0x210] sm:$0xf0] }
 0xc66   : > { %v5800_v32 = vpop.f32.mrf.mxu2  ;;  %7235 = vmatpush.bf16.msra.mxu3 %v9437_v31  ;;  %v9533_v15 = vor.u32 %v10115_v29, %v9530_v42  ;;  %v10007_v10 = vld [vmem:[#allocation9 + $0x24] sm:$0xf]  ;;  %v9466_v11 = vld [vmem:[#allocation9 + $0x310] sm:$0xf0] }
 0xc67   : > { %v5834_v18 = vrot.slane %v5800_v32, 7  ;;  %7176 = vmatpush.bf16.msrb.mxu2 %v9209_v41  ;;  %v10103_v3 = vld [vmem:[#allocation9 + $0x324] sm:$0xf] }
 0xc68   : > { %v5962_v9 = vpop.f32.mrf.mxu1  ;;  %7202 = vmatpush.bf16.msrb.mxu0 %v9465_v63  ;;  %v10035_v1 = vld [vmem:[#allocation9 + $0x104] sm:$0xf] }
 0xc69   : > { %v5837_v23 = vsel %vm4792_vm13, %v13015_v34, %v5834_v18  ;;  %7208 = vmatpush.bf16.msra.mxu1 %v9197_v2  ;;  %v10059_v34 = vld [vmem:[#allocation9 + $0x1c4] sm:$0xf]  ;;  %v9130_v18 = vld [vmem:[#allocation9 + $0x70] sm:$0xf0]  ;;  %v9213_v0 = vor.u32 %v10035_v1, %v9210_v21  ;;  %v10090_v1 = vld [vmem:[#allocation9 + $0x2b4] sm:$0xf0] }
 0xc6a   : > { %v5839_v59 = vsel %vm1194_vm10, %v5837_v23, %v12997_v62  ;;  %v9309_v62 = vor.u32 %v10059_v34, %v9306_v46  ;;  %7236 = vmatpush.bf16.msra.mxu3 %v9421_v57  ;;  %v9133_v4 = vor.u32 %v10015_v40, %v9130_v18  ;;  %v9258_v9 = vld [vmem:[#allocation9 + $0x170] sm:$0xf0]  ;;  %v10079_v2 = vld [vmem:[#allocation9 + $0x264] sm:$0xf]  ;;  %v9485_v57 = vor.u32 %v10103_v3, %v9482_v51  ;;  %v9552_v21 = vld [vmem:[#allocation9 + $0x3a8] sm:$0xf] }
 0xc6b   : > { %v13033_v27 = vadd.f32 %v5839_v59, %v13022_v56  ;;  %7221 = vmatpush.bf16.msra.mxu2 %v9325_v25  ;;  %v10023_v56 = vld [vmem:[#allocation9 + $0xa4] sm:$0xf]  ;;  %v9261_v12 = vor.u32 %v10047_v38, %v9258_v9  ;;  %v9514_v25 = vld [vmem:[#allocation9 + $0x370] sm:$0xf0]  ;;  %v9389_v39 = vor.u32 %v10079_v2, %v9386_v61  ;;  %v6358_v18 = vrot.slane %v13024_v58, 6 }
 0xc6c   : > { %7247 = vmatpush.bf16.msra.mxu0 %v9581_v47  ;;  %v9165_v20 = vor.u32 %v10023_v56, %v9162_v35  ;;  %v10111_v23 = vld [vmem:[#allocation9 + $0x364] sm:$0xf]  ;;  %v9114_v47 = vld [vmem:[#allocation9 + $0x50] sm:$0xf0]  ;;  %v10034_v61 = vld [vmem:[#allocation9 + $0xf4] sm:$0xf0] }
 0xc6d   : > { %7209 = vmatpush.bf16.msra.mxu1 %v9181_v26  ;;  %v9517_v60 = vor.u32 %v10111_v23, %v9514_v25  ;;  %v9117_v19 = vor.u32 %v10011_v28, %v9114_v47  ;;  %v10075_v34 = vld [vmem:[#allocation9 + $0x244] sm:$0xf]  ;;  %v9370_v26 = vld [vmem:[#allocation9 + $0x250] sm:$0xf0]  ;;  %v9328_v25 = vld [vmem:[#allocation9 + $0x1e8] sm:$0xf] }
 0xc6e   : > { %v5802_v44 = vpop.f32.mrf.mxu2  ;;  %7237 = vmatpush.bf16.msra.mxu3 %v9405_v54  ;;  %v9373_v48 = vor.u32 %v10075_v34, %v9370_v26  ;;  %v10071_v56 = vld [vmem:[#allocation9 + $0x224] sm:$0xf]  ;;  %v9354_v35 = vld [vmem:[#allocation9 + $0x230] sm:$0xf0]  ;;  %v9584_v58 = vld [vmem:[#allocation9 + $0x3e8] sm:$0xf] }
 0xc6f   : > { %7222 = vmatpush.bf16.msra.mxu2 %v9309_v62  ;;  %v9498_v62 = vld [vmem:[#allocation9 + $0x350] sm:$0xf0]  ;;  %v9101_v44 = vor.u32 %v10007_v10, %v9098_v24  ;;  %v9357_v50 = vor.u32 %v10071_v56, %v9354_v35  ;;  %v10099_v43 = vld [vmem:[#allocation9 + $0x304] sm:$0xf]  ;;  %v9312_v10 = vld [vmem:[#allocation9 + $0x1c8] sm:$0xf] }
 0xc70   : > { %v13035_v55 = vpop.f32.mrf.mxu1  ;;  %7248 = vmatpush.bf16.msra.mxu0 %v9565_v6  ;;  %v9501_v31 = vor.u32 %v10107_v14, %v9498_v62  ;;  %v9226_v6 = vld [vmem:[#allocation9 + $0x130] sm:$0xf0]  ;;  %v9184_v14 = vld [vmem:[#allocation9 + $0xc8] sm:$0xf]  ;;  %v10030_v62 = vld [vmem:[#allocation9 + $0xd4] sm:$0xf0] }
 0xc71   : > { %7210 = vmatpush.bf16.msra.mxu1 %v9165_v20  ;;  %v10062_v24 = vld [vmem:[#allocation9 + $0x1d4] sm:$0xf0]  ;;  %v9185_v35 = vor.u32 %v10030_v62, %v9184_v14  ;;  %v9104_v14 = vld [vmem:[#allocation9 + $0x28] sm:$0xf] }
 0xc72   : > { %7238 = vmatpush.bf16.msra.mxu3 %v9389_v39  ;;  %v9456_v39 = vld [vmem:[#allocation9 + $0x2e8] sm:$0xf]  ;;  %v10126_v56 = vld [vmem:[#allocation9 + $0x3d4] sm:$0xf0] }
 0xc73   : > { %7223 = vmatpush.bf16.msra.mxu2 %v9293_v5  ;;  %v10003_v5 = vld [vmem:[#allocation9 + $0x4] sm:$0xf]  ;;  %v10010_v62 = vld [vmem:[#allocation9 + $0x34] sm:$0xf0] }
 0xc74   : > { %7249 = vmatpush.bf16.msra.mxu0 %v9549_v7  ;;  %v10067_v7 = vld [vmem:[#allocation9 + $0x204] sm:$0xf]  ;;  %v9085_v13 = vor.u32 %v10003_v5, %v9082_v49  ;;  %v9296_v5 = vld [vmem:[#allocation9 + $0x1a8] sm:$0xf] }
 0xc75   : > { %7211 = vmatpush.bf16.msra.mxu1 %v9149_v53  ;;  %v9341_v29 = vor.u32 %v10067_v7, %v9338_v30  ;;  %v9469_v53 = vor.u32 %v10099_v43, %v9466_v11  ;;  %v9424_v49 = vld [vmem:[#allocation9 + $0x2a8] sm:$0xf]  ;;  %v10122_v7 = vld [vmem:[#allocation9 + $0x3b4] sm:$0xf0] }
 0xc76   : > { %v5973_v32 = vpop.f32.mrf.mxu2  ;;  %7239 = vmatpush.bf16.msra.mxu3 %v9373_v48  ;;  %v10022_v11 = vld [vmem:[#allocation9 + $0x94] sm:$0xf0] }
 0xc77   : > { %v6007_v41 = vrot.slane %v5973_v32, 7  ;;  %7224 = vmatpush.bf16.msra.mxu2 %v9277_v17 }
 0xc78   : > { %v6134_v63 = vpop.f32.mrf.mxu1  ;;  %7250 = vmatpush.bf16.msra.mxu0 %v9533_v15 }
 0xc79   : > { %v6010_v36 = vsel %vm4792_vm13, %v13026_v22, %v6007_v41  ;;  %7212 = vmatpush.bf16.msra.mxu1 %v9133_v4  ;;  %v9242_v22 = vld [vmem:[#allocation9 + $0x150] sm:$0xf0]  ;;  %v6359_v4 = vrot.slane %v12991_v52, 5 }
 0xc7a   : > { %v6012_v45 = vsel %vm1194_vm10, %v6010_v36, %v13003_v33  ;;  %v9245_v46 = vor.u32 %v10043_v16, %v9242_v22  ;;  %7240 = vmatpush.bf16.msra.mxu3 %v9357_v50  ;;  %v10130_v16 = vld [vmem:[#allocation9 + $0x3f4] sm:$0xf0] }
 0xc7b   : > { %v6014_v59 = vadd.f32 %v6012_v45, %v13033_v27  ;;  %7225 = vmatpush.bf16.msra.mxu2 %v9261_v12  ;;  %v10039_v27 = vld [vmem:[#allocation9 + $0x124] sm:$0xf]  ;;  %v6361_v9 = vsel %vm4794_vm14, %v6358_v18, %v6359_v4  ;;  %v10026_v50 = vld [vmem:[#allocation9 + $0xb4] sm:$0xf0]  ;;  %v9136_v18 = vld [vmem:[#allocation9 + $0x68] sm:$0xf] }
 0xc7c   : > { %7251 = vmatpush.bf16.msra.mxu0 %v9517_v60  ;;  %v9229_v20 = vor.u32 %v10039_v27, %v9226_v6  ;;  %v10098_v60 = vld [vmem:[#allocation9 + $0x2f4] sm:$0xf0]  ;;  %v9440_v27 = vld [vmem:[#allocation9 + $0x2c8] sm:$0xf] }
 0xc7d   : > { %7213 = vmatpush.bf16.msra.mxu1 %v9117_v19  ;;  %v9568_v6 = vld [vmem:[#allocation9 + $0x3c8] sm:$0xf] }
 0xc7e   : > { %v5975_v33 = vpop.f32.mrf.mxu2  ;;  %7241 = vmatpush.bf16.msra.mxu3 %v9341_v29  ;;  %v9569_v51 = vor.u32 %v10126_v56, %v9568_v6  ;;  %v9553_v29 = vor.u32 %v10122_v7, %v9552_v21  ;;  %v9488_v6 = vld [vmem:[#allocation9 + $0x328] sm:$0xf]  ;;  %v10106_v56 = vld [vmem:[#allocation9 + $0x334] sm:$0xf0] }
 0xc7f   : > { %7226 = vmatpush.bf16.msra.mxu2 %v9245_v46  ;;  %v9457_v33 = vor.u32 %v10098_v60, %v9456_v39  ;;  %v9472_v21 = vld [vmem:[#allocation9 + $0x308] sm:$0xf]  ;;  %v10102_v7 = vld [vmem:[#allocation9 + $0x314] sm:$0xf0] }
 0xc80   : > { %v6310_v8 = vpop.f32.mrf.mxu1  ;;  %7252 = vmatpush.bf16.msra.mxu0 %v9501_v31  ;;  %v9585_v31 = vor.u32 %v10130_v16, %v9584_v58  ;;  %v9248_v58 = vld [vmem:[#allocation9 + $0x148] sm:$0xf]  ;;  %v10110_v16 = vld [vmem:[#allocation9 + $0x354] sm:$0xf0] }
 0xc81   : > { %7214 = vmatpush.bf16.msra.mxu1 %v9101_v44  ;;  %v10094_v44 = vld [vmem:[#allocation9 + $0x2d4] sm:$0xf0] }
 0xc82   : > { %v9441_v3 = vor.u32 %v10094_v44, %v9440_v27  ;;  %v9360_v27 = vld [vmem:[#allocation9 + $0x228] sm:$0xf]  ;;  %v10074_v44 = vld [vmem:[#allocation9 + $0x234] sm:$0xf0] }
 0xc83   : > { %7227 = vmatpush.bf16.msra.mxu2 %v9229_v20  ;;  %v9168_v20 = vld [vmem:[#allocation9 + $0xa8] sm:$0xf] }
 0xc84   : > { %7253 = vmatpush.bf16.msra.mxu0 %v9485_v57  ;;  %v10058_v57 = vld [vmem:[#allocation9 + $0x1b4] sm:$0xf0]  ;;  %v9169_v30 = vor.u32 %v10026_v50, %v9168_v20 }
 0xc85   : > { %7215 = vmatpush.bf16.msra.mxu1 %v9085_v13  ;;  %v9297_v43 = vor.u32 %v10058_v57, %v9296_v5  ;;  %v9152_v13 = vld [vmem:[#allocation9 + $0x88] sm:$0xf]  ;;  %v10006_v50 = vld [vmem:[#allocation9 + $0x14] sm:$0xf0]  ;;  %v9361_v5 = vor.u32 %v10074_v44, %v9360_v27  ;;  %v9489_v57 = vor.u32 %v10106_v56, %v9488_v6  ;;  %v10084_v27 = vld [vmem:[#allocation9 + $0x28c] sm:$0xf] }
 0xc86   : > { %v6145_v42 = vpop.f32.mrf.mxu2  ;;  %v9410_v44 = vld [vmem:[#allocation9 + $0x298] sm:$0xf0]  ;;  %v10116_v6 = vld [vmem:[#allocation9 + $0x38c] sm:$0xf] }
 0xc87   : > { %v6179_v17 = vrot.slane %v6145_v42, 7  ;;  %7228 = vmatpush.bf16.msra.mxu2 %v9213_v0  ;;  %v9425_v0 = vor.u32 %v10090_v1, %v9424_v49  ;;  %v10054_v42 = vld [vmem:[#allocation9 + $0x194] sm:$0xf0]  ;;  %v9344_v49 = vld [vmem:[#allocation9 + $0x208] sm:$0xf] }
 0xc88   : > { %v6312_v54 = vpop.f32.mrf.mxu1  ;;  %7254 = vmatpush.bf16.msra.mxu0 %v9469_v53  ;;  %v9280_v53 = vld [vmem:[#allocation9 + $0x188] sm:$0xf]  ;;  %v10070_v1 = vld [vmem:[#allocation9 + $0x214] sm:$0xf0]  ;;  %v9538_v56 = vld [vmem:[#allocation9 + $0x398] sm:$0xf0] }
 0xc89   : > { %v6182_v15 = vsel %vm4792_vm13, %v13035_v55, %v6179_v17  ;;  %v9200_v55 = vld [vmem:[#allocation9 + $0xe8] sm:$0xf]  ;;  %v10086_v54 = vld [vmem:[#allocation9 + $0x294] sm:$0xf0] }
 0xc8a   : > { %v6184_v32 = vsel %vm1194_vm10, %v6182_v15, %v13013_v37  ;;  %v10066_v37 = vld [vmem:[#allocation9 + $0x1f4] sm:$0xf0]  ;;  %v9201_v19 = vor.u32 %v10034_v61, %v9200_v55  ;;  %v9408_v17 = vld [vmem:[#allocation9 + $0x288] sm:$0xf] }
 0xc8b   : > { %v6186_v41 = vadd.f32 %v6184_v32, %v6014_v59  ;;  %v9329_v22 = vor.u32 %v10066_v37, %v9328_v25  ;;  %v9536_v15 = vld [vmem:[#allocation9 + $0x388] sm:$0xf]  ;;  %v10118_v32 = vld [vmem:[#allocation9 + $0x394] sm:$0xf0]  ;;  %v9409_v4 = vor.u32 %v10086_v54, %v9408_v17  ;;  %v10128_v17 = vld [vmem:[#allocation9 + $0x3ec] sm:$0xf] }
 0xc8c   : > { %v9520_v55 = vld [vmem:[#allocation9 + $0x368] sm:$0xf]  ;;  %v10114_v61 = vld [vmem:[#allocation9 + $0x374] sm:$0xf0]  ;;  %v9586_v54 = vld [vmem:[#allocation9 + $0x3f8] sm:$0xf0] }
 0xc8d   : > { %v9120_v37 = vld [vmem:[#allocation9 + $0x48] sm:$0xf]  ;;  %v9521_v60 = vor.u32 %v10114_v61, %v9520_v55  ;;  %v10124_v55 = vld [vmem:[#allocation9 + $0x3cc] sm:$0xf]  ;;  %v9570_v61 = vld [vmem:[#allocation9 + $0x3d8] sm:$0xf0] }
 0xc8e   : > { %v6147_v40 = vpop.f32.mrf.mxu2 }
 0xc8f   : > { %v9281_v40 = vor.u32 %v10054_v42, %v9280_v53  ;;  %v9458_v42 = vld [vmem:[#allocation9 + $0x2f8] sm:$0xf0] }
 0xc96   : > { %v6323_v63 = vpop.f32.mrf.mxu2 }
 0xc97   : > { %v6357_v38 = vrot.slane %v6323_v63, 7  ;;  %v10018_v63 = vld [vmem:[#allocation9 + $0x74] sm:$0xf0] }
 0xc99   : > { %v6360_v2 = vsel %vm4792_vm13, %v6310_v8, %v6357_v38  ;;  %v9313_v8 = vor.u32 %v10062_v24, %v9312_v10  ;;  %v9537_v38 = vor.u32 %v10118_v32, %v9536_v15  ;;  %v9232_v10 = vld [vmem:[#allocation9 + $0x128] sm:$0xf]  ;;  %v10042_v24 = vld [vmem:[#allocation9 + $0x134] sm:$0xf0]  ;;  %v9345_v15 = vor.u32 %v10070_v1, %v9344_v49  ;;  %v10080_v49 = vld [vmem:[#allocation9 + $0x26c] sm:$0xf] }
 0xc9a   : > { %v6362_v36 = vsel %vm1194_vm10, %v6360_v2, %v6361_v9  ;;  %v9264_v9 = vld [vmem:[#allocation9 + $0x168] sm:$0xf]  ;;  %v10050_v2 = vld [vmem:[#allocation9 + $0x174] sm:$0xf0]  ;;  %v9233_v20 = vor.u32 %v10042_v24, %v9232_v10  ;;  %v9473_v32 = vor.u32 %v10102_v7, %v9472_v21  ;;  %v10052_v10 = vld [vmem:[#allocation9 + $0x18c] sm:$0xf] }
 0xc9b   : > { %v6364_v12 = vadd.f32 %v6362_v36, %v6186_v41  ;;  %v9153_v41 = vor.u32 %v10022_v11, %v9152_v13  ;;  %v9392_v36 = vld [vmem:[#allocation9 + $0x268] sm:$0xf]  ;;  %v9265_v25 = vor.u32 %v10050_v2, %v9264_v9  ;;  %v10064_v13 = vld [vmem:[#allocation9 + $0x1ec] sm:$0xf]  ;;  %v9330_v11 = vld [vmem:[#allocation9 + $0x1f8] sm:$0xf0] }
 0xc9c   : > { %v10060_v9 = vld [vmem:[#allocation9 + $0x1cc] sm:$0xf]  ;;  %v9314_v2 = vld [vmem:[#allocation9 + $0x1d8] sm:$0xf0]  ;;  %vm7680_vm10 = vcmask 16384  }
 0xc9d   : > { %v6365_v23 = vmax.f32 %v6364_v12, 0.0  ;;  %v10082_v12 = vld [vmem:[#allocation9 + $0x274] sm:$0xf0]  ;;  %v9282_v24 = vld [vmem:[#allocation9 + $0x198] sm:$0xf0] }
 0xc9e   : > { %v6325_v45 = vpop.f32.mrf.mxu2  ;;  %v9393_v39 = vor.u32 %v10082_v12, %v9392_v36  ;;  %v10092_v36 = vld [vmem:[#allocation9 + $0x2cc] sm:$0xf]  ;;  %v9442_v12 = vld [vmem:[#allocation9 + $0x2d8] sm:$0xf0] }
 0xc9f   : > { %v6367_v59 = vperm.slane %v6365_v23, 0  ;;  %v6368_v28 = vperm.slane %v6365_v23, 1  ;;  %v6369_v52 = vperm.slane %v6365_v23, 2  ;;  %v6370_v47 = vperm.slane %v6365_v23, 3  ;;  %v10014_v45 = vld [vmem:[#allocation9 + $0x54] sm:$0xf0] }
 0xca0   : > { %v9137_v23 = vor.u32 %v10018_v63, %v9136_v18  ;;  %v10028_v18 = vld [vmem:[#allocation9 + $0xcc] sm:$0xf]  ;;  %v9186_v63 = vld [vmem:[#allocation9 + $0xd8] sm:$0xf0] }
 0xca1   : > { %v13051_v34 = vpack.c.bf16 %v6367_v59, %v6367_v59  ;;  %v13053_v26 = vpack.c.bf16 %v6368_v28, %v6368_v28  ;;  %v13055_v46 = vpack.c.bf16 %v6369_v52, %v6369_v52  ;;  %v13057_v48 = vpack.c.bf16 %v6370_v47, %v6370_v47  ;;  %v10046_v59 = vld [vmem:[#allocation9 + $0x154] sm:$0xf0]  ;;  %v9376_v28 = vld [vmem:[#allocation9 + $0x248] sm:$0xf]  ;;  %v9394_v1 = vld [vmem:[#allocation9 + $0x278] sm:$0xf0] }
 0xca2   : > { %v10078_v52 = vld [vmem:[#allocation9 + $0x254] sm:$0xf0]  ;;  %v9504_v47 = vld [vmem:[#allocation9 + $0x348] sm:$0xf]  ;;  %v10112_v21 = vld [vmem:[#allocation9 + $0x36c] sm:$0xf] }
 0xca3   : > { %7164 = vmatmul.bf16.vlgmr.msrb.gmra.mxu1 %v13051_v34  ;;  %7177 = vmatmul.bf16.vlgmr.msrb.gmra.mxu2 %v13053_v26  ;;  %v9522_v7 = vld [vmem:[#allocation9 + $0x378] sm:$0xf0] }
 0xca4   : > { %7190 = vmatmul.bf16.vlgmr.msrb.gmra.mxu3 %v13055_v46  ;;  %7203 = vmatmul.bf16.vlgmr.msrb.gmra.mxu0 %v13057_v48 }
 0xca5   : > { %7260 = vmatpush.bf16.msrb.mxu1 %v9201_v19  ;;  %7273 = vmatpush.bf16.msrb.mxu2 %v9329_v22  ;;  %v9121_v19 = vor.u32 %v10014_v45, %v9120_v37  ;;  %v9249_v22 = vor.u32 %v10046_v59, %v9248_v58  ;;  %v10024_v37 = vld [vmem:[#allocation9 + $0xac] sm:$0xf]  ;;  %v9170_v45 = vld [vmem:[#allocation9 + $0xb8] sm:$0xf0] }
 0xca6   : > { %7286 = vmatpush.bf16.msrb.mxu3 %v9457_v33  ;;  %7299 = vmatpush.bf16.msrb.mxu0 %v9585_v31  ;;  %v9377_v33 = vor.u32 %v10078_v52, %v9376_v28  ;;  %v9505_v31 = vor.u32 %v10110_v16, %v9504_v47  ;;  %v10056_v58 = vld [vmem:[#allocation9 + $0x1ac] sm:$0xf]  ;;  %v9298_v59 = vld [vmem:[#allocation9 + $0x1b8] sm:$0xf0] }
 0xca7   : > { %v10088_v28 = vld [vmem:[#allocation9 + $0x2ac] sm:$0xf]  ;;  %v9426_v52 = vld [vmem:[#allocation9 + $0x2b8] sm:$0xf0] }
 0xca8   : > { %v10120_v47 = vld [vmem:[#allocation9 + $0x3ac] sm:$0xf]  ;;  %v9554_v16 = vld [vmem:[#allocation9 + $0x3b8] sm:$0xf0] }
 0xca9   : > { %7261 = vmatpush.bf16.msrb.mxu1 %v9185_v35  ;;  %7274 = vmatpush.bf16.msrb.mxu2 %v9313_v8  ;;  %v9088_v35 = vld [vmem:[#allocation9 + $0x8] sm:$0xf]  ;;  %v9105_v8 = vor.u32 %v10010_v62, %v9104_v14  ;;  %v10020_v14 = vld [vmem:[#allocation9 + $0x8c] sm:$0xf]  ;;  %v9154_v62 = vld [vmem:[#allocation9 + $0x98] sm:$0xf0] }
 0xcaa   : > { %7287 = vmatpush.bf16.msrb.mxu3 %v9441_v3  ;;  %7300 = vmatpush.bf16.msrb.mxu0 %v9569_v51  ;;  %v9216_v3 = vld [vmem:[#allocation9 + $0x108] sm:$0xf]  ;;  %v10038_v51 = vld [vmem:[#allocation9 + $0x114] sm:$0xf0] }
 0xcab   : > { %v9217_v53 = vor.u32 %v10038_v51, %v9216_v3  ;;  %v9413_v3 = vor.u32 %v10084_v27, %v9410_v44  ;;  %v9541_v51 = vor.u32 %v10116_v6, %v9538_v56  ;;  %v10132_v27 = vld [vmem:[%s13240_s25 + $0x8] sm:$0xff]  ;;  %v10131_v6 = vld [vmem:[%s13240_s25] sm:$0xff] }
 0xcac   : > { %v10144_v44 = vld [vmem:[%s13240_s25 + $0x68] sm:$0xff]  ;;  %v10143_v56 = vld [vmem:[%s13240_s25 + $0x60] sm:$0xff] }
 0xcad   : > { %7262 = vmatpush.bf16.msrb.mxu1 %v9169_v30  ;;  %7275 = vmatpush.bf16.msrb.mxu2 %v9297_v43  ;;  %v10032_v30 = vld [vmem:[#allocation9 + $0xec] sm:$0xf]  ;;  %v9202_v43 = vld [vmem:[#allocation9 + $0xf8] sm:$0xf0] }
 0xcae   : > { %7288 = vmatpush.bf16.msrb.mxu3 %v9425_v0  ;;  %7301 = vmatpush.bf16.msrb.mxu0 %v9553_v29  ;;  %v10096_v0 = vld [vmem:[#allocation9 + $0x2ec] sm:$0xf]  ;;  %v9089_v29 = vor.u32 %v10006_v50, %v9088_v35  ;;  %v9157_v35 = vor.u32 %v10020_v14, %v9154_v62  ;;  %v9138_v50 = vld [vmem:[#allocation9 + $0x78] sm:$0xf0] }
 0xcb1   : > { %7263 = vmatpush.bf16.msrb.mxu1 %v9153_v41  ;;  %7276 = vmatpush.bf16.msrb.mxu2 %v9281_v40  ;;  %v9205_v41 = vor.u32 %v10032_v30, %v9202_v43  ;;  %v9333_v40 = vor.u32 %v10064_v13, %v9330_v11  ;;  %v10012_v13 = vld [vmem:[#allocation9 + $0x4c] sm:$0xf]  ;;  %v9122_v11 = vld [vmem:[#allocation9 + $0x58] sm:$0xf0] }
 0xcb2   : > { %7289 = vmatpush.bf16.msrb.mxu3 %v9409_v4  ;;  %7302 = vmatpush.bf16.msrb.mxu0 %v9537_v38  ;;  %v9461_v4 = vor.u32 %v10096_v0, %v9458_v42  ;;  %v9589_v38 = vor.u32 %v10128_v17, %v9586_v54  ;;  %v9397_v0 = vor.u32 %v10080_v49, %v9394_v1  ;;  %v9250_v42 = vld [vmem:[#allocation9 + $0x158] sm:$0xf0]  ;;  %v10076_v17 = vld [vmem:[#allocation9 + $0x24c] sm:$0xf]  ;;  %v10151_v49 = vld [vmem:[%s13240_s25 + $0xa0] sm:$0xff] }
 0xcb3   : > { %7216 = vmatmul.bf16.vlgmr.msra.gmra.mxu1 %v13051_v34  ;;  %7229 = vmatmul.bf16.vlgmr.msra.gmra.mxu2 %v13053_v26  ;;  %v9378_v54 = vld [vmem:[#allocation9 + $0x258] sm:$0xf0] }
 0xcb4   : > { %7242 = vmatmul.bf16.vlgmr.msra.gmra.mxu3 %v13055_v46  ;;  %7255 = vmatmul.bf16.vlgmr.msra.gmra.mxu0 %v13057_v48 }
 0xcb5   : > { %7264 = vmatpush.bf16.msrb.mxu1 %v9137_v23  ;;  %7277 = vmatpush.bf16.msrb.mxu2 %v9265_v25  ;;  %v9189_v23 = vor.u32 %v10028_v18, %v9186_v63  ;;  %v9317_v25 = vor.u32 %v10060_v9, %v9314_v2  ;;  %v10008_v18 = vld [vmem:[#allocation9 + $0x2c] sm:$0xf]  ;;  %v9106_v63 = vld [vmem:[#allocation9 + $0x38] sm:$0xf0] }
 0xcb6   : > { %7290 = vmatpush.bf16.msrb.mxu3 %v9393_v39  ;;  %7303 = vmatpush.bf16.msrb.mxu0 %v9521_v60  ;;  %v9445_v39 = vor.u32 %v10092_v36, %v9442_v12  ;;  %v9573_v60 = vor.u32 %v10124_v55, %v9570_v61  ;;  %v10040_v9 = vld [vmem:[#allocation9 + $0x12c] sm:$0xf]  ;;  %v9234_v2 = vld [vmem:[#allocation9 + $0x138] sm:$0xf0] }
 0xcb7   : > { %v10072_v36 = vld [vmem:[#allocation9 + $0x22c] sm:$0xf]  ;;  %v9362_v12 = vld [vmem:[#allocation9 + $0x238] sm:$0xf0] }
 0xcb8   : > { %v10104_v55 = vld [vmem:[#allocation9 + $0x32c] sm:$0xf]  ;;  %v9490_v61 = vld [vmem:[#allocation9 + $0x338] sm:$0xf0] }
 0xcb9   : > { %7265 = vmatpush.bf16.msrb.mxu1 %v9121_v19  ;;  %7278 = vmatpush.bf16.msrb.mxu2 %v9249_v22  ;;  %v9173_v19 = vor.u32 %v10024_v37, %v9170_v45  ;;  %v9301_v22 = vor.u32 %v10056_v58, %v9298_v59  ;;  %v10004_v37 = vld [vmem:[#allocation9 + $0xc] sm:$0xf]  ;;  %v9090_v45 = vld [vmem:[#allocation9 + $0x18] sm:$0xf0] }
 0xcba   : > { %7291 = vmatpush.bf16.msrb.mxu3 %v9377_v33  ;;  %7304 = vmatpush.bf16.msrb.mxu0 %v9505_v31  ;;  %v9429_v33 = vor.u32 %v10088_v28, %v9426_v52  ;;  %v9557_v31 = vor.u32 %v10120_v47, %v9554_v16  ;;  %v10036_v58 = vld [vmem:[#allocation9 + $0x10c] sm:$0xf]  ;;  %v9218_v59 = vld [vmem:[#allocation9 + $0x118] sm:$0xf0] }
 0xcbb   : > { %v10068_v28 = vld [vmem:[#allocation9 + $0x20c] sm:$0xf]  ;;  %v9346_v52 = vld [vmem:[#allocation9 + $0x218] sm:$0xf0] }
 0xcbc   : > { %v10100_v47 = vld [vmem:[#allocation9 + $0x30c] sm:$0xf]  ;;  %v9474_v16 = vld [vmem:[#allocation9 + $0x318] sm:$0xf0]  ;;  %v9349_v14 = vor.u32 %v10068_v28, %v9346_v52 }
 0xcbd   : > { %7266 = vmatpush.bf16.msrb.mxu1 %v9105_v8  ;;  %7279 = vmatpush.bf16.msrb.mxu2 %v9233_v20  ;;  %v9285_v8 = vor.u32 %v10052_v10, %v9282_v24  ;;  %v10016_v20 = vld [vmem:[#allocation9 + $0x6c] sm:$0xf]  ;;  %v9477_v62 = vor.u32 %v10100_v47, %v9474_v16  ;;  %v10135_v24 = vld [vmem:[%s13240_s25 + $0x20] sm:$0xff]  ;;  %v10158_v16 = vld [vmem:[%s13240_s25 + $0xd8] sm:$0xff] }
 0xcbe   : > { %7292 = vmatpush.bf16.msrb.mxu3 %v9361_v5  ;;  %7305 = vmatpush.bf16.msrb.mxu0 %v9489_v57  ;;  %v10048_v5 = vld [vmem:[#allocation9 + $0x16c] sm:$0xf]  ;;  %v9266_v57 = vld [vmem:[#allocation9 + $0x178] sm:$0xf0]  ;;  %v9141_v30 = vor.u32 %v10016_v20, %v9138_v50  ;;  %v10141_v20 = vld [vmem:[%s13240_s25 + $0x50] sm:$0xff] }
 0xcbf   : > { %v9269_v43 = vor.u32 %v10048_v5, %v9266_v57  ;;  %v10136_v10 = vld [vmem:[%s13240_s25 + $0x28] sm:$0xff]  ;;  %v10153_v50 = vld [vmem:[%s13240_s25 + $0xb0] sm:$0xff]  ;;  %v13132_v5 = vld [vmem:[%s13239_s24] sm:$0xf] }
 0xcc0   : > { %v10139_v57 = vld [vmem:[%s13240_s25 + $0x40] sm:$0xff] }
 0xcc1   : > { %7267 = vmatpush.bf16.msrb.mxu1 %v9089_v29  ;;  %7280 = vmatpush.bf16.msrb.mxu2 %v9217_v53  ;;  %v9525_v29 = vor.u32 %v10112_v21, %v9522_v7  ;;  %v10044_v53 = vld [vmem:[#allocation9 + $0x14c] sm:$0xf]  ;;  %v7148_v21 = vperm.slane %v13132_v5, 0 }
 0xcc2   : > { %7293 = vmatpush.bf16.msrb.mxu3 %v9345_v15  ;;  %7306 = vmatpush.bf16.msrb.mxu0 %v9473_v32  ;;  %v10108_v15 = vld [vmem:[#allocation9 + $0x34c] sm:$0xf]  ;;  %v9506_v32 = vld [vmem:[#allocation9 + $0x358] sm:$0xf0] }
 0xcc4   : > { %7268 = vmatmul.bf16.vlgmr.msrb.gmra.mxu1 %v13051_v34  ;;  %7281 = vmatmul.bf16.vlgmr.msrb.gmra.mxu2 %v13053_v26 }
 0xcc5   : > { %7312 = vmatpush.bf16.msra.mxu1 %v9205_v41  ;;  %7325 = vmatpush.bf16.msra.mxu2 %v9333_v40  ;;  %v9125_v41 = vor.u32 %v10012_v13, %v9122_v11  ;;  %v9253_v40 = vor.u32 %v10044_v53, %v9250_v42  ;;  %v10149_v53 = vld [vmem:[%s13240_s25 + $0x90] sm:$0xff] }
 0xcc6   : > { %7338 = vmatpush.bf16.msra.mxu3 %v9461_v4  ;;  %7351 = vmatpush.bf16.msra.mxu0 %v9589_v38  ;;  %v9381_v4 = vor.u32 %v10076_v17, %v9378_v54  ;;  %v9509_v38 = vor.u32 %v10108_v15, %v9506_v32  ;;  %v10148_v15 = vld [vmem:[%s13240_s25 + $0x88] sm:$0xff] }
 0xcc7   : > { %7294 = vmatmul.bf16.vlgmr.msrb.gmra.mxu3 %v13055_v46  ;;  %7307 = vmatmul.bf16.vlgmr.msrb.gmra.mxu0 %v13057_v48 }
 0xcc9   : > { %7313 = vmatpush.bf16.msra.mxu1 %v9189_v23  ;;  %7326 = vmatpush.bf16.msra.mxu2 %v9317_v25  ;;  %v9109_v23 = vor.u32 %v10008_v18, %v9106_v63  ;;  %v9237_v25 = vor.u32 %v10040_v9, %v9234_v2  ;;  %v7149_v9 = vperm.slane %v13132_v5, 1 }
 0xcca   : > { %7339 = vmatpush.bf16.msra.mxu3 %v9445_v39  ;;  %7352 = vmatpush.bf16.msra.mxu0 %v9573_v60  ;;  %v9365_v39 = vor.u32 %v10072_v36, %v9362_v12  ;;  %v9493_v60 = vor.u32 %v10104_v55, %v9490_v61  ;;  %v10161_v36 = vld [vmem:[%s13240_s25 + $0xf0] sm:$0xff]  ;;  %v10160_v61 = vld [vmem:[%s13240_s25 + $0xe8] sm:$0xff] }
 0xccd   : > { %7314 = vmatpush.bf16.msra.mxu1 %v9173_v19  ;;  %7327 = vmatpush.bf16.msra.mxu2 %v9301_v22  ;;  %v9093_v19 = vor.u32 %v10004_v37, %v9090_v45  ;;  %v9221_v22 = vor.u32 %v10036_v58, %v9218_v59 }
 0xcce   : > { %7340 = vmatpush.bf16.msra.mxu3 %v9429_v33  ;;  %7353 = vmatpush.bf16.msra.mxu0 %v9557_v31  ;;  %v10138_v33 = vld [vmem:[%s13240_s25 + $0x38] sm:$0xff]  ;;  %v10137_v31 = vld [vmem:[%s13240_s25 + $0x30] sm:$0xff] }
 0xcd1   : > { %7315 = vmatpush.bf16.msra.mxu1 %v9157_v35  ;;  %7328 = vmatpush.bf16.msra.mxu2 %v9285_v8  ;;  %v10154_v35 = vld [vmem:[%s13240_s25 + $0xb8] sm:$0xff] }
 0xcd2   : > { %7341 = vmatpush.bf16.msra.mxu3 %v9413_v3  ;;  %7354 = vmatpush.bf16.msra.mxu0 %v9541_v51  ;;  %v10142_v8 = vld [vmem:[%s13240_s25 + $0x58] sm:$0xff]  ;;  %v10140_v3 = vld [vmem:[%s13240_s25 + $0x48] sm:$0xff] }
 0xcd3   : > { %v10152_v51 = vld [vmem:[%s13240_s25 + $0xa8] sm:$0xff] }
 0xcd5   : > { %7316 = vmatpush.bf16.msra.mxu1 %v9141_v30  ;;  %7329 = vmatpush.bf16.msra.mxu2 %v9269_v43  ;;  %v10150_v30 = vld [vmem:[%s13240_s25 + $0x98] sm:$0xff] }
 0xcd6   : > { %7342 = vmatpush.bf16.msra.mxu3 %v9397_v0  ;;  %7355 = vmatpush.bf16.msra.mxu0 %v9525_v29 }
 0xcd9   : > { %7317 = vmatpush.bf16.msra.mxu1 %v9125_v41  ;;  %7330 = vmatpush.bf16.msra.mxu2 %v9253_v40 }
 0xcda   : > { %7343 = vmatpush.bf16.msra.mxu3 %v9381_v4  ;;  %7356 = vmatpush.bf16.msra.mxu0 %v9509_v38  ;;  %v10147_v4 = vld [vmem:[%s13240_s25 + $0x80] sm:$0xff]  ;;  %v10162_v38 = vld [vmem:[%s13240_s25 + $0xf8] sm:$0xff] }
 0xcdd   : > { %7318 = vmatpush.bf16.msra.mxu1 %v9109_v23  ;;  %7331 = vmatpush.bf16.msra.mxu2 %v9237_v25 }
 0xcde   : > { %7344 = vmatpush.bf16.msra.mxu3 %v9365_v39  ;;  %7357 = vmatpush.bf16.msra.mxu0 %v9493_v60  ;;  %v10159_v60 = vld [vmem:[%s13240_s25 + $0xe0] sm:$0xff] }
 0xce1   : > { %7319 = vmatpush.bf16.msra.mxu1 %v9093_v19  ;;  %7332 = vmatpush.bf16.msra.mxu2 %v9221_v22  ;;  %v7150_v22 = vperm.slane %v13132_v5, 2 }
 0xce2   : > { %7345 = vmatpush.bf16.msra.mxu3 %v9349_v14  ;;  %7358 = vmatpush.bf16.msra.mxu0 %v9477_v62  ;;  %v10157_v62 = vld [vmem:[%s13240_s25 + $0xd0] sm:$0xff] }
 0xce4   : > { %7320 = vmatmul.bf16.vlgmr.msra.gmra.mxu1 %v13051_v34  ;;  %7333 = vmatmul.bf16.vlgmr.msra.gmra.mxu2 %v13053_v26  ;;  %v10134_v34 = vld [vmem:[%s13240_s25 + $0x18] sm:$0xff] }
 0xce5   : > { %7628 = vmatpush.bf16.msrb.mxu1 %v10138_v33  ;;  %7346 = vmatmul.bf16.vlgmr.msra.gmra.mxu3 %v13055_v46  ;;  %v10146_v26 = vld [vmem:[%s13240_s25 + $0x78] sm:$0xff]  ;;  %v10133_v46 = vld [vmem:[%s13240_s25 + $0x10] sm:$0xff] }
 0xce6   : > { %7359 = vmatmul.bf16.vlgmr.msra.gmra.mxu0 %v13057_v48  ;;  %7641 = vmatpush.bf16.msrb.mxu2 %v10146_v26  ;;  %v10145_v48 = vld [vmem:[%s13240_s25 + $0x70] sm:$0xff] }
 0xce7   : > { %7654 = vmatpush.bf16.msrb.mxu3 %v10154_v35  ;;  %7667 = vmatpush.bf16.msrb.mxu0 %v10162_v38 }
 0xce9   : > { %7629 = vmatpush.bf16.msrb.mxu1 %v10137_v31 }
 0xcea   : > { %7642 = vmatpush.bf16.msrb.mxu2 %v10145_v48 }
 0xceb   : > { %7655 = vmatpush.bf16.msrb.mxu3 %v10153_v50  ;;  %7668 = vmatpush.bf16.msrb.mxu0 %v10161_v36  ;;  %v7151_v50 = vperm.slane %v13132_v5, 3 }
 0xced   : > { %7630 = vmatpush.bf16.msrb.mxu1 %v10136_v10  ;;  %v10156_v10 = vld [vmem:[%s13240_s25 + $0xc8] sm:$0xff] }
 0xcee   : > { %7643 = vmatpush.bf16.msrb.mxu2 %v10144_v44 }
 0xcef   : > { %7656 = vmatpush.bf16.msrb.mxu3 %v10152_v51  ;;  %7669 = vmatpush.bf16.msrb.mxu0 %v10160_v61 }
 0xcf1   : > { %7631 = vmatpush.bf16.msrb.mxu1 %v10135_v24 }
 0xcf2   : > { %7644 = vmatpush.bf16.msrb.mxu2 %v10143_v56 }
 0xcf3   : > { %7657 = vmatpush.bf16.msrb.mxu3 %v10151_v49  ;;  %7670 = vmatpush.bf16.msrb.mxu0 %v10159_v60 }
 0xcf5   : > { %7632 = vmatpush.bf16.msrb.mxu1 %v10134_v34 }
 0xcf6   : > { %7645 = vmatpush.bf16.msrb.mxu2 %v10142_v8 }
 0xcf7   : > { %7658 = vmatpush.bf16.msrb.mxu3 %v10150_v30  ;;  %7671 = vmatpush.bf16.msrb.mxu0 %v10158_v16 }
 0xcf9   : > { %7633 = vmatpush.bf16.msrb.mxu1 %v10133_v46 }
 0xcfa   : > { %7646 = vmatpush.bf16.msrb.mxu2 %v10141_v20 }
 0xcfb   : > { %7659 = vmatpush.bf16.msrb.mxu3 %v10149_v53  ;;  %7672 = vmatpush.bf16.msrb.mxu0 %v10157_v62 }
 0xcfd   : > { %7634 = vmatpush.bf16.msrb.mxu1 %v10132_v27  ;;  %v10155_v27 = vld [vmem:[%s13240_s25 + $0xc0] sm:$0xff] }
 0xcfe   : > { %7647 = vmatpush.bf16.msrb.mxu2 %v10140_v3 }
 0xcff   : > { %7660 = vmatpush.bf16.msrb.mxu3 %v10148_v15  ;;  %7673 = vmatpush.bf16.msrb.mxu0 %v10156_v10 }
 0xd01   : > { %7635 = vmatpush.bf16.msrb.mxu1 %v10131_v6 }
 0xd02   : > { %7648 = vmatpush.bf16.msrb.mxu2 %v10139_v57 }
 0xd03   : > { %7661 = vmatpush.bf16.msrb.mxu3 %v10147_v4  ;;  %7674 = vmatpush.bf16.msrb.mxu0 %v10155_v27 }
 0xd20   : > { %v7165_v1 = vpop.f32.mrf.mxu1 }
 0xd21   : > { %v7204_v7 = vpop.f32.mrf.mxu0  ;;  %v7166_v43 = vadd.f32 %v7165_v1, %v7148_v21 }
 0xd26   : > { %v7178_v13 = vpop.f32.mrf.mxu2 }
 0xd27   : > { %v7179_v11 = vadd.f32 %v7178_v13, %v7166_v43  ;;  %v7191_v0 = vpop.f32.mrf.mxu3 }
 0xd28   : > { %v7167_v29 = vpop.f32.mrf.mxu1 }
 0xd29   : > { %v7192_v42 = vadd.f32 %v7191_v0, %v7179_v11  ;;  %v7206_v17 = vpop.f32.mrf.mxu0 }
 0xd2b   : > { %v7205_v54 = vadd.f32 %v7204_v7, %v7192_v42 }
 0xd2d   : > { %v7364_v32 = vmax.f32 %v7205_v54, 0.0 }
 0xd2e   : > { %v7180_v41 = vpop.f32.mrf.mxu2 }
 0xd2f   : > { %v7368_v40 = vpack.c.bf16 %v7364_v32, %v7364_v32  ;;  %v7193_v18 = vpop.f32.mrf.mxu3  ;;  %v1095_v32 = vld [vmem:[%s13328_s26] sm:$0x1]  ;;  %s10452_s26 = scalar_lea.hbm %s10451_s5, 1 }
 0xd30   : > { %v7217_v63 = vpop.f32.mrf.mxu1  ;;  %p10453_p0 = scmp.ne.s32.totalorder %s10451_s5, %s10452_s26  ;;  %p10458_p4 = scmp.lt.s32.totalorder %s10456_s0, %s10452_s26 }
 0xd31   : > { %v7256_v2 = vpop.f32.mrf.mxu0  ;;  %7636 = vmatmul.bf16.vlgmr.msrb.gmra.mxu1 %v7368_v40  ;;  %v7218_v12 = vadd.f32 %v7217_v63, %v7149_v9 }
 0xd32   : > { %p10454_p1 = pnand %p10453_p0, %p10698_p5  ;;  %p10459_p7 = por %p10458_p4, %p10457_p3 }
 0xd34   : > { %p10455_p2 = pneg %p10454_p1 }
 0xd36   : > { %v7230_v55 = vpop.f32.mrf.mxu2  ;;  %p10460_p8 = pnand %p10459_p7, %p10455_p2 }
 0xd37   : > { %v7231_v23 = vadd.f32 %v7230_v55, %v7218_v12  ;;  %v7243_v25 = vpop.f32.mrf.mxu3 }
 0xd38   : > { %v7219_v37 = vpop.f32.mrf.mxu1 }
 0xd39   : > { %v7244_v45 = vadd.f32 %v7243_v25, %v7231_v23  ;;  %v7258_v39 = vpop.f32.mrf.mxu0 }
 0xd3b   : > { %v7257_v58 = vadd.f32 %v7256_v2, %v7244_v45 }
 0xd3d   : > { %v7365_v59 = vmax.f32 %v7257_v58, 0.0 }
 0xd3e   : > { %v7232_v28 = vpop.f32.mrf.mxu2 }
 0xd3f   : > { %v7369_v52 = vpack.c.bf16 %v7365_v59, %v7365_v59  ;;  %v7245_v47 = vpop.f32.mrf.mxu3 }
 0xd41   : > { %7649 = vmatmul.bf16.vlgmr.msrb.gmra.mxu2 %v7369_v52  ;;  %v7269_v19 = vpop.f32.mrf.mxu1 }
 0xd42   : > { %v7270_v33 = vadd.f32 %v7269_v19, %v7150_v22 }
 0xd44   : > { %v7308_v14 = vpop.f32.mrf.mxu0 }
 0xd47   : > { %v7282_v31 = vpop.f32.mrf.mxu2 }
 0xd48   : > { %v7283_v24 = vadd.f32 %v7282_v31, %v7270_v33 }
 0xd49   : > { %v7271_v26 = vpop.f32.mrf.mxu1 }
 0xd4a   : > { %v7295_v34 = vpop.f32.mrf.mxu3 }
 0xd4b   : > { %v7296_v46 = vadd.f32 %v7295_v34, %v7283_v24 }
 0xd4c   : > { %v7310_v48 = vpop.f32.mrf.mxu0 }
 0xd4d   : > { %v7309_v44 = vadd.f32 %v7308_v14, %v7296_v46 }
 0xd4f   : > { %v7366_v6 = vmax.f32 %v7309_v44, 0.0  ;;  %v7284_v56 = vpop.f32.mrf.mxu2 }
 0xd51   : > { %v7370_v35 = vpack.c.bf16 %v7366_v6, %v7366_v6 }
 0xd52   : > { %v7297_v8 = vpop.f32.mrf.mxu3 }
 0xd53   : > { %7662 = vmatmul.bf16.vlgmr.msrb.gmra.mxu3 %v7370_v35 }
 0xd61   : > { %v7321_v20 = vpop.f32.mrf.mxu1 }
 0xd62   : > { %v7322_v51 = vadd.f32 %v7321_v20, %v7151_v50 }
 0xd63   : > { %v7360_v3 = vpop.f32.mrf.mxu0 }
 0xd67   : > { %v7334_v57 = vpop.f32.mrf.mxu2 }
 0xd68   : > { %v7335_v49 = vadd.f32 %v7334_v57, %v7322_v51  ;;  %v7347_v1 = vpop.f32.mrf.mxu3 }
 0xd69   : > { %v7323_v21 = vpop.f32.mrf.mxu1 }
 0xd6a   : > { %v7348_v7 = vadd.f32 %v7347_v1, %v7335_v49 }
 0xd6b   : > { %v7362_v30 = vpop.f32.mrf.mxu0 }
 0xd6c   : > { %v7361_v43 = vadd.f32 %v7360_v3, %v7348_v7 }
 0xd6e   : > { %v7367_v13 = vmax.f32 %v7361_v43, 0.0 }
 0xd6f   : > { %v7336_v11 = vpop.f32.mrf.mxu2 }
 0xd70   : > { %v7371_v0 = vpack.c.bf16 %v7367_v13, %v7367_v13  ;;  %v7349_v29 = vpop.f32.mrf.mxu3 }
 0xd72   : > { %7675 = vmatmul.bf16.vlgmr.msrb.gmra.mxu0 %v7371_v0 }
 0xdae   : > { %v7637_v53 = vpop.f32.mrf.mxu1 }
 0xdaf   : > { %v7638_v41 = vadd.f32 %v7637_v53, %v1095_v32 }
 0xdb6   : > { %v7639_v42 = vpop.f32.mrf.mxu1 }
 0xdc4   : > { %v7650_v17 = vpop.f32.mrf.mxu2 }
 0xdc5   : > { %v7651_v40 = vadd.f32 %v7650_v17, %v7638_v41 }
 0xdcc   : > { %v7652_v5 = vpop.f32.mrf.mxu2 }
 0xdd6   : > { %v7663_v54 = vpop.f32.mrf.mxu3 }
 0xdd7   : > { %v7664_v18 = vadd.f32 %v7663_v54, %v7651_v40 }
 0xdde   : > { %v7665_v15 = vpop.f32.mrf.mxu3 }
 0xdef   : > { %v7676_v63 = vpop.f32.mrf.mxu0 }
 0xdf0   : > { %v7677_v4 = vadd.f32 %v7676_v63, %v7664_v18 }
 0xdf2   : > { %7681 = vst.msk [vmem:[%s844_s30] sm:$0x1] %vm7680_vm10, %v7677_v4 }
 0xdf3   : > { %10463 = shalt.err (!%p10460_p8)
}
 0xdf4   : > { %10171 = dma.vmem_to_hbm [thread:$0]  (%p10698_p5), %s7694_s8, 16, %s7696_s1, %s7683_s10  }
 0xdf7   : > { %v7678_v38 = vpop.f32.mrf.mxu0 }
 0xdf8 PF: > { %s13332_s3 = sld [smem:[#allocation17_spill]] }
 0xdf9   : > { %s13333_s30 = sld [smem:[#allocation15_spill]] }
 0xdfe   : > { %p10188_p9 = scmp.ge.s32.totalorder %s13332_s3, 2 }
 0xdff   : > { %s7707_s12 = sand.u32 1, %s13333_s30  }
 0xe00   : > { %p10181_p10 = pnand %p10188_p9, %p10702_p6  ;;  %s7708_s9 = scalar_lea.sflag [#allocation8], %s7707_s12 }
 0xe02   : > { %p10182_p11 = pneg %p10181_p10 }
 0xe04   : > { %10489 = dma.done.wait (%p10182_p11), %s7708_s9, 16  }
 0xe05   : > { %10491 = vsyncadd (%p10182_p11), %s7708_s9, 4294967280  ;;  %s13335_s30 = sld [smem:[#allocation18_spill]]  ;;  %s13338_s7 = smov %s10498_s4 }
 0xe06   : > { %s13336_s5 = sld [smem:[#allocation16_spill]] }
 0xe07   : > { %s13337_s8 = sld [smem:[#allocation19_spill]] }
 0xe0b   : > { %p39_p12 = scmp.ge.s32.totalorder %s13335_s30, 4  }
 0xe0c   : > { %s13339_s4 = smov %s13336_s5 }
 0xe0d   :  { %41 = sbr.rel (!%p39_p12) target bundleno = 23 (0x17), region = 192 }
 0xe12   :  { %7713 = vsyncpa [#allocation7], 1 }
 0xe13   :  { %7715 = vsyncpa [#allocation7 + $0x1], 1 }
 0xe14   :  { %7716 = vsyncpa [#allocation10], 1 }
 0xe15   :  { %7717 = vsyncpa [#allocation8], 1 }
 0xe16   :  { %7719 = vsyncpa [#allocation8 + $0x1], 1 }

</bundles_post_ra>
